<compile_context>
chip_gen: v7x
topology: tpu7x:2x2x1
jax: 0.10.0
libtpu: 0.0.40
codegen_flags: <defaults>
</compile_context>

<pallas_src>
import functools

import jax
import jax.numpy as jnp
from jax.experimental import pallas as pl
from jax.experimental.pallas import tpu as pltpu

_VMEM_LIMIT = 64 * 1024 * 1024


def _round_up(x, m):
    return ((x + m - 1) // m) * m


def _largest_divisor_leq(n, cap):
    for d in range(min(n, cap), 0, -1):
        if n % d == 0:
            return d
    return 1


def _rowcol_f(idx, wp):
    """Row / column (f32) of flattened padded-image indices.

    Uses an exact float reconstruction instead of vector integer div/mod; the
    +0.5 margin keeps floor() exact for any realistic image size, and floor
    semantics make negative indices map to row <= -1 (always invalid).
    """
    pf = idx.astype(jnp.float32)
    rowf = jnp.floor((pf + 0.5) * (1.0 / wp))
    colf = pf - rowf * wp
    return rowf, colf


# ---------------------------------------------------------------------------
# Pallas kernels
# ---------------------------------------------------------------------------
def _linear_bias_kernel(a_ref, w_ref, b_ref, o_ref):
    o_ref[...] = (
        jnp.dot(a_ref[...], w_ref[...], preferred_element_type=jnp.float32)
        + b_ref[...]
    ).astype(o_ref.dtype)


def _conv3x3_stats_kernel(x_ref, w_ref, sc_ref, sh_ref, h_ref, st_ref, *,
                          tile, wp, h_img, w_img, fuse_input_bn, merge_taps):
    """3x3 conv (row-shifted MXU matmuls) + fused BN partial statistics.

    x_ref : (1, TOT, Cin)     bf16  guarded flattened padded image (one batch)
    w_ref : (3, 3*Cin, Cout)  bf16  per-ky tap-merged conv weights
    sc_ref: (1, Cin)          f32   previous conv's BN scale (if fuse_input_bn)
    sh_ref: (1, Cin)          f32   previous conv's BN shift (if fuse_input_bn)
    h_ref : (1, tile, Cout)   bf16  conv output tile (pre-BN)
    st_ref: (1, 1, 8, Cout)   f32   rows 0/1/2 = sum / centered-M2 / count
    """
    r = pl.program_id(1)
    n_r = pl.num_programs(1)
    cout = h_ref.shape[-1]
    cin = w_ref.shape[1] // 3
    is_guard = jnp.logical_or(r == 0, r == n_r - 1)

    @pl.when(is_guard)
    def _():
        # Zero-fill guard row-blocks so downstream halo loads never read
        # uninitialized HBM.
        h_ref[...] = jnp.zeros(h_ref.shape, h_ref.dtype)
        st_ref[...] = jnp.zeros(st_ref.shape, st_ref.dtype)

    @pl.when(jnp.logical_not(is_guard))
    def _():
        base = r * tile                    # guarded flat row of first output

        acc = jnp.zeros((tile, cout), jnp.float32)
        for ky in range(3):
            # One 8-aligned dynamic window load per kernel row; +/-1 column
            # taps are static sublane shifts of the loaded window.
            start = pl.multiple_of(base + (ky - 1) * wp - 8, 8)
            win = x_ref[0, pl.ds(start, tile + 16), :]
            if fuse_input_bn:
                # Previous conv's BatchNorm + ReLU fused into this conv's
                # load path (zero at pad ring / guard positions).
                j = jax.lax.broadcasted_iota(jnp.int32, (tile + 16, 1), 0)
                p_in = (r - 1) * tile + (ky - 1) * wp - 8 + j
                row_i, col_i = _rowcol_f(p_in, wp)
                valid_in = ((row_i >= 1.0) & (row_i <= float(h_img))
                            & (col_i >= 1.0) & (col_i <= float(w_img)))
                yw = jnp.maximum(
                    win.astype(jnp.float32) * sc_ref[...] + sh_ref[...], 0.0)
                win = jnp.where(valid_in, yw, 0.0).astype(x_ref.dtype)
            if merge_taps:
                # Merge the 3 kx taps along K: one K=3*Cin MXU matmul per ky.
                tap = jnp.concatenate(
                    [win[7:7 + tile, :], win[8:8 + tile, :], win[9:9 + tile, :]],
                    axis=-1)
                acc = acc + jnp.dot(tap, w_ref[ky],
                                    preferred_element_type=jnp.float32)
            else:
                for kx in range(3):
                    tap = win[7 + kx:7 + kx + tile, :]
                    acc = acc + jnp.dot(
                        tap, w_ref[ky, kx * cin:(kx + 1) * cin, :],
                        preferred_element_type=jnp.float32)

        # Validity of output rows (inside the un-padded image), from iota.
        i = jax.lax.broadcasted_iota(jnp.int32, (tile, 1), 0)
        row_o, col_o = _rowcol_f((r - 1) * tile + i, wp)
        valid = ((row_o >= 1.0) & (row_o <= float(h_img))
                 & (col_o >= 1.0) & (col_o <= float(w_img)))

        acc_m = jnp.where(valid, acc, 0.0)
        h_ref[0, :, :] = acc_m.astype(h_ref.dtype)

        # Stable BN partials: row0 = sum, row1 = sum((x - tile_mean)^2),
        # row2 = valid count.  Assembled in registers, one unmasked store.
        cnt = jnp.sum(valid.astype(jnp.float32), keepdims=True)       # (1,1)
        s = jnp.sum(acc_m, axis=0, keepdims=True)                     # (1,C)
        mean_t = s / jnp.maximum(cnt, 1.0)
        diff = jnp.where(valid, acc - mean_t, 0.0)
        m2 = jnp.sum(diff * diff, axis=0, keepdims=True)
        k8 = jax.lax.broadcasted_iota(jnp.int32, (8, 1), 0)
        st = jnp.where(k8 == 0, s,
                       jnp.where(k8 == 1, m2,
                                 jnp.where(k8 == 2, cnt, 0.0)))
        st_ref[0, 0, :, :] = st


def _bn_relu_kernel(h_ref, sc_ref, sh_ref, y_ref):
    y = jnp.maximum(
        h_ref[0, :, :].astype(jnp.float32) * sc_ref[...] + sh_ref[...], 0.0)
    y_ref[0, :, :] = y.astype(y_ref.dtype)


# ---------------------------------------------------------------------------
# Pallas wrappers
# ---------------------------------------------------------------------------
def linear_bias(a, w, b):
    """a @ w + b with bf16 MXU operands and f32 accumulation (nn.Linear)."""
    m, k = a.shape
    n = w.shape[1]
    mp = _round_up(max(m, 8), 8)
    a_p = jnp.pad(a.astype(jnp.float32), ((0, mp - m), (0, 0))).astype(jnp.bfloat16)
    tm = min(mp, 256)
    out = pl.pallas_call(
        _linear_bias_kernel,
        grid=(mp // tm,),
        in_specs=[
            pl.BlockSpec((tm, k), lambda i: (i, 0)),
            pl.BlockSpec((k, n), lambda i: (0, 0)),
            pl.BlockSpec((1, n), lambda i: (0, 0)),
        ],
        out_specs=pl.BlockSpec((tm, n), lambda i: (i, 0)),
        out_shape=jax.ShapeDtypeStruct((mp, n), jnp.float32),
        compiler_params=pltpu.CompilerParams(dimension_semantics=("parallel",)),
    )(a_p, w, b.reshape(1, n))
    return out[:m]


def _conv3x3_stats(xg, w, sc_in, sh_in, *, wp, tile, h_img, w_img,
                   fuse_input_bn, merge_taps, out_dtype):
    n, tot, cin = xg.shape
    cout = w.shape[2]
    rtot = tot // tile
    kern = functools.partial(
        _conv3x3_stats_kernel, tile=tile, wp=wp, h_img=h_img, w_img=w_img,
        fuse_input_bn=fuse_input_bn, merge_taps=merge_taps)
    h, stats = pl.pallas_call(
        kern,
        grid=(n, rtot),
        in_specs=[
            pl.BlockSpec((1, tot, cin), lambda b, r: (b, 0, 0)),   # resident
            pl.BlockSpec(w.shape, lambda b, r: (0, 0, 0)),         # resident
            pl.BlockSpec((1, cin), lambda b, r: (0, 0)),
            pl.BlockSpec((1, cin), lambda b, r: (0, 0)),
        ],
        out_specs=[
            pl.BlockSpec((1, tile, cout), lambda b, r: (b, r, 0)),
            pl.BlockSpec((1, 1, 8, cout), lambda b, r: (b, r, 0, 0)),
        ],
        out_shape=[
            jax.ShapeDtypeStruct((n, tot, cout), out_dtype),
            jax.ShapeDtypeStruct((n, rtot, 8, cout), jnp.float32),
        ],
        compiler_params=pltpu.CompilerParams(
            dimension_semantics=("parallel", "parallel"),
            vmem_limit_bytes=_VMEM_LIMIT),
    )(xg, w, sc_in, sh_in)
    return h, stats


def _bn_relu(h, scale, shift, *, rows_per_block, out_dtype):
    n, tot, c = h.shape
    return pl.pallas_call(
        _bn_relu_kernel,
        grid=(n, tot // rows_per_block),
        in_specs=[
            pl.BlockSpec((1, rows_per_block, c), lambda b, r: (b, r, 0)),
            pl.BlockSpec((1, c), lambda b, r: (0, 0)),
            pl.BlockSpec((1, c), lambda b, r: (0, 0)),
        ],
        out_specs=pl.BlockSpec((1, rows_per_block, c), lambda b, r: (b, r, 0)),
        out_shape=jax.ShapeDtypeStruct((n, tot, c), out_dtype),
        compiler_params=pltpu.CompilerParams(
            dimension_semantics=("parallel", "parallel"),
            vmem_limit_bytes=_VMEM_LIMIT),
    )(h, scale, shift)


def _bn_affine(stats, gamma, beta, n_valid, eps):
    """Combine per-tile (sum, centered-M2, count) into BN scale/shift."""
    s = stats[:, :, 0, :]
    m2 = stats[:, :, 1, :]
    cnt = stats[:, :, 2, :]
    mean = jnp.sum(s, axis=(0, 1)) / n_valid
    mean_t = s / jnp.maximum(cnt, 1.0)
    var = (jnp.sum(m2, axis=(0, 1))
           + jnp.sum(cnt * jnp.square(mean_t - mean), axis=(0, 1))) / n_valid
    var = jnp.maximum(var, 0.0)           # biased variance, as torch train-BN
    scale = gamma * jax.lax.rsqrt(var + eps)
    shift = beta - mean * scale
    return scale.reshape(1, -1), shift.reshape(1, -1)


# ---------------------------------------------------------------------------
# Layout helpers (trace-time constants / pure XLA glue)
# ---------------------------------------------------------------------------
def _flat_geometry(h, w, tile):
    hp = h + 2
    wp = _round_up(w + 2, 8)        # width rounded up so row offsets are 8-aligned
    l = hp * wp
    r_blocks = -(-l // tile)
    tot = (r_blocks + 2) * tile     # one `tile` of guard rows on each side
    return hp, wp, l, tot


# ---------------------------------------------------------------------------
# conv_block forward
# ---------------------------------------------------------------------------
def conv_block_apply(params, x_nhwc, t_emb, *, ch_out, tile=128, eps=1e-5):
    n, h, w, cx = x_nhwc.shape
    hp, wp, l, tot = _flat_geometry(h, w, tile)
    assert tile % 8 == 0 and tile >= wp + 8, "tile must cover the conv halo"

    # Linear time projection -> extra input channel (as in the PyTorch module).
    proj = linear_bias(t_emb, params["proj_w"], params["proj_b"])   # (N, H*W)
    proj = proj.reshape(n, h, w, 1)
    xc = jnp.concatenate([x_nhwc.astype(jnp.float32), proj], axis=-1)

    cin1 = cx + 1
    cinp1 = params["c1"]["w"].shape[1] // 3
    coutp = params["c1"]["w"].shape[2]

    # +1 zero ring for the 3x3 conv, width rounded to a multiple of 8, channels
    # padded, then flattened with `tile` guard rows on each side so every
    # shifted window load stays in bounds.
    xpad = jnp.pad(xc, ((0, 0), (1, 1), (1, wp - w - 1), (0, cinp1 - cin1)))
    xg = jnp.pad(xpad.reshape(n, l, cinp1),
                 ((0, 0), (tile, tot - tile - l), (0, 0))).astype(jnp.bfloat16)

    n_valid = n * h * w
    dummy = jnp.zeros((1, cinp1), jnp.float32)

    # conv1: conv + fused BN statistics (pre-BN activation kept in bf16).
    h1, st1 = _conv3x3_stats(xg, params["c1"]["w"], dummy, dummy,
                             wp=wp, tile=tile, h_img=h, w_img=w,
                             fuse_input_bn=False, merge_taps=False,
                             out_dtype=jnp.bfloat16)
    sc1, sh1 = _bn_affine(st1, params["c1"]["gamma"], params["c1"]["beta"],
                          n_valid, eps)

    # conv2: BN1+ReLU fused into the window load, tap-merged K=3*C matmuls.
    h2, st2 = _conv3x3_stats(h1, params["c2"]["w"], sc1, sh1,
                             wp=wp, tile=tile, h_img=h, w_img=w,
                             fuse_input_bn=True,
                             merge_taps=(coutp % 128 == 0),
                             out_dtype=jnp.bfloat16)
    sc2, sh2 = _bn_affine(st2, params["c2"]["gamma"], params["c2"]["beta"],
                          n_valid, eps)

    # Final BN2 + ReLU, streamed with wide lane-dense blocks.
    rtot = tot // tile
    rpb = _largest_divisor_leq(rtot, 8)
    y2 = _bn_relu(h2, sc2, sh2, rows_per_block=rpb * tile,
                  out_dtype=jnp.float32)

    out = y2[:, tile:tile + l, :ch_out].reshape(n, hp, wp, ch_out)
    return out[:, 1:h + 1, 1:w + 1, :]


def conv_block_forward(params, x_nchw, t_emb, *, ch_out, tile=128):
    x = jnp.transpose(x_nchw, (0, 2, 3, 1))          # NCHW -> NHWC
    y = conv_block_apply(params, x, t_emb, ch_out=ch_out, tile=tile)
    return jnp.transpose(y, (0, 3, 1, 2))            # NHWC -> NCHW


# ---------------------------------------------------------------------------
# Parameter initialization (deterministic, synthetic)
# ---------------------------------------------------------------------------
def init_conv_block_params(key, ch_in, ch_out, emb_dim, im_width):
    cin1 = ch_in + 1
    cinp1 = _round_up(cin1, 8)
    coutp = _round_up(ch_out, 128)        # lane-dense conv outputs
    k1, k2, k3, k4 = jax.random.split(key, 4)

    def conv_w(k, cin, cinp):
        w = jax.random.normal(k, (3, 3, cin, ch_out), jnp.float32) * 0.05
        wpad = jnp.zeros((3, 3, cinp, coutp), jnp.float32)
        wpad = wpad.at[:, :, :cin, :ch_out].set(w)
        # Tap-merged layout: per ky, the 3 kx taps are stacked along K.
        return wpad.reshape(3, 3 * cinp, coutp).astype(jnp.bfloat16)

    def bn_p():
        return {
            "gamma": jnp.zeros((coutp,), jnp.float32).at[:ch_out].set(1.0),
            "beta": jnp.zeros((coutp,), jnp.float32),
        }

    c1 = {"w": conv_w(k1, cin1, cinp1)}
    c1.update(bn_p())
    c2 = {"w": conv_w(k2, ch_out, coutp)}
    c2.update(bn_p())
    return {
        # NOTE: conv biases are omitted -- exactly cancelled by the
        # training-mode BatchNorm that follows each conv.
        "c1": c1,
        "c2": c2,
        "proj_w": (jax.random.normal(k3, (emb_dim, im_width * im_width),
                                     jnp.float32) * 0.05).astype(jnp.bfloat16),
        "proj_b": jax.random.normal(k4, (im_width * im_width,),
                                    jnp.float32) * 0.05,
    }


# ---------------------------------------------------------------------------
# Pure-JAX reference (for a correctness self-check)
# ---------------------------------------------------------------------------
def _ref_conv_bn_relu(x, wm, gamma, beta, cin, cout, eps=1e-5):
    cinp = wm.shape[1] // 3
    k = wm.astype(jnp.float32).reshape(3, 3, cinp, wm.shape[2])[:, :, :cin, :cout]
    h = jax.lax.conv_general_dilated(
        x, k, window_strides=(1, 1), padding="SAME",
        dimension_numbers=("NHWC", "HWIO", "NHWC"))
    mean = jnp.mean(h, axis=(0, 1, 2))
    var = jnp.var(h, axis=(0, 1, 2))
    y = (h - mean) * jax.lax.rsqrt(var + eps) * gamma[:cout] + beta[:cout]
    return jnp.maximum(y, 0.0)


def conv_block_reference(params, x_nchw, t_emb, *, ch_out):
    x = jnp.transpose(x_nchw, (0, 2, 3, 1)).astype(jnp.float32)
    n, h, w, cx = x.shape
    proj = t_emb @ params["proj_w"].astype(jnp.float32) + params["proj_b"]
    xc = jnp.concatenate([x, proj.reshape(n, h, w, 1)], axis=-1)
    y1 = _ref_conv_bn_relu(xc, params["c1"]["w"], params["c1"]["gamma"],
                           params["c1"]["beta"], cx + 1, ch_out)
    y2 = _ref_conv_bn_relu(y1, params["c2"]["w"], params["c2"]["gamma"],
                           params["c2"]["beta"], ch_out, ch_out)
    return jnp.transpose(y2, (0, 3, 1, 2))


# ---------------------------------------------------------------------------
if __name__ == "__main__":
    B, CH_IN, CH_OUT, EMB_DIM, IM = 2, 4, 8, 32, 16

    key = jax.random.PRNGKey(0)
    kx, kt, kp = jax.random.split(key, 3)
    x = jax.random.normal(kx, (B, CH_IN, IM, IM), jnp.float32)
    t = jax.random.normal(kt, (B, EMB_DIM), jnp.float32)   # time embedding

    params = init_conv_block_params(kp, CH_IN, CH_OUT, EMB_DIM, IM)

    fwd = jax.jit(functools.partial(conv_block_forward, ch_out=CH_OUT))
    out = fwd(params, x, t)
    jax.block_until_ready(out)

    assert out.shape == (B, CH_OUT, IM, IM), out.shape
    assert bool(jnp.all(jnp.isfinite(out)))

    # Pure-JAX f32 reference; tolerance covers the bf16 matmul operands /
    # bf16 intermediate activations used on the Pallas path.
    ref = conv_block_reference(params, x, t, ch_out=CH_OUT)
    err = float(jnp.max(jnp.abs(out - ref)))
    assert err < 0.2, f"max |out - ref| = {err}"

    print("KERNEL_OK")
</pallas_src>

<mosaic_0001>
module attributes {stable_mosaic.version = 11 : i64} {
  func.func @_linear_bias_kernel(%arg0: i32, %arg1: memref<8x32xbf16, #tpu.memory_space<vmem>>, %arg2: memref<32x256xbf16, #tpu.memory_space<vmem>>, %arg3: memref<1x256xf32, #tpu.memory_space<vmem>>, %arg4: memref<8x256xf32, #tpu.memory_space<vmem>>) attributes {dimension_semantics = [#tpu.dimension_semantics<parallel>], iteration_bounds = array<i64: 1>, scalar_prefetch = 0 : i64, scratch_operands = 0 : i64, tpu.core_type = #tpu.core_type<tc>, window_params = [{transform_indices = @transform_0, window_bounds = array<i64: 8, 32>}, {pipeline_mode = #tpu.pipeline_mode<synchronous>, transform_indices = @transform_1, window_bounds = array<i64: 32, 256>}, {pipeline_mode = #tpu.pipeline_mode<synchronous>, transform_indices = @transform_2, window_bounds = array<i64: 1, 256>}, {transform_indices = @transform_3, window_bounds = array<i64: 8, 256>}]} {
    %c0 = arith.constant 0 : index
    %c0_0 = arith.constant 0 : index
    %0 = vector.load %arg1[%c0, %c0_0] : memref<8x32xbf16, #tpu.memory_space<vmem>>, vector<8x32xbf16>
    %c0_1 = arith.constant 0 : index
    %c0_2 = arith.constant 0 : index
    %1 = vector.load %arg2[%c0_1, %c0_2] : memref<32x256xbf16, #tpu.memory_space<vmem>>, vector<32x256xbf16>
    %cst = arith.constant dense<0.000000e+00> : vector<8x256xf32>
    %2 = tpu.matmul %0, %1, %cst {dimension_numbers = #tpu.dot_dimension_numbers<[1], [0], [0], [1], [0, 0, 1, 1], [], []>} : vector<8x32xbf16>, vector<32x256xbf16>, vector<8x256xf32> -> vector<8x256xf32>
    %c0_3 = arith.constant 0 : index
    %c0_4 = arith.constant 0 : index
    %3 = vector.load %arg3[%c0_3, %c0_4] : memref<1x256xf32, #tpu.memory_space<vmem>>, vector<1x256xf32>
    %4 = vector.broadcast %3 : vector<1x256xf32> to vector<8x256xf32>
    %5 = arith.addf %2, %4 : vector<8x256xf32>
    %c0_5 = arith.constant 0 : index
    %c0_6 = arith.constant 0 : index
    %6 = vector.load %arg4[%c0_5, %c0_6] : memref<8x256xf32, #tpu.memory_space<vmem>>, vector<8x256xf32>
    tpu.vector_store %arg4[%c0_5, %c0_6], %5 {strides = array<i32>} : memref<8x256xf32, #tpu.memory_space<vmem>>, vector<8x256xf32>,
    return
  }
  func.func @transform_0(%arg0: i32) -> (i32, i32) {
    %c0_i32 = arith.constant 0 : i32
    %c0_i32_0 = arith.constant 0 : i32
    return %arg0, %c0_i32 : i32, i32
  }
  func.func @transform_1(%arg0: i32) -> (i32, i32) {
    %c0_i32 = arith.constant 0 : i32
    %c0_i32_0 = arith.constant 0 : i32
    %c0_i32_1 = arith.constant 0 : i32
    return %c0_i32, %c0_i32_0 : i32, i32
  }
  func.func @transform_2(%arg0: i32) -> (i32, i32) {
    %c0_i32 = arith.constant 0 : i32
    %c0_i32_0 = arith.constant 0 : i32
    %c0_i32_1 = arith.constant 0 : i32
    return %c0_i32, %c0_i32_0 : i32, i32
  }
  func.func @transform_3(%arg0: i32) -> (i32, i32) {
    %c0_i32 = arith.constant 0 : i32
    %c0_i32_0 = arith.constant 0 : i32
    return %arg0, %c0_i32 : i32, i32
  }
}

module attributes {stable_mosaic.version = 11 : i64} {
  func.func @_conv3x3_stats_kernel(%arg0: i32, %arg1: i32, %arg2: memref<1x768x8xbf16, #tpu.memory_space<vmem>>, %arg3: memref<3x24x128xbf16, #tpu.memory_space<vmem>>, %arg4: memref<1x8xf32, #tpu.memory_space<vmem>>, %arg5: memref<1x8xf32, #tpu.memory_space<vmem>>, %arg6: memref<1x128x128xbf16, #tpu.memory_space<vmem>>, %arg7: memref<1x1x8x128xf32, #tpu.memory_space<vmem>>) attributes {dimension_semantics = [#tpu.dimension_semantics<parallel>, #tpu.dimension_semantics<parallel>], iteration_bounds = array<i64: 2, 6>, scalar_prefetch = 0 : i64, scratch_operands = 0 : i64, tpu.core_type = #tpu.core_type<tc>, window_params = [{transform_indices = @transform_0, window_bounds = array<i64: 1, 768, 8>}, {pipeline_mode = #tpu.pipeline_mode<synchronous>, transform_indices = @transform_1, window_bounds = array<i64: 3, 24, 128>}, {pipeline_mode = #tpu.pipeline_mode<synchronous>, transform_indices = @transform_2, window_bounds = array<i64: 1, 8>}, {pipeline_mode = #tpu.pipeline_mode<synchronous>, transform_indices = @transform_3, window_bounds = array<i64: 1, 8>}, {transform_indices = @transform_4, window_bounds = array<i64: 1, 128, 128>}, {transform_indices = @transform_5, window_bounds = array<i64: 1, 1, 8, 128>}]} {
    %c0_i32 = arith.constant 0 : i32
    %0 = arith.cmpi eq, %arg1, %c0_i32 : i32
    %c5_i32 = arith.constant 5 : i32
    %1 = arith.cmpi eq, %arg1, %c5_i32 : i32
    %2 = arith.ori %0, %1 : i1
    %3 = arith.extui %2 : i1 to i32
    %c0_i32_0 = arith.constant 0 : i32
    %4 = arith.cmpi ne, %3, %c0_i32_0 : i32
    scf.if %4 {
      %cst = arith.constant 0.000000e+00 : bf16
      %8 = vector.broadcast %cst : bf16 to vector<1x128x128xbf16>
      %c0 = arith.constant 0 : index
      %c0_2 = arith.constant 0 : index
      %c0_3 = arith.constant 0 : index
      %9 = vector.load %arg6[%c0, %c0_2, %c0_3] : memref<1x128x128xbf16, #tpu.memory_space<vmem>>, vector<1x128x128xbf16>
      tpu.vector_store %arg6[%c0, %c0_2, %c0_3], %8 {strides = array<i32>} : memref<1x128x128xbf16, #tpu.memory_space<vmem>>, vector<1x128x128xbf16>,
      %cst_4 = arith.constant 0.000000e+00 : f32
      %10 = vector.broadcast %cst_4 : f32 to vector<1x1x8x128xf32>
      %c0_5 = arith.constant 0 : index
      %c0_6 = arith.constant 0 : index
      %c0_7 = arith.constant 0 : index
      %c0_8 = arith.constant 0 : index
      %11 = vector.load %arg7[%c0_5, %c0_6, %c0_7, %c0_8] : memref<1x1x8x128xf32, #tpu.memory_space<vmem>>, vector<1x1x8x128xf32>
      tpu.vector_store %arg7[%c0_5, %c0_6, %c0_7, %c0_8], %10 {strides = array<i32>} : memref<1x1x8x128xf32, #tpu.memory_space<vmem>>, vector<1x1x8x128xf32>,
    } else {
    }
    %true = arith.constant true
    %5 = arith.xori %2, %true : i1
    %6 = arith.extui %5 : i1 to i32
    %c0_i32_1 = arith.constant 0 : i32
    %7 = arith.cmpi ne, %6, %c0_i32_1 : i32
    scf.if %7 {
      %c128_i32 = arith.constant 128 : i32
      %8 = arith.muli %arg1, %c128_i32 : i32
      %cst = arith.constant 0.000000e+00 : f32
      %9 = vector.broadcast %cst : f32 to vector<128x128xf32>
      %c-24_i32 = arith.constant -24 : i32
      %10 = arith.addi %8, %c-24_i32 : i32
      %c8_i32 = arith.constant 8 : i32
      %11 = arith.subi %10, %c8_i32 : i32
      %12 = tpu.assume_multiple %11, 8 : i32
      %c0 = arith.constant 0 : index
      %13 = arith.index_cast %12 : i32 to index
      %c0_2 = arith.constant 0 : index
      %14 = vector.load %arg2[%c0, %13, %c0_2] : memref<1x768x8xbf16, #tpu.memory_space<vmem>>, vector<1x144x8xbf16>
      %15 = vector.shape_cast %14 : vector<1x144x8xbf16> to vector<144x8xbf16>
      %16 = vector.extract_strided_slice %15 {offsets = [7, 0], sizes = [128, 8], strides = [1, 1]} : vector<144x8xbf16> to vector<128x8xbf16>
      %c0_3 = arith.constant 0 : index
      %c0_4 = arith.constant 0 : index
      %c0_5 = arith.constant 0 : index
      %17 = vector.load %arg3[%c0_3, %c0_4, %c0_5] : memref<3x24x128xbf16, #tpu.memory_space<vmem>>, vector<1x8x128xbf16>
      %18 = vector.shape_cast %17 : vector<1x8x128xbf16> to vector<8x128xbf16>
      %cst_6 = arith.constant dense<0.000000e+00> : vector<128x128xf32>
      %19 = tpu.matmul %16, %18, %cst_6 {dimension_numbers = #tpu.dot_dimension_numbers<[1], [0], [0], [1], [0, 0, 1, 1], [], []>} : vector<128x8xbf16>, vector<8x128xbf16>, vector<128x128xf32> -> vector<128x128xf32>
      %20 = arith.addf %9, %19 : vector<128x128xf32>
      %21 = vector.extract_strided_slice %15 {offsets = [8, 0], sizes = [128, 8], strides = [1, 1]} : vector<144x8xbf16> to vector<128x8xbf16>
      %c0_7 = arith.constant 0 : index
      %c8 = arith.constant 8 : index
      %c0_8 = arith.constant 0 : index
      %22 = vector.load %arg3[%c0_7, %c8, %c0_8] : memref<3x24x128xbf16, #tpu.memory_space<vmem>>, vector<1x8x128xbf16>
      %23 = vector.shape_cast %22 : vector<1x8x128xbf16> to vector<8x128xbf16>
      %cst_9 = arith.constant dense<0.000000e+00> : vector<128x128xf32>
      %24 = tpu.matmul %21, %23, %cst_9 {dimension_numbers = #tpu.dot_dimension_numbers<[1], [0], [0], [1], [0, 0, 1, 1], [], []>} : vector<128x8xbf16>, vector<8x128xbf16>, vector<128x128xf32> -> vector<128x128xf32>
      %25 = arith.addf %20, %24 : vector<128x128xf32>
      %26 = vector.extract_strided_slice %15 {offsets = [9, 0], sizes = [128, 8], strides = [1, 1]} : vector<144x8xbf16> to vector<128x8xbf16>
      %c0_10 = arith.constant 0 : index
      %c16 = arith.constant 16 : index
      %c0_11 = arith.constant 0 : index
      %27 = vector.load %arg3[%c0_10, %c16, %c0_11] : memref<3x24x128xbf16, #tpu.memory_space<vmem>>, vector<1x8x128xbf16>
      %28 = vector.shape_cast %27 : vector<1x8x128xbf16> to vector<8x128xbf16>
      %cst_12 = arith.constant dense<0.000000e+00> : vector<128x128xf32>
      %29 = tpu.matmul %26, %28, %cst_12 {dimension_numbers = #tpu.dot_dimension_numbers<[1], [0], [0], [1], [0, 0, 1, 1], [], []>} : vector<128x8xbf16>, vector<8x128xbf16>, vector<128x128xf32> -> vector<128x128xf32>
      %30 = arith.addf %25, %29 : vector<128x128xf32>
      %c0_i32_13 = arith.constant 0 : i32
      %31 = arith.addi %8, %c0_i32_13 : i32
      %c8_i32_14 = arith.constant 8 : i32
      %32 = arith.subi %31, %c8_i32_14 : i32
      %33 = tpu.assume_multiple %32, 8 : i32
      %c0_15 = arith.constant 0 : index
      %34 = arith.index_cast %33 : i32 to index
      %c0_16 = arith.constant 0 : index
      %35 = vector.load %arg2[%c0_15, %34, %c0_16] : memref<1x768x8xbf16, #tpu.memory_space<vmem>>, vector<1x144x8xbf16>
      %36 = vector.shape_cast %35 : vector<1x144x8xbf16> to vector<144x8xbf16>
      %37 = vector.extract_strided_slice %36 {offsets = [7, 0], sizes = [128, 8], strides = [1, 1]} : vector<144x8xbf16> to vector<128x8xbf16>
      %c1 = arith.constant 1 : index
      %c0_17 = arith.constant 0 : index
      %c0_18 = arith.constant 0 : index
      %38 = vector.load %arg3[%c1, %c0_17, %c0_18] : memref<3x24x128xbf16, #tpu.memory_space<vmem>>, vector<1x8x128xbf16>
      %39 = vector.shape_cast %38 : vector<1x8x128xbf16> to vector<8x128xbf16>
      %cst_19 = arith.constant dense<0.000000e+00> : vector<128x128xf32>
      %40 = tpu.matmul %37, %39, %cst_19 {dimension_numbers = #tpu.dot_dimension_numbers<[1], [0], [0], [1], [0, 0, 1, 1], [], []>} : vector<128x8xbf16>, vector<8x128xbf16>, vector<128x128xf32> -> vector<128x128xf32>
      %41 = arith.addf %30, %40 : vector<128x128xf32>
      %42 = vector.extract_strided_slice %36 {offsets = [8, 0], sizes = [128, 8], strides = [1, 1]} : vector<144x8xbf16> to vector<128x8xbf16>
      %c1_20 = arith.constant 1 : index
      %c8_21 = arith.constant 8 : index
      %c0_22 = arith.constant 0 : index
      %43 = vector.load %arg3[%c1_20, %c8_21, %c0_22] : memref<3x24x128xbf16, #tpu.memory_space<vmem>>, vector<1x8x128xbf16>
      %44 = vector.shape_cast %43 : vector<1x8x128xbf16> to vector<8x128xbf16>
      %cst_23 = arith.constant dense<0.000000e+00> : vector<128x128xf32>
      %45 = tpu.matmul %42, %44, %cst_23 {dimension_numbers = #tpu.dot_dimension_numbers<[1], [0], [0], [1], [0, 0, 1, 1], [], []>} : vector<128x8xbf16>, vector<8x128xbf16>, vector<128x128xf32> -> vector<128x128xf32>
      %46 = arith.addf %41, %45 : vector<128x128xf32>
      %47 = vector.extract_strided_slice %36 {offsets = [9, 0], sizes = [128, 8], strides = [1, 1]} : vector<144x8xbf16> to vector<128x8xbf16>
      %c1_24 = arith.constant 1 : index
      %c16_25 = arith.constant 16 : index
      %c0_26 = arith.constant 0 : index
      %48 = vector.load %arg3[%c1_24, %c16_25, %c0_26] : memref<3x24x128xbf16, #tpu.memory_space<vmem>>, vector<1x8x128xbf16>
      %49 = vector.shape_cast %48 : vector<1x8x128xbf16> to vector<8x128xbf16>
      %cst_27 = arith.constant dense<0.000000e+00> : vector<128x128xf32>
      %50 = tpu.matmul %47, %49, %cst_27 {dimension_numbers = #tpu.dot_dimension_numbers<[1], [0], [0], [1], [0, 0, 1, 1], [], []>} : vector<128x8xbf16>, vector<8x128xbf16>, vector<128x128xf32> -> vector<128x128xf32>
      %51 = arith.addf %46, %50 : vector<128x128xf32>
      %c24_i32 = arith.constant 24 : i32
      %52 = arith.addi %8, %c24_i32 : i32
      %c8_i32_28 = arith.constant 8 : i32
      %53 = arith.subi %52, %c8_i32_28 : i32
      %54 = tpu.assume_multiple %53, 8 : i32
      %c0_29 = arith.constant 0 : index
      %55 = arith.index_cast %54 : i32 to index
      %c0_30 = arith.constant 0 : index
      %56 = vector.load %arg2[%c0_29, %55, %c0_30] : memref<1x768x8xbf16, #tpu.memory_space<vmem>>, vector<1x144x8xbf16>
      %57 = vector.shape_cast %56 : vector<1x144x8xbf16> to vector<144x8xbf16>
      %58 = vector.extract_strided_slice %57 {offsets = [7, 0], sizes = [128, 8], strides = [1, 1]} : vector<144x8xbf16> to vector<128x8xbf16>
      %c2 = arith.constant 2 : index
      %c0_31 = arith.constant 0 : index
      %c0_32 = arith.constant 0 : index
      %59 = vector.load %arg3[%c2, %c0_31, %c0_32] : memref<3x24x128xbf16, #tpu.memory_space<vmem>>, vector<1x8x128xbf16>
      %60 = vector.shape_cast %59 : vector<1x8x128xbf16> to vector<8x128xbf16>
      %cst_33 = arith.constant dense<0.000000e+00> : vector<128x128xf32>
      %61 = tpu.matmul %58, %60, %cst_33 {dimension_numbers = #tpu.dot_dimension_numbers<[1], [0], [0], [1], [0, 0, 1, 1], [], []>} : vector<128x8xbf16>, vector<8x128xbf16>, vector<128x128xf32> -> vector<128x128xf32>
      %62 = arith.addf %51, %61 : vector<128x128xf32>
      %63 = vector.extract_strided_slice %57 {offsets = [8, 0], sizes = [128, 8], strides = [1, 1]} : vector<144x8xbf16> to vector<128x8xbf16>
      %c2_34 = arith.constant 2 : index
      %c8_35 = arith.constant 8 : index
      %c0_36 = arith.constant 0 : index
      %64 = vector.load %arg3[%c2_34, %c8_35, %c0_36] : memref<3x24x128xbf16, #tpu.memory_space<vmem>>, vector<1x8x128xbf16>
      %65 = vector.shape_cast %64 : vector<1x8x128xbf16> to vector<8x128xbf16>
      %cst_37 = arith.constant dense<0.000000e+00> : vector<128x128xf32>
      %66 = tpu.matmul %63, %65, %cst_37 {dimension_numbers = #tpu.dot_dimension_numbers<[1], [0], [0], [1], [0, 0, 1, 1], [], []>} : vector<128x8xbf16>, vector<8x128xbf16>, vector<128x128xf32> -> vector<128x128xf32>
      %67 = arith.addf %62, %66 : vector<128x128xf32>
      %68 = vector.extract_strided_slice %57 {offsets = [9, 0], sizes = [128, 8], strides = [1, 1]} : vector<144x8xbf16> to vector<128x8xbf16>
      %c2_38 = arith.constant 2 : index
      %c16_39 = arith.constant 16 : index
      %c0_40 = arith.constant 0 : index
      %69 = vector.load %arg3[%c2_38, %c16_39, %c0_40] : memref<3x24x128xbf16, #tpu.memory_space<vmem>>, vector<1x8x128xbf16>
      %70 = vector.shape_cast %69 : vector<1x8x128xbf16> to vector<8x128xbf16>
      %cst_41 = arith.constant dense<0.000000e+00> : vector<128x128xf32>
      %71 = tpu.matmul %68, %70, %cst_41 {dimension_numbers = #tpu.dot_dimension_numbers<[1], [0], [0], [1], [0, 0, 1, 1], [], []>} : vector<128x8xbf16>, vector<8x128xbf16>, vector<128x128xf32> -> vector<128x128xf32>
      %72 = arith.addf %67, %71 : vector<128x128xf32>
      %73 = tpu.iota {dimensions = array<i32: 0>} : vector<128x1xi32>
      %c1_i32 = arith.constant 1 : i32
      %74 = arith.subi %arg1, %c1_i32 : i32
      %c128_i32_42 = arith.constant 128 : i32
      %75 = arith.muli %74, %c128_i32_42 : i32
      %76 = vector.broadcast %75 : i32 to vector<128x1xi32>
      %77 = arith.addi %76, %73 : vector<128x1xi32>
      %78 = arith.sitofp %77 : vector<128x1xi32> to vector<128x1xf32>
      %cst_43 = arith.constant 5.000000e-01 : f32
      %79 = vector.broadcast %cst_43 : f32 to vector<128x1xf32>
      %80 = arith.addf %78, %79 : vector<128x1xf32>
      %cst_44 = arith.constant 0.0416666679 : f32
      %81 = vector.broadcast %cst_44 : f32 to vector<128x1xf32>
      %82 = arith.mulf %80, %81 : vector<128x1xf32>
      %83 = math.floor %82 : vector<128x1xf32>
      %cst_45 = arith.constant 2.400000e+01 : f32
      %84 = vector.broadcast %cst_45 : f32 to vector<128x1xf32>
      %85 = arith.mulf %83, %84 : vector<128x1xf32>
      %86 = arith.subf %78, %85 : vector<128x1xf32>
      %cst_46 = arith.constant 1.000000e+00 : f32
      %87 = vector.broadcast %cst_46 : f32 to vector<128x1xf32>
      %88 = arith.cmpf oge, %83, %87 : vector<128x1xf32>
      %cst_47 = arith.constant 1.600000e+01 : f32
      %89 = vector.broadcast %cst_47 : f32 to vector<128x1xf32>
      %90 = arith.cmpf ole, %83, %89 : vector<128x1xf32>
      %91 = arith.andi %88, %90 : vector<128x1xi1>
      %cst_48 = arith.constant 1.000000e+00 : f32
      %92 = vector.broadcast %cst_48 : f32 to vector<128x1xf32>
      %93 = arith.cmpf oge, %86, %92 : vector<128x1xf32>
      %94 = arith.andi %91, %93 : vector<128x1xi1>
      %cst_49 = arith.constant 1.600000e+01 : f32
      %95 = vector.broadcast %cst_49 : f32 to vector<128x1xf32>
      %96 = arith.cmpf ole, %86, %95 : vector<128x1xf32>
      %97 = arith.andi %94, %96 : vector<128x1xi1>
      %cst_50 = arith.constant 0.000000e+00 : f32
      %98 = vector.shape_cast %97 : vector<128x1xi1> to vector<128x1xi1>
      %99 = vector.broadcast %98 : vector<128x1xi1> to vector<128x128xi1>
      %100 = vector.broadcast %cst_50 : f32 to vector<128x128xf32>
      %101 = arith.select %99, %72, %100 : vector<128x128xi1>, vector<128x128xf32>
      %102 = arith.truncf %101 : vector<128x128xf32> to vector<128x128xbf16>
      %c0_51 = arith.constant 0 : index
      %c0_52 = arith.constant 0 : index
      %c0_53 = arith.constant 0 : index
      %103 = vector.load %arg6[%c0_51, %c0_52, %c0_53] : memref<1x128x128xbf16, #tpu.memory_space<vmem>>, vector<1x128x128xbf16>
      %104 = vector.shape_cast %103 : vector<1x128x128xbf16> to vector<128x128xbf16>
      %105 = vector.shape_cast %102 : vector<128x128xbf16> to vector<1x128x128xbf16>
      tpu.vector_store %arg6[%c0_51, %c0_52, %c0_53], %105 {strides = array<i32>} : memref<1x128x128xbf16, #tpu.memory_space<vmem>>, vector<1x128x128xbf16>,
      %106 = arith.extui %97 : vector<128x1xi1> to vector<128x1xi32>
      %107 = arith.sitofp %106 : vector<128x1xi32> to vector<128x1xf32>
      %108 = vector.shape_cast %107 : vector<128x1xf32> to vector<1x128x1xf32>
      %cst_54 = arith.constant dense<0.000000e+00> : vector<1xf32>
      %109 = vector.multi_reduction <add>, %108, %cst_54 [1, 2] : vector<1x128x1xf32> to vector<1xf32>
      %110 = vector.shape_cast %109 : vector<1xf32> to vector<1x1x1xf32>
      %111 = vector.extract %110[0, 0, 0] : f32 from vector<1x1x1xf32>
      %112 = vector.broadcast %111 : f32 to vector<1x1xf32>
      %cst_55 = arith.constant dense<0.000000e+00> : vector<128xf32>
      %113 = vector.multi_reduction <add>, %101, %cst_55 [0] : vector<128x128xf32> to vector<128xf32>
      %114 = vector.shape_cast %113 : vector<128xf32> to vector<1x128xf32>
      %cst_56 = arith.constant 1.000000e+00 : f32
      %115 = vector.broadcast %cst_56 : f32 to vector<1x1xf32>
      %116 = arith.maximumf %112, %115 : vector<1x1xf32>
      %117 = vector.broadcast %116 : vector<1x1xf32> to vector<1x128xf32>
      %118 = arith.divf %114, %117 : vector<1x128xf32>
      %119 = vector.broadcast %118 : vector<1x128xf32> to vector<128x128xf32>
      %120 = arith.subf %72, %119 : vector<128x128xf32>
      %cst_57 = arith.constant 0.000000e+00 : f32
      %121 = vector.shape_cast %97 : vector<128x1xi1> to vector<128x1xi1>
      %122 = vector.broadcast %121 : vector<128x1xi1> to vector<128x128xi1>
      %123 = vector.broadcast %cst_57 : f32 to vector<128x128xf32>
      %124 = arith.select %122, %120, %123 : vector<128x128xi1>, vector<128x128xf32>
      %125 = arith.mulf %124, %124 : vector<128x128xf32>
      %cst_58 = arith.constant dense<0.000000e+00> : vector<128xf32>
      %126 = vector.multi_reduction <add>, %125, %cst_58 [0] : vector<128x128xf32> to vector<128xf32>
      %127 = vector.shape_cast %126 : vector<128xf32> to vector<1x128xf32>
      %128 = tpu.iota {dimensions = array<i32: 0>} : vector<8x1xi32>
      %c0_i32_59 = arith.constant 0 : i32
      %129 = vector.broadcast %c0_i32_59 : i32 to vector<8x1xi32>
      %130 = arith.cmpi eq, %128, %129 : vector<8x1xi32>
      %c1_i32_60 = arith.constant 1 : i32
      %131 = vector.broadcast %c1_i32_60 : i32 to vector<8x1xi32>
      %132 = arith.cmpi eq, %128, %131 : vector<8x1xi32>
      %c2_i32 = arith.constant 2 : i32
      %133 = vector.broadcast %c2_i32 : i32 to vector<8x1xi32>
      %134 = arith.cmpi eq, %128, %133 : vector<8x1xi32>
      %cst_61 = arith.constant 0.000000e+00 : f32
      %135 = vector.shape_cast %112 : vector<1x1xf32> to vector<1x1xf32>
      %136 = vector.broadcast %135 : vector<1x1xf32> to vector<8x1xf32>
      %137 = vector.broadcast %cst_61 : f32 to vector<8x1xf32>
      %138 = arith.select %134, %136, %137 : vector<8x1xi1>, vector<8x1xf32>
      %139 = vector.shape_cast %132 : vector<8x1xi1> to vector<8x1xi1>
      %140 = vector.broadcast %139 : vector<8x1xi1> to vector<8x128xi1>
      %141 = vector.shape_cast %127 : vector<1x128xf32> to vector<1x128xf32>
      %142 = vector.broadcast %141 : vector<1x128xf32> to vector<8x128xf32>
      %143 = vector.shape_cast %138 : vector<8x1xf32> to vector<8x1xf32>
      %144 = vector.broadcast %143 : vector<8x1xf32> to vector<8x128xf32>
      %145 = arith.select %140, %142, %144 : vector<8x128xi1>, vector<8x128xf32>
      %146 = vector.shape_cast %130 : vector<8x1xi1> to vector<8x1xi1>
      %147 = vector.broadcast %146 : vector<8x1xi1> to vector<8x128xi1>
      %148 = vector.shape_cast %114 : vector<1x128xf32> to vector<1x128xf32>
      %149 = vector.broadcast %148 : vector<1x128xf32> to vector<8x128xf32>
      %150 = arith.select %147, %149, %145 : vector<8x128xi1>, vector<8x128xf32>
      %c0_62 = arith.constant 0 : index
      %c0_63 = arith.constant 0 : index
      %c0_64 = arith.constant 0 : index
      %c0_65 = arith.constant 0 : index
      %151 = vector.load %arg7[%c0_62, %c0_63, %c0_64, %c0_65] : memref<1x1x8x128xf32, #tpu.memory_space<vmem>>, vector<1x1x8x128xf32>
      %152 = vector.shape_cast %151 : vector<1x1x8x128xf32> to vector<8x128xf32>
      %153 = vector.shape_cast %150 : vector<8x128xf32> to vector<1x1x8x128xf32>
      tpu.vector_store %arg7[%c0_62, %c0_63, %c0_64, %c0_65], %153 {strides = array<i32>} : memref<1x1x8x128xf32, #tpu.memory_space<vmem>>, vector<1x1x8x128xf32>,
    } else {
    }
    return
  }
  func.func @transform_0(%arg0: i32, %arg1: i32) -> (i32, i32, i32) {
    %c0_i32 = arith.constant 0 : i32
    %c0_i32_0 = arith.constant 0 : i32
    %c0_i32_1 = arith.constant 0 : i32
    return %arg0, %c0_i32, %c0_i32_0 : i32, i32, i32
  }
  func.func @transform_1(%arg0: i32, %arg1: i32) -> (i32, i32, i32) {
    %c0_i32 = arith.constant 0 : i32
    %c0_i32_0 = arith.constant 0 : i32
    %c0_i32_1 = arith.constant 0 : i32
    %c0_i32_2 = arith.constant 0 : i32
    return %c0_i32, %c0_i32_0, %c0_i32_1 : i32, i32, i32
  }
  func.func @transform_2(%arg0: i32, %arg1: i32) -> (i32, i32) {
    %c0_i32 = arith.constant 0 : i32
    %c0_i32_0 = arith.constant 0 : i32
    %c0_i32_1 = arith.constant 0 : i32
    return %c0_i32, %c0_i32_0 : i32, i32
  }
  func.func @transform_3(%arg0: i32, %arg1: i32) -> (i32, i32) {
    %c0_i32 = arith.constant 0 : i32
    %c0_i32_0 = arith.constant 0 : i32
    %c0_i32_1 = arith.constant 0 : i32
    return %c0_i32, %c0_i32_0 : i32, i32
  }
  func.func @transform_4(%arg0: i32, %arg1: i32) -> (i32, i32, i32) {
    %c0_i32 = arith.constant 0 : i32
    %c0_i32_0 = arith.constant 0 : i32
    return %arg0, %arg1, %c0_i32 : i32, i32, i32
  }
  func.func @transform_5(%arg0: i32, %arg1: i32) -> (i32, i32, i32, i32) {
    %c0_i32 = arith.constant 0 : i32
    %c0_i32_0 = arith.constant 0 : i32
    %c0_i32_1 = arith.constant 0 : i32
    return %arg0, %arg1, %c0_i32, %c0_i32_0 : i32, i32, i32, i32
  }
}

module attributes {stable_mosaic.version = 11 : i64} {
  func.func @_bn_relu_kernel(%arg0: i32, %arg1: i32, %arg2: memref<1x768x128xbf16, #tpu.memory_space<vmem>>, %arg3: memref<1x128xf32, #tpu.memory_space<vmem>>, %arg4: memref<1x128xf32, #tpu.memory_space<vmem>>, %arg5: memref<1x768x128xf32, #tpu.memory_space<vmem>>) attributes {dimension_semantics = [#tpu.dimension_semantics<parallel>, #tpu.dimension_semantics<parallel>], iteration_bounds = array<i64: 2, 1>, scalar_prefetch = 0 : i64, scratch_operands = 0 : i64, tpu.core_type = #tpu.core_type<tc>, window_params = [{transform_indices = @transform_0, window_bounds = array<i64: 1, 768, 128>}, {pipeline_mode = #tpu.pipeline_mode<synchronous>, transform_indices = @transform_1, window_bounds = array<i64: 1, 128>}, {pipeline_mode = #tpu.pipeline_mode<synchronous>, transform_indices = @transform_2, window_bounds = array<i64: 1, 128>}, {transform_indices = @transform_3, window_bounds = array<i64: 1, 768, 128>}]} {
    %c0 = arith.constant 0 : index
    %c0_0 = arith.constant 0 : index
    %c0_1 = arith.constant 0 : index
    %0 = vector.load %arg2[%c0, %c0_0, %c0_1] : memref<1x768x128xbf16, #tpu.memory_space<vmem>>, vector<1x768x128xbf16>
    %1 = vector.shape_cast %0 : vector<1x768x128xbf16> to vector<768x128xbf16>
    %2 = arith.extf %1 : vector<768x128xbf16> to vector<768x128xf32>
    %c0_2 = arith.constant 0 : index
    %c0_3 = arith.constant 0 : index
    %3 = vector.load %arg3[%c0_2, %c0_3] : memref<1x128xf32, #tpu.memory_space<vmem>>, vector<1x128xf32>
    %4 = vector.broadcast %3 : vector<1x128xf32> to vector<768x128xf32>
    %5 = arith.mulf %2, %4 : vector<768x128xf32>
    %c0_4 = arith.constant 0 : index
    %c0_5 = arith.constant 0 : index
    %6 = vector.load %arg4[%c0_4, %c0_5] : memref<1x128xf32, #tpu.memory_space<vmem>>, vector<1x128xf32>
    %7 = vector.broadcast %6 : vector<1x128xf32> to vector<768x128xf32>
    %8 = arith.addf %5, %7 : vector<768x128xf32>
    %cst = arith.constant 0.000000e+00 : f32
    %9 = vector.broadcast %cst : f32 to vector<768x128xf32>
    %10 = arith.maximumf %8, %9 : vector<768x128xf32>
    %c0_6 = arith.constant 0 : index
    %c0_7 = arith.constant 0 : index
    %c0_8 = arith.constant 0 : index
    %11 = vector.load %arg5[%c0_6, %c0_7, %c0_8] : memref<1x768x128xf32, #tpu.memory_space<vmem>>, vector<1x768x128xf32>
    %12 = vector.shape_cast %11 : vector<1x768x128xf32> to vector<768x128xf32>
    %13 = vector.shape_cast %10 : vector<768x128xf32> to vector<1x768x128xf32>
    tpu.vector_store %arg5[%c0_6, %c0_7, %c0_8], %13 {strides = array<i32>} : memref<1x768x128xf32, #tpu.memory_space<vmem>>, vector<1x768x128xf32>,
    return
  }
  func.func @transform_0(%arg0: i32, %arg1: i32) -> (i32, i32, i32) {
    %c0_i32 = arith.constant 0 : i32
    %c0_i32_0 = arith.constant 0 : i32
    return %arg0, %arg1, %c0_i32 : i32, i32, i32
  }
  func.func @transform_1(%arg0: i32, %arg1: i32) -> (i32, i32) {
    %c0_i32 = arith.constant 0 : i32
    %c0_i32_0 = arith.constant 0 : i32
    %c0_i32_1 = arith.constant 0 : i32
    return %c0_i32, %c0_i32_0 : i32, i32
  }
  func.func @transform_2(%arg0: i32, %arg1: i32) -> (i32, i32) {
    %c0_i32 = arith.constant 0 : i32
    %c0_i32_0 = arith.constant 0 : i32
    %c0_i32_1 = arith.constant 0 : i32
    return %c0_i32, %c0_i32_0 : i32, i32
  }
  func.func @transform_3(%arg0: i32, %arg1: i32) -> (i32, i32, i32) {
    %c0_i32 = arith.constant 0 : i32
    %c0_i32_0 = arith.constant 0 : i32
    return %arg0, %arg1, %c0_i32 : i32, i32, i32
  }
}

module attributes {stable_mosaic.version = 11 : i64} {
  func.func @_conv3x3_stats_kernel(%arg0: i32, %arg1: i32, %arg2: memref<1x768x128xbf16, #tpu.memory_space<vmem>>, %arg3: memref<3x384x128xbf16, #tpu.memory_space<vmem>>, %arg4: memref<1x128xf32, #tpu.memory_space<vmem>>, %arg5: memref<1x128xf32, #tpu.memory_space<vmem>>, %arg6: memref<1x128x128xbf16, #tpu.memory_space<vmem>>, %arg7: memref<1x1x8x128xf32, #tpu.memory_space<vmem>>) attributes {dimension_semantics = [#tpu.dimension_semantics<parallel>, #tpu.dimension_semantics<parallel>], iteration_bounds = array<i64: 2, 6>, scalar_prefetch = 0 : i64, scratch_operands = 0 : i64, tpu.core_type = #tpu.core_type<tc>, window_params = [{transform_indices = @transform_0, window_bounds = array<i64: 1, 768, 128>}, {pipeline_mode = #tpu.pipeline_mode<synchronous>, transform_indices = @transform_1, window_bounds = array<i64: 3, 384, 128>}, {pipeline_mode = #tpu.pipeline_mode<synchronous>, transform_indices = @transform_2, window_bounds = array<i64: 1, 128>}, {pipeline_mode = #tpu.pipeline_mode<synchronous>, transform_indices = @transform_3, window_bounds = array<i64: 1, 128>}, {transform_indices = @transform_4, window_bounds = array<i64: 1, 128, 128>}, {transform_indices = @transform_5, window_bounds = array<i64: 1, 1, 8, 128>}]} {
    %c0_i32 = arith.constant 0 : i32
    %0 = arith.cmpi eq, %arg1, %c0_i32 : i32
    %c5_i32 = arith.constant 5 : i32
    %1 = arith.cmpi eq, %arg1, %c5_i32 : i32
    %2 = arith.ori %0, %1 : i1
    %3 = arith.extui %2 : i1 to i32
    %c0_i32_0 = arith.constant 0 : i32
    %4 = arith.cmpi ne, %3, %c0_i32_0 : i32
    scf.if %4 {
      %cst = arith.constant 0.000000e+00 : bf16
      %8 = vector.broadcast %cst : bf16 to vector<1x128x128xbf16>
      %c0 = arith.constant 0 : index
      %c0_2 = arith.constant 0 : index
      %c0_3 = arith.constant 0 : index
      %9 = vector.load %arg6[%c0, %c0_2, %c0_3] : memref<1x128x128xbf16, #tpu.memory_space<vmem>>, vector<1x128x128xbf16>
      tpu.vector_store %arg6[%c0, %c0_2, %c0_3], %8 {strides = array<i32>} : memref<1x128x128xbf16, #tpu.memory_space<vmem>>, vector<1x128x128xbf16>,
      %cst_4 = arith.constant 0.000000e+00 : f32
      %10 = vector.broadcast %cst_4 : f32 to vector<1x1x8x128xf32>
      %c0_5 = arith.constant 0 : index
      %c0_6 = arith.constant 0 : index
      %c0_7 = arith.constant 0 : index
      %c0_8 = arith.constant 0 : index
      %11 = vector.load %arg7[%c0_5, %c0_6, %c0_7, %c0_8] : memref<1x1x8x128xf32, #tpu.memory_space<vmem>>, vector<1x1x8x128xf32>
      tpu.vector_store %arg7[%c0_5, %c0_6, %c0_7, %c0_8], %10 {strides = array<i32>} : memref<1x1x8x128xf32, #tpu.memory_space<vmem>>, vector<1x1x8x128xf32>,
    } else {
    }
    %true = arith.constant true
    %5 = arith.xori %2, %true : i1
    %6 = arith.extui %5 : i1 to i32
    %c0_i32_1 = arith.constant 0 : i32
    %7 = arith.cmpi ne, %6, %c0_i32_1 : i32
    scf.if %7 {
      %c128_i32 = arith.constant 128 : i32
      %8 = arith.muli %arg1, %c128_i32 : i32
      %cst = arith.constant 0.000000e+00 : f32
      %9 = vector.broadcast %cst : f32 to vector<128x128xf32>
      %c-24_i32 = arith.constant -24 : i32
      %10 = arith.addi %8, %c-24_i32 : i32
      %c8_i32 = arith.constant 8 : i32
      %11 = arith.subi %10, %c8_i32 : i32
      %12 = tpu.assume_multiple %11, 8 : i32
      %c0 = arith.constant 0 : index
      %13 = arith.index_cast %12 : i32 to index
      %c0_2 = arith.constant 0 : index
      %14 = vector.load %arg2[%c0, %13, %c0_2] : memref<1x768x128xbf16, #tpu.memory_space<vmem>>, vector<1x144x128xbf16>
      %15 = vector.shape_cast %14 : vector<1x144x128xbf16> to vector<144x128xbf16>
      %16 = tpu.iota {dimensions = array<i32: 0>} : vector<144x1xi32>
      %c1_i32 = arith.constant 1 : i32
      %17 = arith.subi %arg1, %c1_i32 : i32
      %c128_i32_3 = arith.constant 128 : i32
      %18 = arith.muli %17, %c128_i32_3 : i32
      %c-24_i32_4 = arith.constant -24 : i32
      %19 = arith.addi %18, %c-24_i32_4 : i32
      %c8_i32_5 = arith.constant 8 : i32
      %20 = arith.subi %19, %c8_i32_5 : i32
      %21 = vector.broadcast %20 : i32 to vector<144x1xi32>
      %22 = arith.addi %21, %16 : vector<144x1xi32>
      %23 = arith.sitofp %22 : vector<144x1xi32> to vector<144x1xf32>
      %cst_6 = arith.constant 5.000000e-01 : f32
      %24 = vector.broadcast %cst_6 : f32 to vector<144x1xf32>
      %25 = arith.addf %23, %24 : vector<144x1xf32>
      %cst_7 = arith.constant 0.0416666679 : f32
      %26 = vector.broadcast %cst_7 : f32 to vector<144x1xf32>
      %27 = arith.mulf %25, %26 : vector<144x1xf32>
      %28 = math.floor %27 : vector<144x1xf32>
      %cst_8 = arith.constant 2.400000e+01 : f32
      %29 = vector.broadcast %cst_8 : f32 to vector<144x1xf32>
      %30 = arith.mulf %28, %29 : vector<144x1xf32>
      %31 = arith.subf %23, %30 : vector<144x1xf32>
      %cst_9 = arith.constant 1.000000e+00 : f32
      %32 = vector.broadcast %cst_9 : f32 to vector<144x1xf32>
      %33 = arith.cmpf oge, %28, %32 : vector<144x1xf32>
      %cst_10 = arith.constant 1.600000e+01 : f32
      %34 = vector.broadcast %cst_10 : f32 to vector<144x1xf32>
      %35 = arith.cmpf ole, %28, %34 : vector<144x1xf32>
      %36 = arith.andi %33, %35 : vector<144x1xi1>
      %cst_11 = arith.constant 1.000000e+00 : f32
      %37 = vector.broadcast %cst_11 : f32 to vector<144x1xf32>
      %38 = arith.cmpf oge, %31, %37 : vector<144x1xf32>
      %39 = arith.andi %36, %38 : vector<144x1xi1>
      %cst_12 = arith.constant 1.600000e+01 : f32
      %40 = vector.broadcast %cst_12 : f32 to vector<144x1xf32>
      %41 = arith.cmpf ole, %31, %40 : vector<144x1xf32>
      %42 = arith.andi %39, %41 : vector<144x1xi1>
      %43 = arith.extf %15 : vector<144x128xbf16> to vector<144x128xf32>
      %c0_13 = arith.constant 0 : index
      %c0_14 = arith.constant 0 : index
      %44 = vector.load %arg4[%c0_13, %c0_14] : memref<1x128xf32, #tpu.memory_space<vmem>>, vector<1x128xf32>
      %45 = vector.broadcast %44 : vector<1x128xf32> to vector<144x128xf32>
      %46 = arith.mulf %43, %45 : vector<144x128xf32>
      %c0_15 = arith.constant 0 : index
      %c0_16 = arith.constant 0 : index
      %47 = vector.load %arg5[%c0_15, %c0_16] : memref<1x128xf32, #tpu.memory_space<vmem>>, vector<1x128xf32>
      %48 = vector.broadcast %47 : vector<1x128xf32> to vector<144x128xf32>
      %49 = arith.addf %46, %48 : vector<144x128xf32>
      %cst_17 = arith.constant 0.000000e+00 : f32
      %50 = vector.broadcast %cst_17 : f32 to vector<144x128xf32>
      %51 = arith.maximumf %49, %50 : vector<144x128xf32>
      %cst_18 = arith.constant 0.000000e+00 : f32
      %52 = vector.shape_cast %42 : vector<144x1xi1> to vector<144x1xi1>
      %53 = vector.broadcast %52 : vector<144x1xi1> to vector<144x128xi1>
      %54 = vector.broadcast %cst_18 : f32 to vector<144x128xf32>
      %55 = arith.select %53, %51, %54 : vector<144x128xi1>, vector<144x128xf32>
      %56 = arith.truncf %55 : vector<144x128xf32> to vector<144x128xbf16>
      %57 = vector.extract_strided_slice %56 {offsets = [7, 0], sizes = [128, 128], strides = [1, 1]} : vector<144x128xbf16> to vector<128x128xbf16>
      %58 = vector.extract_strided_slice %56 {offsets = [8, 0], sizes = [128, 128], strides = [1, 1]} : vector<144x128xbf16> to vector<128x128xbf16>
      %59 = vector.extract_strided_slice %56 {offsets = [9, 0], sizes = [128, 128], strides = [1, 1]} : vector<144x128xbf16> to vector<128x128xbf16>
      %60 = tpu.concatenate %57, %58, %59 in 1 : vector<128x128xbf16>, vector<128x128xbf16>, vector<128x128xbf16> -> vector<128x384xbf16>
      %c0_19 = arith.constant 0 : index
      %c0_20 = arith.constant 0 : index
      %c0_21 = arith.constant 0 : index
      %61 = vector.load %arg3[%c0_19, %c0_20, %c0_21] : memref<3x384x128xbf16, #tpu.memory_space<vmem>>, vector<1x384x128xbf16>
      %62 = vector.shape_cast %61 : vector<1x384x128xbf16> to vector<384x128xbf16>
      %cst_22 = arith.constant dense<0.000000e+00> : vector<128x128xf32>
      %63 = tpu.matmul %60, %62, %cst_22 {dimension_numbers = #tpu.dot_dimension_numbers<[1], [0], [0], [1], [0, 0, 1, 1], [], []>} : vector<128x384xbf16>, vector<384x128xbf16>, vector<128x128xf32> -> vector<128x128xf32>
      %64 = arith.addf %9, %63 : vector<128x128xf32>
      %c0_i32_23 = arith.constant 0 : i32
      %65 = arith.addi %8, %c0_i32_23 : i32
      %c8_i32_24 = arith.constant 8 : i32
      %66 = arith.subi %65, %c8_i32_24 : i32
      %67 = tpu.assume_multiple %66, 8 : i32
      %c0_25 = arith.constant 0 : index
      %68 = arith.index_cast %67 : i32 to index
      %c0_26 = arith.constant 0 : index
      %69 = vector.load %arg2[%c0_25, %68, %c0_26] : memref<1x768x128xbf16, #tpu.memory_space<vmem>>, vector<1x144x128xbf16>
      %70 = vector.shape_cast %69 : vector<1x144x128xbf16> to vector<144x128xbf16>
      %71 = tpu.iota {dimensions = array<i32: 0>} : vector<144x1xi32>
      %c1_i32_27 = arith.constant 1 : i32
      %72 = arith.subi %arg1, %c1_i32_27 : i32
      %c128_i32_28 = arith.constant 128 : i32
      %73 = arith.muli %72, %c128_i32_28 : i32
      %c0_i32_29 = arith.constant 0 : i32
      %74 = arith.addi %73, %c0_i32_29 : i32
      %c8_i32_30 = arith.constant 8 : i32
      %75 = arith.subi %74, %c8_i32_30 : i32
      %76 = vector.broadcast %75 : i32 to vector<144x1xi32>
      %77 = arith.addi %76, %71 : vector<144x1xi32>
      %78 = arith.sitofp %77 : vector<144x1xi32> to vector<144x1xf32>
      %cst_31 = arith.constant 5.000000e-01 : f32
      %79 = vector.broadcast %cst_31 : f32 to vector<144x1xf32>
      %80 = arith.addf %78, %79 : vector<144x1xf32>
      %cst_32 = arith.constant 0.0416666679 : f32
      %81 = vector.broadcast %cst_32 : f32 to vector<144x1xf32>
      %82 = arith.mulf %80, %81 : vector<144x1xf32>
      %83 = math.floor %82 : vector<144x1xf32>
      %cst_33 = arith.constant 2.400000e+01 : f32
      %84 = vector.broadcast %cst_33 : f32 to vector<144x1xf32>
      %85 = arith.mulf %83, %84 : vector<144x1xf32>
      %86 = arith.subf %78, %85 : vector<144x1xf32>
      %cst_34 = arith.constant 1.000000e+00 : f32
      %87 = vector.broadcast %cst_34 : f32 to vector<144x1xf32>
      %88 = arith.cmpf oge, %83, %87 : vector<144x1xf32>
      %cst_35 = arith.constant 1.600000e+01 : f32
      %89 = vector.broadcast %cst_35 : f32 to vector<144x1xf32>
      %90 = arith.cmpf ole, %83, %89 : vector<144x1xf32>
      %91 = arith.andi %88, %90 : vector<144x1xi1>
      %cst_36 = arith.constant 1.000000e+00 : f32
      %92 = vector.broadcast %cst_36 : f32 to vector<144x1xf32>
      %93 = arith.cmpf oge, %86, %92 : vector<144x1xf32>
      %94 = arith.andi %91, %93 : vector<144x1xi1>
      %cst_37 = arith.constant 1.600000e+01 : f32
      %95 = vector.broadcast %cst_37 : f32 to vector<144x1xf32>
      %96 = arith.cmpf ole, %86, %95 : vector<144x1xf32>
      %97 = arith.andi %94, %96 : vector<144x1xi1>
      %98 = arith.extf %70 : vector<144x128xbf16> to vector<144x128xf32>
      %c0_38 = arith.constant 0 : index
      %c0_39 = arith.constant 0 : index
      %99 = vector.load %arg4[%c0_38, %c0_39] : memref<1x128xf32, #tpu.memory_space<vmem>>, vector<1x128xf32>
      %100 = vector.broadcast %99 : vector<1x128xf32> to vector<144x128xf32>
      %101 = arith.mulf %98, %100 : vector<144x128xf32>
      %c0_40 = arith.constant 0 : index
      %c0_41 = arith.constant 0 : index
      %102 = vector.load %arg5[%c0_40, %c0_41] : memref<1x128xf32, #tpu.memory_space<vmem>>, vector<1x128xf32>
      %103 = vector.broadcast %102 : vector<1x128xf32> to vector<144x128xf32>
      %104 = arith.addf %101, %103 : vector<144x128xf32>
      %cst_42 = arith.constant 0.000000e+00 : f32
      %105 = vector.broadcast %cst_42 : f32 to vector<144x128xf32>
      %106 = arith.maximumf %104, %105 : vector<144x128xf32>
      %cst_43 = arith.constant 0.000000e+00 : f32
      %107 = vector.shape_cast %97 : vector<144x1xi1> to vector<144x1xi1>
      %108 = vector.broadcast %107 : vector<144x1xi1> to vector<144x128xi1>
      %109 = vector.broadcast %cst_43 : f32 to vector<144x128xf32>
      %110 = arith.select %108, %106, %109 : vector<144x128xi1>, vector<144x128xf32>
      %111 = arith.truncf %110 : vector<144x128xf32> to vector<144x128xbf16>
      %112 = vector.extract_strided_slice %111 {offsets = [7, 0], sizes = [128, 128], strides = [1, 1]} : vector<144x128xbf16> to vector<128x128xbf16>
      %113 = vector.extract_strided_slice %111 {offsets = [8, 0], sizes = [128, 128], strides = [1, 1]} : vector<144x128xbf16> to vector<128x128xbf16>
      %114 = vector.extract_strided_slice %111 {offsets = [9, 0], sizes = [128, 128], strides = [1, 1]} : vector<144x128xbf16> to vector<128x128xbf16>
      %115 = tpu.concatenate %112, %113, %114 in 1 : vector<128x128xbf16>, vector<128x128xbf16>, vector<128x128xbf16> -> vector<128x384xbf16>
      %c1 = arith.constant 1 : index
      %c0_44 = arith.constant 0 : index
      %c0_45 = arith.constant 0 : index
      %116 = vector.load %arg3[%c1, %c0_44, %c0_45] : memref<3x384x128xbf16, #tpu.memory_space<vmem>>, vector<1x384x128xbf16>
      %117 = vector.shape_cast %116 : vector<1x384x128xbf16> to vector<384x128xbf16>
      %cst_46 = arith.constant dense<0.000000e+00> : vector<128x128xf32>
      %118 = tpu.matmul %115, %117, %cst_46 {dimension_numbers = #tpu.dot_dimension_numbers<[1], [0], [0], [1], [0, 0, 1, 1], [], []>} : vector<128x384xbf16>, vector<384x128xbf16>, vector<128x128xf32> -> vector<128x128xf32>
      %119 = arith.addf %64, %118 : vector<128x128xf32>
      %c24_i32 = arith.constant 24 : i32
      %120 = arith.addi %8, %c24_i32 : i32
      %c8_i32_47 = arith.constant 8 : i32
      %121 = arith.subi %120, %c8_i32_47 : i32
      %122 = tpu.assume_multiple %121, 8 : i32
      %c0_48 = arith.constant 0 : index
      %123 = arith.index_cast %122 : i32 to index
      %c0_49 = arith.constant 0 : index
      %124 = vector.load %arg2[%c0_48, %123, %c0_49] : memref<1x768x128xbf16, #tpu.memory_space<vmem>>, vector<1x144x128xbf16>
      %125 = vector.shape_cast %124 : vector<1x144x128xbf16> to vector<144x128xbf16>
      %126 = tpu.iota {dimensions = array<i32: 0>} : vector<144x1xi32>
      %c1_i32_50 = arith.constant 1 : i32
      %127 = arith.subi %arg1, %c1_i32_50 : i32
      %c128_i32_51 = arith.constant 128 : i32
      %128 = arith.muli %127, %c128_i32_51 : i32
      %c24_i32_52 = arith.constant 24 : i32
      %129 = arith.addi %128, %c24_i32_52 : i32
      %c8_i32_53 = arith.constant 8 : i32
      %130 = arith.subi %129, %c8_i32_53 : i32
      %131 = vector.broadcast %130 : i32 to vector<144x1xi32>
      %132 = arith.addi %131, %126 : vector<144x1xi32>
      %133 = arith.sitofp %132 : vector<144x1xi32> to vector<144x1xf32>
      %cst_54 = arith.constant 5.000000e-01 : f32
      %134 = vector.broadcast %cst_54 : f32 to vector<144x1xf32>
      %135 = arith.addf %133, %134 : vector<144x1xf32>
      %cst_55 = arith.constant 0.0416666679 : f32
      %136 = vector.broadcast %cst_55 : f32 to vector<144x1xf32>
      %137 = arith.mulf %135, %136 : vector<144x1xf32>
      %138 = math.floor %137 : vector<144x1xf32>
      %cst_56 = arith.constant 2.400000e+01 : f32
      %139 = vector.broadcast %cst_56 : f32 to vector<144x1xf32>
      %140 = arith.mulf %138, %139 : vector<144x1xf32>
      %141 = arith.subf %133, %140 : vector<144x1xf32>
      %cst_57 = arith.constant 1.000000e+00 : f32
      %142 = vector.broadcast %cst_57 : f32 to vector<144x1xf32>
      %143 = arith.cmpf oge, %138, %142 : vector<144x1xf32>
      %cst_58 = arith.constant 1.600000e+01 : f32
      %144 = vector.broadcast %cst_58 : f32 to vector<144x1xf32>
      %145 = arith.cmpf ole, %138, %144 : vector<144x1xf32>
      %146 = arith.andi %143, %145 : vector<144x1xi1>
      %cst_59 = arith.constant 1.000000e+00 : f32
      %147 = vector.broadcast %cst_59 : f32 to vector<144x1xf32>
      %148 = arith.cmpf oge, %141, %147 : vector<144x1xf32>
      %149 = arith.andi %146, %148 : vector<144x1xi1>
      %cst_60 = arith.constant 1.600000e+01 : f32
      %150 = vector.broadcast %cst_60 : f32 to vector<144x1xf32>
      %151 = arith.cmpf ole, %141, %150 : vector<144x1xf32>
      %152 = arith.andi %149, %151 : vector<144x1xi1>
      %153 = arith.extf %125 : vector<144x128xbf16> to vector<144x128xf32>
      %c0_61 = arith.constant 0 : index
      %c0_62 = arith.constant 0 : index
      %154 = vector.load %arg4[%c0_61, %c0_62] : memref<1x128xf32, #tpu.memory_space<vmem>>, vector<1x128xf32>
      %155 = vector.broadcast %154 : vector<1x128xf32> to vector<144x128xf32>
      %156 = arith.mulf %153, %155 : vector<144x128xf32>
      %c0_63 = arith.constant 0 : index
      %c0_64 = arith.constant 0 : index
      %157 = vector.load %arg5[%c0_63, %c0_64] : memref<1x128xf32, #tpu.memory_space<vmem>>, vector<1x128xf32>
      %158 = vector.broadcast %157 : vector<1x128xf32> to vector<144x128xf32>
      %159 = arith.addf %156, %158 : vector<144x128xf32>
      %cst_65 = arith.constant 0.000000e+00 : f32
      %160 = vector.broadcast %cst_65 : f32 to vector<144x128xf32>
      %161 = arith.maximumf %159, %160 : vector<144x128xf32>
      %cst_66 = arith.constant 0.000000e+00 : f32
      %162 = vector.shape_cast %152 : vector<144x1xi1> to vector<144x1xi1>
      %163 = vector.broadcast %162 : vector<144x1xi1> to vector<144x128xi1>
      %164 = vector.broadcast %cst_66 : f32 to vector<144x128xf32>
      %165 = arith.select %163, %161, %164 : vector<144x128xi1>, vector<144x128xf32>
      %166 = arith.truncf %165 : vector<144x128xf32> to vector<144x128xbf16>
      %167 = vector.extract_strided_slice %166 {offsets = [7, 0], sizes = [128, 128], strides = [1, 1]} : vector<144x128xbf16> to vector<128x128xbf16>
      %168 = vector.extract_strided_slice %166 {offsets = [8, 0], sizes = [128, 128], strides = [1, 1]} : vector<144x128xbf16> to vector<128x128xbf16>
      %169 = vector.extract_strided_slice %166 {offsets = [9, 0], sizes = [128, 128], strides = [1, 1]} : vector<144x128xbf16> to vector<128x128xbf16>
      %170 = tpu.concatenate %167, %168, %169 in 1 : vector<128x128xbf16>, vector<128x128xbf16>, vector<128x128xbf16> -> vector<128x384xbf16>
      %c2 = arith.constant 2 : index
      %c0_67 = arith.constant 0 : index
      %c0_68 = arith.constant 0 : index
      %171 = vector.load %arg3[%c2, %c0_67, %c0_68] : memref<3x384x128xbf16, #tpu.memory_space<vmem>>, vector<1x384x128xbf16>
      %172 = vector.shape_cast %171 : vector<1x384x128xbf16> to vector<384x128xbf16>
      %cst_69 = arith.constant dense<0.000000e+00> : vector<128x128xf32>
      %173 = tpu.matmul %170, %172, %cst_69 {dimension_numbers = #tpu.dot_dimension_numbers<[1], [0], [0], [1], [0, 0, 1, 1], [], []>} : vector<128x384xbf16>, vector<384x128xbf16>, vector<128x128xf32> -> vector<128x128xf32>
      %174 = arith.addf %119, %173 : vector<128x128xf32>
      %175 = tpu.iota {dimensions = array<i32: 0>} : vector<128x1xi32>
      %c1_i32_70 = arith.constant 1 : i32
      %176 = arith.subi %arg1, %c1_i32_70 : i32
      %c128_i32_71 = arith.constant 128 : i32
      %177 = arith.muli %176, %c128_i32_71 : i32
      %178 = vector.broadcast %177 : i32 to vector<128x1xi32>
      %179 = arith.addi %178, %175 : vector<128x1xi32>
      %180 = arith.sitofp %179 : vector<128x1xi32> to vector<128x1xf32>
      %cst_72 = arith.constant 5.000000e-01 : f32
      %181 = vector.broadcast %cst_72 : f32 to vector<128x1xf32>
      %182 = arith.addf %180, %181 : vector<128x1xf32>
      %cst_73 = arith.constant 0.0416666679 : f32
      %183 = vector.broadcast %cst_73 : f32 to vector<128x1xf32>
      %184 = arith.mulf %182, %183 : vector<128x1xf32>
      %185 = math.floor %184 : vector<128x1xf32>
      %cst_74 = arith.constant 2.400000e+01 : f32
      %186 = vector.broadcast %cst_74 : f32 to vector<128x1xf32>
      %187 = arith.mulf %185, %186 : vector<128x1xf32>
      %188 = arith.subf %180, %187 : vector<128x1xf32>
      %cst_75 = arith.constant 1.000000e+00 : f32
      %189 = vector.broadcast %cst_75 : f32 to vector<128x1xf32>
      %190 = arith.cmpf oge, %185, %189 : vector<128x1xf32>
      %cst_76 = arith.constant 1.600000e+01 : f32
      %191 = vector.broadcast %cst_76 : f32 to vector<128x1xf32>
      %192 = arith.cmpf ole, %185, %191 : vector<128x1xf32>
      %193 = arith.andi %190, %192 : vector<128x1xi1>
      %cst_77 = arith.constant 1.000000e+00 : f32
      %194 = vector.broadcast %cst_77 : f32 to vector<128x1xf32>
      %195 = arith.cmpf oge, %188, %194 : vector<128x1xf32>
      %196 = arith.andi %193, %195 : vector<128x1xi1>
      %cst_78 = arith.constant 1.600000e+01 : f32
      %197 = vector.broadcast %cst_78 : f32 to vector<128x1xf32>
      %198 = arith.cmpf ole, %188, %197 : vector<128x1xf32>
      %199 = arith.andi %196, %198 : vector<128x1xi1>
      %cst_79 = arith.constant 0.000000e+00 : f32
      %200 = vector.shape_cast %199 : vector<128x1xi1> to vector<128x1xi1>
      %201 = vector.broadcast %200 : vector<128x1xi1> to vector<128x128xi1>
      %202 = vector.broadcast %cst_79 : f32 to vector<128x128xf32>
      %203 = arith.select %201, %174, %202 : vector<128x128xi1>, vector<128x128xf32>
      %204 = arith.truncf %203 : vector<128x128xf32> to vector<128x128xbf16>
      %c0_80 = arith.constant 0 : index
      %c0_81 = arith.constant 0 : index
      %c0_82 = arith.constant 0 : index
      %205 = vector.load %arg6[%c0_80, %c0_81, %c0_82] : memref<1x128x128xbf16, #tpu.memory_space<vmem>>, vector<1x128x128xbf16>
      %206 = vector.shape_cast %205 : vector<1x128x128xbf16> to vector<128x128xbf16>
      %207 = vector.shape_cast %204 : vector<128x128xbf16> to vector<1x128x128xbf16>
      tpu.vector_store %arg6[%c0_80, %c0_81, %c0_82], %207 {strides = array<i32>} : memref<1x128x128xbf16, #tpu.memory_space<vmem>>, vector<1x128x128xbf16>,
      %208 = arith.extui %199 : vector<128x1xi1> to vector<128x1xi32>
      %209 = arith.sitofp %208 : vector<128x1xi32> to vector<128x1xf32>
      %210 = vector.shape_cast %209 : vector<128x1xf32> to vector<1x128x1xf32>
      %cst_83 = arith.constant dense<0.000000e+00> : vector<1xf32>
      %211 = vector.multi_reduction <add>, %210, %cst_83 [1, 2] : vector<1x128x1xf32> to vector<1xf32>
      %212 = vector.shape_cast %211 : vector<1xf32> to vector<1x1x1xf32>
      %213 = vector.extract %212[0, 0, 0] : f32 from vector<1x1x1xf32>
      %214 = vector.broadcast %213 : f32 to vector<1x1xf32>
      %cst_84 = arith.constant dense<0.000000e+00> : vector<128xf32>
      %215 = vector.multi_reduction <add>, %203, %cst_84 [0] : vector<128x128xf32> to vector<128xf32>
      %216 = vector.shape_cast %215 : vector<128xf32> to vector<1x128xf32>
      %cst_85 = arith.constant 1.000000e+00 : f32
      %217 = vector.broadcast %cst_85 : f32 to vector<1x1xf32>
      %218 = arith.maximumf %214, %217 : vector<1x1xf32>
      %219 = vector.broadcast %218 : vector<1x1xf32> to vector<1x128xf32>
      %220 = arith.divf %216, %219 : vector<1x128xf32>
      %221 = vector.broadcast %220 : vector<1x128xf32> to vector<128x128xf32>
      %222 = arith.subf %174, %221 : vector<128x128xf32>
      %cst_86 = arith.constant 0.000000e+00 : f32
      %223 = vector.shape_cast %199 : vector<128x1xi1> to vector<128x1xi1>
      %224 = vector.broadcast %223 : vector<128x1xi1> to vector<128x128xi1>
      %225 = vector.broadcast %cst_86 : f32 to vector<128x128xf32>
      %226 = arith.select %224, %222, %225 : vector<128x128xi1>, vector<128x128xf32>
      %227 = arith.mulf %226, %226 : vector<128x128xf32>
      %cst_87 = arith.constant dense<0.000000e+00> : vector<128xf32>
      %228 = vector.multi_reduction <add>, %227, %cst_87 [0] : vector<128x128xf32> to vector<128xf32>
      %229 = vector.shape_cast %228 : vector<128xf32> to vector<1x128xf32>
      %230 = tpu.iota {dimensions = array<i32: 0>} : vector<8x1xi32>
      %c0_i32_88 = arith.constant 0 : i32
      %231 = vector.broadcast %c0_i32_88 : i32 to vector<8x1xi32>
      %232 = arith.cmpi eq, %230, %231 : vector<8x1xi32>
      %c1_i32_89 = arith.constant 1 : i32
      %233 = vector.broadcast %c1_i32_89 : i32 to vector<8x1xi32>
      %234 = arith.cmpi eq, %230, %233 : vector<8x1xi32>
      %c2_i32 = arith.constant 2 : i32
      %235 = vector.broadcast %c2_i32 : i32 to vector<8x1xi32>
      %236 = arith.cmpi eq, %230, %235 : vector<8x1xi32>
      %cst_90 = arith.constant 0.000000e+00 : f32
      %237 = vector.shape_cast %214 : vector<1x1xf32> to vector<1x1xf32>
      %238 = vector.broadcast %237 : vector<1x1xf32> to vector<8x1xf32>
      %239 = vector.broadcast %cst_90 : f32 to vector<8x1xf32>
      %240 = arith.select %236, %238, %239 : vector<8x1xi1>, vector<8x1xf32>
      %241 = vector.shape_cast %234 : vector<8x1xi1> to vector<8x1xi1>
      %242 = vector.broadcast %241 : vector<8x1xi1> to vector<8x128xi1>
      %243 = vector.shape_cast %229 : vector<1x128xf32> to vector<1x128xf32>
      %244 = vector.broadcast %243 : vector<1x128xf32> to vector<8x128xf32>
      %245 = vector.shape_cast %240 : vector<8x1xf32> to vector<8x1xf32>
      %246 = vector.broadcast %245 : vector<8x1xf32> to vector<8x128xf32>
      %247 = arith.select %242, %244, %246 : vector<8x128xi1>, vector<8x128xf32>
      %248 = vector.shape_cast %232 : vector<8x1xi1> to vector<8x1xi1>
      %249 = vector.broadcast %248 : vector<8x1xi1> to vector<8x128xi1>
      %250 = vector.shape_cast %216 : vector<1x128xf32> to vector<1x128xf32>
      %251 = vector.broadcast %250 : vector<1x128xf32> to vector<8x128xf32>
      %252 = arith.select %249, %251, %247 : vector<8x128xi1>, vector<8x128xf32>
      %c0_91 = arith.constant 0 : index
      %c0_92 = arith.constant 0 : index
      %c0_93 = arith.constant 0 : index
      %c0_94 = arith.constant 0 : index
      %253 = vector.load %arg7[%c0_91, %c0_92, %c0_93, %c0_94] : memref<1x1x8x128xf32, #tpu.memory_space<vmem>>, vector<1x1x8x128xf32>
      %254 = vector.shape_cast %253 : vector<1x1x8x128xf32> to vector<8x128xf32>
      %255 = vector.shape_cast %252 : vector<8x128xf32> to vector<1x1x8x128xf32>
      tpu.vector_store %arg7[%c0_91, %c0_92, %c0_93, %c0_94], %255 {strides = array<i32>} : memref<1x1x8x128xf32, #tpu.memory_space<vmem>>, vector<1x1x8x128xf32>,
    } else {
    }
    return
  }
  func.func @transform_0(%arg0: i32, %arg1: i32) -> (i32, i32, i32) {
    %c0_i32 = arith.constant 0 : i32
    %c0_i32_0 = arith.constant 0 : i32
    %c0_i32_1 = arith.constant 0 : i32
    return %arg0, %c0_i32, %c0_i32_0 : i32, i32, i32
  }
  func.func @transform_1(%arg0: i32, %arg1: i32) -> (i32, i32, i32) {
    %c0_i32 = arith.constant 0 : i32
    %c0_i32_0 = arith.constant 0 : i32
    %c0_i32_1 = arith.constant 0 : i32
    %c0_i32_2 = arith.constant 0 : i32
    return %c0_i32, %c0_i32_0, %c0_i32_1 : i32, i32, i32
  }
  func.func @transform_2(%arg0: i32, %arg1: i32) -> (i32, i32) {
    %c0_i32 = arith.constant 0 : i32
    %c0_i32_0 = arith.constant 0 : i32
    %c0_i32_1 = arith.constant 0 : i32
    return %c0_i32, %c0_i32_0 : i32, i32
  }
  func.func @transform_3(%arg0: i32, %arg1: i32) -> (i32, i32) {
    %c0_i32 = arith.constant 0 : i32
    %c0_i32_0 = arith.constant 0 : i32
    %c0_i32_1 = arith.constant 0 : i32
    return %c0_i32, %c0_i32_0 : i32, i32
  }
  func.func @transform_4(%arg0: i32, %arg1: i32) -> (i32, i32, i32) {
    %c0_i32 = arith.constant 0 : i32
    %c0_i32_0 = arith.constant 0 : i32
    return %arg0, %arg1, %c0_i32 : i32, i32, i32
  }
  func.func @transform_5(%arg0: i32, %arg1: i32) -> (i32, i32, i32, i32) {
    %c0_i32 = arith.constant 0 : i32
    %c0_i32_0 = arith.constant 0 : i32
    %c0_i32_1 = arith.constant 0 : i32
    return %arg0, %arg1, %c0_i32, %c0_i32_0 : i32, i32, i32, i32
  }
}

</mosaic_0001>

<bundles_post_ra>
// kernel: conv_block_forward.4
= control target key start
LH: loop header
LB: loop body
LE: loop exit
PB: predicated region body
PF: predicated region fallthrough
CT: control target
= control target key end

     0   :  { %v115_v1 = vmov 0   ;;  %vm52_vm0 = vcmask 261120   ;;  %v22_v6 = vlaneseq  ;;  %s160_s1 = inlined_call_operand.vmem [shape: bf16[32,256], index: 1, kind: input, shape index: {}]   ;;  %s161_s0 = inlined_call_operand.vmem [shape: bf16[8,32], index: 0, kind: input, shape index: {}]   ;;  %s162_s2 = inlined_call_operand.vmem [shape: f32[1,256], index: 2, kind: input, shape index: {}]   ;;  %s163_s3 = inlined_call_operand.vmem [shape: f32[8,256], index: 3, kind: output, shape index: {}]  }
   0x1   :  { %v109_v0 = vld [vmem:[%s160_s1 + $0x4] ss:$8 sps:$4 sm:$0xff]   ;;  %88 = vmatprep.mubr.bf16.mxu0 %v115_v1  ;;  %v111_v2 = vld [vmem:[%s160_s1] ss:$8 sps:$4 sm:$0xff]   ;;  %v112_v3 = vld [vmem:[%s160_s1 + $0x14] ss:$8 sps:$4 sm:$0xff]  }
   0x2   :  { %56 = vmatprep.subr.bf16.mxu0 %v109_v0  ;;  %v114_v4 = vld [vmem:[%s160_s1 + $0x10] ss:$8 sps:$4 sm:$0xff]   ;;  %v15_v5 = vld [vmem:[%s161_s0] sm:$0xf]  ;;  %v23_v7 = vshrl.u32 %v22_v6, 7 }
   0x3   :  { %57 = vmatpush1.bf16.msra.mxu0 %v111_v2  ;;  %v20_v9 = vld [vmem:[%s162_s2] sm:$0x3] }
   0x4   :  { %58 = vmatprep.subr.bf16.mxu0 %v112_v3  ;;  %v24_v8 = vsub.s32 0, %v23_v7  ;;  %v28_v10 = vsub.s32 1, %v23_v7 }
   0x6   :  { %v25_v11 = vrot.slane %v20_v9, %v24_v8  ;;  %v29_v12 = vrot.slane %v20_v9, %v28_v10 }
   0x7   :  { %59 = vmatpush1.bf16.msra.mxu0 %v114_v4 }
   0xa   :  { %107 = vmatmul.mubr.msk.bf16.vlgmr.msra.gmra.mrb[0].mxu0 %vm52_vm0, %v15_v5 }
  0xdd   :  { %v90_v13 = vpop.f32.mrb[0].mxu0 }
  0xde   :  { %v91_v14 = vadd.f32 %v90_v13, %v25_v11  ;;  %v92_v15 = vpop.f32.mrb[1].mxu0 }
  0xdf   :  { %v93_v16 = vadd.f32 %v92_v15, %v29_v12  ;;  %v94_v17 = vpop.f32.mrb[2].mxu0 }
  0xe0   :  { %97 = vst [vmem:[%s163_s3] sm:$0xff] %v91_v14  ;;  %v95_v18 = vpop.f32.mrb[3].mxu0 }
  0xe1   :  { %98 = vst [vmem:[%s163_s3 + $0x8] sm:$0xff] %v93_v16 }

// kernel: conv_block_forward.7
= control target key start
LH: loop header
LB: loop body
LE: loop exit
PB: predicated region body
PF: predicated region fallthrough
CT: control target
= control target key end

     0   :  { %8 = vsyncpa [#allocation3], 0  ;;  %s2091_s0 = inlined_call_operand.hbm [shape: bf16[2,768,128], index: 0, kind: input, shape index: {}]   ;;  %s2092_s1 = inlined_call_operand.hbm [shape: f32[1,128], index: 1, kind: input, shape index: {}]   ;;  %s2093_s2 = inlined_call_operand.hbm [shape: f32[1,128], index: 2, kind: input, shape index: {}]   ;;  %s2094_s3 = inlined_call_operand.hbm [shape: f32[2,768,128], index: 3, kind: output, shape index: {}]  }
   0x1   :  { %10 = vsyncpa [#allocation3 + $0x1], 0 }
   0x2   :  { %11 = vsyncpa [#allocation6], 0 }
   0x3   :  { %12 = vsyncpa [#allocation4], 0 }
   0x4   :  { %14 = vsyncpa [#allocation4 + $0x1], 0  ;;  %s1494_s12 = smov 0   ;;  %s1496_s13 = smov 0  }
   0x5   :  { %s1498_s14 = smov 0   ;;  %s1500_s15 = smov 0  }
   0x6   :  { %s1502_s16 = smov 0   ;;  %s1504_s17 = smov 0  }
   0x7 LB: > { %s946_s18 = sadd.s32 4294967295, %s1464_s17   ;;  %s947_s19 = sadd.s32 4294967294, %s1464_s17   ;;  %s1464_s17 = sphi %s1504_s17, %s20_s17   ;;  %s1460_s16 = sphi %s1502_s16, %s2120_s16   ;;  %s1456_s15 = sphi %s1500_s15, %s2119_s15   ;;  %s1452_s14 = sphi %s1498_s14, %s2118_s14   ;;  %s1448_s13 = sphi %s1496_s13, %s2117_s13   ;;  %s1444_s12 = sphi %s1494_s12, %s2116_s12  }
   0x8   : > { %s41_s20 = sadd.s32 1, %s1452_s14  ;;  %p48_p0 = scmp.ne.s32.totalorder %s1452_s14, %s1448_s13 }
   0x9   : > { %p49_p1 = scmp.eq.s32.totalorder %s1464_s17, 0  ;;  %p54_p2 = scmp.ne.s32.totalorder %s1448_s13, %s1444_s12 }
   0xa   : > { %p1532_p3 = scmp.eq.s32.totalorder %s946_s18, 0  ;;  %p122_p4 = scmp.eq.s32.totalorder %s946_s18, 1 }
   0xb   : > { %p1536_p5 = por %p49_p1, %p48_p0  ;;  %p128_p6 = scmp.eq.s32.totalorder %s947_s19, 1 }
   0xc   : > { %s2101_s21 = scalar_select %p1532_p3, 1, 0 }
   0xd   : > { %p1542_p7 = por %p1532_p3, %p54_p2  ;;  %p1546_p8 = por %p122_p4, %p48_p0 }
   0xe   : > { %p1550_p9 = por %p128_p6, %p54_p2  ;;  %p948_p10 = scmp.ge.s32.totalorder %s1464_s17, 1 }
   0xf   : > { %s2103_s23 = scalar_select %p1542_p7, 1, 0 }
  0x10   : > { %s2104_s24 = scalar_select %p1546_p8, 1, 0 }
  0x11   : > { %s2105_s25 = scalar_select %p1550_p9, 1, 0 }
  0x12   : > { %p135_p11 = scmp.lt.s32.totalorder %s1464_s17, 3  ;;  %s1466_s27 = smov [#allocation5]  }
  0x13   : > { %s148_s28 = sshll.u32 %s1466_s27, 4  ;;  %p1234_p1 = scmp.lt.s32.totalorder %s1464_s17, 2  ;;  %s149_s28 = int_to_ptr.vmem [resolvable:$true] %s148_s28 }
  0x14   : > { %p1557_p13 = pnand %p948_p10, %p135_p11  ;;  %s1467_s30 = smov [#allocation7]  }
  0x15   : > { %p1566_p4 = pnand %p1234_p1, %p1536_p5  ;;  %s159_s4 = sshll.u32 %s1467_s30, 4  ;;  %s1576_s4 = int_to_ptr.vmem [resolvable:$true] %s159_s4 }
  0x16   : > { %s2106_s26 = scalar_select %p1557_p13, 1, 0 }
  0x17   : > { %p1217_p0 = pneg %p1557_p13  ;;  %s1292_s8 = scalar_lea.hbm %s2092_s1, 16 }
  0x18   : > { %s2107_s29 = scalar_select %p1566_p4, 1, 0 }
  0x19   : > { %p1572_p2 = pnand %p1217_p0, %p1532_p3  ;;  %p1293_p5 = scmp.ne.s32.totalorder %s2092_s1, %s1292_s8 }
  0x1a   : > { %p1299_p1 = scmp.lt.u32.totalorder %s1292_s8, %s2092_s1 }
  0x1b   : > { %p1294_p6 = pneg %p1572_p2 }
  0x1d   : > { %p1295_p10 = pnand %p1294_p6, %p1293_p5 }
  0x1f   : > { %p1296_p11 = pneg %p1295_p10 }
  0x21   : > { %p1301_p0 = pnand %p1299_p1, %p1296_p11 }
  0x23   : > { %1304 = shalt.err (!%p1301_p0)
}
  0x24   : > { %s1305_s19 = scalar_lea.vmem %s149_s28, 16  ;;  %s1312_s22 = scalar_lea.vmem %s149_s28, 32 }
  0x25   : > { %p1306_p12 = scmp.ne.s32.totalorder %s149_s28, %s1305_s19  ;;  %p1313_p3 = scmp.lt.s32.totalorder %s149_s28, %s149_s28 }
  0x26   : > { %p1314_p7 = scmp.lt.s32.totalorder %s1312_s22, %s1305_s19 }
  0x27   : > { %p1308_p9 = pnand %p1306_p12, %p1294_p6 }
  0x28   : > { %p1315_p13 = por %p1314_p7, %p1313_p3 }
  0x29   : > { %p1309_p8 = pneg %p1308_p9 }
  0x2b   : > { %p1316_p4 = pnand %p1315_p13, %p1309_p8 }
  0x2d   : > { %1319 = shalt.err (!%p1316_p4)
}
  0x2e   : > { %1220 = dma.hbm_to_vmem [thread:$0]  (!%p1572_p2), %s2092_s1, 16, %s149_s28, [#allocation6]  }
  0x2f   : > { %s1320_s8 = scalar_lea.hbm %s2093_s2, 16 }
  0x30   : > { %p1321_p9 = scmp.ne.s32.totalorder %s2093_s2, %s1320_s8  ;;  %p1327_p8 = scmp.lt.u32.totalorder %s1320_s8, %s2093_s2 }
  0x32   : > { %p1323_p3 = pnand %p1321_p9, %p1294_p6 }
  0x34   : > { %p1324_p7 = pneg %p1323_p3 }
  0x36   : > { %p1329_p12 = pnand %p1327_p8, %p1324_p7 }
  0x38   : > { %1332 = shalt.err (!%p1329_p12)
}
  0x39   : > { %s1333_s28 = scalar_lea.vmem %s1576_s4, 16  ;;  %s1340_s19 = scalar_lea.vmem %s1576_s4, 32 }
  0x3a   : > { %p1334_p13 = scmp.ne.s32.totalorder %s1576_s4, %s1333_s28  ;;  %p1341_p10 = scmp.lt.s32.totalorder %s1576_s4, %s1576_s4 }
  0x3b   : > { %p1342_p11 = scmp.lt.s32.totalorder %s1340_s19, %s1333_s28 }
  0x3c   : > { %p1336_p4 = pnand %p1334_p13, %p1294_p6 }
  0x3d   : > { %p1343_p1 = por %p1342_p11, %p1341_p10 }
  0x3e   : > { %p1337_p5 = pneg %p1336_p4 }
  0x40   : > { %p1344_p0 = pnand %p1343_p1, %p1337_p5 }
  0x42   : > { %1347 = shalt.err (!%p1344_p0)
}
  0x43   : > { %1223 = dma.hbm_to_vmem [thread:$0]  (!%p1572_p2), %s2093_s2, 16, %s1576_s4, [#allocation6]  }
  0x44   : > { %s32_s30 = sadd.s32 1, %s1460_s16  ;;  %s170_s6 = sand.u32 1, %s1452_s14  }
  0x45   : > { %p34_p6 = scmp.ge.s32.totalorder %s32_s30, 2  ;;  %s1200_s7 = smul.u32 384, %s170_s6 }
  0x46   : > { %s1201_s5 = smul.u32 6144, %s1460_s16  ;;  %s1645_s19 = scalar_lea.sflag [#allocation3], %s170_s6 }
  0x47   : > { %s2122_s30 = smov (%p34_p6, %s32_s30), 0  ;;  %s174_s9 = scalar_lea.vmem [#allocation2], %s1200_s7 }
  0x48   : > { %s36_s8 = ssub.s32 %s1460_s16, %s2122_s30  ;;  %s183_s10 = sshll.u32 %s174_s9, 4  ;;  %s1638_s10 = int_to_ptr.vmem [resolvable:$true] %s183_s10 }
  0x49   : > { %p39_p9 = scmp.eq.s32.totalorder %s36_s8, 0  ;;  %s1636_s28 = scalar_lea.hbm %s2091_s0, %s1201_s5 }
  0x4a   : > { %s1348_s22 = scalar_lea.hbm %s1636_s28, 6144  ;;  %p2109_p3 = scmp.ne.s32.totalorder %s2107_s29, 0 }
  0x4b   : > { %s1643_s4 = scalar_select %p39_p9, %s1452_s14, %s41_s20  }
  0x4c   : > { %p1349_p2 = scmp.ne.s32.totalorder %s1636_s28, %s1348_s22  ;;  %p1350_p7 = pneg %p2109_p3 }
  0x4d   : > { %s1353_s5 = scalar_lea.hbm %s2091_s0, 12288  ;;  %p1354_p13 = scmp.lt.u32.totalorder %s1636_s28, %s2091_s0 }
  0x4e   : > { %p1351_p8 = pnand %p1350_p7, %p1349_p2  ;;  %p1355_p4 = scmp.lt.u32.totalorder %s1353_s5, %s1348_s22 }
  0x4f   : > { %p1357_p10 = scmp.lt.u32.totalorder %s1348_s22, %s1636_s28 }
  0x50   : > { %p1352_p12 = pneg %p1351_p8  ;;  %p1356_p5 = por %p1355_p4, %p1354_p13 }
  0x52   : > { %p1358_p11 = por %p1357_p10, %p1356_p5 }
  0x54   : > { %p1359_p1 = pnand %p1358_p11, %p1352_p12 }
  0x56   : > { %1362 = shalt.err (!%p1359_p1)
}
  0x57   : > { %s1363_s20 = scalar_lea.vmem %s1638_s10, 6144  ;;  %s1468_s6 = smov [#allocation2]  }
  0x58   : > { %p1364_p0 = scmp.ne.s32.totalorder %s1638_s10, %s1363_s20  ;;  %s1368_s11 = sshll.u32 %s1468_s6, 4  ;;  %s1369_s11 = int_to_ptr.vmem [resolvable:$false] %s1368_s11 }
  0x59   : > { %s1370_s18 = scalar_lea.vmem %s1369_s11, 12288  ;;  %p1371_p2 = scmp.lt.s32.totalorder %s1638_s10, %s1369_s11 }
  0x5a   : > { %p1366_p6 = pnand %p1364_p0, %p1350_p7  ;;  %p1372_p8 = scmp.lt.s32.totalorder %s1370_s18, %s1363_s20 }
  0x5c   : > { %p1367_p9 = pneg %p1366_p6  ;;  %p1373_p13 = por %p1372_p8, %p1371_p2 }
  0x5e   : > { %p1374_p4 = pnand %p1373_p13, %p1367_p9 }
  0x60   : > { %1377 = shalt.err (!%p1374_p4)
}
  0x61   : > { %s1469_s22 = smov 64   ;;  %s1470_s27 = smov 4  }
  0x62   : > { %1227 = dma.hbm_to_vmem [thread:$0]  (!%p2109_p3), %s1636_s28, 6144, %s1638_s10, %s1645_s19, %s1469_s22, %s1469_s22, %s1470_s27  }
  0x63   : > { %p2110_p7 = scmp.ne.s32.totalorder %s2106_s26, 0 }
  0x64   : > { %s1676_s7 = sand.u32 (!%p2110_p7), 1, %s1448_s13   ;;  %p2111_p12 = scmp.ne.s32.totalorder (!%p2110_p7), %s2103_s23, 0 }
  0x65   : > { %195 = sbr.rel (%p2110_p7) target bundleno = 226 (0xe2), region = 32  ;;  %s198_s8 = scalar_lea.sflag (!%p2110_p7), [#allocation3], %s1676_s7 }
  0x66   : > { %s1202_s5 = smul.u32 (!%p2110_p7), 384, %s1676_s7 }
  0x68   : > { %s1680_s9 = scalar_lea.vmem (!%p2110_p7), [#allocation2], %s1202_s5 }
  0x6c   : > { %1431 = dma.done.wait (%p2111_p12), %s198_s8, 6144  }
  0x6d   : > { %1433 = vsyncadd (%p2111_p12), %s198_s8, 4294961152  ;;  %p2112_p3 = scmp.ne.s32.totalorder %s2101_s21, 0 }
  0x6f   : > { %1435 = dma.done.wait (%p2112_p3), [#allocation6], 32  }
  0x70   : > { %1437 = vsyncadd (%p2112_p3), [#allocation6], 4294967264  ;;  %v962_v0 = vld [vmem:[%s1680_s9] sm:$0xff]   ;;  %v1153_v4 = vld [vmem:[%s1680_s9 + $0x8] sm:$0xff]   ;;  %s1203_s23 = smul.u32 768, %s1676_s7  ;;  %s825_s19 = scalar_lea.sflag [#allocation4], %s1676_s7 }
  0x71   : > { %v1691_v1 = vld [vmem:[#allocation5] ss:$0 sm:$0xff]  ;;  %v963_v2 = vunpack.c.l.bf16 %v962_v0  ;;  %v964_v3 = vunpack.c.h.bf16 %v962_v0  ;;  %v1154_v5 = vld [vmem:[%s1680_s9 + $0x10] sm:$0xff]   ;;  %v1155_v6 = vld [vmem:[%s1680_s9 + $0x18] sm:$0xff]   ;;  %v967_v8 = vunpack.c.l.bf16 %v1153_v4  ;;  %v968_v9 = vunpack.c.h.bf16 %v1153_v4  ;;  %s1204_s26 = smul.u32 12288, %s1456_s15  ;;  %p2113_p10 = scmp.ne.s32.totalorder %s2104_s24, 0 }
  0x72   : > { %v1697_v7 = vld [vmem:[#allocation7] ss:$0 sm:$0xff]  ;;  %v971_v10 = vunpack.c.l.bf16 %v1154_v5  ;;  %v972_v11 = vunpack.c.h.bf16 %v1154_v5  ;;  %v975_v14 = vunpack.c.l.bf16 %v1155_v6  ;;  %v976_v15 = vunpack.c.h.bf16 %v1155_v6  ;;  %v1157_v33 = vld [vmem:[%s1680_s9 + $0x28] sm:$0xff]   ;;  %v1158_v34 = vld [vmem:[%s1680_s9 + $0x30] sm:$0xff]   ;;  %s1721_s21 = scalar_lea.vmem [#allocation8], %s1203_s23  ;;  %s1471_s6 = smov [#allocation8]  }
  0x73   : > { %v433_v12 = vmul.f32 %v963_v2, %v1691_v1  ;;  %v434_v13 = vmul.f32 %v964_v3, %v1691_v1  ;;  %v435_v16 = vmul.f32 %v967_v8, %v1691_v1  ;;  %v436_v17 = vmul.f32 %v968_v9, %v1691_v1  ;;  %v1156_v28 = vld [vmem:[%s1680_s9 + $0x20] sm:$0xff]   ;;  %v1159_v39 = vld [vmem:[%s1680_s9 + $0x38] sm:$0xff]   ;;  %v1161_v6 = vld [vmem:[%s1680_s9 + $0x48] sm:$0xff]   ;;  %s840_s29 = sshll.u32 %s1721_s21, 4  ;;  %s2034_s28 = scalar_lea.hbm %s2094_s3, %s1204_s26  ;;  %s2036_s29 = int_to_ptr.vmem [resolvable:$true] %s840_s29 }
  0x74   : > { %v437_v18 = vmul.f32 %v971_v10, %v1691_v1  ;;  %v438_v19 = vmul.f32 %v972_v11, %v1691_v1  ;;  %v439_v22 = vmul.f32 %v975_v14, %v1691_v1  ;;  %v440_v23 = vmul.f32 %v976_v15, %v1691_v1  ;;  %v1160_v0 = vld [vmem:[%s1680_s9 + $0x40] sm:$0xff]   ;;  %v1162_v8 = vld [vmem:[%s1680_s9 + $0x50] sm:$0xff]   ;;  %s1378_s20 = scalar_lea.vmem %s2036_s29, 12288  ;;  %s1382_s11 = sshll.u32 %s1471_s6, 4  ;;  %s1383_s11 = int_to_ptr.vmem [resolvable:$false] %s1382_s11 }
  0x75   : > { %v536_v20 = vadd.f32 %v1697_v7, %v433_v12  ;;  %v537_v21 = vadd.f32 %v1697_v7, %v434_v13  ;;  %v538_v24 = vadd.f32 %v1697_v7, %v435_v16  ;;  %v539_v25 = vadd.f32 %v1697_v7, %v436_v17  ;;  %v1163_v13 = vld [vmem:[%s1680_s9 + $0x58] sm:$0xff]   ;;  %p1379_p5 = scmp.ne.s32.totalorder %s2036_s29, %s1378_s20  ;;  %s1384_s18 = scalar_lea.vmem %s1383_s11, 24576 }
  0x76   : > { %v540_v26 = vadd.f32 %v1697_v7, %v437_v18  ;;  %v541_v27 = vadd.f32 %v1697_v7, %v438_v19  ;;  %v542_v31 = vadd.f32 %v1697_v7, %v439_v22  ;;  %v543_v32 = vadd.f32 %v1697_v7, %v440_v23  ;;  %p1385_p0 = scmp.lt.s32.totalorder %s2036_s29, %s1383_s11  ;;  %p1386_p6 = scmp.lt.s32.totalorder %s1384_s18, %s1378_s20 }
  0x77   : > { %v632_v29 = vmax.f32 %v536_v20, 0.0  ;;  %v633_v30 = vmax.f32 %v537_v21, 0.0  ;;  %v634_v35 = vmax.f32 %v538_v24, 0.0  ;;  %v635_v36 = vmax.f32 %v539_v25, 0.0  ;;  %p1380_p11 = pnand %p1379_p5, %p2113_p10 }
  0x78   : > { %v636_v37 = vmax.f32 %v540_v26, 0.0  ;;  %v637_v38 = vmax.f32 %v541_v27, 0.0  ;;  %v638_v40 = vmax.f32 %v542_v31, 0.0  ;;  %v639_v41 = vmax.f32 %v543_v32, 0.0  ;;  %p1387_p9 = por %p1386_p6, %p1385_p0 }
  0x79   : > { %728 = vst [vmem:[%s1721_s21] sm:$0xff] %v632_v29  ;;  %729 = vst [vmem:[%s1721_s21 + $0x8] sm:$0xff] %v633_v30  ;;  %v979_v42 = vunpack.c.l.bf16 %v1156_v28  ;;  %v980_v43 = vunpack.c.h.bf16 %v1156_v28  ;;  %v983_v44 = vunpack.c.l.bf16 %v1157_v33  ;;  %v984_v45 = vunpack.c.h.bf16 %v1157_v33  ;;  %p1381_p1 = pneg %p1380_p11 }
  0x7a   : > { %730 = vst [vmem:[%s1721_s21 + $0x10] sm:$0xff] %v634_v35  ;;  %731 = vst [vmem:[%s1721_s21 + $0x18] sm:$0xff] %v635_v36  ;;  %v987_v46 = vunpack.c.l.bf16 %v1158_v34  ;;  %v988_v47 = vunpack.c.h.bf16 %v1158_v34  ;;  %v991_v50 = vunpack.c.l.bf16 %v1159_v39  ;;  %v992_v51 = vunpack.c.h.bf16 %v1159_v39 }
  0x7b   : > { %732 = vst [vmem:[%s1721_s21 + $0x20] sm:$0xff] %v636_v37  ;;  %733 = vst [vmem:[%s1721_s21 + $0x28] sm:$0xff] %v637_v38  ;;  %v441_v48 = vmul.f32 %v979_v42, %v1691_v1  ;;  %v442_v49 = vmul.f32 %v980_v43, %v1691_v1  ;;  %v443_v52 = vmul.f32 %v983_v44, %v1691_v1  ;;  %v995_v16 = vunpack.c.l.bf16 %v1160_v0  ;;  %v1164_v38 = vld [vmem:[%s1680_s9 + $0x60] sm:$0xff]   ;;  %v1165_v43 = vld [vmem:[%s1680_s9 + $0x68] sm:$0xff]   ;;  %p1388_p2 = pnand %p1387_p9, %p1381_p1 }
  0x7c   : > { %734 = vst [vmem:[%s1721_s21 + $0x30] sm:$0xff] %v638_v40  ;;  %735 = vst [vmem:[%s1721_s21 + $0x38] sm:$0xff] %v639_v41  ;;  %v444_v53 = vmul.f32 %v984_v45, %v1691_v1  ;;  %v445_v54 = vmul.f32 %v987_v46, %v1691_v1  ;;  %v446_v55 = vmul.f32 %v988_v47, %v1691_v1  ;;  %v996_v17 = vunpack.c.h.bf16 %v1160_v0  ;;  %v1166_v44 = vld [vmem:[%s1680_s9 + $0x70] sm:$0xff]  }
  0x7d   : > { %v544_v56 = vadd.f32 %v1697_v7, %v441_v48  ;;  %v545_v57 = vadd.f32 %v1697_v7, %v442_v49  ;;  %v447_v58 = vmul.f32 %v991_v50, %v1691_v1  ;;  %v448_v59 = vmul.f32 %v992_v51, %v1691_v1  ;;  %v1167_v49 = vld [vmem:[%s1680_s9 + $0x78] sm:$0xff]  }
  0x7e   : > { %v546_v60 = vadd.f32 %v1697_v7, %v443_v52  ;;  %v547_v61 = vadd.f32 %v1697_v7, %v444_v53  ;;  %v548_v62 = vadd.f32 %v1697_v7, %v445_v54  ;;  %v549_v63 = vadd.f32 %v1697_v7, %v446_v55 }
  0x7f   : > { %v640_v2 = vmax.f32 %v544_v56, 0.0  ;;  %v641_v3 = vmax.f32 %v545_v57, 0.0  ;;  %v550_v4 = vadd.f32 %v1697_v7, %v447_v58  ;;  %v551_v5 = vadd.f32 %v1697_v7, %v448_v59 }
  0x80   : > { %v642_v9 = vmax.f32 %v546_v60, 0.0  ;;  %v643_v10 = vmax.f32 %v547_v61, 0.0  ;;  %v644_v11 = vmax.f32 %v548_v62, 0.0  ;;  %v645_v12 = vmax.f32 %v549_v63, 0.0 }
  0x81   : > { %736 = vst [vmem:[%s1721_s21 + $0x40] sm:$0xff] %v640_v2  ;;  %737 = vst [vmem:[%s1721_s21 + $0x48] sm:$0xff] %v641_v3  ;;  %v646_v14 = vmax.f32 %v550_v4, 0.0  ;;  %v647_v15 = vmax.f32 %v551_v5, 0.0  ;;  %v999_v18 = vunpack.c.l.bf16 %v1161_v6  ;;  %v1000_v19 = vunpack.c.h.bf16 %v1161_v6 }
  0x82   : > { %738 = vst [vmem:[%s1721_s21 + $0x50] sm:$0xff] %v642_v9  ;;  %739 = vst [vmem:[%s1721_s21 + $0x58] sm:$0xff] %v643_v10  ;;  %v1003_v20 = vunpack.c.l.bf16 %v1162_v8  ;;  %v1004_v21 = vunpack.c.h.bf16 %v1162_v8  ;;  %v449_v22 = vmul.f32 %v995_v16, %v1691_v1  ;;  %v450_v23 = vmul.f32 %v996_v17, %v1691_v1  ;;  %v1169_v17 = vld [vmem:[%s1680_s9 + $0x88] sm:$0xff]  }
  0x83   : > { %740 = vst [vmem:[%s1721_s21 + $0x60] sm:$0xff] %v644_v11  ;;  %741 = vst [vmem:[%s1721_s21 + $0x68] sm:$0xff] %v645_v12  ;;  %v1007_v24 = vunpack.c.l.bf16 %v1163_v13  ;;  %v1008_v25 = vunpack.c.h.bf16 %v1163_v13  ;;  %v451_v26 = vmul.f32 %v999_v18, %v1691_v1  ;;  %v452_v27 = vmul.f32 %v1000_v19, %v1691_v1  ;;  %v1168_v12 = vld [vmem:[%s1680_s9 + $0x80] sm:$0xff]   ;;  %v1170_v18 = vld [vmem:[%s1680_s9 + $0x90] sm:$0xff]  }
  0x84   : > { %742 = vst [vmem:[%s1721_s21 + $0x70] sm:$0xff] %v646_v14  ;;  %743 = vst [vmem:[%s1721_s21 + $0x78] sm:$0xff] %v647_v15  ;;  %v453_v28 = vmul.f32 %v1003_v20, %v1691_v1  ;;  %v454_v29 = vmul.f32 %v1004_v21, %v1691_v1  ;;  %v552_v30 = vadd.f32 %v1697_v7, %v449_v22  ;;  %v1011_v52 = vunpack.c.l.bf16 %v1164_v38 }
  0x85   : > { %v553_v31 = vadd.f32 %v1697_v7, %v450_v23  ;;  %v455_v32 = vmul.f32 %v1007_v24, %v1691_v1  ;;  %v456_v33 = vmul.f32 %v1008_v25, %v1691_v1  ;;  %v554_v34 = vadd.f32 %v1697_v7, %v451_v26  ;;  %v1171_v23 = vld [vmem:[%s1680_s9 + $0x98] sm:$0xff]  }
  0x86   : > { %v555_v35 = vadd.f32 %v1697_v7, %v452_v27  ;;  %v556_v36 = vadd.f32 %v1697_v7, %v453_v28  ;;  %v557_v37 = vadd.f32 %v1697_v7, %v454_v29  ;;  %v648_v39 = vmax.f32 %v552_v30, 0.0 }
  0x87   : > { %v649_v40 = vmax.f32 %v553_v31, 0.0  ;;  %v558_v41 = vadd.f32 %v1697_v7, %v455_v32  ;;  %v559_v42 = vadd.f32 %v1697_v7, %v456_v33  ;;  %v650_v45 = vmax.f32 %v554_v34, 0.0 }
  0x88   : > { %v651_v46 = vmax.f32 %v555_v35, 0.0  ;;  %v652_v47 = vmax.f32 %v556_v36, 0.0  ;;  %v653_v48 = vmax.f32 %v557_v37, 0.0  ;;  %744 = vst [vmem:[%s1721_s21 + $0x80] sm:$0xff] %v648_v39  ;;  %v1012_v53 = vunpack.c.h.bf16 %v1164_v38 }
  0x89   : > { %745 = vst [vmem:[%s1721_s21 + $0x88] sm:$0xff] %v649_v40  ;;  %v654_v50 = vmax.f32 %v558_v41, 0.0  ;;  %v655_v51 = vmax.f32 %v559_v42, 0.0  ;;  %746 = vst [vmem:[%s1721_s21 + $0x90] sm:$0xff] %v650_v45  ;;  %v1015_v54 = vunpack.c.l.bf16 %v1165_v43  ;;  %v1016_v55 = vunpack.c.h.bf16 %v1165_v43 }
  0x8a   : > { %747 = vst [vmem:[%s1721_s21 + $0x98] sm:$0xff] %v651_v46  ;;  %748 = vst [vmem:[%s1721_s21 + $0xa0] sm:$0xff] %v652_v47  ;;  %v1019_v56 = vunpack.c.l.bf16 %v1166_v44  ;;  %v1020_v57 = vunpack.c.h.bf16 %v1166_v44  ;;  %v457_v58 = vmul.f32 %v1011_v52, %v1691_v1  ;;  %v458_v59 = vmul.f32 %v1012_v53, %v1691_v1  ;;  %v1173_v53 = vld [vmem:[%s1680_s9 + $0xa8] sm:$0xff]  }
  0x8b   : > { %749 = vst [vmem:[%s1721_s21 + $0xa8] sm:$0xff] %v653_v48  ;;  %750 = vst [vmem:[%s1721_s21 + $0xb0] sm:$0xff] %v654_v50  ;;  %v1023_v60 = vunpack.c.l.bf16 %v1167_v49  ;;  %v1024_v61 = vunpack.c.h.bf16 %v1167_v49  ;;  %v459_v62 = vmul.f32 %v1015_v54, %v1691_v1  ;;  %v460_v63 = vmul.f32 %v1016_v55, %v1691_v1  ;;  %v1172_v48 = vld [vmem:[%s1680_s9 + $0xa0] sm:$0xff]   ;;  %v1174_v54 = vld [vmem:[%s1680_s9 + $0xb0] sm:$0xff]  }
  0x8c   : > { %751 = vst [vmem:[%s1721_s21 + $0xb8] sm:$0xff] %v655_v51  ;;  %v461_v0 = vmul.f32 %v1019_v56, %v1691_v1  ;;  %v462_v2 = vmul.f32 %v1020_v57, %v1691_v1  ;;  %v560_v3 = vadd.f32 %v1697_v7, %v457_v58  ;;  %v561_v4 = vadd.f32 %v1697_v7, %v458_v59  ;;  %v1175_v59 = vld [vmem:[%s1680_s9 + $0xb8] sm:$0xff]  }
  0x8d   : > { %v463_v5 = vmul.f32 %v1023_v60, %v1691_v1  ;;  %v464_v6 = vmul.f32 %v1024_v61, %v1691_v1  ;;  %v562_v8 = vadd.f32 %v1697_v7, %v459_v62  ;;  %v563_v9 = vadd.f32 %v1697_v7, %v460_v63 }
  0x8e   : > { %v564_v10 = vadd.f32 %v1697_v7, %v461_v0  ;;  %v565_v11 = vadd.f32 %v1697_v7, %v462_v2  ;;  %v656_v13 = vmax.f32 %v560_v3, 0.0  ;;  %v657_v14 = vmax.f32 %v561_v4, 0.0 }
  0x8f   : > { %v566_v15 = vadd.f32 %v1697_v7, %v463_v5  ;;  %v567_v16 = vadd.f32 %v1697_v7, %v464_v6  ;;  %v658_v19 = vmax.f32 %v562_v8, 0.0  ;;  %v659_v20 = vmax.f32 %v563_v9, 0.0 }
  0x90   : > { %v660_v21 = vmax.f32 %v564_v10, 0.0  ;;  %v661_v22 = vmax.f32 %v565_v11, 0.0  ;;  %752 = vst [vmem:[%s1721_s21 + $0xc0] sm:$0xff] %v656_v13  ;;  %753 = vst [vmem:[%s1721_s21 + $0xc8] sm:$0xff] %v657_v14  ;;  %v1027_v26 = vunpack.c.l.bf16 %v1168_v12  ;;  %v1028_v27 = vunpack.c.h.bf16 %v1168_v12 }
  0x91   : > { %v662_v24 = vmax.f32 %v566_v15, 0.0  ;;  %v663_v25 = vmax.f32 %v567_v16, 0.0  ;;  %754 = vst [vmem:[%s1721_s21 + $0xd0] sm:$0xff] %v658_v19  ;;  %755 = vst [vmem:[%s1721_s21 + $0xd8] sm:$0xff] %v659_v20  ;;  %v1031_v28 = vunpack.c.l.bf16 %v1169_v17  ;;  %v1032_v29 = vunpack.c.h.bf16 %v1169_v17 }
  0x92   : > { %756 = vst [vmem:[%s1721_s21 + $0xe0] sm:$0xff] %v660_v21  ;;  %757 = vst [vmem:[%s1721_s21 + $0xe8] sm:$0xff] %v661_v22  ;;  %v1035_v30 = vunpack.c.l.bf16 %v1170_v18  ;;  %v1036_v31 = vunpack.c.h.bf16 %v1170_v18  ;;  %v465_v32 = vmul.f32 %v1027_v26, %v1691_v1  ;;  %v466_v33 = vmul.f32 %v1028_v27, %v1691_v1  ;;  %v1176_v22 = vld [vmem:[%s1680_s9 + $0xc0] sm:$0xff]   ;;  %v1177_v27 = vld [vmem:[%s1680_s9 + $0xc8] sm:$0xff]  }
  0x93   : > { %758 = vst [vmem:[%s1721_s21 + $0xf0] sm:$0xff] %v662_v24  ;;  %759 = vst [vmem:[%s1721_s21 + $0xf8] sm:$0xff] %v663_v25  ;;  %v1039_v34 = vunpack.c.l.bf16 %v1171_v23  ;;  %v1040_v35 = vunpack.c.h.bf16 %v1171_v23  ;;  %v467_v36 = vmul.f32 %v1031_v28, %v1691_v1  ;;  %v468_v37 = vmul.f32 %v1032_v29, %v1691_v1  ;;  %v1178_v28 = vld [vmem:[%s1680_s9 + $0xd0] sm:$0xff]  }
  0x94   : > { %v469_v38 = vmul.f32 %v1035_v30, %v1691_v1  ;;  %v470_v39 = vmul.f32 %v1036_v31, %v1691_v1  ;;  %v568_v40 = vadd.f32 %v1697_v7, %v465_v32  ;;  %v569_v41 = vadd.f32 %v1697_v7, %v466_v33  ;;  %v1179_v33 = vld [vmem:[%s1680_s9 + $0xd8] sm:$0xff]  }
  0x95   : > { %v471_v42 = vmul.f32 %v1039_v34, %v1691_v1  ;;  %v472_v43 = vmul.f32 %v1040_v35, %v1691_v1  ;;  %v570_v44 = vadd.f32 %v1697_v7, %v467_v36  ;;  %v571_v45 = vadd.f32 %v1697_v7, %v468_v37 }
  0x96   : > { %v572_v46 = vadd.f32 %v1697_v7, %v469_v38  ;;  %v573_v47 = vadd.f32 %v1697_v7, %v470_v39  ;;  %v664_v49 = vmax.f32 %v568_v40, 0.0  ;;  %v665_v50 = vmax.f32 %v569_v41, 0.0 }
  0x97   : > { %v574_v51 = vadd.f32 %v1697_v7, %v471_v42  ;;  %v575_v52 = vadd.f32 %v1697_v7, %v472_v43  ;;  %v666_v55 = vmax.f32 %v570_v44, 0.0  ;;  %v667_v56 = vmax.f32 %v571_v45, 0.0 }
  0x98   : > { %v668_v57 = vmax.f32 %v572_v46, 0.0  ;;  %v669_v58 = vmax.f32 %v573_v47, 0.0  ;;  %760 = vst [vmem:[%s1721_s21 + $0x100] sm:$0xff] %v664_v49  ;;  %761 = vst [vmem:[%s1721_s21 + $0x108] sm:$0xff] %v665_v50  ;;  %v1043_v62 = vunpack.c.l.bf16 %v1172_v48  ;;  %v1044_v63 = vunpack.c.h.bf16 %v1172_v48 }
  0x99   : > { %v670_v60 = vmax.f32 %v574_v51, 0.0  ;;  %v671_v61 = vmax.f32 %v575_v52, 0.0  ;;  %762 = vst [vmem:[%s1721_s21 + $0x110] sm:$0xff] %v666_v55  ;;  %763 = vst [vmem:[%s1721_s21 + $0x118] sm:$0xff] %v667_v56  ;;  %v1047_v0 = vunpack.c.l.bf16 %v1173_v53  ;;  %v1048_v2 = vunpack.c.h.bf16 %v1173_v53 }
  0x9a   : > { %764 = vst [vmem:[%s1721_s21 + $0x120] sm:$0xff] %v668_v57  ;;  %765 = vst [vmem:[%s1721_s21 + $0x128] sm:$0xff] %v669_v58  ;;  %v1051_v3 = vunpack.c.l.bf16 %v1174_v54  ;;  %v1052_v4 = vunpack.c.h.bf16 %v1174_v54  ;;  %v473_v5 = vmul.f32 %v1043_v62, %v1691_v1  ;;  %v474_v6 = vmul.f32 %v1044_v63, %v1691_v1  ;;  %v1180_v58 = vld [vmem:[%s1680_s9 + $0xe0] sm:$0xff]   ;;  %v1181_v63 = vld [vmem:[%s1680_s9 + $0xe8] sm:$0xff]  }
  0x9b   : > { %766 = vst [vmem:[%s1721_s21 + $0x130] sm:$0xff] %v670_v60  ;;  %767 = vst [vmem:[%s1721_s21 + $0x138] sm:$0xff] %v671_v61  ;;  %v1055_v8 = vunpack.c.l.bf16 %v1175_v59  ;;  %v1056_v9 = vunpack.c.h.bf16 %v1175_v59  ;;  %v475_v10 = vmul.f32 %v1047_v0, %v1691_v1  ;;  %v476_v11 = vmul.f32 %v1048_v2, %v1691_v1  ;;  %v1182_v0 = vld [vmem:[%s1680_s9 + $0xf0] sm:$0xff]  }
  0x9c   : > { %v477_v12 = vmul.f32 %v1051_v3, %v1691_v1  ;;  %v478_v13 = vmul.f32 %v1052_v4, %v1691_v1  ;;  %v576_v14 = vadd.f32 %v1697_v7, %v473_v5  ;;  %v577_v15 = vadd.f32 %v1697_v7, %v474_v6  ;;  %v1183_v6 = vld [vmem:[%s1680_s9 + $0xf8] sm:$0xff]  }
  0x9d   : > { %v479_v16 = vmul.f32 %v1055_v8, %v1691_v1  ;;  %v480_v17 = vmul.f32 %v1056_v9, %v1691_v1  ;;  %v578_v18 = vadd.f32 %v1697_v7, %v475_v10  ;;  %v579_v19 = vadd.f32 %v1697_v7, %v476_v11 }
  0x9e   : > { %v580_v20 = vadd.f32 %v1697_v7, %v477_v12  ;;  %v581_v21 = vadd.f32 %v1697_v7, %v478_v13  ;;  %v672_v23 = vmax.f32 %v576_v14, 0.0  ;;  %v673_v24 = vmax.f32 %v577_v15, 0.0 }
  0x9f   : > { %v582_v25 = vadd.f32 %v1697_v7, %v479_v16  ;;  %v583_v26 = vadd.f32 %v1697_v7, %v480_v17  ;;  %v674_v29 = vmax.f32 %v578_v18, 0.0  ;;  %v675_v30 = vmax.f32 %v579_v19, 0.0 }
  0xa0   : > { %v676_v31 = vmax.f32 %v580_v20, 0.0  ;;  %v677_v32 = vmax.f32 %v581_v21, 0.0  ;;  %768 = vst [vmem:[%s1721_s21 + $0x140] sm:$0xff] %v672_v23  ;;  %769 = vst [vmem:[%s1721_s21 + $0x148] sm:$0xff] %v673_v24  ;;  %v1059_v36 = vunpack.c.l.bf16 %v1176_v22  ;;  %v1060_v37 = vunpack.c.h.bf16 %v1176_v22 }
  0xa1   : > { %v678_v34 = vmax.f32 %v582_v25, 0.0  ;;  %v679_v35 = vmax.f32 %v583_v26, 0.0  ;;  %770 = vst [vmem:[%s1721_s21 + $0x150] sm:$0xff] %v674_v29  ;;  %771 = vst [vmem:[%s1721_s21 + $0x158] sm:$0xff] %v675_v30  ;;  %v1063_v38 = vunpack.c.l.bf16 %v1177_v27  ;;  %v1064_v39 = vunpack.c.h.bf16 %v1177_v27 }
  0xa2   : > { %772 = vst [vmem:[%s1721_s21 + $0x160] sm:$0xff] %v676_v31  ;;  %773 = vst [vmem:[%s1721_s21 + $0x168] sm:$0xff] %v677_v32  ;;  %v1067_v40 = vunpack.c.l.bf16 %v1178_v28  ;;  %v1068_v41 = vunpack.c.h.bf16 %v1178_v28  ;;  %v481_v42 = vmul.f32 %v1059_v36, %v1691_v1  ;;  %v482_v43 = vmul.f32 %v1060_v37, %v1691_v1  ;;  %v1184_v32 = vld [vmem:[%s1680_s9 + $0x100] sm:$0xff]   ;;  %v1185_v37 = vld [vmem:[%s1680_s9 + $0x108] sm:$0xff]  }
  0xa3   : > { %774 = vst [vmem:[%s1721_s21 + $0x170] sm:$0xff] %v678_v34  ;;  %775 = vst [vmem:[%s1721_s21 + $0x178] sm:$0xff] %v679_v35  ;;  %v1071_v44 = vunpack.c.l.bf16 %v1179_v33  ;;  %v1072_v45 = vunpack.c.h.bf16 %v1179_v33  ;;  %v483_v46 = vmul.f32 %v1063_v38, %v1691_v1  ;;  %v484_v47 = vmul.f32 %v1064_v39, %v1691_v1  ;;  %v1186_v38 = vld [vmem:[%s1680_s9 + $0x110] sm:$0xff]  }
  0xa4   : > { %v485_v48 = vmul.f32 %v1067_v40, %v1691_v1  ;;  %v486_v49 = vmul.f32 %v1068_v41, %v1691_v1  ;;  %v584_v50 = vadd.f32 %v1697_v7, %v481_v42  ;;  %v585_v51 = vadd.f32 %v1697_v7, %v482_v43  ;;  %v1187_v43 = vld [vmem:[%s1680_s9 + $0x118] sm:$0xff]  }
  0xa5   : > { %v487_v52 = vmul.f32 %v1071_v44, %v1691_v1  ;;  %v488_v53 = vmul.f32 %v1072_v45, %v1691_v1  ;;  %v586_v54 = vadd.f32 %v1697_v7, %v483_v46  ;;  %v587_v55 = vadd.f32 %v1697_v7, %v484_v47 }
  0xa6   : > { %v588_v56 = vadd.f32 %v1697_v7, %v485_v48  ;;  %v589_v57 = vadd.f32 %v1697_v7, %v486_v49  ;;  %v680_v59 = vmax.f32 %v584_v50, 0.0  ;;  %v681_v60 = vmax.f32 %v585_v51, 0.0 }
  0xa7   : > { %v590_v61 = vadd.f32 %v1697_v7, %v487_v52  ;;  %v591_v62 = vadd.f32 %v1697_v7, %v488_v53  ;;  %v682_v2 = vmax.f32 %v586_v54, 0.0  ;;  %v683_v3 = vmax.f32 %v587_v55, 0.0 }
  0xa8   : > { %v684_v4 = vmax.f32 %v588_v56, 0.0  ;;  %v685_v5 = vmax.f32 %v589_v57, 0.0  ;;  %776 = vst [vmem:[%s1721_s21 + $0x180] sm:$0xff] %v680_v59  ;;  %777 = vst [vmem:[%s1721_s21 + $0x188] sm:$0xff] %v681_v60  ;;  %v1075_v10 = vunpack.c.l.bf16 %v1180_v58  ;;  %v1076_v11 = vunpack.c.h.bf16 %v1180_v58 }
  0xa9   : > { %v686_v8 = vmax.f32 %v590_v61, 0.0  ;;  %v687_v9 = vmax.f32 %v591_v62, 0.0  ;;  %778 = vst [vmem:[%s1721_s21 + $0x190] sm:$0xff] %v682_v2  ;;  %779 = vst [vmem:[%s1721_s21 + $0x198] sm:$0xff] %v683_v3  ;;  %v1079_v12 = vunpack.c.l.bf16 %v1181_v63  ;;  %v1080_v13 = vunpack.c.h.bf16 %v1181_v63 }
  0xaa   : > { %780 = vst [vmem:[%s1721_s21 + $0x1a0] sm:$0xff] %v684_v4  ;;  %781 = vst [vmem:[%s1721_s21 + $0x1a8] sm:$0xff] %v685_v5  ;;  %v1083_v14 = vunpack.c.l.bf16 %v1182_v0  ;;  %v1084_v15 = vunpack.c.h.bf16 %v1182_v0  ;;  %v489_v16 = vmul.f32 %v1075_v10, %v1691_v1  ;;  %v490_v17 = vmul.f32 %v1076_v11, %v1691_v1  ;;  %v1188_v5 = vld [vmem:[%s1680_s9 + $0x120] sm:$0xff]   ;;  %v1189_v11 = vld [vmem:[%s1680_s9 + $0x128] sm:$0xff]  }
  0xab   : > { %782 = vst [vmem:[%s1721_s21 + $0x1b0] sm:$0xff] %v686_v8  ;;  %783 = vst [vmem:[%s1721_s21 + $0x1b8] sm:$0xff] %v687_v9  ;;  %v1087_v18 = vunpack.c.l.bf16 %v1183_v6  ;;  %v1088_v19 = vunpack.c.h.bf16 %v1183_v6  ;;  %v491_v20 = vmul.f32 %v1079_v12, %v1691_v1  ;;  %v492_v21 = vmul.f32 %v1080_v13, %v1691_v1  ;;  %v1190_v12 = vld [vmem:[%s1680_s9 + $0x130] sm:$0xff]  }
  0xac   : > { %v493_v22 = vmul.f32 %v1083_v14, %v1691_v1  ;;  %v494_v23 = vmul.f32 %v1084_v15, %v1691_v1  ;;  %v592_v24 = vadd.f32 %v1697_v7, %v489_v16  ;;  %v593_v25 = vadd.f32 %v1697_v7, %v490_v17  ;;  %v1191_v17 = vld [vmem:[%s1680_s9 + $0x138] sm:$0xff]  }
  0xad   : > { %v495_v26 = vmul.f32 %v1087_v18, %v1691_v1  ;;  %v496_v27 = vmul.f32 %v1088_v19, %v1691_v1  ;;  %v594_v28 = vadd.f32 %v1697_v7, %v491_v20  ;;  %v595_v29 = vadd.f32 %v1697_v7, %v492_v21 }
  0xae   : > { %v596_v30 = vadd.f32 %v1697_v7, %v493_v22  ;;  %v597_v31 = vadd.f32 %v1697_v7, %v494_v23  ;;  %v688_v33 = vmax.f32 %v592_v24, 0.0  ;;  %v689_v34 = vmax.f32 %v593_v25, 0.0 }
  0xaf   : > { %v598_v35 = vadd.f32 %v1697_v7, %v495_v26  ;;  %v599_v36 = vadd.f32 %v1697_v7, %v496_v27  ;;  %v690_v39 = vmax.f32 %v594_v28, 0.0  ;;  %v691_v40 = vmax.f32 %v595_v29, 0.0 }
  0xb0   : > { %v692_v41 = vmax.f32 %v596_v30, 0.0  ;;  %v693_v42 = vmax.f32 %v597_v31, 0.0  ;;  %784 = vst [vmem:[%s1721_s21 + $0x1c0] sm:$0xff] %v688_v33  ;;  %785 = vst [vmem:[%s1721_s21 + $0x1c8] sm:$0xff] %v689_v34  ;;  %v1091_v46 = vunpack.c.l.bf16 %v1184_v32  ;;  %v1092_v47 = vunpack.c.h.bf16 %v1184_v32 }
  0xb1   : > { %v694_v44 = vmax.f32 %v598_v35, 0.0  ;;  %v695_v45 = vmax.f32 %v599_v36, 0.0  ;;  %786 = vst [vmem:[%s1721_s21 + $0x1d0] sm:$0xff] %v690_v39  ;;  %787 = vst [vmem:[%s1721_s21 + $0x1d8] sm:$0xff] %v691_v40  ;;  %v1095_v48 = vunpack.c.l.bf16 %v1185_v37  ;;  %v1096_v49 = vunpack.c.h.bf16 %v1185_v37 }
  0xb2   : > { %788 = vst [vmem:[%s1721_s21 + $0x1e0] sm:$0xff] %v692_v41  ;;  %789 = vst [vmem:[%s1721_s21 + $0x1e8] sm:$0xff] %v693_v42  ;;  %v1099_v50 = vunpack.c.l.bf16 %v1186_v38  ;;  %v1100_v51 = vunpack.c.h.bf16 %v1186_v38  ;;  %v497_v52 = vmul.f32 %v1091_v46, %v1691_v1  ;;  %v498_v53 = vmul.f32 %v1092_v47, %v1691_v1  ;;  %v1192_v42 = vld [vmem:[%s1680_s9 + $0x140] sm:$0xff]   ;;  %v1193_v47 = vld [vmem:[%s1680_s9 + $0x148] sm:$0xff]  }
  0xb3   : > { %790 = vst [vmem:[%s1721_s21 + $0x1f0] sm:$0xff] %v694_v44  ;;  %791 = vst [vmem:[%s1721_s21 + $0x1f8] sm:$0xff] %v695_v45  ;;  %v1103_v54 = vunpack.c.l.bf16 %v1187_v43  ;;  %v1104_v55 = vunpack.c.h.bf16 %v1187_v43  ;;  %v499_v56 = vmul.f32 %v1095_v48, %v1691_v1  ;;  %v500_v57 = vmul.f32 %v1096_v49, %v1691_v1  ;;  %v1194_v48 = vld [vmem:[%s1680_s9 + $0x150] sm:$0xff]  }
  0xb4   : > { %v501_v58 = vmul.f32 %v1099_v50, %v1691_v1  ;;  %v502_v59 = vmul.f32 %v1100_v51, %v1691_v1  ;;  %v600_v60 = vadd.f32 %v1697_v7, %v497_v52  ;;  %v601_v61 = vadd.f32 %v1697_v7, %v498_v53  ;;  %v1195_v53 = vld [vmem:[%s1680_s9 + $0x158] sm:$0xff]  }
  0xb5   : > { %v503_v62 = vmul.f32 %v1103_v54, %v1691_v1  ;;  %v504_v63 = vmul.f32 %v1104_v55, %v1691_v1  ;;  %v602_v0 = vadd.f32 %v1697_v7, %v499_v56  ;;  %v603_v2 = vadd.f32 %v1697_v7, %v500_v57 }
  0xb6   : > { %v604_v3 = vadd.f32 %v1697_v7, %v501_v58  ;;  %v605_v4 = vadd.f32 %v1697_v7, %v502_v59  ;;  %v696_v6 = vmax.f32 %v600_v60, 0.0  ;;  %v697_v8 = vmax.f32 %v601_v61, 0.0 }
  0xb7   : > { %v606_v9 = vadd.f32 %v1697_v7, %v503_v62  ;;  %v607_v10 = vadd.f32 %v1697_v7, %v504_v63  ;;  %v698_v13 = vmax.f32 %v602_v0, 0.0  ;;  %v699_v14 = vmax.f32 %v603_v2, 0.0 }
  0xb8   : > { %v700_v15 = vmax.f32 %v604_v3, 0.0  ;;  %v701_v16 = vmax.f32 %v605_v4, 0.0  ;;  %792 = vst [vmem:[%s1721_s21 + $0x200] sm:$0xff] %v696_v6  ;;  %793 = vst [vmem:[%s1721_s21 + $0x208] sm:$0xff] %v697_v8  ;;  %v1107_v20 = vunpack.c.l.bf16 %v1188_v5  ;;  %v1108_v21 = vunpack.c.h.bf16 %v1188_v5 }
  0xb9   : > { %v702_v18 = vmax.f32 %v606_v9, 0.0  ;;  %v703_v19 = vmax.f32 %v607_v10, 0.0  ;;  %794 = vst [vmem:[%s1721_s21 + $0x210] sm:$0xff] %v698_v13  ;;  %795 = vst [vmem:[%s1721_s21 + $0x218] sm:$0xff] %v699_v14  ;;  %v1111_v22 = vunpack.c.l.bf16 %v1189_v11  ;;  %v1112_v23 = vunpack.c.h.bf16 %v1189_v11 }
  0xba   : > { %796 = vst [vmem:[%s1721_s21 + $0x220] sm:$0xff] %v700_v15  ;;  %797 = vst [vmem:[%s1721_s21 + $0x228] sm:$0xff] %v701_v16  ;;  %v1115_v24 = vunpack.c.l.bf16 %v1190_v12  ;;  %v1116_v25 = vunpack.c.h.bf16 %v1190_v12  ;;  %v505_v26 = vmul.f32 %v1107_v20, %v1691_v1  ;;  %v506_v27 = vmul.f32 %v1108_v21, %v1691_v1  ;;  %v1196_v16 = vld [vmem:[%s1680_s9 + $0x160] sm:$0xff]   ;;  %v1197_v21 = vld [vmem:[%s1680_s9 + $0x168] sm:$0xff]  }
  0xbb   : > { %798 = vst [vmem:[%s1721_s21 + $0x230] sm:$0xff] %v702_v18  ;;  %799 = vst [vmem:[%s1721_s21 + $0x238] sm:$0xff] %v703_v19  ;;  %v1119_v28 = vunpack.c.l.bf16 %v1191_v17  ;;  %v1120_v29 = vunpack.c.h.bf16 %v1191_v17  ;;  %v507_v30 = vmul.f32 %v1111_v22, %v1691_v1  ;;  %v508_v31 = vmul.f32 %v1112_v23, %v1691_v1  ;;  %v1198_v22 = vld [vmem:[%s1680_s9 + $0x170] sm:$0xff]  }
  0xbc   : > { %v509_v32 = vmul.f32 %v1115_v24, %v1691_v1  ;;  %v510_v33 = vmul.f32 %v1116_v25, %v1691_v1  ;;  %v608_v34 = vadd.f32 %v1697_v7, %v505_v26  ;;  %v609_v35 = vadd.f32 %v1697_v7, %v506_v27  ;;  %v1199_v27 = vld [vmem:[%s1680_s9 + $0x178] sm:$0xff]  }
  0xbd   : > { %v511_v36 = vmul.f32 %v1119_v28, %v1691_v1  ;;  %v512_v37 = vmul.f32 %v1120_v29, %v1691_v1  ;;  %v610_v38 = vadd.f32 %v1697_v7, %v507_v30  ;;  %v611_v39 = vadd.f32 %v1697_v7, %v508_v31 }
  0xbe   : > { %v612_v40 = vadd.f32 %v1697_v7, %v509_v32  ;;  %v613_v41 = vadd.f32 %v1697_v7, %v510_v33  ;;  %v704_v43 = vmax.f32 %v608_v34, 0.0  ;;  %v705_v44 = vmax.f32 %v609_v35, 0.0 }
  0xbf   : > { %v614_v45 = vadd.f32 %v1697_v7, %v511_v36  ;;  %v615_v46 = vadd.f32 %v1697_v7, %v512_v37  ;;  %v706_v49 = vmax.f32 %v610_v38, 0.0  ;;  %v707_v50 = vmax.f32 %v611_v39, 0.0 }
  0xc0   : > { %v708_v51 = vmax.f32 %v612_v40, 0.0  ;;  %v709_v52 = vmax.f32 %v613_v41, 0.0  ;;  %800 = vst [vmem:[%s1721_s21 + $0x240] sm:$0xff] %v704_v43  ;;  %801 = vst [vmem:[%s1721_s21 + $0x248] sm:$0xff] %v705_v44  ;;  %v1123_v56 = vunpack.c.l.bf16 %v1192_v42  ;;  %v1124_v57 = vunpack.c.h.bf16 %v1192_v42 }
  0xc1   : > { %v710_v54 = vmax.f32 %v614_v45, 0.0  ;;  %v711_v55 = vmax.f32 %v615_v46, 0.0  ;;  %802 = vst [vmem:[%s1721_s21 + $0x250] sm:$0xff] %v706_v49  ;;  %803 = vst [vmem:[%s1721_s21 + $0x258] sm:$0xff] %v707_v50  ;;  %v1127_v58 = vunpack.c.l.bf16 %v1193_v47  ;;  %v1128_v59 = vunpack.c.h.bf16 %v1193_v47 }
  0xc2   : > { %804 = vst [vmem:[%s1721_s21 + $0x260] sm:$0xff] %v708_v51  ;;  %805 = vst [vmem:[%s1721_s21 + $0x268] sm:$0xff] %v709_v52  ;;  %v1131_v60 = vunpack.c.l.bf16 %v1194_v48  ;;  %v1132_v61 = vunpack.c.h.bf16 %v1194_v48  ;;  %v513_v62 = vmul.f32 %v1123_v56, %v1691_v1  ;;  %v514_v63 = vmul.f32 %v1124_v57, %v1691_v1 }
  0xc3   : > { %806 = vst [vmem:[%s1721_s21 + $0x270] sm:$0xff] %v710_v54  ;;  %807 = vst [vmem:[%s1721_s21 + $0x278] sm:$0xff] %v711_v55  ;;  %v1135_v0 = vunpack.c.l.bf16 %v1195_v53  ;;  %v1136_v2 = vunpack.c.h.bf16 %v1195_v53  ;;  %v515_v3 = vmul.f32 %v1127_v58, %v1691_v1  ;;  %v516_v4 = vmul.f32 %v1128_v59, %v1691_v1 }
  0xc4   : > { %v517_v5 = vmul.f32 %v1131_v60, %v1691_v1  ;;  %v518_v6 = vmul.f32 %v1132_v61, %v1691_v1  ;;  %v616_v8 = vadd.f32 %v1697_v7, %v513_v62  ;;  %v617_v9 = vadd.f32 %v1697_v7, %v514_v63 }
  0xc5   : > { %v519_v10 = vmul.f32 %v1135_v0, %v1691_v1  ;;  %v520_v11 = vmul.f32 %v1136_v2, %v1691_v1  ;;  %v618_v12 = vadd.f32 %v1697_v7, %v515_v3  ;;  %v619_v13 = vadd.f32 %v1697_v7, %v516_v4 }
  0xc6   : > { %v620_v14 = vadd.f32 %v1697_v7, %v517_v5  ;;  %v621_v15 = vadd.f32 %v1697_v7, %v518_v6  ;;  %v712_v17 = vmax.f32 %v616_v8, 0.0  ;;  %v713_v18 = vmax.f32 %v617_v9, 0.0 }
  0xc7   : > { %v622_v19 = vadd.f32 %v1697_v7, %v519_v10  ;;  %v623_v20 = vadd.f32 %v1697_v7, %v520_v11  ;;  %v714_v23 = vmax.f32 %v618_v12, 0.0  ;;  %v715_v24 = vmax.f32 %v619_v13, 0.0 }
  0xc8   : > { %v716_v25 = vmax.f32 %v620_v14, 0.0  ;;  %v717_v26 = vmax.f32 %v621_v15, 0.0  ;;  %808 = vst [vmem:[%s1721_s21 + $0x280] sm:$0xff] %v712_v17  ;;  %809 = vst [vmem:[%s1721_s21 + $0x288] sm:$0xff] %v713_v18  ;;  %v1139_v30 = vunpack.c.l.bf16 %v1196_v16  ;;  %v1140_v31 = vunpack.c.h.bf16 %v1196_v16 }
  0xc9   : > { %v718_v28 = vmax.f32 %v622_v19, 0.0  ;;  %v719_v29 = vmax.f32 %v623_v20, 0.0  ;;  %810 = vst [vmem:[%s1721_s21 + $0x290] sm:$0xff] %v714_v23  ;;  %811 = vst [vmem:[%s1721_s21 + $0x298] sm:$0xff] %v715_v24  ;;  %v1143_v32 = vunpack.c.l.bf16 %v1197_v21  ;;  %v1144_v33 = vunpack.c.h.bf16 %v1197_v21 }
  0xca   : > { %812 = vst [vmem:[%s1721_s21 + $0x2a0] sm:$0xff] %v716_v25  ;;  %813 = vst [vmem:[%s1721_s21 + $0x2a8] sm:$0xff] %v717_v26  ;;  %v1147_v34 = vunpack.c.l.bf16 %v1198_v22  ;;  %v1148_v35 = vunpack.c.h.bf16 %v1198_v22  ;;  %v521_v36 = vmul.f32 %v1139_v30, %v1691_v1  ;;  %v522_v37 = vmul.f32 %v1140_v31, %v1691_v1 }
  0xcb   : > { %814 = vst [vmem:[%s1721_s21 + $0x2b0] sm:$0xff] %v718_v28  ;;  %815 = vst [vmem:[%s1721_s21 + $0x2b8] sm:$0xff] %v719_v29  ;;  %v1151_v38 = vunpack.c.l.bf16 %v1199_v27  ;;  %v1152_v39 = vunpack.c.h.bf16 %v1199_v27  ;;  %v523_v40 = vmul.f32 %v1143_v32, %v1691_v1  ;;  %v524_v41 = vmul.f32 %v1144_v33, %v1691_v1 }
  0xcc   : > { %v525_v42 = vmul.f32 %v1147_v34, %v1691_v1  ;;  %v526_v43 = vmul.f32 %v1148_v35, %v1691_v1  ;;  %v624_v44 = vadd.f32 %v1697_v7, %v521_v36  ;;  %v625_v45 = vadd.f32 %v1697_v7, %v522_v37 }
  0xcd   : > { %v527_v46 = vmul.f32 %v1151_v38, %v1691_v1  ;;  %v528_v47 = vmul.f32 %v1152_v39, %v1691_v1  ;;  %v626_v48 = vadd.f32 %v1697_v7, %v523_v40  ;;  %v627_v49 = vadd.f32 %v1697_v7, %v524_v41 }
  0xce   : > { %v628_v50 = vadd.f32 %v1697_v7, %v525_v42  ;;  %v629_v51 = vadd.f32 %v1697_v7, %v526_v43  ;;  %v720_v52 = vmax.f32 %v624_v44, 0.0  ;;  %v721_v53 = vmax.f32 %v625_v45, 0.0 }
  0xcf   : > { %v630_v54 = vadd.f32 %v1697_v7, %v527_v46  ;;  %v631_v1 = vadd.f32 %v1697_v7, %v528_v47  ;;  %v722_v55 = vmax.f32 %v626_v48, 0.0  ;;  %v723_v56 = vmax.f32 %v627_v49, 0.0 }
  0xd0   : > { %v724_v57 = vmax.f32 %v628_v50, 0.0  ;;  %v725_v58 = vmax.f32 %v629_v51, 0.0  ;;  %816 = vst [vmem:[%s1721_s21 + $0x2c0] sm:$0xff] %v720_v52  ;;  %817 = vst [vmem:[%s1721_s21 + $0x2c8] sm:$0xff] %v721_v53 }
  0xd1   : > { %v726_v59 = vmax.f32 %v630_v54, 0.0  ;;  %v727_v60 = vmax.f32 %v631_v1, 0.0  ;;  %818 = vst [vmem:[%s1721_s21 + $0x2d0] sm:$0xff] %v722_v55  ;;  %819 = vst [vmem:[%s1721_s21 + $0x2d8] sm:$0xff] %v723_v56 }
  0xd2   : > { %820 = vst [vmem:[%s1721_s21 + $0x2e0] sm:$0xff] %v724_v57  ;;  %821 = vst [vmem:[%s1721_s21 + $0x2e8] sm:$0xff] %v725_v58 }
  0xd3   : > { %822 = vst [vmem:[%s1721_s21 + $0x2f0] sm:$0xff] %v726_v59  ;;  %823 = vst [vmem:[%s1721_s21 + $0x2f8] sm:$0xff] %v727_v60 }
  0xd4   : > { %1391 = shalt.err (!%p1388_p2)
}
  0xd5   : > { %s1392_s22 = scalar_lea.hbm %s2034_s28, 12288  ;;  %s1396_s8 = scalar_lea.hbm %s2094_s3, 24576 }
  0xd6   : > { %p1393_p8 = scmp.ne.s32.totalorder %s2034_s28, %s1392_s22  ;;  %p1397_p7 = scmp.lt.u32.totalorder %s2034_s28, %s2094_s3 }
  0xd7   : > { %p1398_p12 = scmp.lt.u32.totalorder %s1396_s8, %s1392_s22  ;;  %p1400_p5 = scmp.lt.u32.totalorder %s1392_s22, %s2034_s28 }
  0xd8   : > { %p1394_p13 = pnand %p1393_p8, %p2113_p10 }
  0xd9   : > { %p1399_p3 = por %p1398_p12, %p1397_p7 }
  0xda   : > { %p1395_p4 = pneg %p1394_p13 }
  0xdb   : > { %p1401_p11 = por %p1400_p5, %p1399_p3 }
  0xdd   : > { %p1402_p1 = pnand %p1401_p11, %p1395_p4 }
  0xdf   : > { %1405 = shalt.err (!%p1402_p1)
}
  0xe0   : > { %s1472_s21 = smov 128   ;;  %s1473_s26 = smov 8  }
  0xe1   : > { %1215 = dma.vmem_to_hbm [thread:$0]  (%p2113_p10), %s2036_s29, 12288, %s2034_s28, %s825_s19, %s1472_s21, %s1472_s21, %s1473_s26  }
  0xe2 PF: > { %s855_s15 = sand.u32 1, %s1444_s12   ;;  %p2114_p0 = scmp.ne.s32.totalorder %s2105_s25, 0 }
  0xe3   : > { %p2115_p6 = scmp.ge.s32.totalorder %s1464_s17, 2  ;;  %s856_s10 = scalar_lea.sflag [#allocation4], %s855_s15 }
  0xe5   : > { %p1229_p9 = pnand %p2115_p6, %p2114_p0 }
  0xe7   : > { %1439 = dma.done.wait (!%p1229_p9), %s856_s10, 12288  }
  0xe8   : > { %1441 = vsyncadd (!%p1229_p9), %s856_s10, 4294955008  ;;  %s20_s17 = sadd.s32 1, %s1464_s17   ;;  %s2116_s12 = smov %s1448_s13 }
  0xe9   : > { %p17_p2 = scmp.ge.s32.totalorder %s20_s17, 4   ;;  %s2117_s13 = smov %s1452_s14 }
  0xea   : > { %s2118_s14 = smov %s1643_s4  ;;  %s2119_s15 = smov %s1460_s16 }
  0xeb   : > { %s2120_s16 = smov %s2122_s30  ;;  %19 = sbr.rel (!%p17_p2) target bundleno = 7 (0x7), region = 85 }
  0xf2   :  { %861 = vsyncpa [#allocation3], 1 }
  0xf3   :  { %863 = vsyncpa [#allocation3 + $0x1], 1 }
  0xf4   :  { %864 = vsyncpa [#allocation6], 1 }
  0xf5   :  { %865 = vsyncpa [#allocation4], 1 }
  0xf6   :  { %867 = vsyncpa [#allocation4 + $0x1], 1 }

// kernel: conv_block_forward.5
= control target key start
LH: loop header
LB: loop body
LE: loop exit
PB: predicated region body
PF: predicated region fallthrough
CT: control target
= control target key end

     0   :  { %s5748_s0 = inlined_call_operand.hbm [shape: bf16[2,768,8], index: 0, kind: input, shape index: {}]   ;;  %s5749_s1 = inlined_call_operand.hbm [shape: bf16[3,24,128], index: 1, kind: input, shape index: {}]   ;;  %s5750_s2 = inlined_call_operand.hbm [shape: f32[1,8], index: 2, kind: input, shape index: {}, may-alias: {2,3}]   ;;  %s5751_s3 = inlined_call_operand.hbm [shape: f32[1,8], index: 3, kind: input, shape index: {}, may-alias: {2,3}]   ;;  %s5752_s4 = inlined_call_operand.hbm [shape: bf16[2,768,128], index: 4, kind: output, shape index: {0}]   ;;  %s5753_s5 = inlined_call_operand.hbm [shape: f32[2,6,8,128], index: 5, kind: output, shape index: {1}]  }
   0x1   :  { %5800 = sst [smem:[#allocation32_spill]] %s5748_s0 }
   0x2   :  { %5801 = sst [smem:[#allocation33_spill]] %s5749_s1 }
   0x3   :  { %5802 = sst [smem:[#allocation34_spill]] %s5750_s2 }
   0x4   :  { %5803 = sst [smem:[#allocation35_spill]] %s5751_s3 }
   0x5   :  { %5804 = sst [smem:[#allocation36_spill]] %s5752_s4 }
   0x6   :  { %5805 = sst [smem:[#allocation37_spill]] %s5753_s5 }
   0x7   :  { %11 = vsyncpa [#allocation3], 0 }
   0x8   :  { %13 = vsyncpa [#allocation3 + $0x1], 0 }
   0x9   :  { %14 = vsyncpa [#allocation6], 0 }
   0xa   :  { %15 = vsyncpa [#allocation9], 0 }
   0xb   :  { %16 = vsyncpa [#allocation4], 0 }
   0xc   :  { %18 = vsyncpa [#allocation4 + $0x1], 0 }
   0xd   :  { %19 = vsyncpa [#allocation12], 0 }
   0xe   :  { %21 = vsyncpa [#allocation12 + $0x1], 0  ;;  %s4119_s18 = smov 0   ;;  %s4121_s19 = smov 0  }
   0xf   :  { %s4123_s20 = smov 0   ;;  %s4125_s21 = smov 0  }
  0x10   :  { %s4127_s22 = smov 0   ;;  %s4129_s23 = smov 0  }
  0x11   :  { %s4131_s24 = smov 0   ;;  %s4133_s25 = smov 0  }
  0x12   :  { %s4135_s26 = smov 0   ;;  %s4137_s27 = smov 0  }
  0x13   :  { %s4139_s28 = smov 0  }
  0x14 LB: > { %5806 = sst [smem:[#allocation18_spill]] %s4034_s18  ;;  %s2959_s29 = sadd.s32 4294967295, %s4074_s28   ;;  %s4074_s28 = sphi %s4139_s28, %s27_s28   ;;  %s4070_s27 = sphi %s4137_s27, %s6016_s27   ;;  %s4066_s26 = sphi %s4135_s26, %s6015_s26   ;;  %s4062_s25 = sphi %s4133_s25, %s6014_s25   ;;  %s4058_s24 = sphi %s4131_s24, %s6013_s24   ;;  %s4054_s23 = sphi %s4129_s23, %s6012_s23   ;;  %s4050_s22 = sphi %s4127_s22, %s6011_s22   ;;  %s4046_s21 = sphi %s4125_s21, %s6010_s21   ;;  %s4042_s20 = sphi %s4123_s20, %s6009_s20   ;;  %s4038_s19 = sphi %s4121_s19, %s6008_s19   ;;  %s4034_s18 = sphi %s4119_s18, %s6007_s18  }
  0x15   : > { %5807 = sst [smem:[#allocation19_spill]] %s4062_s25  ;;  %s2960_s30 = sadd.s32 4294967294, %s4074_s28  }
  0x16   : > { %p59_p0 = scmp.ne.s32.totalorder %s4050_s22, %s4046_s21  ;;  %p4175_p1 = scmp.eq.s32.totalorder %s2959_s29, 0 }
  0x17   : > { %p147_p2 = scmp.ne.s32.totalorder %s4042_s20, %s4038_s19  ;;  %p148_p4 = scmp.eq.s32.totalorder %s2959_s29, 11 }
  0x18   : > { %s5808_s6 = scalar_select %p4175_p1, 1, 0 }
  0x19   : > { %p4184_p3 = por %p4175_p1, %p59_p0  ;;  %p153_p5 = scmp.ne.s32.totalorder %s4038_s19, %s4034_s18 }
  0x1a   : > { %p154_p6 = scmp.eq.s32.totalorder %s2960_s30, 11  ;;  %p4190_p7 = por %p148_p4, %p147_p2 }
  0x1b   : > { %s5809_s8 = scalar_select %p4184_p3, 1, 0 }
  0x1c   : > { %s5810_s9 = scalar_select %p4190_p7, 1, 0 }
  0x1d   : > { %p2961_p8 = scmp.ge.s32.totalorder %s4074_s28, 1  ;;  %p4195_p9 = por %p154_p6, %p153_p5 }
  0x1e   : > { %5811 = sst [smem:[#allocation20_spill]] %s5810_s9  ;;  %p189_p10 = scmp.lt.s32.totalorder %s4074_s28, 13 }
  0x1f   : > { %s5812_s10 = scalar_select %p4195_p9, 1, 0 }
  0x20   : > { %p4200_p11 = pnand %p2961_p8, %p189_p10  ;;  %s4076_s12 = smov [#allocation5]  }
  0x21   : > { %5813 = sst [smem:[#allocation21_spill]] %s5812_s10  ;;  %s201_s13 = sshll.u32 %s4076_s12, 4  ;;  %s4204_s13 = int_to_ptr.vmem [resolvable:$true] %s201_s13 }
  0x22   : > { %s5814_s11 = scalar_select %p4200_p11, 1, 0 }
  0x23   : > { %p3615_p12 = pneg %p4200_p11  ;;  %s4077_s15 = smov [#allocation7]  }
  0x24   : > { %s215_s16 = sshll.u32 %s4077_s15, 4  ;;  %s4078_s17 = smov [#allocation8]   ;;  %s4214_s16 = int_to_ptr.vmem [resolvable:$true] %s215_s16 }
  0x25   : > { %p4210_p13 = pnand %p3615_p12, %p4175_p1  ;;  %s4216_s21 = sshll.u32 %s4078_s17, 4  ;;  %s227_s21 = int_to_ptr.vmem [resolvable:$true] %s4216_s21 }
  0x26   : > { %s5816_s1 = sld [smem:[#allocation33_spill]] }
  0x27   : > { %p4226_p2 = pneg %p4210_p13 }
  0x2c   : > { %s3798_s12 = scalar_lea.hbm %s5816_s1, 576 }
  0x2d   : > { %p3799_p0 = scmp.ne.s32.totalorder %s5816_s1, %s3798_s12  ;;  %p3805_p6 = scmp.lt.u32.totalorder %s3798_s12, %s5816_s1 }
  0x2f   : > { %p3801_p4 = pnand %p4226_p2, %p3799_p0 }
  0x31   : > { %p3802_p5 = pneg %p3801_p4 }
  0x33   : > { %p3807_p8 = pnand %p3805_p6, %p3802_p5 }
  0x35   : > { %3810 = shalt.err (!%p3807_p8)
}
  0x36   : > { %s3811_s7 = scalar_lea.vmem %s4204_s13, 576  ;;  %p3819_p7 = scmp.lt.s32.totalorder %s4204_s13, %s4204_s13 }
  0x37   : > { %p3812_p10 = scmp.ne.s32.totalorder %s4204_s13, %s3811_s7  ;;  %p3820_p1 = scmp.lt.s32.totalorder %s3811_s7, %s3811_s7 }
  0x39   : > { %p3814_p12 = pnand %p3812_p10, %p4226_p2  ;;  %p3821_p0 = por %p3820_p1, %p3819_p7 }
  0x3b   : > { %p3815_p9 = pneg %p3814_p12 }
  0x3d   : > { %p3822_p4 = pnand %p3821_p0, %p3815_p9 }
  0x3f   : > { %3825 = shalt.err (!%p3822_p4)
}
  0x40   : > { %s5766_s10 = smov 64   ;;  %s5767_s29 = smov 4  }
  0x41   : > { %3618 = dma.hbm_to_vmem [thread:$0]  (!%p4210_p13), %s5816_s1, 576, %s4204_s13, [#allocation6], %s5766_s10, %s5766_s10, %s5767_s29  }
  0x42   : > { %s5818_s2 = sld [smem:[#allocation34_spill]] }
  0x48   : > { %s3826_s7 = scalar_lea.hbm %s5818_s2, 16 }
  0x49   : > { %p3827_p1 = scmp.ne.s32.totalorder %s5818_s2, %s3826_s7  ;;  %p3833_p5 = scmp.lt.u32.totalorder %s3826_s7, %s5818_s2 }
  0x4b   : > { %p3829_p7 = pnand %p3827_p1, %p4226_p2 }
  0x4d   : > { %p3830_p9 = pneg %p3829_p7 }
  0x4f   : > { %p3835_p6 = pnand %p3833_p5, %p3830_p9 }
  0x51   : > { %3838 = shalt.err (!%p3835_p6)
}
  0x52   : > { %s3839_s13 = scalar_lea.vmem %s4214_s16, 16  ;;  %s3846_s4 = scalar_lea.vmem %s4214_s16, 32 }
  0x53   : > { %p3840_p8 = scmp.ne.s32.totalorder %s4214_s16, %s3839_s13  ;;  %p3847_p0 = scmp.lt.s32.totalorder %s4214_s16, %s4214_s16 }
  0x54   : > { %p3848_p4 = scmp.lt.s32.totalorder %s3846_s4, %s3839_s13 }
  0x55   : > { %p3842_p10 = pnand %p3840_p8, %p4226_p2 }
  0x56   : > { %p3849_p1 = por %p3848_p4, %p3847_p0 }
  0x57   : > { %p3843_p12 = pneg %p3842_p10 }
  0x59   : > { %p3850_p7 = pnand %p3849_p1, %p3843_p12 }
  0x5b   : > { %3853 = shalt.err (!%p3850_p7)
}
  0x5c   : > { %3621 = dma.hbm_to_vmem [thread:$0]  (!%p4210_p13), %s5818_s2, 16, %s4214_s16, [#allocation6]  }
  0x5d   : > { %s5819_s3 = sld [smem:[#allocation35_spill]] }
  0x63   : > { %s3854_s12 = scalar_lea.hbm %s5819_s3, 16 }
  0x64   : > { %p3855_p9 = scmp.ne.s32.totalorder %s5819_s3, %s3854_s12  ;;  %p3861_p8 = scmp.lt.u32.totalorder %s3854_s12, %s5819_s3 }
  0x66   : > { %p3857_p5 = pnand %p3855_p9, %p4226_p2 }
  0x68   : > { %p3858_p6 = pneg %p3857_p5 }
  0x6a   : > { %p3863_p10 = pnand %p3861_p8, %p3858_p6 }
  0x6c   : > { %3866 = shalt.err (!%p3863_p10)
}
  0x6d   : > { %s3867_s4 = scalar_lea.vmem %s227_s21, 16  ;;  %s3874_s16 = scalar_lea.vmem %s227_s21, 32 }
  0x6e   : > { %p3868_p12 = scmp.ne.s32.totalorder %s227_s21, %s3867_s4  ;;  %p3875_p1 = scmp.lt.s32.totalorder %s227_s21, %s227_s21 }
  0x6f   : > { %p3876_p7 = scmp.lt.s32.totalorder %s3874_s16, %s3867_s4 }
  0x70   : > { %p3870_p0 = pnand %p3868_p12, %p4226_p2 }
  0x71   : > { %p3877_p3 = por %p3876_p7, %p3875_p1 }
  0x72   : > { %p3871_p4 = pneg %p3870_p0 }
  0x74   : > { %p3878_p11 = pnand %p3877_p3, %p3871_p4 }
  0x76   : > { %3881 = shalt.err (!%p3878_p11)
}
  0x77   : > { %3624 = dma.hbm_to_vmem [thread:$0]  (!%p4210_p13), %s5819_s3, 16, %s227_s21, [#allocation9]  }
  0x78   : > { %s36_s18 = sadd.s32 1, %s4066_s26  ;;  %s39_s9 = sadd.s32 1, %s4070_s27 }
  0x79   : > { %p37_p3 = scmp.ge.s32.totalorder %s36_s18, 6  ;;  %s46_s14 = sadd.s32 1, %s4054_s23 }
  0x7a   : > { %p53_p11 = scmp.ne.s32.totalorder %s4054_s23, %s4050_s22  ;;  %p54_p2 = scmp.eq.s32.totalorder %s4074_s28, 0 }
  0x7b   : > { %s6018_s18 = smov (%p37_p3, %s36_s18), 0  ;;  %s6020_s9 = smov (!%p37_p3, %s39_s9), %s4070_s27 }
  0x7c   : > { %s133_s30 = ssub.s32 %s4066_s26, %s6018_s18  ;;  %p41_p9 = scmp.ge.s32.totalorder %s6020_s9, 2 }
  0x7d   : > { %p3639_p5 = scmp.lt.s32.totalorder %s4074_s28, 12  ;;  %p4305_p13 = por %p54_p2, %p53_p11 }
  0x7e   : > { %s237_s12 = sand.u32 1, %s4054_s23   ;;  %s6022_s9 = smov (%p41_p9, %s6020_s9), 0 }
  0x7f   : > { %5821 = sst [smem:[#allocation22_spill]] %s6022_s9  ;;  %s3590_s15 = smul.u32 384, %s237_s12 }
  0x80   : > { %s43_s17 = ssub.s32 %s4070_s27, %s6022_s9  ;;  %s3591_s7 = smul.u32 6144, %s4070_s27 }
  0x81   : > { %p44_p6 = scmp.eq.s32.totalorder %s43_s17, 0  ;;  %s134_s13 = sor.u32 %s133_s30, %s43_s17 }
  0x82   : > { %p135_p8 = scmp.eq.s32.totalorder %s134_s13, 0  ;;  %s5822_s16 = sadd.s32 1, %s4042_s20 }
  0x83   : > { %s4316_s4 = scalar_select %p44_p6, %s4054_s23, %s46_s14  }
  0x84   : > { %s4321_s5 = scalar_select %p135_p8, %s4042_s20, %s5822_s16  }
  0x85   : > { %s5823_s0 = sld [smem:[#allocation32_spill]]  ;;  %s241_s1 = scalar_lea.vmem [#allocation2], %s3590_s15 }
  0x86   : > { %s248_s2 = sshll.u32 %s241_s1, 4  ;;  %p4334_p10 = pnand %p3639_p5, %p4305_p13  ;;  %s4328_s2 = int_to_ptr.vmem [resolvable:$true] %s248_s2 }
  0x87   : > { %s4338_s30 = scalar_lea.sflag [#allocation3], %s237_s12 }
  0x88   : > { %p3884_p0 = pneg %p4334_p10 }
  0x8b   : > { %s4326_s29 = scalar_lea.hbm %s5823_s0, %s3591_s7  ;;  %s3887_s21 = scalar_lea.hbm %s5823_s0, 12288 }
  0x8c   : > { %s3882_s10 = scalar_lea.hbm %s4326_s29, 6144  ;;  %p3888_p7 = scmp.lt.u32.totalorder %s4326_s29, %s5823_s0 }
  0x8d   : > { %p3883_p12 = scmp.ne.s32.totalorder %s4326_s29, %s3882_s10  ;;  %p3889_p3 = scmp.lt.u32.totalorder %s3887_s21, %s3882_s10 }
  0x8e   : > { %p3891_p2 = scmp.lt.u32.totalorder %s3882_s10, %s4326_s29 }
  0x8f   : > { %p3885_p4 = pnand %p3884_p0, %p3883_p12  ;;  %p3890_p11 = por %p3889_p3, %p3888_p7 }
  0x91   : > { %p3886_p1 = pneg %p3885_p4  ;;  %p3892_p9 = por %p3891_p2, %p3890_p11 }
  0x93   : > { %p3893_p5 = pnand %p3892_p9, %p3886_p1 }
  0x95   : > { %3896 = shalt.err (!%p3893_p5)
}
  0x96   : > { %s3897_s12 = scalar_lea.vmem %s4328_s2, 6144  ;;  %s4081_s13 = smov [#allocation2]  }
  0x97   : > { %p3898_p13 = scmp.ne.s32.totalorder %s4328_s2, %s3897_s12  ;;  %s3902_s16 = sshll.u32 %s4081_s13, 4  ;;  %s3903_s16 = int_to_ptr.vmem [resolvable:$false] %s3902_s16 }
  0x98   : > { %s3904_s25 = scalar_lea.vmem %s3903_s16, 12288  ;;  %p3905_p12 = scmp.lt.s32.totalorder %s4328_s2, %s3903_s16 }
  0x99   : > { %p3900_p6 = pnand %p3898_p13, %p3884_p0  ;;  %p3906_p4 = scmp.lt.s32.totalorder %s3904_s25, %s3897_s12 }
  0x9b   : > { %p3901_p8 = pneg %p3900_p6  ;;  %p3907_p7 = por %p3906_p4, %p3905_p12 }
  0x9d   : > { %p3908_p3 = pnand %p3907_p7, %p3901_p8 }
  0x9f   : > { %3911 = shalt.err (!%p3908_p3)
}
  0xa0   : > { %s5825_s10 = smov 4   ;;  %s5826_s1 = smov 64  }
  0xa1   : > { %3628 = dma.hbm_to_vmem [thread:$0]  (!%p4334_p10), %s4326_s29, 6144, %s4328_s2, %s4338_s30, %s5826_s1, %s5826_s1, %s5825_s10  }
  0xa2   : > { %p5827_p0 = scmp.ne.s32.totalorder %s5814_s11, 0 }
  0xa3   : > { %s262_s15 = sand.u32 (!%p5827_p0), 1, %s4050_s22   ;;  %p5828_p1 = scmp.ne.s32.totalorder (!%p5827_p0), %s5809_s8, 0 }
  0xa4   : > { %260 = sbr.rel (%p5827_p0) target bundleno = 724 (0x2d4), region = 36  ;;  %s263_s17 = scalar_lea.sflag (!%p5827_p0), [#allocation3], %s262_s15 }
  0xa5   : > { %s3592_s21 = smul.u32 (!%p5827_p0), 384, %s262_s15 }
  0xa7   : > { %s4372_s7 = scalar_lea.vmem (!%p5827_p0), [#allocation2], %s3592_s21 }
  0xab   : > { %4013 = dma.done.wait (%p5828_p1), %s263_s17, 6144  }
  0xac   : > { %4015 = vsyncadd (%p5828_p1), %s263_s17, 4294961152  ;;  %p5829_p11 = scmp.ne.s32.totalorder %s5808_s6, 0 }
  0xae   : > { %4017 = dma.done.wait (%p5829_p11), [#allocation6], 592  }
  0xaf   : > { %4019 = vsyncadd (%p5829_p11), [#allocation6], 4294966704 }
  0xb0   : > { %4021 = dma.done.wait (%p5829_p11), [#allocation9], 16  }
  0xb1   : > { %4023 = vsyncadd (%p5829_p11), [#allocation9], 4294967280  ;;  %s4387_s2 = sand.u32 1, %s4038_s19   ;;  %p312_p10 = scmp.eq.s32.totalorder %s4058_s24, 0 }
  0xb2   : > { %s2971_s8 = sshll.u32 %s4387_s2, 6  ;;  %s2972_s11 = sshll.u32 %s4387_s2, 3 }
  0xb3   : > { %p313_p2 = scmp.eq.s32.totalorder %s4058_s24, 5  ;;  %s4397_s14 = scalar_lea.vmem [#allocation10], %s2971_s8 }
  0xb4   : > { %s4399_s30 = scalar_lea.vmem [#allocation11], %s2972_s11 }
  0xb5   : > { %p4393_p9 = por %p313_p2, %p312_p10 }
  0xb6   : > { %v4082_v0 = vmov (%p4393_p9), 0   ;;  %v4083_v1 = vmov (%p4393_p9), 0.0  }
  0xb7   : > { %317 = sbr.rel (!%p4393_p9) target bundleno = 192 (0xc0), region = 56  ;;  %318 = vst [vmem:[%s4397_s14] sm:$0xf] (%p4393_p9), %v4082_v0  ;;  %319 = vst [vmem:[%s4397_s14 + $0x4] sm:$0xf] (%p4393_p9), %v4082_v0 }
  0xb8   : > { %320 = vst [vmem:[%s4397_s14 + $0x8] sm:$0xf] (%p4393_p9), %v4082_v0  ;;  %321 = vst [vmem:[%s4397_s14 + $0xc] sm:$0xf] (%p4393_p9), %v4082_v0 }
  0xb9   : > { %322 = vst [vmem:[%s4397_s14 + $0x10] sm:$0xf] (%p4393_p9), %v4082_v0  ;;  %323 = vst [vmem:[%s4397_s14 + $0x14] sm:$0xf] (%p4393_p9), %v4082_v0 }
  0xba   : > { %324 = vst [vmem:[%s4397_s14 + $0x18] sm:$0xf] (%p4393_p9), %v4082_v0  ;;  %325 = vst [vmem:[%s4397_s14 + $0x1c] sm:$0xf] (%p4393_p9), %v4082_v0 }
  0xbb   : > { %326 = vst [vmem:[%s4397_s14 + $0x20] sm:$0xf] (%p4393_p9), %v4082_v0  ;;  %327 = vst [vmem:[%s4397_s14 + $0x24] sm:$0xf] (%p4393_p9), %v4082_v0 }
  0xbc   : > { %328 = vst [vmem:[%s4397_s14 + $0x28] sm:$0xf] (%p4393_p9), %v4082_v0  ;;  %329 = vst [vmem:[%s4397_s14 + $0x2c] sm:$0xf] (%p4393_p9), %v4082_v0 }
  0xbd   : > { %330 = vst [vmem:[%s4397_s14 + $0x30] sm:$0xf] (%p4393_p9), %v4082_v0  ;;  %331 = vst [vmem:[%s4397_s14 + $0x34] sm:$0xf] (%p4393_p9), %v4082_v0 }
  0xbe   : > { %332 = vst [vmem:[%s4397_s14 + $0x38] sm:$0xf] %v4082_v0  ;;  %333 = vst [vmem:[%s4397_s14 + $0x3c] sm:$0xf] %v4082_v0 }
  0xbf   : > { %334 = vst [vmem:[%s4399_s30] sm:$0xff] %v4083_v1 }
  0xc0 PF: > { %337 = sbr.rel (%p4393_p9) target bundleno = 671 (0x29f), region = 60 }
  0xc7   : > { %v363_v2 = vld [vmem:[#allocation5 + $0x4] sm:$0xf]  ;;  %vm429_vm0 = vcmask 1043456   ;;  %v4422_v3 = vld [vmem:[#allocation5 + $0x10] sm:$0xf]  ;;  %s4425_s6 = sshll.u32 %s4058_s24, 7 }
  0xc8   : > { %3580 = vmatprep.subr.msk.bf16.mxu1 %vm429_vm0, %v363_v2  ;;  %3584 = vmatprep.subr.msk.bf16.mxu0 %vm429_vm0, %v4422_v3  ;;  %v431_v4 = vsel %vm429_vm0, %v363_v2, 0  ;;  %v4433_v5 = vsel %vm429_vm0, %v4422_v3, 0  ;;  %s339_s12 = sadd.s32 4294967264, %s4425_s6  ;;  %v362_v6 = vld [vmem:[#allocation5] sm:$0xf]  ;;  %vm5777_vm1 = vcmask 64512  }
  0xc9   : > { %5831 = vst [vmem:[#allocation23_spill] sm:$0xff] %v4433_v5  ;;  %3289 = vmatpush3.bf16.msra.mxu1 %v431_v4  ;;  %3361 = vmatpush3.bf16.msra.mxu0 %v4433_v5  ;;  %s340_s13 = sshra.s32 %s339_s12, 3  ;;  %v1388_v7 = vld [vmem:[#allocation5 + $0x14] sm:$0xf]  ;;  %s951_s10 = sadd.s32 4294967288, %s4425_s6  ;;  %v647_v15 = vsel %vm429_vm0, %v362_v6, 0 }
  0xca   : > { %s2974_s16 = sshll.u32 %s340_s13, 2  ;;  %3581 = vmatprep.subr.msk.bf16.mxu1 %vm429_vm0, %v362_v6  ;;  %3586 = vmatprep.subr.msk.bf16.mxu0 %vm429_vm0, %v1388_v7  ;;  %s952_s1 = sshra.s32 %s951_s10, 3  ;;  %v4459_v18 = vld [vmem:[#allocation5 + $0x8] sm:$0xf]  ;;  %v1477_v31 = vsel %vm429_vm0, %v1388_v7, 0 }
  0xcb   : > { %s4440_s25 = scalar_lea.vmem %s4372_s7, %s2974_s16 [#allocation2]  ;;  %s3017_s15 = sshll.u32 %s952_s1, 2  ;;  %v1616_v36 = vld [vmem:[#allocation5 + $0x18] sm:$0xf]  ;;  %vm750_vm2 = vsmask.f32 7424 }
  0xcc   : > { %v344_v8 = vld [vmem:[%s4440_s25] sm:$0xf]  ;;  %v345_v9 = vld [vmem:[%s4440_s25 + $0x4] sm:$0xf]  ;;  %v346_v10 = vld [vmem:[%s4440_s25 + $0x8] sm:$0xf]  ;;  %s4462_s21 = scalar_lea.vmem %s4372_s7, %s3017_s15 [#allocation2] }
  0xcd   : > { %v347_v11 = vld [vmem:[%s4440_s25 + $0xc] sm:$0xf]  ;;  %v4446_v12 = vcombine.low %v345_v9, %v346_v10  ;;  %v348_v13 = vld [vmem:[%s4440_s25 + $0x10] sm:$0xf]  ;;  %v349_v16 = vld [vmem:[%s4440_s25 + $0x14] sm:$0xf]  ;;  %v2991_v19 = vcombine.low %v344_v8, %v345_v9 }
  0xce   : > { %v4450_v14 = vcombine.low %v347_v11, %v348_v13  ;;  %v4455_v17 = vld [vmem:[%s4440_s25 + $0x18] sm:$0xf]  ;;  %v956_v21 = vld [vmem:[%s4462_s21] sm:$0xf]  ;;  %v4471_v22 = vld [vmem:[%s4440_s25 + $0x1c] sm:$0xf]  ;;  %v2992_v24 = vcombine.low %v346_v10, %v347_v11  ;;  %v2993_v48 = vcombine.low %v348_v13, %v349_v16 }
  0xcf   : > { %3290 = vmatprep.mubr.msk.bf16.mxu1 %vm5777_vm1, %v4446_v12  ;;  %v4467_v20 = vcombine.low %v349_v16, %v4455_v17  ;;  %v4474_v23 = vld [vmem:[%s4440_s25 + $0x20] sm:$0xf]  ;;  %v957_v25 = vld [vmem:[%s4462_s21 + $0x4] sm:$0xf]  ;;  %v958_v26 = vld [vmem:[%s4462_s21 + $0x8] sm:$0xf] }
  0xd0   : > { %3291 = vmatmul.mubr.msk.bf16.vlgmr.msra.gmra.mrb[0].mxu1 %vm5777_vm1, %v4450_v14  ;;  %v959_v27 = vld [vmem:[%s4462_s21 + $0xc] sm:$0xf]  ;;  %v4483_v28 = vcombine.low %v956_v21, %v957_v25  ;;  %v3035_v29 = vcombine.low %v957_v25, %v958_v26  ;;  %v960_v30 = vld [vmem:[%s4462_s21 + $0x10] sm:$0xf]  ;;  %v543_v32 = vshrl.u32 %v2991_v19, 16  ;;  %v4491_v35 = vcombine.low %v4471_v22, %v4474_v23  ;;  %s1592_s17 = sadd.s32 16, %s4425_s6 }
  0xd1   : > { %3307 = vmatpush3.bf16.msra.mxu1 %v647_v15  ;;  %3294 = vmatprep.mubr.msk.bf16.mxu1 %vm5777_vm1, %v4467_v20  ;;  %v4487_v33 = vcombine.low %v958_v26, %v959_v27  ;;  %v3036_v34 = vcombine.low %v959_v27, %v960_v30  ;;  %v961_v38 = vld [vmem:[%s4462_s21 + $0x14] sm:$0xf]  ;;  %v962_v39 = vld [vmem:[%s4462_s21 + $0x18] sm:$0xf]  ;;  %v546_v40 = vshll.u32 %v2991_v19, 16  ;;  %v551_v41 = vshrl.u32 %v2992_v24, 16 }
  0xd2   : > { %3582 = vmatprep.subr.msk.bf16.mxu1 %vm429_vm0, %v4459_v18  ;;  %3362 = vmatprep.mubr.msk.bf16.mxu0 %vm5777_vm1, %v3035_v29  ;;  %v1394_v37 = vshll.u32 %v3035_v29, 16  ;;  %v554_v42 = vshll.u32 %v2992_v24, 16  ;;  %v1392_v43 = vshrl.u32 %v3035_v29, 16  ;;  %v963_v45 = vld [vmem:[%s4462_s21 + $0x1c] sm:$0xf]  ;;  %v4499_v47 = vrot.slane %v543_v32, 3 }
  0xd3   : > { %3363 = vmatmul.mubr.msk.bf16.vlgmr.msra.gmra.mrb[0].mxu0 %vm5777_vm1, %v3036_v34  ;;  %v964_v46 = vld [vmem:[%s4462_s21 + $0x20] sm:$0xf]  ;;  %v4502_v49 = vcombine.low %v960_v30, %v961_v38  ;;  %v3037_v50 = vcombine.low %v961_v38, %v962_v39  ;;  %v965_v51 = vld [vmem:[%s4462_s21 + $0x24] sm:$0xf]  ;;  %v4511_v53 = vcombine.low %v962_v39, %v963_v45  ;;  %v4516_v55 = vld [vmem:[%s4440_s25 + $0x28] sm:$0xf] }
  0xd4   : > { %v1396_v44 = vrot.slane %v1394_v37, 1  ;;  %3379 = vmatpush3.bf16.msra.mxu0 %v1477_v31  ;;  %v4508_v52 = vld [vmem:[%s4440_s25 + $0x24] sm:$0xf]  ;;  %v4513_v54 = vcombine.low %v964_v46, %v965_v51  ;;  %v4519_v56 = vld [vmem:[%s4440_s25 + $0x2c] sm:$0xf]  ;;  %v4524_v58 = vrot.slane %v546_v40, 4  ;;  %v4530_v61 = vcombine.low %v963_v45, %v964_v46 }
  0xd5   : > { %3587 = vmatprep.subr.msk.bf16.mxu0 %vm429_vm0, %v1616_v36  ;;  %v4522_v57 = vld [vmem:[%s4440_s25 + $0x30] sm:$0xf]  ;;  %3366 = vmatprep.mubr.msk.bf16.mxu0 %vm5777_vm1, %v3037_v50  ;;  %v1405_v59 = vshll.u32 %v3037_v50, 16  ;;  %v4528_v60 = vld [vmem:[%s4462_s21 + $0x28] sm:$0xf]  ;;  %v4534_v62 = vcombine.low %v4508_v52, %v4516_v55  ;;  %v553_v0 = vrot.slane %v551_v41, 3  ;;  %v2994_v37 = vcombine.low %v4455_v17, %v4471_v22 }
  0xd6   : > { %v4537_v63 = vld [vmem:[%s4440_s25 + $0x34] sm:$0xf]  ;;  %v1397_v1 = vor.u32 %v1396_v44, %v1392_v43  ;;  %v1398_v2 = vshll.u32 %v3036_v34, 16  ;;  %v1402_v4 = vshrl.u32 %v3036_v34, 16  ;;  %v4540_v6 = vld [vmem:[%s4440_s25 + $0x38] sm:$0xf]  ;;  %v4546_v10 = vcombine.low %v4519_v56, %v4522_v57 }
  0xd7   : > { %vm541_vm3 = vsmask.f32 4352  ;;  %v556_v7 = vrot.slane %v554_v42, 4  ;;  %v560_v8 = vshrl.u32 %v2993_v48, 16  ;;  %v563_v9 = vshll.u32 %v2993_v48, 16  ;;  %s4550_s8 = sshra.s32 %s1592_s17, 3 }
  0xd8   : > { %3295 = vmatmul.mubr.msk.bf16.gmra.mrb[4].mxu1 %vm5777_vm1, %v4491_v35  ;;  %v1407_v11 = vrot.slane %v1405_v59, 1  ;;  %v4553_v13 = vcombine.low %v965_v51, %v4528_v60  ;;  %v1400_v15 = vrot.slane %v1398_v2, 1  ;;  %v4557_v16 = vcombine.low %v4537_v63, %v4540_v6  ;;  %v4563_v24 = vld [vmem:[%s4462_s21 + $0x2c] sm:$0xf]  ;;  %v4566_v25 = vld [vmem:[%s4462_s21 + $0x30] sm:$0xf] }
  0xd9   : > { %3298 = vmatprep.mubr.msk.bf16.mxu1 %vm5777_vm1, %v4534_v62  ;;  %v1409_v19 = vshrl.u32 %v3037_v50, 16  ;;  %v1412_v21 = vshll.u32 %v4530_v61, 16  ;;  %v1765_v29 = vsel %vm429_vm0, %v1616_v36, 0  ;;  %v359_v30 = vld [vmem:[%s4440_s25 + $0x3c] sm:$0xf]  ;;  %v4576_v32 = vsel %vm429_vm0, %v4459_v18, 0 }
  0xda   : > { %5832 = vst [vmem:[#allocation24_spill] sm:$0xff] %v4553_v13  ;;  %v1401_v26 = vsel %vm750_vm2, %v1397_v1, %v1400_v15  ;;  %v1404_v27 = vor.u32 %v1402_v4, %v1400_v15  ;;  %v4572_v31 = vld [vmem:[%s4440_s25 + $0x40] sm:$0xf]  ;;  %v753_v39 = vshll.u32 %v4446_v12, 16  ;;  %v1419_v18 = vshll.u32 %v4553_v13, 16  ;;  %s3060_s11 = sshll.u32 %s4550_s8, 2 }
  0xdb   : > { %3367 = vmatmul.mubr.msk.bf16.gmra.mrb[4].mxu0 %vm5777_vm1, %v4530_v61  ;;  %v1411_v36 = vor.u32 %v1409_v19, %v1407_v11  ;;  %v1414_v38 = vrot.slane %v1412_v21, 1  ;;  %v549_v40 = vor.u32 %v4524_v58, %v4499_v47  ;;  %v4592_v17 = vcombine.low %v4563_v24, %v4566_v25  ;;  %v4595_v22 = vld [vmem:[%s4462_s21 + $0x34] sm:$0xf]  ;;  %v4598_v41 = vld [vmem:[%s4462_s21 + $0x38] sm:$0xf]  ;;  %s4619_s29 = scalar_lea.vmem %s4372_s7, %s3060_s11 [#allocation2]  ;;  %s3103_s7 = sadd.s32 4294967295, %s4058_s24 }
  0xdc   : > { %3380 = vmatprep.mubr.msk.bf16.mxu0 %vm5777_vm1, %v1401_v26  ;;  %v562_v42 = vrot.slane %v560_v8, 3  ;;  %v565_v43 = vrot.slane %v563_v9, 4  ;;  %v4602_v44 = vcombine.low %v359_v30, %v4572_v31  ;;  %v557_v45 = vor.u32 %v556_v7, %v553_v0  ;;  %v4614_v2 = vld [vmem:[%s4462_s21 + $0x3c] sm:$0xf]  ;;  %v4626_v8 = vld [vmem:[%s4462_s21 + $0x40] sm:$0xf] }
  0xdd   : > { %5833 = vst [vmem:[#allocation25_spill] sm:$0xff] %v4592_v17  ;;  %v1408_v46 = vsel %vm750_vm2, %v1404_v27, %v1407_v11  ;;  %v1416_v47 = vshrl.u32 %v4530_v61, 16  ;;  %v1423_v48 = vshrl.u32 %v4553_v13, 16  ;;  %v1426_v50 = vshll.u32 %v4592_v17, 16  ;;  %v4628_v9 = vld [vmem:[#allocation5 + $0x1c] sm:$0xf] }
  0xde   : > { %v1415_v51 = vsel %vm750_vm2, %v1411_v36, %v1414_v38  ;;  %v4611_v58 = vcombine.low %v4595_v22, %v4598_v41  ;;  %v569_v59 = vshrl.u32 %v2994_v37, 16  ;;  %v572_v1 = vshll.u32 %v2994_v37, 16  ;;  %v1597_v36 = vld [vmem:[%s4619_s29] sm:$0xf]  ;;  %s3104_s6 = sshll.u32 %s3103_s7, 7 }
  0xdf   : > { %v4616_v4 = vrot.slane %v753_v39, 1  ;;  %v2995_v61 = vcombine.low %v4474_v23, %v4508_v52  ;;  %v2996_v0 = vcombine.low %v4516_v55, %v4519_v56  ;;  %v1421_v7 = vrot.slane %v1419_v18, 1 }
  0xe0   : > { %3299 = vmatmul.mubr.msk.bf16.gmra.mrb[8].mxu1 %vm5777_vm1, %v4546_v10  ;;  %5834 = vst [vmem:[#allocation26_spill] sm:$0xff] %v4611_v58  ;;  %v558_v11 = vsel %vm541_vm3, %v549_v40, %v557_v45  ;;  %v566_v15 = vor.u32 %v565_v43, %v562_v42  ;;  %v571_v19 = vrot.slane %v569_v59, 3  ;;  %v574_v21 = vrot.slane %v572_v1, 4  ;;  %v4655_v42 = vld [vmem:[%s4619_s29 + $0x8] sm:$0xf] }
  0xe1   : > { %3302 = vmatprep.mubr.msk.bf16.mxu1 %vm5777_vm1, %v4557_v16  ;;  %v1418_v23 = vor.u32 %v1416_v47, %v1414_v38  ;;  %v1425_v52 = vor.u32 %v1423_v48, %v1421_v7  ;;  %v1428_v55 = vrot.slane %v1426_v50, 1  ;;  %v1430_v56 = vshrl.u32 %v4592_v17, 16  ;;  %v4658_v43 = vld [vmem:[%s4619_s29 + $0xc] sm:$0xf]  ;;  %v4692_v17 = vld [vmem:[%s4619_s29 + $0x1c] sm:$0xf] }
  0xe2   : > { %v1433_v27 = vshll.u32 %v4611_v58, 16  ;;  %v4640_v37 = vcombine.low %v4614_v2, %v4626_v8  ;;  %v2997_v38 = vcombine.low %v4522_v57, %v4537_v63  ;;  %v4651_v39 = vcombine.low %v4540_v6, %v359_v30  ;;  %v3772_v6 = vld [vmem:[%s4462_s21 + $0x44] ss:$0 sps:$4 sm:$0xff]  }
  0xe3   : > { %3381 = vmatmul.mubr.msk.bf16.vlgmr.msra.gmra.mrb[0].mxu0 %vm5777_vm1, %v1408_v46  ;;  %v578_v18 = vshrl.u32 %v2995_v61, 16  ;;  %v581_v40 = vshll.u32 %v2995_v61, 16  ;;  %v567_v46 = vsel %vm541_vm3, %v557_v45, %v566_v15  ;;  %v575_v47 = vor.u32 %v574_v21, %v571_v19 }
  0xe4   : > { %3397 = vmatpush3.bf16.msra.mxu0 %v1765_v29  ;;  %3384 = vmatprep.mubr.msk.bf16.mxu0 %vm5777_vm1, %v1415_v51  ;;  %5835 = vst [vmem:[#allocation27_spill] sm:$0xff] %v4640_v37  ;;  %v4644_v29 = vld [vmem:[%s4619_s29 + $0x4] sm:$0xf]  ;;  %v587_v48 = vshrl.u32 %v2996_v0, 16  ;;  %v590_v50 = vshll.u32 %v2996_v0, 16  ;;  %v1422_v51 = vsel %vm750_vm2, %v1418_v23, %v1421_v7  ;;  %v1429_v57 = vsel %vm750_vm2, %v1425_v52, %v1428_v55 }
  0xe5   : > { %3588 = vmatprep.subr.msk.bf16.mxu0 %vm429_vm0, %v4628_v9  ;;  %v1437_v63 = vshrl.u32 %v4611_v58, 16  ;;  %v3061_v30 = vcombine.low %v1597_v36, %v4644_v29  ;;  %v1432_v59 = vor.u32 %v1430_v56, %v1428_v55  ;;  %v1435_v1 = vrot.slane %v1433_v27, 1  ;;  %v4675_v52 = vld [vmem:[%s4619_s29 + $0x14] sm:$0xf]  ;;  %v4689_v58 = vld [vmem:[%s4619_s29 + $0x18] sm:$0xf] }
  0xe6   : > { %v1440_v61 = vshll.u32 %v4640_v37, 16  ;;  %v3062_v45 = vcombine.low %v4655_v42, %v4658_v43  ;;  %v580_v0 = vrot.slane %v578_v18, 3  ;;  %v583_v19 = vrot.slane %v581_v40, 4 }
  0xe7   : > { %v589_v7 = vrot.slane %v587_v48, 3  ;;  %v592_v21 = vrot.slane %v590_v50, 4  ;;  %v576_v23 = vsel %vm541_vm3, %v566_v15, %v575_v47  ;;  %v1661_v36 = vshrl.u32 %v3061_v30, 16  ;;  %v4679_v48 = vld [vmem:[#allocation5 + $0xc] sm:$0xf] }
  0xe8   : > { %3303 = vmatmul.mubr.msk.bf16.gmra.mrb[12].mxu1 %vm5777_vm1, %v4602_v44  ;;  %v1664_v55 = vshll.u32 %v3061_v30, 16  ;;  %v1669_v56 = vshrl.u32 %v3062_v45, 16  ;;  %v1020_v27 = vshrl.u32 %v4483_v28, 16  ;;  %v1672_v34 = vshll.u32 %v3062_v45, 16 }
  0xe9   : > { %3308 = vmatprep.mubr.msk.bf16.mxu1 %vm5777_vm1, %v558_v11  ;;  %v4668_v11 = vld [vmem:[%s4619_s29 + $0x10] sm:$0xf]  ;;  %v596_v18 = vshrl.u32 %v2997_v38, 16  ;;  %v599_v40 = vshll.u32 %v2997_v38, 16  ;;  %v1436_v15 = vsel %vm750_vm2, %v1432_v59, %v1435_v1  ;;  %v1439_v50 = vor.u32 %v1437_v63, %v1435_v1 }
  0xea   : > { %v1444_v30 = vshrl.u32 %v4640_v37, 16  ;;  %v1448_v26 = vshll.u32 %v3772_v6, 16  ;;  %v593_v45 = vor.u32 %v592_v21, %v589_v7  ;;  %v3063_v38 = vcombine.low %v4668_v11, %v4675_v52 }
  0xeb   : > { %3385 = vmatmul.mubr.msk.bf16.gmra.mrb[4].mxu0 %vm5777_vm1, %v1422_v51  ;;  %v1442_v51 = vrot.slane %v1440_v61, 1  ;;  %v1666_v59 = vrot.slane %v1664_v55, 4  ;;  %v1671_v63 = vrot.slane %v1669_v56, 3  ;;  %v605_v1 = vshrl.u32 %v4651_v39, 16 }
  0xec   : > { %3388 = vmatprep.mubr.msk.bf16.mxu0 %vm5777_vm1, %v1429_v57  ;;  %v584_v57 = vor.u32 %v583_v19, %v580_v0  ;;  %v598_v61 = vrot.slane %v596_v18, 3  ;;  %v601_v6 = vrot.slane %v599_v40, 4  ;;  %v608_v0 = vshll.u32 %v4651_v39, 16  ;;  %v4708_v18 = vld [vmem:[%s4619_s29 + $0x20] sm:$0xf] }
  0xed   : > { %v1023_v19 = vshll.u32 %v4483_v28, 16  ;;  %v2999_v7 = vcombine.low %v4572_v31, %v4572_v31  ;;  %v1443_v21 = vsel %vm750_vm2, %v1439_v50, %v1442_v51  ;;  %v1446_v55 = vor.u32 %v1444_v30, %v1442_v51  ;;  %v4712_v50 = vld [vmem:[%s4619_s29 + $0x24] sm:$0xf] }
  0xee   : > { %v594_v56 = vsel %vm541_vm3, %v584_v57, %v593_v45  ;;  %v1678_v28 = vshrl.u32 %v3063_v38, 16  ;;  %v1681_v31 = vshll.u32 %v3063_v38, 16  ;;  %v607_v39 = vrot.slane %v605_v1, 3  ;;  %5836 = vst [vmem:[#allocation28_spill] sm:$0xff] %v4712_v50 }
  0xef   : > { %v610_v40 = vrot.slane %v608_v0, 4  ;;  %v602_v30 = vor.u32 %v601_v6, %v598_v61  ;;  %v614_v1 = vshrl.u32 %v2999_v7, 16  ;;  %v4721_v0 = vld [vmem:[%s4619_s29 + $0x2c] sm:$0xf]  ;;  %v4723_v13 = vrot.slane %v1020_v27, 3 }
  0xf0   : > { %3309 = vmatmul.mubr.msk.bf16.vlgmr.msra.gmra.mrb[0].mxu1 %vm5777_vm1, %v567_v46  ;;  %v1663_v46 = vrot.slane %v1661_v36, 3  ;;  %v1450_v36 = vrot.slane %v1448_v26, 1  ;;  %5837 = vst [vmem:[#allocation29_spill] sm:$0xff] %v4721_v0  ;;  %v617_v26 = vshll.u32 %v2999_v7, 16  ;;  %v1680_v61 = vrot.slane %v1678_v28, 3 }
  0xf1   : > { %3325 = vmatpush3.bf16.msra.mxu1 %v4576_v32  ;;  %3312 = vmatprep.mubr.msk.bf16.mxu1 %vm5777_vm1, %v576_v23  ;;  %v1674_v32 = vrot.slane %v1672_v34, 4  ;;  %v3064_v23 = vcombine.low %v4689_v58, %v4692_v17  ;;  %v585_v34 = vsel %vm541_vm3, %v575_v47, %v584_v57  ;;  %v4716_v57 = vld [vmem:[%s4619_s29 + $0x28] sm:$0xf]  ;;  %v1683_v6 = vrot.slane %v1681_v31, 4 }
  0xf2   : > { %3583 = vmatprep.subr.msk.bf16.mxu1 %vm429_vm0, %v4679_v48  ;;  %v1667_v47 = vor.u32 %v1666_v59, %v1663_v46  ;;  %v3065_v46 = vcombine.low %v4708_v18, %v4712_v50  ;;  %v4729_v59 = vld [vmem:[%s4619_s29 + $0x30] sm:$0xf]  ;;  %v3066_v7 = vcombine.low %v4716_v57, %v4721_v0  ;;  %v616_v5 = vrot.slane %v614_v1, 3 }
  0xf3   : > { %3389 = vmatmul.mubr.msk.bf16.gmra.mrb[8].mxu0 %vm5777_vm1, %v1436_v15  ;;  %v1675_v51 = vor.u32 %v1674_v32, %v1671_v63  ;;  %v1687_v15 = vshrl.u32 %v3064_v23, 16  ;;  %v1690_v38 = vshll.u32 %v3064_v23, 16  ;;  %5838 = vst [vmem:[#allocation30_spill] sm:$0xff] %v4729_v59  ;;  %v4732_v63 = vld [vmem:[%s4619_s29 + $0x34] sm:$0xf]  ;;  %v4734_v32 = vrot.slane %v1023_v19, 4 }
  0xf4   : > { %3392 = vmatprep.mubr.msk.bf16.mxu0 %vm5777_vm1, %v1443_v21  ;;  %5839 = vst [vmem:[#allocation31_spill] sm:$0xff] %v4732_v63  ;;  %v611_v21 = vor.u32 %v610_v40, %v607_v39  ;;  %v1451_v23 = vsel %vm750_vm2, %v1446_v55, %v1450_v36  ;;  %v3067_v19 = vcombine.low %v4729_v59, %v4732_v63  ;;  %v619_v28 = vrot.slane %v617_v26, 4  ;;  %v4753_v26 = vld [vmem:[%s4619_s29 + $0x38] sm:$0xf] }
  0xf5   : > { %v1676_v27 = vsel %vm541_vm3, %v1667_v47, %v1675_v51  ;;  %v1692_v37 = vrot.slane %v1690_v38, 4  ;;  %v1696_v31 = vshrl.u32 %v3065_v46, 16  ;;  %v1699_v39 = vshll.u32 %v3065_v46, 16  ;;  %v4756_v46 = vld [vmem:[%s4619_s29 + $0x3c] sm:$0xf] }
  0xf6   : > { %v757_v36 = vshll.u32 %v4450_v14, 16  ;;  %v5840_v55 = vshll.u32 %v4467_v20, 16  ;;  %v1684_v47 = vor.u32 %v1683_v6, %v1680_v61  ;;  %v1705_v38 = vshrl.u32 %v3066_v7, 16 }
  0xf7   : > { %v1708_v1 = vshll.u32 %v3066_v7, 16  ;;  %v1714_v59 = vshrl.u32 %v3067_v19, 16  ;;  %v1698_v61 = vrot.slane %v1696_v31, 3  ;;  %v1701_v6 = vrot.slane %v1699_v39, 4 }
  0xf8   : > { %3313 = vmatmul.mubr.msk.bf16.gmra.mrb[4].mxu1 %vm5777_vm1, %v585_v34  ;;  %v603_v34 = vsel %vm541_vm3, %v593_v45, %v602_v30  ;;  %v4746_v40 = vrot.slane %v5840_v55, 1  ;;  %v1037_v45 = vshrl.u32 %v4502_v49, 16  ;;  %v5841_v55 = vshrl.u32 %v4446_v12, 16 }
  0xf9   : > { %3316 = vmatprep.mubr.msk.bf16.mxu1 %vm5777_vm1, %v594_v56  ;;  %v1689_v56 = vrot.slane %v1687_v15, 3  ;;  %v612_v15 = vsel %vm541_vm3, %v602_v30, %v611_v21  ;;  %v620_v30 = vor.u32 %v619_v28, %v616_v5  ;;  %v1040_v7 = vshll.u32 %v4502_v49, 16 }
  0xfa   : > { %v756_v0 = vor.u32 %v4616_v4, %v5841_v55  ;;  %v1685_v50 = vsel %vm541_vm3, %v1675_v51, %v1684_v47  ;;  %v3068_v12 = vcombine.low %v4753_v26, %v4756_v46  ;;  %v761_v4 = vshrl.u32 %v4450_v14, 16  ;;  %v4777_v55 = vld [vmem:[%s4619_s29 + $0x40] sm:$0xf] }
  0xfb   : > { %3393 = vmatmul.mubr.msk.bf16.gmra.mrb[12].mxu0 %vm5777_vm1, %v1451_v23  ;;  %v1693_v63 = vor.u32 %v1692_v37, %v1689_v56  ;;  %v1717_v23 = vshll.u32 %v3067_v19, 16  ;;  %v1707_v37 = vrot.slane %v1705_v38, 3  ;;  %v1710_v56 = vrot.slane %v1708_v1, 4  ;;  %v4779_v14 = vld [vmem:[#allocation5 + $0x20] sm:$0xf] }
  0xfc   : > { %3398 = vmatprep.mubr.msk.bf16.mxu0 %vm5777_vm1, %v1676_v27  ;;  %v759_v27 = vrot.slane %v757_v36, 1  ;;  %v768_v19 = vshrl.u32 %v4467_v20, 16  ;;  %v1914_v5 = vsel %vm429_vm0, %v4628_v9, 0  ;;  %v1716_v49 = vrot.slane %v1714_v59, 3 }
  0xfd   : > { %v1694_v28 = vsel %vm541_vm3, %v1684_v47, %v1693_v63  ;;  %v1719_v31 = vrot.slane %v1717_v23, 4  ;;  %v621_v51 = vsel %vm541_vm3, %v611_v21, %v620_v30  ;;  %v1702_v39 = vor.u32 %v1701_v6, %v1698_v61 }
  0xfe   : > { %v760_v36 = vsel %vm750_vm2, %v756_v0, %v759_v27  ;;  %v1723_v38 = vshrl.u32 %v3068_v12, 16  ;;  %v1726_v9 = vshll.u32 %v3068_v12, 16  ;;  %v778_v47 = vshll.u32 %v4534_v62, 16 }
  0xff   : > { %v5842_v59 = vshrl.u32 %v4487_v33, 16  ;;  %v763_v0 = vor.u32 %v761_v4, %v759_v27  ;;  %v1711_v21 = vor.u32 %v1710_v56, %v1707_v37  ;;  %v5843_v23 = vshll.u32 %v4487_v33, 16 }
 0x100   : > { %3317 = vmatmul.mubr.msk.bf16.gmra.mrb[8].mxu1 %vm5777_vm1, %v603_v34  ;;  %v771_v34 = vshll.u32 %v4491_v35, 16  ;;  %v1039_v61 = vrot.slane %v1037_v45, 3  ;;  %v3069_v6 = vcombine.low %v4777_v55, %v4777_v55  ;;  %v1703_v12 = vsel %vm541_vm3, %v1693_v63, %v1702_v39 }
 0x101   : > { %3320 = vmatprep.mubr.msk.bf16.mxu1 %vm5777_vm1, %v612_v15  ;;  %v775_v15 = vshrl.u32 %v4491_v35, 16  ;;  %v1030_v1 = vrot.slane %v5842_v59, 3  ;;  %v770_v35 = vor.u32 %v768_v19, %v4746_v40  ;;  %v1033_v30 = vrot.slane %v5843_v23, 4 }
 0x102   : > { %v773_v20 = vrot.slane %v771_v34, 1  ;;  %v1042_v34 = vrot.slane %v1040_v7, 4  ;;  %v1124_v27 = vsel %vm429_vm0, %v4679_v48, 0  ;;  %v782_v33 = vshrl.u32 %v4534_v62, 16 }
 0x103   : > { %3399 = vmatmul.mubr.msk.bf16.vlgmr.msra.gmra.mrb[0].mxu0 %vm5777_vm1, %v1685_v50  ;;  %v1720_v50 = vor.u32 %v1719_v31, %v1716_v49  ;;  %v1725_v45 = vrot.slane %v1723_v38, 3  ;;  %v1728_v4 = vrot.slane %v1726_v9, 4  ;;  %v780_v56 = vrot.slane %v778_v47, 1 }
 0x104   : > { %3415 = vmatpush3.bf16.msra.mxu0 %v1914_v5  ;;  %3402 = vmatprep.mubr.msk.bf16.mxu0 %vm5777_vm1, %v1694_v28  ;;  %v777_v37 = vor.u32 %v775_v15, %v773_v20  ;;  %v1712_v19 = vsel %vm541_vm3, %v1702_v39, %v1711_v21  ;;  %v767_v5 = vsel %vm750_vm2, %v763_v0, %v4746_v40  ;;  %v1732_v49 = vshrl.u32 %v3069_v6, 16 }
 0x105   : > { %3589 = vmatprep.subr.msk.bf16.mxu0 %vm429_vm0, %v4779_v14  ;;  %v774_v7 = vsel %vm750_vm2, %v770_v35, %v773_v20  ;;  %v1026_v63 = vor.u32 %v4734_v32, %v4723_v13  ;;  %v1721_v28 = vsel %vm541_vm3, %v1711_v21, %v1720_v50  ;;  %v1735_v48 = vshll.u32 %v3069_v6, 16 }
 0x106   : > { %v1034_v31 = vor.u32 %v1033_v30, %v1030_v1  ;;  %v784_v62 = vor.u32 %v782_v33, %v780_v56  ;;  %v1046_v15 = vshrl.u32 %v4511_v53, 16  ;;  %v1729_v39 = vor.u32 %v1728_v4, %v1725_v45 }
 0x107   : > { %v781_v40 = vsel %vm750_vm2, %v777_v37, %v780_v56  ;;  %v1049_v13 = vshll.u32 %v4511_v53, 16  ;;  %v1055_v9 = vshrl.u32 %v4513_v54, 16  ;;  %v1058_v47 = vshll.u32 %v4513_v54, 16 }
 0x108   : > { %3321 = vmatmul.mubr.msk.bf16.gmra.mrb[12].mxu1 %vm5777_vm1, %v621_v51  ;;  %v785_v51 = vshll.u32 %v4546_v10, 16  ;;  %v4811_v20 = vsel %vm541_vm3, %v1026_v63, %v1034_v31  ;;  %v1048_v38 = vrot.slane %v1046_v15, 3  ;;  %v1734_v59 = vrot.slane %v1732_v49, 3 }
 0x109   : > { %3326 = vmatprep.mubr.msk.bf16.mxu1 %vm5777_vm1, %v760_v36  ;;  %v1043_v36 = vor.u32 %v1042_v34, %v1039_v61  ;;  %v1737_v1 = vrot.slane %v1735_v48, 4  ;;  %v1051_v0 = vrot.slane %v1049_v13, 4  ;;  %v3023_v21 = vcombine.low %v4528_v60, %v4563_v24 }
 0x10a   : > { %v787_v53 = vrot.slane %v785_v51, 1  ;;  %v789_v35 = vshrl.u32 %v4546_v10, 16  ;;  %v1057_v23 = vrot.slane %v1055_v9, 3  ;;  %v1060_v30 = vrot.slane %v1058_v47, 4 }
 0x10b   : > { %3403 = vmatmul.mubr.msk.bf16.gmra.mrb[4].mxu0 %vm5777_vm1, %v1703_v12  ;;  %v4816_v32 = vsel %vm541_vm3, %v1034_v31, %v1043_v36  ;;  %v792_v61 = vshll.u32 %v4557_v16, 16  ;;  %v1052_v54 = vor.u32 %v1051_v0, %v1048_v38  ;;  %v1064_v6 = vshrl.u32 %v3023_v21, 16  ;;  %v3785_v31 = vld [vmem:[%s4440_s25 + $0x44] ss:$0 sps:$4 sm:$0xff]  }
 0x10c   : > { %3406 = vmatprep.mubr.msk.bf16.mxu0 %vm5777_vm1, %v1712_v19  ;;  %v1067_v34 = vshll.u32 %v3023_v21, 16  ;;  %v1730_v12 = vsel %vm541_vm3, %v1720_v50, %v1729_v39  ;;  %v796_v60 = vshrl.u32 %v4557_v16, 16  ;;  %v1061_v24 = vor.u32 %v1060_v30, %v1057_v23 }
 0x10d   : > { %v4833_v10 = vsel %vm541_vm3, %v1043_v36, %v1052_v54  ;;  %v1066_v33 = vrot.slane %v1064_v6, 3  ;;  %v3025_v4 = vcombine.low %v4598_v41, %v4614_v2  ;;  %v799_v37 = vshll.u32 %v4602_v44, 16 }
 0x10e   : > { %v1069_v45 = vrot.slane %v1067_v34, 4  ;;  %v4840_v50 = vsel %vm541_vm3, %v1052_v54, %v1061_v24  ;;  %v807_v21 = vshll.u32 %v3785_v31, 16  ;;  %v3079_v30 = vcombine.low %v4658_v43, %v4668_v11  ;;  %v5847_v34 = vld [vmem:[#allocation29_spill] sm:$0xff] }
 0x10f   : > { %v1082_v56 = vshrl.u32 %v3025_v4, 16  ;;  %v1085_v19 = vshll.u32 %v3025_v4, 16  ;;  %v801_v36 = vrot.slane %v799_v37, 1  ;;  %v2118_v54 = vsel %vm429_vm0, %v4779_v14, 0  ;;  %v5845_v14 = vld [vmem:[#allocation23_spill] sm:$0xff] }
 0x110   : > { %3327 = vmatmul.mubr.msk.bf16.vlgmr.msra.gmra.mrb[0].mxu1 %vm5777_vm1, %v767_v5  ;;  %v1738_v5 = vor.u32 %v1737_v1, %v1734_v59  ;;  %v803_v59 = vshrl.u32 %v4602_v44, 16  ;;  %v3081_v43 = vcombine.low %v4692_v17, %v4708_v18  ;;  %v2039_v17 = vshll.u32 %v3079_v30, 16 }
 0x111   : > { %3343 = vmatpush3.bf16.msra.mxu1 %v1124_v27  ;;  %3330 = vmatprep.mubr.msk.bf16.mxu1 %vm5777_vm1, %v774_v7  ;;  %v3024_v27 = vcombine.low %v4566_v25, %v4595_v22  ;;  %v1070_v25 = vor.u32 %v1069_v45, %v1066_v33  ;;  %v794_v7 = vrot.slane %v792_v61, 1  ;;  %v1084_v49 = vrot.slane %v1082_v56, 3  ;;  %v3795_v56 = vld [vmem:[%s4619_s29 + $0x44] ss:$0 sps:$4 sm:$0xff]  }
 0x112   : > { %3585 = vmatprep.subr.msk.bf16.mxu1 %vm429_vm0, %v4422_v3  ;;  %v788_v3 = vsel %vm750_vm2, %v784_v62, %v787_v53  ;;  %v1087_v48 = vrot.slane %v1085_v19, 4  ;;  %v3026_v62 = vcombine.low %v4626_v8, %v4626_v8  ;;  %v1739_v38 = vsel %vm541_vm3, %v1729_v39, %v1738_v5 }
 0x113   : > { %v1073_v16 = vshrl.u32 %v3024_v27, 16  ;;  %3407 = vmatmul.mubr.msk.bf16.gmra.mrb[8].mxu0 %vm5777_vm1, %v1721_v28  ;;  %v1076_v22 = vshll.u32 %v3024_v27, 16  ;;  %v4846_v2 = vsel %vm541_vm3, %v1061_v24, %v1070_v25  ;;  %v791_v28 = vor.u32 %v789_v35, %v787_v53 }
 0x114   : > { %3410 = vmatprep.mubr.msk.bf16.mxu0 %vm5777_vm1, %v1730_v12  ;;  %v798_v51 = vor.u32 %v796_v60, %v794_v7  ;;  %v1088_v13 = vor.u32 %v1087_v48, %v1084_v49  ;;  %v1091_v9 = vshrl.u32 %v3026_v62, 16  ;;  %v1094_v47 = vshll.u32 %v3026_v62, 16 }
 0x115   : > { %v1075_v41 = vrot.slane %v1073_v16, 3  ;;  %v1078_v63 = vrot.slane %v1076_v22, 4  ;;  %v795_v8 = vsel %vm750_vm2, %v791_v28, %v794_v7  ;;  %v805_v44 = vor.u32 %v803_v59, %v801_v36 }
 0x116   : > { %v1093_v53 = vrot.slane %v1091_v9, 3  ;;  %v1096_v35 = vrot.slane %v1094_v47, 4  ;;  %v802_v39 = vsel %vm750_vm2, %v798_v51, %v801_v36  ;;  %v3080_v61 = vcombine.low %v4675_v52, %v4689_v58  ;;  %v5844_v58 = vld [vmem:[#allocation28_spill] sm:$0xff] }
 0x117   : > { %v1079_v15 = vor.u32 %v1078_v63, %v1075_v41  ;;  %v3082_v11 = vcombine.low %v5844_v58, %v4716_v57  ;;  %v5848_v57 = vld [vmem:[#allocation31_spill] sm:$0xff]  ;;  %v2053_v33 = vshll.u32 %v3081_v43, 16  ;;  %v2233_v4 = vlaneseq }
 0x118   : > { %3331 = vmatmul.mubr.msk.bf16.gmra.mrb[4].mxu1 %vm5777_vm1, %v781_v40  ;;  %v3078_v40 = vcombine.low %v4644_v29, %v4655_v42  ;;  %v1097_v29 = vor.u32 %v1096_v35, %v1093_v53  ;;  %v809_v42 = vrot.slane %v807_v21, 1  ;;  %v2046_v18 = vshll.u32 %v3080_v61, 16 }
 0x119   : > { %3334 = vmatprep.mubr.msk.bf16.mxu1 %vm5777_vm1, %v788_v3  ;;  %v4857_v1 = vsel %vm541_vm3, %v1070_v25, %v1079_v15  ;;  %v4860_v0 = vsel %vm541_vm3, %v1079_v15, %v1088_v13  ;;  %v3084_v60 = vcombine.low %v5848_v57, %v4753_v26  ;;  %v2043_v3 = vshrl.u32 %v3079_v30, 16 }
 0x11a   : > { %v4869_v23 = vsel %vm541_vm3, %v1088_v13, %v1097_v29  ;;  %v810_v6 = vsel %vm750_vm2, %v805_v44, %v809_v42  ;;  %v2035_v52 = vshll.u32 %v3078_v40, 16  ;;  %v2033_v24 = vshrl.u32 %v3078_v40, 16 }
 0x11b   : > { %3411 = vmatmul.mubr.msk.bf16.gmra.mrb[12].mxu0 %vm5777_vm1, %v1739_v38  ;;  %v2050_v37 = vshrl.u32 %v3080_v61, 16  ;;  %v2060_v16 = vshll.u32 %v3082_v11, 16  ;;  %v2048_v25 = vrot.slane %v2046_v18, 1  ;;  %v2055_v19 = vrot.slane %v2053_v33, 1 }
 0x11c   : > { %3416 = vmatprep.mubr.msk.bf16.mxu0 %vm5777_vm1, %v3078_v40  ;;  %v2037_v27 = vrot.slane %v2035_v52, 1  ;;  %v2074_v5 = vshll.u32 %v3084_v60, 16  ;;  %v4908_v63 = vshrl.u32 %v2233_v4, 7  ;;  %v2078_v31 = vshrl.u32 %v3084_v60, 16 }
 0x11d   : > { %v2052_v48 = vor.u32 %v2050_v37, %v2048_v25  ;;  %v2062_v28 = vrot.slane %v2060_v16, 1  ;;  %v2089_v36 = vshll.u32 %v3795_v56, 16  ;;  %v2252_v9 = vstv %s3104_s6 }
 0x11e   : > { %v2038_v26 = vor.u32 %v2037_v27, %v2033_v24  ;;  %v2076_v38 = vrot.slane %v2074_v5, 1  ;;  %v2236_v21 = vadd.s32 16, %v4908_v63  ;;  %v2238_v29 = vadd.s32 32, %v4908_v63 }
 0x11f   : > { %v2056_v59 = vsel %vm750_vm2, %v2052_v48, %v2055_v19  ;;  %v2091_v35 = vrot.slane %v2089_v36, 1  ;;  %v2242_v58 = vadd.s32 64, %v4908_v63  ;;  %v2244_v52 = vadd.s32 80, %v4908_v63 }
 0x120   : > { %3335 = vmatmul.mubr.msk.bf16.gmra.mrb[8].mxu1 %vm5777_vm1, %v795_v8  ;;  %v2080_v8 = vor.u32 %v2078_v31, %v2076_v38  ;;  %v2246_v18 = vadd.s32 96, %v4908_v63  ;;  %v2247_v24 = vadd.s32 104, %v4908_v63  ;;  %v2248_v37 = vadd.s32 112, %v4908_v63 }
 0x121   : > { %3338 = vmatprep.mubr.msk.bf16.mxu1 %vm5777_vm1, %v802_v39  ;;  %v2237_v39 = vadd.s32 24, %v4908_v63  ;;  %v2249_v16 = vadd.s32 120, %v4908_v63 }
 0x122   : > { %v4981_v56 = vadd.s32 %v2252_v9, %v2246_v18  ;;  %v4988_v5 = vadd.s32 %v2252_v9, %v2247_v24 }
 0x123   : > { %3417 = vmatmul.mubr.msk.bf16.vlgmr.msra.gmra.mrb[0].mxu0 %vm5777_vm1, %v3079_v30  ;;  %v2239_v30 = vadd.s32 40, %v4908_v63 }
 0x124   : > { %3433 = vmatpush3.bf16.msra.mxu0 %v2118_v54  ;;  %3420 = vmatprep.mubr.msk.bf16.mxu0 %vm5777_vm1, %v3080_v61  ;;  %v4927_v61 = vadd.s32 %v2252_v9, %v4908_v63 }
 0x125   : > { %v4955_v57 = vadd.s32 %v2252_v9, %v2239_v30 }
 0x128   : > { %3339 = vmatmul.mubr.msk.bf16.gmra.mrb[12].mxu1 %vm5777_vm1, %v810_v6  ;;  %v2240_v6 = vadd.s32 48, %v4908_v63 }
 0x129   : > { %3344 = vmatprep.mubr.msk.bf16.mxu1 %vm5777_vm1, %v4811_v20  ;;  %v5846_v20 = vld [vmem:[#allocation30_spill] sm:$0xff] }
 0x12a   : > { %v3083_v12 = vcombine.low %v5847_v34, %v5846_v20  ;;  %v4949_v34 = vadd.s32 %v2252_v9, %v2237_v39  ;;  %v4959_v27 = vadd.s32 %v2252_v9, %v2240_v6 }
 0x12b   : > { %3421 = vmatmul.mubr.msk.bf16.gmra.mrb[4].mxu0 %vm5777_vm1, %v3081_v43 }
 0x12c   : > { %3424 = vmatprep.mubr.msk.bf16.mxu0 %vm5777_vm1, %v3082_v11  ;;  %v2067_v45 = vshll.u32 %v3083_v12, 16  ;;  %v2071_v41 = vshrl.u32 %v3083_v12, 16 }
 0x12e   : > { %v2069_v7 = vrot.slane %v2067_v45, 1  ;;  %v4965_v45 = vadd.s32 %v2252_v9, %v2242_v58 }
 0x130   : > { %3345 = vmatmul.mubr.msk.bf16.vlgmr.msra.gmra.mrb[0].mxu1 %vm5777_vm1, %v4816_v32  ;;  %v3085_v32 = vcombine.low %v4756_v46, %v4777_v55  ;;  %v2057_v46 = vshrl.u32 %v3081_v43, 16  ;;  %v2064_v55 = vshrl.u32 %v3082_v11, 16  ;;  %v2073_v40 = vor.u32 %v2071_v41, %v2069_v7 }
 0x131   : > { %3451 = vmatpush3.bf16.msra.mxu1 %v5845_v14  ;;  %3348 = vmatprep.mubr.msk.bf16.mxu1 %vm5777_vm1, %v4833_v10  ;;  %v2041_v10 = vrot.slane %v2039_v17, 1  ;;  %v2243_v11 = vadd.s32 72, %v4908_v63  ;;  %v4941_v14 = vadd.s32 %v2252_v9, %v2236_v21  ;;  %v2245_v17 = vadd.s32 88, %v4908_v63 }
 0x132   : > { %v2081_v22 = vshll.u32 %v3085_v32, 16  ;;  %v2085_v51 = vshrl.u32 %v3085_v32, 16  ;;  %v2059_v15 = vor.u32 %v2057_v46, %v2055_v19  ;;  %v2066_v13 = vor.u32 %v2064_v55, %v2062_v28  ;;  %v5849_v55 = vld [vmem:[#allocation24_spill] sm:$0xff] }
 0x133   : > { %3425 = vmatmul.mubr.msk.bf16.gmra.mrb[8].mxu0 %vm5777_vm1, %v3083_v12  ;;  %v2045_v49 = vor.u32 %v2043_v3, %v2041_v10  ;;  %v4932_v54 = vsel %vm750_vm2, %v2073_v40, %v2076_v38  ;;  %v4951_v12 = vadd.s32 %v2252_v9, %v2238_v29  ;;  %v4967_v4 = vadd.s32 %v2252_v9, %v2243_v11 }
 0x134   : > { %3428 = vmatprep.mubr.msk.bf16.mxu0 %vm5777_vm1, %v3084_v60  ;;  %v2083_v62 = vrot.slane %v2081_v22, 1  ;;  %v2063_v44 = vsel %vm750_vm2, %v2059_v15, %v2062_v28  ;;  %v4923_v42 = vsel %vm750_vm2, %v2066_v13, %v2069_v7  ;;  %v2269_v60 = vcvt.s32.f32 %v4927_v61 }
 0x135   : > { %v2049_v47 = vsel %vm750_vm2, %v2045_v49, %v2048_v25  ;;  %v2271_v3 = vcvt.s32.f32 %v4941_v14  ;;  %v2272_v25 = vcvt.s32.f32 %v4949_v34  ;;  %v4979_v22 = vadd.s32 %v2252_v9, %v2245_v17  ;;  %v5851_v17 = vld [vmem:[#allocation26_spill] sm:$0xff] }
 0x136   : > { %v2087_v53 = vor.u32 %v2085_v51, %v2083_v62  ;;  %v4944_v20 = vsel %vm750_vm2, %v2080_v8, %v2083_v62  ;;  %v2274_v19 = vcvt.s32.f32 %v4955_v57  ;;  %v2285_v46 = vadd.f32 0.5, %v2269_v60 }
 0x137   : > { %v2275_v7 = vcvt.s32.f32 %v4959_v27  ;;  %v2277_v49 = vcvt.s32.f32 %v4965_v45  ;;  %v2278_v48 = vcvt.s32.f32 %v4967_v4  ;;  %v2287_v31 = vadd.f32 0.5, %v2271_v3 }
 0x138   : > { %3349 = vmatmul.mubr.msk.bf16.gmra.mrb[4].mxu1 %vm5777_vm1, %v4840_v50  ;;  %v2042_v50 = vsel %vm750_vm2, %v2038_v26, %v2041_v10  ;;  %v4969_v10 = vadd.s32 %v2252_v9, %v2244_v52  ;;  %v2273_v26 = vcvt.s32.f32 %v4951_v12  ;;  %v4999_v62 = vadd.s32 %v2252_v9, %v2248_v37 }
 0x139   : > { %3352 = vmatprep.mubr.msk.bf16.mxu1 %vm5777_vm1, %v4846_v2  ;;  %v2235_v2 = vadd.s32 8, %v4908_v63  ;;  %v5001_v51 = vadd.s32 %v2252_v9, %v2249_v16  ;;  %v2288_v36 = vadd.f32 0.5, %v2272_v25  ;;  %v2280_v15 = vcvt.s32.f32 %v4979_v22 }
 0x13a   : > { %v2279_v28 = vcvt.s32.f32 %v4969_v10  ;;  %v2281_v13 = vcvt.s32.f32 %v4981_v56  ;;  %v2290_v38 = vadd.f32 0.5, %v2274_v19  ;;  %v2301_v40 = vmul.f32 0.041666668, %v2285_v46 }
 0x13b   : > { %3429 = vmatmul.mubr.msk.bf16.gmra.mrb[12].mxu0 %vm5777_vm1, %v3085_v32  ;;  %v4936_v43 = vadd.s32 %v2252_v9, %v2235_v2  ;;  %v2282_v2 = vcvt.s32.f32 %v4988_v5  ;;  %v2293_v8 = vadd.f32 0.5, %v2277_v49  ;;  %v2294_v21 = vadd.f32 0.5, %v2278_v48 }
 0x13c   : > { %3434 = vmatprep.mubr.msk.bf16.mxu0 %vm5777_vm1, %v2042_v50  ;;  %v2289_v50 = vadd.f32 0.5, %v2273_v26  ;;  %v2283_v39 = vcvt.s32.f32 %v4999_v62  ;;  %v2284_v29 = vcvt.s32.f32 %v5001_v51  ;;  %v2304_v30 = vmul.f32 0.041666668, %v2288_v36 }
 0x13d   : > { %v2270_v32 = vcvt.s32.f32 %v4936_v43  ;;  %v5033_v58 = vadd.f32 0.5, %v2281_v13  ;;  %v2306_v11 = vmul.f32 0.041666668, %v2290_v38  ;;  %v2317_v52 = vfloor.f32 %v2301_v40 }
 0x13e   : > { %v2305_v6 = vmul.f32 0.041666668, %v2289_v50  ;;  %v2309_v16 = vmul.f32 0.041666668, %v2293_v8  ;;  %v5041_v46 = vmul.f32 0.041666668, %v2294_v21 }
 0x13f   : > { %vm2365_vm4 = vcmp.ge.f32.partialorder %v2317_v52, 1.0  ;;  %vm2381_vm5 = vcmp.le.f32.partialorder %v2317_v52, 16.0  ;;  %v2322_v50 = vfloor.f32 %v2306_v11  ;;  %v2333_v38 = vmul.f32 24.0, %v2317_v52 }
 0x140   : > { %3353 = vmatmul.mubr.msk.bf16.gmra.mrb[8].mxu1 %vm5777_vm1, %v4857_v1  ;;  %v2241_v1 = vadd.s32 56, %v4908_v63  ;;  %v2321_v36 = vfloor.f32 %v2305_v6  ;;  %vm5048_vm12 = vmand %vm2365_vm4, %vm2381_vm5  ;;  %v2325_v8 = vfloor.f32 %v2309_v16  ;;  %v5872_v27 = vmov 0 }
 0x141   : > { %3356 = vmatprep.mubr.msk.bf16.mxu1 %vm5777_vm1, %v4860_v0  ;;  %v4947_v0 = vsel %vm750_vm2, %v2087_v53, %v2091_v35  ;;  %v2295_v53 = vadd.f32 0.5, %v2279_v28  ;;  %v2303_v35 = vmul.f32 0.041666668, %v2287_v31  ;;  %v2320_v31 = vfloor.f32 %v2304_v30 }
 0x142   : > { %v4961_v33 = vadd.s32 %v2252_v9, %v2241_v1  ;;  %v2291_v9 = vadd.f32 0.5, %v2275_v7  ;;  %v2296_v1 = vadd.f32 0.5, %v2280_v15  ;;  %vm2369_vm13 = vcmp.ge.f32.partialorder %v2321_v36, 1.0 }
 0x143   : > { %3435 = vmatmul.mubr.msk.bf16.vlgmr.msra.gmra.mrb[0].mxu0 %vm5777_vm1, %v2049_v47  ;;  %vm2368_vm10 = vcmp.ge.f32.partialorder %v2320_v31, 1.0  ;;  %vm2384_vm11 = vcmp.le.f32.partialorder %v2320_v31, 16.0  ;;  %v2336_v21 = vmul.f32 24.0, %v2320_v31  ;;  %vm2385_vm14 = vcmp.le.f32.partialorder %v2321_v36, 16.0 }
 0x144   : > { %3438 = vmatprep.mubr.msk.bf16.mxu0 %vm5777_vm1, %v2056_v59  ;;  %v2276_v41 = vcvt.s32.f32 %v4961_v33  ;;  %v2307_v18 = vmul.f32 0.041666668, %v2291_v9  ;;  %v5064_v30 = vsub.f32 %v2269_v60, %v2333_v38  ;;  %vm2370_vm0 = vcmp.ge.f32.partialorder %v2322_v50, 1.0 }
 0x145   : > { %vm2386_vm2 = vcmp.le.f32.partialorder %v2322_v50, 16.0  ;;  %v2338_v6 = vmul.f32 24.0, %v2322_v50  ;;  %v5900_v61 = vmov 0  ;;  %v5904_v10 = vmov 0 }
 0x146   : > { %v2292_v47 = vadd.f32 0.5, %v2276_v41  ;;  %v2323_v40 = vfloor.f32 %v2307_v18  ;;  %v2341_v18 = vmul.f32 24.0, %v2325_v8 }
 0x148   : > { %3357 = vmatmul.mubr.msk.bf16.gmra.mrb[12].mxu1 %vm5777_vm1, %v4869_v23  ;;  %v2286_v23 = vadd.f32 0.5, %v2270_v32  ;;  %v2308_v24 = vmul.f32 0.041666668, %v2292_v47  ;;  %vm2371_vm4 = vcmp.ge.f32.partialorder %v2323_v40, 1.0  ;;  %vm2387_vm5 = vcmp.le.f32.partialorder %v2323_v40, 16.0 }
 0x149   : > { %3370 = vmatprep.mubr.msk.bf16.mxu1 %vm5777_vm1, %v5849_v55  ;;  %v5043_v55 = vmul.f32 0.041666668, %v2295_v53  ;;  %v5856_v53 = vld [vmem:[#allocation27_spill] sm:$0xff]  ;;  %v2339_v60 = vmul.f32 24.0, %v2323_v40 }
 0x14a   : > { %v2302_v59 = vmul.f32 0.041666668, %v2286_v23  ;;  %v2319_v23 = vfloor.f32 %v2303_v35  ;;  %v2324_v9 = vfloor.f32 %v2308_v24  ;;  %v2337_v35 = vmul.f32 24.0, %v2321_v36 }
 0x14b   : > { %3439 = vmatmul.mubr.msk.bf16.gmra.mrb[4].mxu0 %vm5777_vm1, %v2063_v44  ;;  %v5850_v44 = vld [vmem:[#allocation25_spill] sm:$0xff]  ;;  %v5134_v57 = vsub.f32 %v2275_v7, %v2339_v60 }
 0x14c   : > { %3442 = vmatprep.mubr.msk.bf16.mxu0 %vm5777_vm1, %v4923_v42  ;;  %v5039_v42 = vadd.f32 0.5, %v2282_v2  ;;  %v2318_v37 = vfloor.f32 %v2302_v59  ;;  %vm2367_vm8 = vcmp.ge.f32.partialorder %v2319_v23, 1.0  ;;  %vm2383_vm9 = vcmp.le.f32.partialorder %v2319_v23, 16.0 }
 0x14d   : > { %v2335_v47 = vmul.f32 24.0, %v2319_v23  ;;  %vm5068_vm3 = vmand %vm2367_vm8, %vm2383_vm9  ;;  %vm2388_vm8 = vcmp.le.f32.partialorder %v2324_v9, 16.0  ;;  %v5104_v24 = vsub.f32 %v2273_v26, %v2337_v35  ;;  %v2313_v26 = vmul.f32 0.041666668, %v5033_v58 }
 0x14e   : > { %vm2366_vm6 = vcmp.ge.f32.partialorder %v2318_v37, 1.0  ;;  %vm2382_vm7 = vcmp.le.f32.partialorder %v2318_v37, 16.0  ;;  %vm5088_vm9 = vmand %vm2369_vm13, %vm2385_vm14  ;;  %vm2413_vm14 = vcmp.ge.f32.partialorder %v5064_v30, 1.0  ;;  %v2314_v16 = vmul.f32 0.041666668, %v5039_v42 }
 0x14f   : > { %vm5056_vm15 = vmand %vm2366_vm6, %vm2382_vm7  ;;  %v5084_v52 = vsub.f32 %v2271_v3, %v2335_v47  ;;  %vm2372_vm7 = vcmp.ge.f32.partialorder %v2324_v9, 1.0  ;;  %v2312_v3 = vmul.f32 0.041666668, %v2296_v1  ;;  %v5119_v1 = vsub.f32 %v2274_v19, %v2338_v6 }
 0x150   : > { %3371 = vmatmul.mubr.msk.bf16.vlgmr.msra.gmra.mrb[8].mxu1 %vm5777_vm1, %v5850_v44  ;;  %v2334_v44 = vmul.f32 24.0, %v2318_v37  ;;  %vm5078_vm6 = vmand %vm2368_vm10, %vm2384_vm11  ;;  %vm2373_vm10 = vcmp.ge.f32.partialorder %v2325_v8, 1.0  ;;  %vm2389_vm11 = vcmp.le.f32.partialorder %v2325_v8, 16.0  ;;  %v2300_v37 = vadd.f32 0.5, %v2284_v29 }
 0x151   : > { %3374 = vmatprep.mubr.msk.bf16.mxu1 %vm5777_vm1, %v5851_v17  ;;  %v5094_v17 = vsub.f32 %v2272_v25, %v2336_v21  ;;  %vm5108_vm13 = vmand %vm2371_vm4, %vm2387_vm5  ;;  %v2299_v25 = vadd.f32 0.5, %v2283_v39  ;;  %vm5869_vm4 = vcmask 64512   ;;  %v5870_v19 = vmov 0 }
 0x152   : > { %v5074_v11 = vsub.f32 %v2270_v32, %v2334_v44  ;;  %v2340_v32 = vmul.f32 24.0, %v2324_v9  ;;  %vm5138_vm5 = vmand %vm2373_vm10, %vm2389_vm11  ;;  %v2326_v23 = vfloor.f32 %v5041_v46  ;;  %v2328_v7 = vfloor.f32 %v2312_v3 }
 0x153   : > { %3443 = vmatmul.mubr.msk.bf16.gmra.mrb[8].mxu0 %vm5777_vm1, %v4932_v54  ;;  %v5871_v19 = vsel %vm5138_vm5, 4294967295, %v5870_v19  ;;  %vm5154_vm10 = vmand %vm5048_vm12, %vm2413_vm14  ;;  %v5160_v42 = vsub.f32 %v2277_v49, %v2341_v18  ;;  %v2316_v46 = vmul.f32 0.041666668, %v2300_v37  ;;  %vm2418_vm12 = vcmp.ge.f32.partialorder %v5119_v1, 1.0 }
 0x154   : > { %3446 = vmatprep.mubr.msk.bf16.mxu0 %vm5777_vm1, %v4944_v20  ;;  %v5147_v58 = vsub.f32 %v2276_v41, %v2340_v32  ;;  %v5873_v27 = vsel %vm5154_vm10, 4294967295, %v5872_v27  ;;  %v2315_v41 = vmul.f32 0.041666668, %v2299_v25  ;;  %v2329_v49 = vfloor.f32 %v2313_v26 }
 0x155   : > { %vm2390_vm10 = vcmp.le.f32.partialorder %v2326_v23, 16.0  ;;  %v2330_v31 = vfloor.f32 %v2314_v16  ;;  %v2342_v36 = vmul.f32 24.0, %v2326_v23  ;;  %v2344_v40 = vmul.f32 24.0, %v2328_v7 }
 0x156   : > { %v5883_v44 = vmov 0  ;;  %v2331_v9 = vfloor.f32 %v2315_v41  ;;  %v5203_v47 = vfloor.f32 %v2316_v46  ;;  %v5886_v59 = vmov 0 }
 0x157   : > { %vm5888_vm5 = vcmp.ge.f32.partialorder %v5134_v57, 1.0  ;;  %v2345_v21 = vmul.f32 24.0, %v2329_v49  ;;  %v5892_v54 = vmov 0  ;;  %v5231_v35 = vsub.f32 %v2278_v48, %v2342_v36 }
 0x158   : > { %3375 = vmatmul.mubr.msk.bf16.gmra.mrb[12].mxu1 %vm5777_vm1, %v5856_v53  ;;  %vm5098_vm1 = vmand %vm2370_vm0, %vm2386_vm2  ;;  %vm2414_vm2 = vcmp.ge.f32.partialorder %v5074_v11, 1.0  ;;  %v2346_v53 = vmul.f32 24.0, %v2330_v31  ;;  %v5896_v6 = vmov 0  ;;  %v5254_v4 = vsub.f32 %v2280_v15, %v2344_v40 }
 0x159   : > { %vm5123_vm0 = vmand %vm2372_vm7, %vm2388_vm8  ;;  %vm2415_vm7 = vcmp.ge.f32.partialorder %v5084_v52, 1.0  ;;  %vm2416_vm8 = vcmp.ge.f32.partialorder %v5094_v17, 1.0  ;;  %vm5907_vm11 = vcmp.ge.f32.partialorder %v2328_v7, 1.0  ;;  %v5911_v48 = vmov 0 }
 0x15a   : > { %vm5174_vm14 = vmand %vm5068_vm3, %vm2415_vm7  ;;  %vm5880_vm3 = vcmp.ge.f32.partialorder %v5104_v24, 1.0  ;;  %v2362_v33 = vsub.f32 %v2282_v2, %v2346_v53  ;;  %v5957_v46 = vmov 0 }
 0x15b   : > { %3447 = vmatmul.mubr.msk.bf16.gmra.mrb[12].mxu0 %vm5869_vm4, %v4947_v0  ;;  %v2327_v0 = vfloor.f32 %v5043_v55  ;;  %vm5167_vm4 = vmand %vm5056_vm15, %vm2414_vm2  ;;  %vm2449_vm2 = vcmp.le.f32.partialorder %v5104_v24, 16.0  ;;  %v5933_v24 = vmov 0 }
 0x15c   : > { %vm5181_vm15 = vmand %vm5078_vm6, %vm2416_vm8 }
 0x15d   : > { %v2343_v50 = vmul.f32 24.0, %v2327_v0  ;;  %vm5190_vm7 = vmand %vm5088_vm9, %vm5880_vm3  ;;  %vm5885_vm9 = vcmp.ge.f32.partialorder %v2326_v23, 1.0  ;;  %v2361_v23 = vsub.f32 %v2281_v13, %v2345_v21 }
 0x15e   : > { %vm5199_vm8 = vmand %vm5098_vm1, %vm2418_vm12 }
 0x15f   : > { %v5884_v44 = vsel %vm5199_vm8, 4294967295, %v5883_v44  ;;  %vm5207_vm3 = vmand %vm5885_vm9, %vm2390_vm10  ;;  %vm5891_vm8 = vcmp.ge.f32.partialorder %v5147_v58, 1.0  ;;  %v5235_v20 = vsub.f32 %v2279_v28, %v2343_v50  ;;  %v4084_v28 = vmov 0.0  }
 0x160   : > { %v5887_v59 = vsel %vm5207_vm3, 4294967295, %v5886_v59  ;;  %vm5215_vm6 = vmand %vm5108_vm13, %vm5888_vm5  ;;  %vm5894_vm13 = vcmp.le.f32.partialorder %v2327_v0, 16.0  ;;  %vm5895_vm5 = vcmp.ge.f32.partialorder %v2327_v0, 1.0  ;;  %v5940_v0 = vmov 0 }
 0x161   : > { %vm5224_vm10 = vmand %vm5123_vm0, %vm5891_vm8  ;;  %vm5898_vm0 = vcmp.ge.f32.partialorder %v5160_v42, 1.0  ;;  %vm5899_vm8 = vnez %v5871_v19  ;;  %v2347_v19 = vmul.f32 24.0, %v2331_v9 }
 0x162   : > { %v5893_v54 = vsel %vm5224_vm10, 4294967295, %v5892_v54  ;;  %vm5239_vm12 = vmand %vm5895_vm5, %vm5894_vm13  ;;  %vm5902_vm5 = vcmp.le.f32.partialorder %v5064_v30, 16.0  ;;  %vm5910_vm13 = vcmp.le.f32.partialorder %v5074_v11, 16.0  ;;  %v5914_v30 = vmov 0 }
 0x163   : > { %v5897_v6 = vsel %vm5239_vm12, 4294967295, %v5896_v6  ;;  %vm5247_vm9 = vmand %vm5899_vm8, %vm5898_vm0  ;;  %vm5903_vm12 = vnez %v5873_v27  ;;  %vm5917_vm8 = vcmp.le.f32.partialorder %v2329_v49, 16.0  ;;  %vm5918_vm0 = vcmp.ge.f32.partialorder %v2329_v49, 1.0 }
 0x164   : > { %v5901_v61 = vsel %vm5247_vm9, 4294967295, %v5900_v61  ;;  %vm5261_vm3 = vmand %vm5903_vm12, %vm5902_vm5  ;;  %vm5906_vm9 = vcmp.le.f32.partialorder %v2328_v7, 16.0  ;;  %v2348_v7 = vmul.f32 24.0, %v5203_v47  ;;  %v5962_v49 = vmov 0 }
 0x165   : > { %v5905_v10 = vsel %vm5261_vm3, 4294967295, %v5904_v10  ;;  %vm5267_vm10 = vmand %vm5907_vm11, %vm5906_vm9  ;;  %v3121_v15 = vsel %vm5261_vm3, 1.0, %v4084_v28  ;;  %vm5913_vm9 = vcmp.le.f32.partialorder %v5084_v52, 16.0  ;;  %v5922_v52 = vmov 0 }
 0x166   : > { %vm5276_vm1 = vmand %vm5167_vm4, %vm5910_vm13  ;;  %vm5916_vm4 = vcmask 7168   ;;  %vm5928_vm13 = vcmp.ge.f32.partialorder %v2330_v31, 1.0  ;;  %vm5932_vm11 = vnez %v5884_v44  ;;  %vm5948_vm3 = vnez %v5887_v59 }
 0x167   : > { %v5912_v48 = vsel %vm5276_vm1, 4294967295, %v5911_v48  ;;  %vm5288_vm5 = vmand %vm5174_vm14, %vm5913_vm9  ;;  %v3122_v11 = vsel %vm5276_vm1, 1.0, %v4084_v28  ;;  %v2622_v60 = vsel %vm5916_vm4, %v3121_v15, 0.0  ;;  %vm5921_vm14 = vcmp.le.f32.partialorder %v5094_v17, 16.0 }
 0x168   : > { %v5915_v30 = vsel %vm5288_vm5, 4294967295, %v5914_v30  ;;  %vm5298_vm12 = vmand %vm5918_vm0, %vm5917_vm8  ;;  %v3123_v32 = vsel %vm5288_vm5, 1.0, %v4084_v28  ;;  %v2623_v14 = vsel %vm5916_vm4, %v3122_v11, 0.0  ;;  %v5924_v17 = vmov 0 }
 0x169   : > { %vm5307_vm9 = vmand %vm5181_vm15, %vm5921_vm14  ;;  %v2624_v18 = vadd.f32 %v2623_v14, %v2622_v60  ;;  %vm5935_vm14 = vcmp.le.f32.partialorder %v5134_v57, 16.0  ;;  %v5944_v57 = vmov 0  ;;  %vm5960_vm5 = vnez %v5897_v6 }
 0x16a   : > { %v5923_v52 = vsel %vm5307_vm9, 4294967295, %v5922_v52  ;;  %vm5320_vm8 = vmand %vm5190_vm7, %vm2449_vm2  ;;  %v3124_v3 = vsel %vm5307_vm9, 1.0, %v4084_v28  ;;  %vm5931_vm7 = vcmp.le.f32.partialorder %v5119_v1, 16.0  ;;  %v5936_v1 = vmov 0 }
 0x16b   : > { %v5925_v17 = vsel %vm5320_vm8, 4294967295, %v5924_v17  ;;  %vm5926_vm15 = vmmov %vm5916_vm4  ;;  %vm5927_vm4 = vcmp.le.f32.partialorder %v2330_v31, 16.0  ;;  %v3125_v37 = vsel %vm5320_vm8, 1.0, %v4084_v28  ;;  %vm5947_vm8 = vcmp.ge.f32.partialorder %v5231_v35, 1.0 }
 0x16c   : > { %v2625_v34 = vsel %vm5926_vm15, %v3123_v32, 0.0  ;;  %vm5331_vm0 = vmand %vm5928_vm13, %vm5927_vm4  ;;  %v2627_v12 = vsel %vm5926_vm15, %v3124_v3, 0.0  ;;  %vm5943_vm4 = vnez %v5893_v54  ;;  %vm5959_vm9 = vcmask 7168  }
 0x16d   : > { %vm5340_vm1 = vmand %vm5932_vm11, %vm5931_vm7  ;;  %v2626_v16 = vadd.f32 %v2625_v34, %v2624_v18  ;;  %vm5938_vm11 = vcmp.le.f32.partialorder %v2331_v9, 16.0  ;;  %vm5939_vm7 = vcmp.ge.f32.partialorder %v2331_v9, 1.0  ;;  %v2364_v31 = vsub.f32 %v2284_v29, %v2348_v7 }
 0x16e   : > { %v5934_v24 = vsel %vm5340_vm1, 4294967295, %v5933_v24  ;;  %vm5354_vm2 = vmand %vm5215_vm6, %vm5935_vm14  ;;  %v3126_v26 = vsel %vm5340_vm1, 1.0, %v4084_v28  ;;  %vm2423_vm6 = vcmp.ge.f32.partialorder %v5235_v20, 1.0  ;;  %vm5942_vm14 = vcmp.le.f32.partialorder %v5147_v58, 16.0 }
 0x16f   : > { %v5937_v1 = vsel %vm5354_vm2, 4294967295, %v5936_v1  ;;  %vm5365_vm15 = vmand %vm5939_vm7, %vm5938_vm11  ;;  %vm5946_vm1 = vcmask 7168   ;;  %v3127_v13 = vsel %vm5354_vm2, 1.0, %v4084_v28  ;;  %v2628_v58 = vadd.f32 %v2627_v12, %v2626_v16 }
 0x170   : > { %v5941_v0 = vsel %vm5365_vm15, 4294967295, %v5940_v0  ;;  %vm5374_vm13 = vmand %vm5943_vm4, %vm5942_vm14  ;;  %v2629_v27 = vsel %vm5946_vm1, %v3125_v37, 0.0  ;;  %vm5951_vm1 = vcmp.le.f32.partialorder %v5203_v47, 16.0  ;;  %vm5952_vm4 = vcmp.ge.f32.partialorder %v5203_v47, 1.0 }
 0x171   : > { %v5945_v57 = vsel %vm5374_vm13, 4294967295, %v5944_v57  ;;  %vm5383_vm11 = vmand %vm5948_vm3, %vm5947_vm8  ;;  %vm2424_vm8 = vcmp.ge.f32.partialorder %v5254_v4, 1.0  ;;  %vm5955_vm14 = vcmp.le.f32.partialorder %v5160_v42, 16.0  ;;  %vm5956_vm7 = vnez %v5901_v61 }
 0x172   : > { %vm5398_vm3 = vmand %vm5952_vm4, %vm5951_vm1  ;;  %v2631_v5 = vsel %vm5959_vm9, %v3126_v26, 0.0  ;;  %vm2455_vm1 = vcmp.le.f32.partialorder %v5235_v20, 16.0  ;;  %v3128_v2 = vsel %vm5374_vm13, 1.0, %v4084_v28  ;;  %v2630_v45 = vadd.f32 %v2629_v27, %v2628_v58 }
 0x173   : > { %vm5407_vm2 = vmand %vm5956_vm7, %vm5955_vm14  ;;  %v2363_v42 = vsub.f32 %v2283_v39, %v2347_v19  ;;  %vm2425_vm4 = vcmp.ge.f32.partialorder %v2361_v23, 1.0  ;;  %vm5961_vm7 = vcmp.le.f32.partialorder %v5231_v35, 16.0  ;;  %vm2426_vm13 = vcmp.ge.f32.partialorder %v2362_v33, 1.0 }
 0x174   : > { %v5958_v46 = vsel %vm5407_vm2, 4294967295, %v5957_v46  ;;  %vm2439_vm15 = vmand %vm5960_vm5, %vm2423_vm6  ;;  %vm2456_vm6 = vcmp.le.f32.partialorder %v5254_v4, 16.0  ;;  %v3129_v62 = vsel %vm5407_vm2, 1.0, %v4084_v28  ;;  %v2632_v39 = vadd.f32 %v2631_v5, %v2630_v45 }
 0x175   : > { %vm5424_vm14 = vmand %vm5383_vm11, %vm5961_vm7 }
 0x176   : > { %v5963_v49 = vsel %vm5424_vm14, 4294967295, %v5962_v49  ;;  %vm5964_vm5 = vmmov %vm5959_vm9  ;;  %v3130_v38 = vsel %vm5424_vm14, 1.0, %v4084_v28 }
 0x177   : > { %v2633_v55 = vsel %vm5964_vm5, %v3127_v13, 0.0  ;;  %vm2440_vm9 = vmand %vm5267_vm10, %vm2424_vm8  ;;  %vm2457_vm8 = vcmp.le.f32.partialorder %v2361_v23, 16.0 }
 0x178   : > { %vm5437_vm11 = vmand %vm2439_vm15, %vm2455_vm1  ;;  %v2634_v40 = vadd.f32 %v2633_v55, %v2632_v39 }
 0x179   : > { %vm5967_vm7 = vmmov %vm5964_vm5  ;;  %vm2427_vm5 = vcmp.ge.f32.partialorder %v2363_v42, 1.0  ;;  %v3131_v44 = vsel %vm5437_vm11, 1.0, %v4084_v28 }
 0x17a   : > { %v2635_v50 = vsel %vm5967_vm7, %v3128_v2, 0.0  ;;  %vm2441_vm10 = vmand %vm5298_vm12, %vm2425_vm4  ;;  %vm2428_vm12 = vcmp.ge.f32.partialorder %v2364_v31, 1.0 }
 0x17b   : > { %vm5447_vm2 = vmand %vm2440_vm9, %vm2456_vm6  ;;  %v2636_v9 = vadd.f32 %v2635_v50, %v2634_v40  ;;  %vm5974_vm6 = vnez %v5941_v0 }
 0x17c   : > { %vm5970_vm15 = vmmov %vm5967_vm7  ;;  %vm2458_vm7 = vcmp.le.f32.partialorder %v2362_v33, 16.0  ;;  %v3132_v8 = vsel %vm5447_vm2, 1.0, %v4084_v28 }
 0x17d   : > { %v2637_v29 = vsel %vm5970_vm15, %v3129_v62, 0.0  ;;  %vm2442_vm1 = vmand %vm5331_vm0, %vm2426_vm13 }
 0x17e   : > { %vm5457_vm4 = vmand %vm2441_vm10, %vm2457_vm8  ;;  %v2638_v21 = vadd.f32 %v2637_v29, %v2636_v9  ;;  %vm2460_vm8 = vcmp.le.f32.partialorder %v2364_v31, 16.0 }
 0x17f   : > { %vm5973_vm9 = vmmov %vm5970_vm15  ;;  %vm2459_vm15 = vcmp.le.f32.partialorder %v2363_v42, 16.0  ;;  %v3133_v35 = vsel %vm5457_vm4, 1.0, %v4084_v28 }
 0x180   : > { %v2639_v59 = vsel %vm5973_vm9, %v3130_v38, 0.0  ;;  %vm2443_vm14 = vmand %vm5974_vm6, %vm2427_vm5  ;;  %v2643_v61 = vsel %vm5973_vm9, %v3132_v8, 0.0  ;;  %vm5986_vm6 = vnez %v5915_v30 }
 0x181   : > { %vm5467_vm0 = vmand %vm2442_vm1, %vm2458_vm7  ;;  %v2640_v20 = vadd.f32 %v2639_v59, %v2638_v21 }
 0x182   : > { %vm5977_vm13 = vmmov %vm5973_vm9  ;;  %v3134_v4 = vsel %vm5467_vm0, 1.0, %v4084_v28 }
 0x183   : > { %v2641_v53 = vsel %vm5977_vm13, %v3131_v44, 0.0  ;;  %vm2444_vm10 = vmand %vm5398_vm3, %vm2428_vm12  ;;  %vm5988_vm13 = vnez %v5905_v10 }
 0x184   : > { %vm5477_vm5 = vmand %vm2443_vm14, %vm2459_vm15  ;;  %v2642_v22 = vadd.f32 %v2641_v53, %v2640_v20  ;;  %vm5987_vm15 = vnez %v5923_v52 }
 0x185   : > { %vm5485_vm1 = vmand %vm2444_vm10, %vm2460_vm8  ;;  %v3135_v60 = vsel %vm5477_vm5, 1.0, %v4084_v28  ;;  %vm5989_vm10 = vnez %v5912_v48  ;;  %vm5990_vm8 = vnez %v5925_v17 }
 0x186   : > { %vm5982_vm3 = vmmov %vm5973_vm9  ;;  %v2644_v43 = vadd.f32 %v2643_v61, %v2642_v22  ;;  %v3136_v14 = vsel %vm5485_vm1, 1.0, %v4084_v28  ;;  %vm5991_vm9 = vnez %v5937_v1 }
 0x187   : > { %v2645_v11 = vsel %vm5982_vm3, %v3133_v35, 0.0  ;;  %vm5983_vm14 = vmmov %vm5982_vm3 }
 0x188   : > { %v2647_v32 = vsel %vm5983_vm14, %v3134_v4, 0.0  ;;  %v2646_v3 = vadd.f32 %v2645_v11, %v2644_v43  ;;  %vm5984_vm7 = vmmov %vm5982_vm3  ;;  %vm5993_vm14 = vnez %v5934_v24 }
 0x189   : > { %v2649_v18 = vsel %vm5984_vm7, %v3135_v60, 0.0  ;;  %vm5985_vm12 = vmmov %vm5982_vm3  ;;  %vm5992_vm3 = vnez %v5945_v57  ;;  %vm5994_vm7 = vnez %v5958_v46 }
 0x18a   : > { %v2648_v34 = vadd.f32 %v2647_v32, %v2646_v3  ;;  %v2651_v25 = vsel %vm5985_vm12, %v3136_v14, 0.0  ;;  %vm5995_vm12 = vnez %v5963_v49 }
 0x18c   : > { %v2650_v37 = vadd.f32 %v2649_v18, %v2648_v34 }
 0x18e   : > { %v2652_v12 = vadd.f32 %v2651_v25, %v2650_v37 }
 0x190   : > { %2653 = vadd.xlane.f32.xlu0 %v2652_v12 }
 0x203   : > { %v3346_v26 = vpop.f32.mrb[0].mxu1 }
 0x204   : > { %v1160_v16 = vpop.f32.mrb[1].mxu1 }
 0x205   : > { %v3347_v19 = vpop.f32.mrb[2].mxu1 }
 0x206   : > { %v1163_v23 = vpop.f32.mrb[3].mxu1 }
 0x20b   : > { %v3350_v0 = vpop.f32.mrb[4].mxu1 }
 0x20c   : > { %v1176_v27 = vpop.f32.mrb[5].mxu1 }
 0x20d   : > { %v3351_v56 = vpop.f32.mrb[6].mxu1 }
 0x20e   : > { %v1179_v13 = vpop.f32.mrb[7].mxu1 }
 0x216   : > { %v3436_v28 = vpop.f32.mrb[0].mxu0 }
 0x217   : > { %v5499_v41 = vadd.f32 %v3436_v28, %v3346_v26  ;;  %v2154_v5 = vpop.f32.mrb[1].mxu0 }
 0x218   : > { %v5501_v2 = vadd.f32 %v2154_v5, %v1160_v16  ;;  %v3437_v45 = vpop.f32.mrb[2].mxu0 }
 0x219   : > { %v5503_v55 = vadd.f32 %v3437_v45, %v3347_v19  ;;  %v2157_v62 = vpop.f32.mrb[3].mxu0  ;;  %v2511_v50 = vsel %vm5986_vm6, %v5499_v41, 0.0 }
 0x21a   : > { %v5505_v39 = vadd.f32 %v2157_v62, %v1163_v23  ;;  %v2509_v40 = vsel %vm5988_vm13, %v5501_v2, 0.0 }
 0x21b   : > { %v2512_v38 = vsel %vm5987_vm15, %v5503_v55, 0.0 }
 0x21c   : > { %v3168_v29 = vpack.c.bf16 %v2512_v38, %v2511_v50  ;;  %v2510_v44 = vsel %vm5989_vm10, %v5505_v39, 0.0 }
 0x21d   : > { %v2654_v58 = vpop.xlane.xlu0 %2653  ;;  %v3163_v59 = vpack.c.bf16 %v2510_v44, %v2509_v40  ;;  %v2663_v8 = vadd.f32 %v2510_v44, %v2509_v40 }
 0x21e   : > { %v2655_v7 = vrot.slane %v2654_v58, 4  ;;  %3200 = vst [vmem:[%s4397_s14 + $0x8] sm:$0xff] %v3168_v29   ;;  %v3440_v21 = vpop.f32.mrb[4].mxu0 }
 0x21f   : > { %3164 = vst [vmem:[%s4397_s14] sm:$0xff] %v3163_v59   ;;  %v2664_v35 = vadd.f32 %v2663_v8, %v2511_v50  ;;  %v5521_v20 = vadd.f32 %v3440_v21, %v3350_v0  ;;  %v2170_v61 = vpop.f32.mrb[5].mxu0 }
 0x220   : > { %v2656_v33 = vadd.f32 %v2655_v7, %v2654_v58  ;;  %v5523_v4 = vadd.f32 %v2170_v61, %v1176_v27  ;;  %v3441_v22 = vpop.f32.mrb[6].mxu0 }
 0x221   : > { %v2665_v60 = vadd.f32 %v2664_v35, %v2512_v38  ;;  %v5525_v43 = vadd.f32 %v3441_v22, %v3351_v56  ;;  %v2173_v32 = vpop.f32.mrb[7].mxu0  ;;  %v2515_v25 = vsel %vm5991_vm9, %v5521_v20, 0.0 }
 0x222   : > { %v2657_v42 = vrot.slane %v2656_v33, 2  ;;  %v2513_v3 = vsel %vm5990_vm8, %v5523_v4, 0.0  ;;  %v5530_v18 = vadd.f32 %v2173_v32, %v1179_v13 }
 0x223   : > { %v3372_v11 = vpop.f32.mrb[8].mxu1  ;;  %v2666_v37 = vadd.f32 %v2665_v60, %v2513_v3  ;;  %v2516_v12 = vsel %vm5992_vm3, %v5525_v43, 0.0 }
 0x224   : > { %v2658_v31 = vadd.f32 %v2657_v42, %v2656_v33  ;;  %v1341_v14 = vpop.f32.mrb[9].mxu1  ;;  %v3178_v16 = vpack.c.bf16 %v2516_v12, %v2515_v25  ;;  %v2514_v19 = vsel %vm5993_vm14, %v5530_v18, 0.0 }
 0x225   : > { %v3373_v34 = vpop.f32.mrb[10].mxu1  ;;  %v3173_v23 = vpack.c.bf16 %v2514_v19, %v2513_v3  ;;  %v2667_v0 = vadd.f32 %v2666_v37, %v2514_v19 }
 0x226   : > { %v2659_v9 = vrot.slane %v2658_v31, 1  ;;  %v1344_v26 = vpop.f32.mrb[11].mxu1  ;;  %3202 = vst [vmem:[%s4397_s14 + $0x18] sm:$0xff] %v3178_v16   ;;  %v3444_v27 = vpop.f32.mrb[8].mxu0 }
 0x227   : > { %3201 = vst [vmem:[%s4397_s14 + $0x10] sm:$0xff] %v3173_v23   ;;  %v2668_v56 = vadd.f32 %v2667_v0, %v2515_v25  ;;  %v5543_v13 = vadd.f32 %v3444_v27, %v3372_v11  ;;  %v2186_v58 = vpop.f32.mrb[9].mxu0 }
 0x228   : > { %v2660_v53 = vadd.f32 %v2659_v9, %v2658_v31  ;;  %v5545_v7 = vadd.f32 %v2186_v58, %v1341_v14  ;;  %v3445_v28 = vpop.f32.mrb[10].mxu0 }
 0x229   : > { %v2669_v5 = vadd.f32 %v2668_v56, %v2516_v12  ;;  %v5547_v45 = vadd.f32 %v3445_v28, %v3373_v34  ;;  %v2189_v42 = vpop.f32.mrb[11].mxu0  ;;  %v2519_v40 = vsel %vm5437_vm11, %v5543_v13, 0.0 }
 0x22a   : > { %3593 = vpush %v2660_v53  ;;  %v2517_v31 = vsel %vm5994_vm7, %v5545_v7, 0.0  ;;  %v5552_v50 = vadd.f32 %v2189_v42, %v1344_v26 }
 0x22b   : > { %v3376_v33 = vpop.f32.mrb[12].mxu1  ;;  %v2670_v29 = vadd.f32 %v2669_v5, %v2517_v31  ;;  %v2520_v44 = vsel %vm5447_vm2, %v5547_v45, 0.0 }
 0x22c   : > { %v1357_v62 = vpop.f32.mrb[13].mxu1  ;;  %v3188_v59 = vpack.c.bf16 %v2520_v44, %v2519_v40  ;;  %v2518_v8 = vsel %vm5995_vm12, %v5552_v50, 0.0 }
 0x22d   : > { %v3377_v38 = vpop.f32.mrb[14].mxu1  ;;  %v3183_v21 = vpack.c.bf16 %v2518_v8, %v2517_v31  ;;  %v2671_v53 = vadd.f32 %v2670_v29, %v2518_v8 }
 0x22e   : > { %v1360_v9 = vpop.f32.mrb[15].mxu1  ;;  %3204 = vst [vmem:[%s4397_s14 + $0x28] sm:$0xff] %v3188_v59   ;;  %v3448_v35 = vpop.f32.mrb[12].mxu0 }
 0x22f   : > { %3203 = vst [vmem:[%s4397_s14 + $0x20] sm:$0xff] %v3183_v21   ;;  %v2672_v61 = vadd.f32 %v2671_v53, %v2519_v40  ;;  %v5565_v22 = vadd.f32 %v3448_v35, %v3376_v33  ;;  %v2202_v11 = vpop.f32.mrb[13].mxu0 }
 0x230   : > { %v5567_v60 = vadd.f32 %v2202_v11, %v1357_v62  ;;  %v3449_v32 = vpop.f32.mrb[14].mxu0 }
 0x231   : > { %v2673_v14 = vadd.f32 %v2672_v61, %v2520_v44  ;;  %v5569_v3 = vadd.f32 %v3449_v32, %v3377_v38  ;;  %v2205_v34 = vpop.f32.mrb[15].mxu0  ;;  %v2523_v12 = vsel %vm5477_vm5, %v5565_v22, 0.0 }
 0x232   : > { %v2521_v25 = vsel %vm5457_vm4, %v5567_v60, 0.0  ;;  %v5574_v37 = vadd.f32 %v2205_v34, %v1360_v9 }
 0x233   : > { %v2674_v26 = vadd.f32 %v2673_v14, %v2521_v25  ;;  %v2524_v16 = vsel %vm5485_vm1, %v5569_v3, 0.0 }
 0x234   : > { %v3198_v19 = vpack.c.bf16 %v2524_v16, %v2523_v12  ;;  %v2522_v23 = vsel %vm5467_vm0, %v5574_v37, 0.0 }
 0x235   : > { %v3193_v0 = vpack.c.bf16 %v2522_v23, %v2521_v25  ;;  %v2675_v27 = vadd.f32 %v2674_v26, %v2522_v23 }
 0x236   : > { %3206 = vst [vmem:[%s4397_s14 + $0x38] sm:$0xff] %v3198_v19  }
 0x237   : > { %3205 = vst [vmem:[%s4397_s14 + $0x30] sm:$0xff] %v3193_v0   ;;  %v2676_v56 = vadd.f32 %v2675_v27, %v2523_v12 }
 0x239   : > { %v2677_v58 = vadd.f32 %v2676_v56, %v2524_v16 }
 0x23b   : > { %v2678_v28 = vrot.slane %v2677_v58, 4 }
 0x23d   : > { %v2679_v33 = vadd.f32 %v2678_v28, %v2677_v58 }
 0x23f   : > { %v2680_v5 = vrot.slane %v2679_v33, 2 }
 0x241   : > { %v2681_v31 = vadd.f32 %v2680_v5, %v2679_v33 }
 0x243   : > { %v2682_v38 = vrot.slane %v2681_v31, 1 }
 0x245   : > { %v5592_v40 = vadd.f32 %v2682_v38, %v2681_v31 }
 0x25b   : > { %s5587_s12 = spop %3593 }
 0x25c   : > { %v2662_v42 = vstv %s5587_s12 }
 0x25d   : > { %v2684_v62 = vmax.f32 %v2662_v42, 1.0 }
 0x25f   : > { %3796 = vrcp.f32 %v2684_v62 }
 0x269   : > { %v3797_v29 = vpop.eup %3796 }
 0x26a   : > { %v2686_v44 = vmul.f32 %v3797_v29, %v5592_v40 }
 0x26c   : > { %v2687_v9 = vsub.f32 %v5501_v2, %v2686_v44  ;;  %v2688_v59 = vsub.f32 %v5505_v39, %v2686_v44  ;;  %v2692_v8 = vsub.f32 %v5530_v18, %v2686_v44  ;;  %v2695_v21 = vsub.f32 %v5545_v7, %v2686_v44 }
 0x26d   : > { %v2696_v53 = vsub.f32 %v5552_v50, %v2686_v44  ;;  %v2697_v35 = vsub.f32 %v5543_v13, %v2686_v44  ;;  %v2698_v61 = vsub.f32 %v5547_v45, %v2686_v44  ;;  %v2699_v11 = vsub.f32 %v5567_v60, %v2686_v44 }
 0x26e   : > { %v2700_v32 = vsub.f32 %v5574_v37, %v2686_v44  ;;  %v2701_v14 = vsub.f32 %v5565_v22, %v2686_v44  ;;  %v2702_v2 = vsub.f32 %v5569_v3, %v2686_v44  ;;  %v2689_v39 = vsub.f32 %v5499_v41, %v2686_v44 }
 0x26f   : > { %v2703_v18 = vsel %vm5988_vm13, %v2687_v9, 0.0  ;;  %v2704_v7 = vsel %vm5989_vm10, %v2688_v59, 0.0  ;;  %v2690_v13 = vsub.f32 %v5503_v55, %v2686_v44  ;;  %v2691_v60 = vsub.f32 %v5523_v4, %v2686_v44 }
 0x270   : > { %v2719_v50 = vmul.f32 %v2703_v18, %v2703_v18  ;;  %v2720_v45 = vmul.f32 %v2704_v7, %v2704_v7  ;;  %v2705_v34 = vsel %vm5986_vm6, %v2689_v39, 0.0  ;;  %v2693_v10 = vsub.f32 %v5521_v20, %v2686_v44 }
 0x271   : > { %v2706_v22 = vsel %vm5987_vm15, %v2690_v13, 0.0  ;;  %v2721_v3 = vmul.f32 %v2705_v34, %v2705_v34  ;;  %v2707_v48 = vsel %vm5990_vm8, %v2691_v60, 0.0  ;;  %v2694_v55 = vsub.f32 %v5525_v43, %v2686_v44 }
 0x272   : > { %v2735_v41 = vadd.f32 %v2720_v45, %v2719_v50  ;;  %v2722_v25 = vmul.f32 %v2706_v22, %v2706_v22  ;;  %v2708_v4 = vsel %vm5993_vm14, %v2692_v8, 0.0  ;;  %v2723_v12 = vmul.f32 %v2707_v48, %v2707_v48 }
 0x273   : > { %v2709_v52 = vsel %vm5991_vm9, %v2693_v10, 0.0  ;;  %v2724_v26 = vmul.f32 %v2708_v4, %v2708_v4  ;;  %v2710_v20 = vsel %vm5992_vm3, %v2694_v55, 0.0  ;;  %v2711_v23 = vsel %vm5994_vm7, %v2695_v21, 0.0 }
 0x274   : > { %v2736_v37 = vadd.f32 %v2735_v41, %v2721_v3  ;;  %v2725_v19 = vmul.f32 %v2709_v52, %v2709_v52  ;;  %v2726_v0 = vmul.f32 %v2710_v20, %v2710_v20  ;;  %v2712_v24 = vsel %vm5995_vm12, %v2696_v53, 0.0 }
 0x275   : > { %v2727_v27 = vmul.f32 %v2711_v23, %v2711_v23  ;;  %v2713_v1 = vsel %vm5437_vm11, %v2697_v35, 0.0  ;;  %v2728_v58 = vmul.f32 %v2712_v24, %v2712_v24  ;;  %v2714_v57 = vsel %vm5447_vm2, %v2698_v61, 0.0 }
 0x276   : > { %v2737_v30 = vadd.f32 %v2736_v37, %v2722_v25  ;;  %v2729_v33 = vmul.f32 %v2713_v1, %v2713_v1  ;;  %v2715_v46 = vsel %vm5457_vm4, %v2699_v11, 0.0  ;;  %v2730_v62 = vmul.f32 %v2714_v57, %v2714_v57 }
 0x277   : > { %v2716_v49 = vsel %vm5467_vm0, %v2700_v32, 0.0  ;;  %v2731_v38 = vmul.f32 %v2715_v46, %v2715_v46  ;;  %v2717_v36 = vsel %vm5477_vm5, %v2701_v14, 0.0  ;;  %v2718_v51 = vsel %vm5485_vm1, %v2702_v2, 0.0 }
 0x278   : > { %v2738_v16 = vadd.f32 %v2737_v30, %v2723_v12  ;;  %v2732_v44 = vmul.f32 %v2716_v49, %v2716_v49  ;;  %v2733_v59 = vmul.f32 %v2717_v36, %v2717_v36  ;;  %v2734_v47 = vmul.f32 %v2718_v51, %v2718_v51 }
 0x279   : > { %vm2758_vm2 = vcmp.eq.s32.totalorder %v4908_v63, 2  ;;  %vm2757_vm11 = vcmp.eq.s32.totalorder %v4908_v63, 1  ;;  %vm2756_vm4 = vcmp.eq.s32.totalorder %v4908_v63, 0 }
 0x27a   : > { %v2739_v17 = vadd.f32 %v2738_v16, %v2724_v26  ;;  %v2759_v15 = vsel %vm2758_vm2, %v2662_v42, 0.0 }
 0x27c   : > { %v2740_v43 = vadd.f32 %v2739_v17, %v2725_v19 }
 0x27e   : > { %v2741_v56 = vadd.f32 %v2740_v43, %v2726_v0 }
 0x280   : > { %v2742_v28 = vadd.f32 %v2741_v56, %v2727_v27 }
 0x282   : > { %v2743_v5 = vadd.f32 %v2742_v28, %v2728_v58 }
 0x284   : > { %v2744_v31 = vadd.f32 %v2743_v5, %v2729_v33 }
 0x286   : > { %v2745_v29 = vadd.f32 %v2744_v31, %v2730_v62 }
 0x288   : > { %v2746_v9 = vadd.f32 %v2745_v29, %v2731_v38 }
 0x28a   : > { %v2747_v8 = vadd.f32 %v2746_v9, %v2732_v44 }
 0x28c   : > { %v2748_v21 = vadd.f32 %v2747_v8, %v2733_v59 }
 0x28e   : > { %v2749_v53 = vadd.f32 %v2748_v21, %v2734_v47 }
 0x290   : > { %v2750_v35 = vrot.slane %v2749_v53, 4 }
 0x292   : > { %v2751_v54 = vadd.f32 %v2750_v35, %v2749_v53 }
 0x294   : > { %v2752_v61 = vrot.slane %v2751_v54, 2 }
 0x296   : > { %v2753_v11 = vadd.f32 %v2752_v61, %v2751_v54 }
 0x298   : > { %v2754_v32 = vrot.slane %v2753_v11, 1 }
 0x29a   : > { %v2755_v6 = vadd.f32 %v2754_v32, %v2753_v11 }
 0x29c   : > { %v2762_v14 = vsel %vm2757_vm11, %v2755_v6, %v2759_v15 }
 0x29d   : > { %v2765_v2 = vsel %vm2756_vm4, %v5592_v40, %v2762_v14 }
 0x29e   : > { %2766 = vst [vmem:[%s4399_s30] sm:$0xff] %v2765_v2 }
 0x29f PF: > { %s5996_s13 = sld [smem:[#allocation19_spill]]  ;;  %s5997_s16 = sld [smem:[#allocation20_spill]] }
 0x2a0   : > { %s3139_s25 = sshll.u32 %s4058_s24, 4  ;;  %s2788_s1 = sshll.u32 %s4397_s14, 4  ;;  %s5653_s1 = int_to_ptr.vmem [resolvable:$true] %s2788_s1 }
 0x2a1   : > { %s5998_s11 = sld [smem:[#allocation36_spill]]  ;;  %s2768_s6 = scalar_lea.sflag [#allocation4], %s4387_s2 }
 0x2a2   : > { %s3912_s12 = scalar_lea.vmem %s5653_s1, 1024  ;;  %s4085_s14 = smov [#allocation10]  }
 0x2a3   : > { %p3913_p5 = scmp.ne.s32.totalorder %s5653_s1, %s3912_s12  ;;  %s3916_s0 = sshll.u32 %s4085_s14, 4  ;;  %s3917_s0 = int_to_ptr.vmem [resolvable:$false] %s3916_s0 }
 0x2a4   : > { %s3918_s3 = scalar_lea.vmem %s3917_s0, 2048  ;;  %p3919_p12 = scmp.lt.s32.totalorder %s5653_s1, %s3917_s0 }
 0x2a5   : > { %s3595_s10 = smul.u32 96, %s5996_s13  ;;  %p5999_p13 = scmp.ne.s32.totalorder %s5997_s16, 0 }
 0x2a6   : > { %s3596_s7 = smul.u32 6, %s5996_s13  ;;  %p3920_p4 = scmp.lt.s32.totalorder %s3918_s3, %s3912_s12 }
 0x2a7   : > { %s2785_s15 = sadd.s32 %s3595_s10, %s3139_s25  ;;  %p3914_p6 = pnand %p3913_p5, %p5999_p13 }
 0x2a8   : > { %s3140_s21 = sshll.u32 %s2785_s15, 6  ;;  %p3921_p7 = por %p3920_p4, %p3919_p12 }
 0x2a9   : > { %s5658_s29 = scalar_lea.hbm %s5998_s11, %s3140_s21  ;;  %p3915_p8 = pneg %p3914_p6 }
 0x2ab   : > { %p3922_p3 = pnand %p3921_p7, %p3915_p8 }
 0x2ad   : > { %3925 = shalt.err (!%p3922_p3)
}
 0x2ae   : > { %s3926_s25 = scalar_lea.hbm %s5658_s29, 1024  ;;  %s3930_s21 = scalar_lea.hbm %s5998_s11, 12288 }
 0x2af   : > { %p3927_p0 = scmp.ne.s32.totalorder %s5658_s29, %s3926_s25  ;;  %p3931_p10 = scmp.lt.u32.totalorder %s5658_s29, %s5998_s11 }
 0x2b0   : > { %p3932_p2 = scmp.lt.u32.totalorder %s3930_s21, %s3926_s25  ;;  %p3934_p5 = scmp.lt.u32.totalorder %s3926_s25, %s5658_s29 }
 0x2b1   : > { %p3928_p1 = pnand %p3927_p0, %p5999_p13 }
 0x2b2   : > { %p3933_p9 = por %p3932_p2, %p3931_p10 }
 0x2b3   : > { %p3929_p11 = pneg %p3928_p1 }
 0x2b4   : > { %p3935_p6 = por %p3934_p5, %p3933_p9 }
 0x2b6   : > { %p3936_p8 = pnand %p3935_p6, %p3929_p11 }
 0x2b8   : > { %3939 = shalt.err (!%p3936_p8)
}
 0x2b9   : > { %s4086_s3 = smov 64   ;;  %s4087_s8 = smov 4  }
 0x2ba   : > { %3611 = dma.vmem_to_hbm [thread:$0]  (%p5999_p13), %s5653_s1, 1024, %s5658_s29, %s2768_s6, %s4086_s3, %s4086_s3, %s4087_s8  }
 0x2bb   : > { %s2802_s12 = sadd.s32 %s4058_s24, %s3596_s7  ;;  %s2806_s14 = sshll.u32 %s4399_s30, 4  ;;  %s5689_s14 = int_to_ptr.vmem [resolvable:$true] %s2806_s14 }
 0x2bc   : > { %s3141_s25 = sshll.u32 %s2802_s12, 7  ;;  %s6000_s21 = sld [smem:[#allocation37_spill]] }
 0x2bd   : > { %s2773_s11 = scalar_lea.sflag [#allocation12], %s4387_s2  ;;  %s3940_s9 = scalar_lea.vmem %s5689_s14, 128 }
 0x2be   : > { %p3941_p12 = scmp.ne.s32.totalorder %s5689_s14, %s3940_s9  ;;  %s4088_s1 = smov [#allocation11]  }
 0x2bf   : > { %s3944_s13 = sshll.u32 %s4088_s1, 4  ;;  %s3945_s13 = int_to_ptr.vmem [resolvable:$false] %s3944_s13 }
 0x2c0   : > { %p3942_p4 = pnand %p3941_p12, %p5999_p13  ;;  %s3946_s24 = scalar_lea.vmem %s3945_s13, 256 }
 0x2c1   : > { %p3947_p3 = scmp.lt.s32.totalorder %s5689_s14, %s3945_s13  ;;  %p3948_p0 = scmp.lt.s32.totalorder %s3946_s24, %s3940_s9 }
 0x2c2   : > { %s6001_s17 = smov %s6000_s21  ;;  %s2804_s0 = scalar_lea.hbm %s6000_s21, %s3141_s25 }
 0x2c3   : > { %p3943_p7 = pneg %p3942_p4  ;;  %p3949_p1 = por %p3948_p0, %p3947_p3 }
 0x2c5   : > { %p3950_p11 = pnand %p3949_p1, %p3943_p7 }
 0x2c7   : > { %3953 = shalt.err (!%p3950_p11)
}
 0x2c8   : > { %s3954_s30 = scalar_lea.hbm %s2804_s0, 128  ;;  %s3958_s7 = scalar_lea.hbm %s6001_s17, 1536 }
 0x2c9   : > { %p3955_p10 = scmp.ne.s32.totalorder %s2804_s0, %s3954_s30  ;;  %p3959_p5 = scmp.lt.u32.totalorder %s2804_s0, %s6001_s17 }
 0x2ca   : > { %p3960_p6 = scmp.lt.u32.totalorder %s3958_s7, %s3954_s30  ;;  %p3962_p12 = scmp.lt.u32.totalorder %s3954_s30, %s2804_s0 }
 0x2cb   : > { %p3956_p2 = pnand %p3955_p10, %p5999_p13 }
 0x2cc   : > { %p3961_p8 = por %p3960_p6, %p3959_p5 }
 0x2cd   : > { %p3957_p9 = pneg %p3956_p2 }
 0x2ce   : > { %p3963_p4 = por %p3962_p12, %p3961_p8 }
 0x2d0   : > { %p3964_p7 = pnand %p3963_p4, %p3957_p9 }
 0x2d2   : > { %3967 = shalt.err (!%p3964_p7)
}
 0x2d3   : > { %3612 = dma.vmem_to_hbm [thread:$0]  (%p5999_p13), %s5689_s14, 128, %s2804_s0, %s2773_s11  }
 0x2d4 PF: > { %s6002_s9 = sld [smem:[#allocation18_spill]]  ;;  %s6003_s8 = sld [smem:[#allocation21_spill]] }
 0x2d5   : > { %p3643_p3 = scmp.ge.s32.totalorder %s4074_s28, 2 }
 0x2da   : > { %s2818_s12 = sand.u32 1, %s6002_s9   ;;  %p6004_p0 = scmp.ne.s32.totalorder %s6003_s8, 0 }
 0x2db   : > { %s2819_s25 = scalar_lea.sflag [#allocation4], %s2818_s12 }
 0x2dc   : > { %p3630_p1 = pnand %p3643_p3, %p6004_p0 }
 0x2de   : > { %4025 = dma.done.wait (!%p3630_p1), %s2819_s25, 1024  }
 0x2df   : > { %4027 = vsyncadd (!%p3630_p1), %s2819_s25, 4294966272  ;;  %s2828_s10 = scalar_lea.sflag [#allocation12], %s2818_s12 }
 0x2e0   : > { %4029 = dma.done.wait (!%p3630_p1), %s2828_s10, 128  }
 0x2e1   : > { %4031 = vsyncadd (!%p3630_p1), %s2828_s10, 4294967168  ;;  %s27_s28 = sadd.s32 1, %s4074_s28   ;;  %s6005_s16 = smov %s6018_s18 }
 0x2e2   : > { %p24_p11 = scmp.ge.s32.totalorder %s27_s28, 14   ;;  %s6006_s11 = sld [smem:[#allocation22_spill]] }
 0x2e3   : > { %s6007_s18 = smov %s4038_s19  ;;  %s6008_s19 = smov %s4042_s20 }
 0x2e4   : > { %s6009_s20 = smov %s4321_s5  ;;  %s6010_s21 = smov %s4050_s22 }
 0x2e5   : > { %s6011_s22 = smov %s4054_s23  ;;  %s6012_s23 = smov %s4316_s4 }
 0x2e6   : > { %s6013_s24 = smov %s4066_s26  ;;  %s6014_s25 = smov %s4070_s27 }
 0x2e7   : > { %s6015_s26 = smov %s6005_s16  ;;  %26 = sbr.rel (!%p24_p11) target bundleno = 20 (0x14), region = 123 }
 0x2e8   : > { %s6016_s27 = smov %s6006_s11 }
 0x2ee   :  { %2833 = vsyncpa [#allocation3], 1 }
 0x2ef   :  { %2835 = vsyncpa [#allocation3 + $0x1], 1 }
 0x2f0   :  { %2836 = vsyncpa [#allocation6], 1 }
 0x2f1   :  { %2837 = vsyncpa [#allocation9], 1 }
 0x2f2   :  { %2838 = vsyncpa [#allocation4], 1 }
 0x2f3   :  { %2840 = vsyncpa [#allocation4 + $0x1], 1 }
 0x2f4   :  { %2841 = vsyncpa [#allocation12], 1 }
 0x2f5   :  { %2843 = vsyncpa [#allocation12 + $0x1], 1 }

// kernel: conv_block_forward.6
= control target key start
LH: loop header
LB: loop body
LE: loop exit
PB: predicated region body
PF: predicated region fallthrough
CT: control target
= control target key end

     0   :  { %s9149_s0 = inlined_call_operand.hbm [shape: bf16[2,768,128], index: 0, kind: input, shape index: {}]   ;;  %s9150_s1 = inlined_call_operand.hbm [shape: bf16[3,384,128], index: 1, kind: input, shape index: {}]   ;;  %s9151_s2 = inlined_call_operand.hbm [shape: f32[1,128], index: 2, kind: input, shape index: {}]   ;;  %s9152_s3 = inlined_call_operand.hbm [shape: f32[1,128], index: 3, kind: input, shape index: {}]   ;;  %s9153_s4 = inlined_call_operand.hbm [shape: bf16[2,768,128], index: 4, kind: output, shape index: {0}]   ;;  %s9154_s5 = inlined_call_operand.hbm [shape: f32[2,6,8,128], index: 5, kind: output, shape index: {1}]  }
   0x1   :  { %9235 = sst [smem:[#allocation45_spill]] %s9149_s0 }
   0x2   :  { %9236 = sst [smem:[#allocation46_spill]] %s9150_s1 }
   0x3   :  { %9237 = sst [smem:[#allocation47_spill]] %s9151_s2 }
   0x4   :  { %9238 = sst [smem:[#allocation48_spill]] %s9152_s3 }
   0x5   :  { %9239 = sst [smem:[#allocation49_spill]] %s9153_s4 }
   0x6   :  { %9240 = sst [smem:[#allocation50_spill]] %s9154_s5 }
   0x7   :  { %11 = vsyncpa [#allocation3], 0 }
   0x8   :  { %13 = vsyncpa [#allocation3 + $0x1], 0 }
   0x9   :  { %14 = vsyncpa [#allocation6], 0 }
   0xa   :  { %15 = vsyncpa [#allocation9], 0 }
   0xb   :  { %16 = vsyncpa [#allocation4], 0 }
   0xc   :  { %18 = vsyncpa [#allocation4 + $0x1], 0 }
   0xd   :  { %19 = vsyncpa [#allocation12], 0 }
   0xe   :  { %21 = vsyncpa [#allocation12 + $0x1], 0  ;;  %s5758_s18 = smov 0   ;;  %s5760_s19 = smov 0  }
   0xf   :  { %s5762_s20 = smov 0   ;;  %s5764_s21 = smov 0  }
  0x10   :  { %s5766_s22 = smov 0   ;;  %s5768_s23 = smov 0  }
  0x11   :  { %s5770_s24 = smov 0   ;;  %s5772_s25 = smov 0  }
  0x12   :  { %s5774_s26 = smov 0   ;;  %s5776_s27 = smov 0  }
  0x13   :  { %s5778_s28 = smov 0  }
  0x14 LB: > { %9241 = sst [smem:[#allocation18_spill]] %s5673_s18  ;;  %s4444_s29 = sadd.s32 4294967295, %s5713_s28   ;;  %s5713_s28 = sphi %s5778_s28, %s27_s28   ;;  %s5709_s27 = sphi %s5776_s27, %s9771_s27   ;;  %s5705_s26 = sphi %s5774_s26, %s9770_s26   ;;  %s5701_s25 = sphi %s5772_s25, %s9769_s25   ;;  %s5697_s24 = sphi %s5770_s24, %s9768_s24   ;;  %s5693_s23 = sphi %s5768_s23, %s9767_s23   ;;  %s5689_s22 = sphi %s5766_s22, %s9766_s22   ;;  %s5685_s21 = sphi %s5764_s21, %s9765_s21   ;;  %s5681_s20 = sphi %s5762_s20, %s9764_s20   ;;  %s5677_s19 = sphi %s5760_s19, %s9763_s19   ;;  %s5673_s18 = sphi %s5758_s18, %s9762_s18  }
  0x15   : > { %9242 = sst [smem:[#allocation19_spill]] %s5701_s25  ;;  %s4445_s30 = sadd.s32 4294967294, %s5713_s28  }
  0x16   : > { %p59_p0 = scmp.ne.s32.totalorder %s5689_s22, %s5685_s21  ;;  %p5814_p1 = scmp.eq.s32.totalorder %s4444_s29, 0 }
  0x17   : > { %p147_p2 = scmp.ne.s32.totalorder %s5681_s20, %s5677_s19  ;;  %p148_p4 = scmp.eq.s32.totalorder %s4444_s29, 11 }
  0x18   : > { %s9243_s6 = scalar_select %p5814_p1, 1, 0 }
  0x19   : > { %p5823_p3 = por %p5814_p1, %p59_p0  ;;  %p153_p5 = scmp.ne.s32.totalorder %s5677_s19, %s5673_s18 }
  0x1a   : > { %p154_p6 = scmp.eq.s32.totalorder %s4445_s30, 11  ;;  %p5829_p7 = por %p148_p4, %p147_p2 }
  0x1b   : > { %s9244_s8 = scalar_select %p5823_p3, 1, 0 }
  0x1c   : > { %s9245_s9 = scalar_select %p5829_p7, 1, 0 }
  0x1d   : > { %p4446_p8 = scmp.ge.s32.totalorder %s5713_s28, 1  ;;  %p5834_p9 = por %p154_p6, %p153_p5 }
  0x1e   : > { %9246 = sst [smem:[#allocation20_spill]] %s9245_s9  ;;  %p189_p10 = scmp.lt.s32.totalorder %s5713_s28, 13 }
  0x1f   : > { %s9247_s10 = scalar_select %p5834_p9, 1, 0 }
  0x20   : > { %p5839_p11 = pnand %p4446_p8, %p189_p10  ;;  %s5715_s12 = smov [#allocation5]  }
  0x21   : > { %9248 = sst [smem:[#allocation21_spill]] %s9247_s10  ;;  %s201_s13 = sshll.u32 %s5715_s12, 4  ;;  %s5843_s13 = int_to_ptr.vmem [resolvable:$true] %s201_s13 }
  0x22   : > { %s9249_s11 = scalar_select %p5839_p11, 1, 0 }
  0x23   : > { %p5229_p12 = pneg %p5839_p11  ;;  %s5716_s15 = smov [#allocation7]  }
  0x24   : > { %s215_s16 = sshll.u32 %s5716_s15, 4  ;;  %s5717_s17 = smov [#allocation8]   ;;  %s5853_s16 = int_to_ptr.vmem [resolvable:$true] %s215_s16 }
  0x25   : > { %p5849_p13 = pnand %p5229_p12, %p5814_p1  ;;  %s5855_s21 = sshll.u32 %s5717_s17, 4  ;;  %s227_s21 = int_to_ptr.vmem [resolvable:$true] %s5855_s21 }
  0x26   : > { %s9251_s1 = sld [smem:[#allocation46_spill]] }
  0x27   : > { %p5865_p2 = pneg %p5849_p13 }
  0x2c   : > { %s5437_s12 = scalar_lea.hbm %s9251_s1, 9216 }
  0x2d   : > { %p5438_p0 = scmp.ne.s32.totalorder %s9251_s1, %s5437_s12  ;;  %p5444_p6 = scmp.lt.u32.totalorder %s5437_s12, %s9251_s1 }
  0x2f   : > { %p5440_p4 = pnand %p5865_p2, %p5438_p0 }
  0x31   : > { %p5441_p5 = pneg %p5440_p4 }
  0x33   : > { %p5446_p8 = pnand %p5444_p6, %p5441_p5 }
  0x35   : > { %5449 = shalt.err (!%p5446_p8)
}
  0x36   : > { %s5450_s7 = scalar_lea.vmem %s5843_s13, 9216  ;;  %p5458_p7 = scmp.lt.s32.totalorder %s5843_s13, %s5843_s13 }
  0x37   : > { %p5451_p10 = scmp.ne.s32.totalorder %s5843_s13, %s5450_s7  ;;  %p5459_p1 = scmp.lt.s32.totalorder %s5450_s7, %s5450_s7 }
  0x39   : > { %p5453_p12 = pnand %p5451_p10, %p5865_p2  ;;  %p5460_p0 = por %p5459_p1, %p5458_p7 }
  0x3b   : > { %p5454_p9 = pneg %p5453_p12 }
  0x3d   : > { %p5461_p4 = pnand %p5460_p0, %p5454_p9 }
  0x3f   : > { %5464 = shalt.err (!%p5461_p4)
}
  0x40   : > { %s9167_s10 = smov 64   ;;  %s9168_s29 = smov 4  }
  0x41   : > { %5232 = dma.hbm_to_vmem [thread:$0]  (!%p5849_p13), %s9251_s1, 9216, %s5843_s13, [#allocation6], %s9167_s10, %s9167_s10, %s9168_s29  }
  0x42   : > { %s9253_s2 = sld [smem:[#allocation47_spill]] }
  0x48   : > { %s5465_s7 = scalar_lea.hbm %s9253_s2, 16 }
  0x49   : > { %p5466_p1 = scmp.ne.s32.totalorder %s9253_s2, %s5465_s7  ;;  %p5472_p5 = scmp.lt.u32.totalorder %s5465_s7, %s9253_s2 }
  0x4b   : > { %p5468_p7 = pnand %p5466_p1, %p5865_p2 }
  0x4d   : > { %p5469_p9 = pneg %p5468_p7 }
  0x4f   : > { %p5474_p6 = pnand %p5472_p5, %p5469_p9 }
  0x51   : > { %5477 = shalt.err (!%p5474_p6)
}
  0x52   : > { %s5478_s13 = scalar_lea.vmem %s5853_s16, 16  ;;  %s5485_s4 = scalar_lea.vmem %s5853_s16, 32 }
  0x53   : > { %p5479_p8 = scmp.ne.s32.totalorder %s5853_s16, %s5478_s13  ;;  %p5486_p0 = scmp.lt.s32.totalorder %s5853_s16, %s5853_s16 }
  0x54   : > { %p5487_p4 = scmp.lt.s32.totalorder %s5485_s4, %s5478_s13 }
  0x55   : > { %p5481_p10 = pnand %p5479_p8, %p5865_p2 }
  0x56   : > { %p5488_p1 = por %p5487_p4, %p5486_p0 }
  0x57   : > { %p5482_p12 = pneg %p5481_p10 }
  0x59   : > { %p5489_p7 = pnand %p5488_p1, %p5482_p12 }
  0x5b   : > { %5492 = shalt.err (!%p5489_p7)
}
  0x5c   : > { %5235 = dma.hbm_to_vmem [thread:$0]  (!%p5849_p13), %s9253_s2, 16, %s5853_s16, [#allocation6]  }
  0x5d   : > { %s9254_s3 = sld [smem:[#allocation48_spill]] }
  0x63   : > { %s5493_s12 = scalar_lea.hbm %s9254_s3, 16 }
  0x64   : > { %p5494_p9 = scmp.ne.s32.totalorder %s9254_s3, %s5493_s12  ;;  %p5500_p8 = scmp.lt.u32.totalorder %s5493_s12, %s9254_s3 }
  0x66   : > { %p5496_p5 = pnand %p5494_p9, %p5865_p2 }
  0x68   : > { %p5497_p6 = pneg %p5496_p5 }
  0x6a   : > { %p5502_p10 = pnand %p5500_p8, %p5497_p6 }
  0x6c   : > { %5505 = shalt.err (!%p5502_p10)
}
  0x6d   : > { %s5506_s4 = scalar_lea.vmem %s227_s21, 16  ;;  %s5513_s16 = scalar_lea.vmem %s227_s21, 32 }
  0x6e   : > { %p5507_p12 = scmp.ne.s32.totalorder %s227_s21, %s5506_s4  ;;  %p5514_p1 = scmp.lt.s32.totalorder %s227_s21, %s227_s21 }
  0x6f   : > { %p5515_p7 = scmp.lt.s32.totalorder %s5513_s16, %s5506_s4 }
  0x70   : > { %p5509_p0 = pnand %p5507_p12, %p5865_p2 }
  0x71   : > { %p5516_p3 = por %p5515_p7, %p5514_p1 }
  0x72   : > { %p5510_p4 = pneg %p5509_p0 }
  0x74   : > { %p5517_p11 = pnand %p5516_p3, %p5510_p4 }
  0x76   : > { %5520 = shalt.err (!%p5517_p11)
}
  0x77   : > { %5238 = dma.hbm_to_vmem [thread:$0]  (!%p5849_p13), %s9254_s3, 16, %s227_s21, [#allocation9]  }
  0x78   : > { %s36_s18 = sadd.s32 1, %s5705_s26  ;;  %s39_s9 = sadd.s32 1, %s5709_s27 }
  0x79   : > { %p37_p3 = scmp.ge.s32.totalorder %s36_s18, 6  ;;  %s46_s14 = sadd.s32 1, %s5693_s23 }
  0x7a   : > { %p53_p11 = scmp.ne.s32.totalorder %s5693_s23, %s5689_s22  ;;  %p54_p2 = scmp.eq.s32.totalorder %s5713_s28, 0 }
  0x7b   : > { %s9773_s18 = smov (%p37_p3, %s36_s18), 0  ;;  %s9775_s9 = smov (!%p37_p3, %s39_s9), %s5709_s27 }
  0x7c   : > { %s133_s30 = ssub.s32 %s5705_s26, %s9773_s18  ;;  %p41_p9 = scmp.ge.s32.totalorder %s9775_s9, 2 }
  0x7d   : > { %p5253_p5 = scmp.lt.s32.totalorder %s5713_s28, 12  ;;  %p5944_p13 = por %p54_p2, %p53_p11 }
  0x7e   : > { %s237_s12 = sand.u32 1, %s5693_s23   ;;  %s9777_s9 = smov (%p41_p9, %s9775_s9), 0 }
  0x7f   : > { %s5204_s15 = smul.u32 384, %s237_s12  ;;  %s43_s17 = ssub.s32 %s5709_s27, %s9777_s9 }
  0x80   : > { %s5205_s7 = smul.u32 6144, %s5709_s27  ;;  %p44_p6 = scmp.eq.s32.totalorder %s43_s17, 0 }
  0x81   : > { %s134_s13 = sor.u32 %s133_s30, %s43_s17  ;;  %s9256_s16 = sadd.s32 1, %s5681_s20 }
  0x82   : > { %p135_p8 = scmp.eq.s32.totalorder %s134_s13, 0  ;;  %s9257_s0 = sld [smem:[#allocation45_spill]] }
  0x83   : > { %s5955_s4 = scalar_select %p44_p6, %s5693_s23, %s46_s14  }
  0x84   : > { %s5960_s5 = scalar_select %p135_p8, %s5681_s20, %s9256_s16  }
  0x85   : > { %s241_s1 = scalar_lea.vmem [#allocation2], %s5204_s15  ;;  %p5973_p10 = pnand %p5253_p5, %p5944_p13 }
  0x86   : > { %s248_s2 = sshll.u32 %s241_s1, 4  ;;  %s5977_s30 = scalar_lea.sflag [#allocation3], %s237_s12  ;;  %s5967_s2 = int_to_ptr.vmem [resolvable:$true] %s248_s2 }
  0x87   : > { %p5523_p0 = pneg %p5973_p10 }
  0x88   : > { %s5965_s29 = scalar_lea.hbm %s9257_s0, %s5205_s7  ;;  %s5526_s21 = scalar_lea.hbm %s9257_s0, 12288 }
  0x89   : > { %s5521_s10 = scalar_lea.hbm %s5965_s29, 6144  ;;  %p5527_p7 = scmp.lt.u32.totalorder %s5965_s29, %s9257_s0 }
  0x8a   : > { %p5522_p12 = scmp.ne.s32.totalorder %s5965_s29, %s5521_s10  ;;  %p5528_p3 = scmp.lt.u32.totalorder %s5526_s21, %s5521_s10 }
  0x8b   : > { %p5530_p2 = scmp.lt.u32.totalorder %s5521_s10, %s5965_s29 }
  0x8c   : > { %p5524_p4 = pnand %p5523_p0, %p5522_p12  ;;  %p5529_p11 = por %p5528_p3, %p5527_p7 }
  0x8e   : > { %p5525_p1 = pneg %p5524_p4  ;;  %p5531_p9 = por %p5530_p2, %p5529_p11 }
  0x90   : > { %p5532_p5 = pnand %p5531_p9, %p5525_p1 }
  0x92   : > { %5535 = shalt.err (!%p5532_p5)
}
  0x93   : > { %s5536_s12 = scalar_lea.vmem %s5967_s2, 6144  ;;  %s5720_s13 = smov [#allocation2]  }
  0x94   : > { %p5537_p13 = scmp.ne.s32.totalorder %s5967_s2, %s5536_s12  ;;  %s5541_s16 = sshll.u32 %s5720_s13, 4  ;;  %s5542_s16 = int_to_ptr.vmem [resolvable:$false] %s5541_s16 }
  0x95   : > { %s5543_s25 = scalar_lea.vmem %s5542_s16, 12288  ;;  %p5544_p12 = scmp.lt.s32.totalorder %s5967_s2, %s5542_s16 }
  0x96   : > { %p5539_p6 = pnand %p5537_p13, %p5523_p0  ;;  %p5545_p4 = scmp.lt.s32.totalorder %s5543_s25, %s5536_s12 }
  0x98   : > { %p5540_p8 = pneg %p5539_p6  ;;  %p5546_p7 = por %p5545_p4, %p5544_p12 }
  0x9a   : > { %p5547_p3 = pnand %p5546_p7, %p5540_p8 }
  0x9c   : > { %5550 = shalt.err (!%p5547_p3)
}
  0x9d   : > { %s9259_s10 = smov 4   ;;  %s9260_s1 = smov 64  }
  0x9e   : > { %5242 = dma.hbm_to_vmem [thread:$0]  (!%p5973_p10), %s5965_s29, 6144, %s5967_s2, %s5977_s30, %s9260_s1, %s9260_s1, %s9259_s10  }
  0x9f   : > { %p9261_p0 = scmp.ne.s32.totalorder %s9249_s11, 0 }
  0xa0   : > { %s262_s15 = sand.u32 (!%p9261_p0), 1, %s5689_s22   ;;  %p9262_p1 = scmp.ne.s32.totalorder (!%p9261_p0), %s9244_s8, 0 }
  0xa1   : > { %260 = sbr.rel (%p9261_p0) target bundleno = 1012 (0x3f4), region = 36  ;;  %s263_s17 = scalar_lea.sflag (!%p9261_p0), [#allocation3], %s262_s15 }
  0xa2   : > { %s5206_s21 = smul.u32 (!%p9261_p0), 384, %s262_s15 }
  0xa4   : > { %s6011_s7 = scalar_lea.vmem (!%p9261_p0), [#allocation2], %s5206_s21 }
  0xa8   : > { %5652 = dma.done.wait (%p9262_p1), %s263_s17, 6144  }
  0xa9   : > { %5654 = vsyncadd (%p9262_p1), %s263_s17, 4294961152  ;;  %p9263_p11 = scmp.ne.s32.totalorder %s9243_s6, 0 }
  0xab   : > { %5656 = dma.done.wait (%p9263_p11), [#allocation6], 9232  }
  0xac   : > { %5658 = vsyncadd (%p9263_p11), [#allocation6], 4294958064 }
  0xad   : > { %5660 = dma.done.wait (%p9263_p11), [#allocation9], 16  }
  0xae   : > { %5662 = vsyncadd (%p9263_p11), [#allocation9], 4294967280  ;;  %s6026_s2 = sand.u32 1, %s5677_s19   ;;  %p312_p10 = scmp.eq.s32.totalorder %s5697_s24, 0 }
  0xaf   : > { %s4456_s8 = sshll.u32 %s6026_s2, 6  ;;  %s4457_s11 = sshll.u32 %s6026_s2, 3 }
  0xb0   : > { %p313_p2 = scmp.eq.s32.totalorder %s5697_s24, 5  ;;  %s6036_s14 = scalar_lea.vmem [#allocation10], %s4456_s8 }
  0xb1   : > { %s6038_s30 = scalar_lea.vmem [#allocation11], %s4457_s11 }
  0xb2   : > { %p6032_p9 = por %p313_p2, %p312_p10 }
  0xb3   : > { %v5721_v0 = vmov (%p6032_p9), 0   ;;  %v5722_v1 = vmov (%p6032_p9), 0.0  }
  0xb4   : > { %317 = sbr.rel (!%p6032_p9) target bundleno = 189 (0xbd), region = 56  ;;  %318 = vst [vmem:[%s6036_s14] sm:$0xf] (%p6032_p9), %v5721_v0  ;;  %319 = vst [vmem:[%s6036_s14 + $0x4] sm:$0xf] (%p6032_p9), %v5721_v0 }
  0xb5   : > { %320 = vst [vmem:[%s6036_s14 + $0x8] sm:$0xf] (%p6032_p9), %v5721_v0  ;;  %321 = vst [vmem:[%s6036_s14 + $0xc] sm:$0xf] (%p6032_p9), %v5721_v0 }
  0xb6   : > { %322 = vst [vmem:[%s6036_s14 + $0x10] sm:$0xf] (%p6032_p9), %v5721_v0  ;;  %323 = vst [vmem:[%s6036_s14 + $0x14] sm:$0xf] (%p6032_p9), %v5721_v0 }
  0xb7   : > { %324 = vst [vmem:[%s6036_s14 + $0x18] sm:$0xf] (%p6032_p9), %v5721_v0  ;;  %325 = vst [vmem:[%s6036_s14 + $0x1c] sm:$0xf] (%p6032_p9), %v5721_v0 }
  0xb8   : > { %326 = vst [vmem:[%s6036_s14 + $0x20] sm:$0xf] (%p6032_p9), %v5721_v0  ;;  %327 = vst [vmem:[%s6036_s14 + $0x24] sm:$0xf] (%p6032_p9), %v5721_v0 }
  0xb9   : > { %328 = vst [vmem:[%s6036_s14 + $0x28] sm:$0xf] (%p6032_p9), %v5721_v0  ;;  %329 = vst [vmem:[%s6036_s14 + $0x2c] sm:$0xf] (%p6032_p9), %v5721_v0 }
  0xba   : > { %330 = vst [vmem:[%s6036_s14 + $0x30] sm:$0xf] (%p6032_p9), %v5721_v0  ;;  %331 = vst [vmem:[%s6036_s14 + $0x34] sm:$0xf] (%p6032_p9), %v5721_v0 }
  0xbb   : > { %332 = vst [vmem:[%s6036_s14 + $0x38] sm:$0xf] %v5721_v0  ;;  %333 = vst [vmem:[%s6036_s14 + $0x3c] sm:$0xf] %v5721_v0 }
  0xbc   : > { %334 = vst [vmem:[%s6038_s30] sm:$0xff] %v5722_v1 }
  0xbd PF: > { %337 = sbr.rel (%p6032_p9) target bundleno = 959 (0x3bf), region = 60 }
  0xc4   : > { %v5356_v2 = vld [vmem:[#allocation5 + $0x140] sm:$0xff]   ;;  %v362_v3 = vlaneseq  ;;  %s4460_s6 = sadd.s32 4294967295, %s5697_s24  ;;  %v5359_v6 = vld [vmem:[#allocation5 + $0x148] sm:$0xff]   ;;  %s6065_s12 = sshll.u32 %s5697_s24, 7  ;;  %v5362_v10 = vld [vmem:[#allocation5 + $0x150] sm:$0xff]  }
  0xc5   : > { %v5357_v4 = vld [vmem:[#allocation5 + $0x100] sm:$0xff]   ;;  %5012 = vmatprep.subr.bf16.mxu1 %v5356_v2  ;;  %v5360_v8 = vld [vmem:[#allocation5 + $0x108] sm:$0xff]   ;;  %s6067_s13 = sshll.u32 %s4460_s6, 7  ;;  %v5363_v11 = vld [vmem:[#allocation5 + $0x110] sm:$0xff]   ;;  %s933_s16 = sadd.s32 4294967288, %s6065_s12 }
  0xc6   : > { %v5358_v5 = vld [vmem:[#allocation5 + $0xc0] sm:$0xff]   ;;  %5013 = vmatpush3.bf16.msra.mxu1 %v5356_v2  ;;  %4772 = vmatprep.subr.bf16.mxu0 %v5357_v4  ;;  %v6062_v7 = vshrl.u32 %v362_v3, 7  ;;  %v5361_v9 = vld [vmem:[#allocation5 + $0xc8] sm:$0xff]   ;;  %v5364_v13 = vld [vmem:[#allocation5 + $0xd0] sm:$0xff]   ;;  %s956_s25 = sadd.s32 4294967288, %s6067_s13  ;;  %s6086_s10 = sshra.s32 %s933_s16, 3 }
  0xc7   : > { %4773 = vmatpush3.bf16.msra.mxu0 %v5358_v5  ;;  %5014 = vmatprep.subr.bf16.mxu1 %v5359_v6  ;;  %v5365_v15 = vld [vmem:[#allocation5 + $0x158] sm:$0xff]   ;;  %v5368_v20 = vld [vmem:[#allocation5 + $0x160] sm:$0xff]   ;;  %v6088_v23 = vstv %s956_s25  ;;  %v5371_v30 = vld [vmem:[#allocation5 + $0x168] sm:$0xff]   ;;  %s4464_s1 = sshll.u32 %s6086_s10, 2  ;;  %s339_s21 = sadd.s32 4294967264, %s6065_s12 }
  0xc8   : > { %9265 = vst [vmem:[#allocation22_spill] sm:$0xff] %v6062_v7  ;;  %4774 = vmatprep.subr.bf16.mxu0 %v5360_v8  ;;  %v6070_v12 = vadd.s32 8, %v6062_v7  ;;  %v6073_v14 = vadd.s32 16, %v6062_v7  ;;  %v6076_v16 = vadd.s32 24, %v6062_v7  ;;  %v5366_v17 = vld [vmem:[#allocation5 + $0x118] sm:$0xff]   ;;  %v6079_v18 = vadd.s32 32, %v6062_v7  ;;  %s6127_s15 = scalar_lea.vmem %s6011_s7, %s4464_s1 [#allocation2] }
  0xc9   : > { %v5367_v19 = vld [vmem:[#allocation5 + $0xd8] sm:$0xff]   ;;  %v6083_v21 = vadd.s32 40, %v6062_v7  ;;  %v5369_v22 = vld [vmem:[#allocation5 + $0x120] sm:$0xff]   ;;  %v6091_v24 = vadd.s32 48, %v6062_v7  ;;  %v6095_v26 = vadd.s32 %v6088_v23, %v6062_v7  ;;  %v6118_v33 = vadd.s32 56, %v6062_v7  ;;  %v5372_v34 = vld [vmem:[#allocation5 + $0x128] sm:$0xff]  }
  0xca   : > { %5015 = vmatpush3.bf16.msra.mxu1 %v5359_v6  ;;  %9266 = vst [vmem:[#allocation23_spill] sm:$0xff] %v6070_v12  ;;  %9267 = vst [vmem:[#allocation24_spill] sm:$0xff] %v6073_v14  ;;  %v5370_v25 = vld [vmem:[#allocation5 + $0xe0] sm:$0xff]   ;;  %v6099_v27 = vadd.s32 %v6088_v23, %v6070_v12  ;;  %v6103_v28 = vadd.s32 %v6088_v23, %v6073_v14  ;;  %v6107_v29 = vadd.s32 %v6088_v23, %v6076_v16  ;;  %v5373_v39 = vld [vmem:[#allocation5 + $0xe8] sm:$0xff]   ;;  %s6667_s17 = sshra.s32 %s339_s21, 3  ;;  %s383_s29 = sadd.s32 4294967264, %s6067_s13 }
  0xcb   : > { %4775 = vmatpush3.bf16.msra.mxu0 %v5361_v9  ;;  %5016 = vmatprep.subr.bf16.mxu1 %v5362_v10  ;;  %9268 = vst [vmem:[#allocation25_spill] sm:$0xff] %v6076_v16  ;;  %9269 = vst [vmem:[#allocation26_spill] sm:$0xff] %v6079_v18  ;;  %v6111_v31 = vadd.s32 %v6088_v23, %v6079_v18  ;;  %v6115_v32 = vadd.s32 %v6088_v23, %v6083_v21  ;;  %v976_v35 = vcvt.s32.f32 %v6095_v26  ;;  %v5374_v41 = vld [vmem:[#allocation5 + $0x170] sm:$0xff]   ;;  %v5377_v51 = vld [vmem:[#allocation5 + $0x178] sm:$0xff]   ;;  %s4459_s8 = sshll.u32 %s6667_s17, 2  ;;  %s2606_s6 = sadd.s32 16, %s6065_s12 }
  0xcc   : > { %4776 = vmatprep.subr.bf16.mxu0 %v5363_v11  ;;  %9270 = vst [vmem:[#allocation27_spill] sm:$0xff] %v6083_v21  ;;  %9271 = vst [vmem:[#allocation28_spill] sm:$0xff] %v6091_v24  ;;  %v977_v36 = vcvt.s32.f32 %v6099_v27  ;;  %v978_v37 = vcvt.s32.f32 %v6103_v28  ;;  %v979_v38 = vcvt.s32.f32 %v6107_v29  ;;  %v6134_v44 = vadd.s32 %v6088_v23, %v6091_v24  ;;  %v5375_v46 = vld [vmem:[#allocation5 + $0x130] sm:$0xff]   ;;  %v4630_v52 = vld [vmem:[%s6127_s15] sm:$0xff]   ;;  %s6689_s11 = scalar_lea.vmem %s6011_s7, %s4459_s8 [#allocation2]  ;;  %s7099_s12 = sshra.s32 %s2606_s6, 3 }
  0xcd   : > { %9272 = vst [vmem:[#allocation29_spill] sm:$0xff] %v6118_v33  ;;  %v980_v40 = vcvt.s32.f32 %v6111_v31  ;;  %v981_v42 = vcvt.s32.f32 %v6115_v32  ;;  %v994_v43 = vadd.f32 0.5, %v976_v35  ;;  %v6138_v45 = vadd.s32 %v6088_v23, %v6118_v33  ;;  %v5376_v50 = vld [vmem:[#allocation5 + $0xf0] sm:$0xff]   ;;  %v5378_v54 = vld [vmem:[#allocation5 + $0x138] sm:$0xff]   ;;  %v6150_v55 = vld [vmem:[%s6127_s15 + $0x8] sm:$0xff]   ;;  %s4513_s16 = sshll.u32 %s7099_s12, 2 }
  0xce   : > { %5017 = vmatpush3.bf16.msra.mxu1 %v5362_v10  ;;  %v995_v47 = vadd.f32 0.5, %v977_v36  ;;  %v996_v48 = vadd.f32 0.5, %v978_v37  ;;  %v997_v49 = vadd.f32 0.5, %v979_v38  ;;  %v6153_v56 = vld [vmem:[%s6127_s15 + $0x10] sm:$0xff]   ;;  %v982_v59 = vcvt.s32.f32 %v6134_v44  ;;  %v6159_v61 = vld [vmem:[#allocation7] ss:$0 sm:$0xff]  ;;  %s7125_s25 = scalar_lea.vmem %s6011_s7, %s4513_s16 [#allocation2] }
  0xcf   : > { %4777 = vmatpush3.bf16.msra.mxu0 %v5364_v13  ;;  %5018 = vmatprep.subr.bf16.mxu1 %v5365_v15  ;;  %v998_v53 = vadd.f32 0.5, %v980_v40  ;;  %v999_v57 = vadd.f32 0.5, %v981_v42  ;;  %v1012_v58 = vmul.f32 0.041666668, %v994_v43  ;;  %v983_v60 = vcvt.s32.f32 %v6138_v45  ;;  %v5379_v6 = vld [vmem:[#allocation5 + $0xf8] sm:$0xff]   ;;  %s2629_s7 = sadd.s32 16, %s6067_s13 }
  0xd0   : > { %4778 = vmatprep.subr.bf16.mxu0 %v5366_v17  ;;  %v4631_v62 = vunpack.c.l.bf16 %v4630_v52  ;;  %v4632_v63 = vunpack.c.h.bf16 %v4630_v52  ;;  %v4635_v0 = vunpack.c.l.bf16 %v6150_v55  ;;  %v4636_v1 = vunpack.c.h.bf16 %v6150_v55  ;;  %v6203_v31 = vld [vmem:[#allocation8] ss:$0 sm:$0xff] }
  0xd1   : > { %v1013_v2 = vmul.f32 0.041666668, %v995_v47  ;;  %v1014_v3 = vmul.f32 0.041666668, %v996_v48  ;;  %v1015_v4 = vmul.f32 0.041666668, %v997_v49  ;;  %v1030_v5 = vfloor.f32 %v1012_v58 }
  0xd2   : > { %5019 = vmatpush3.bf16.msra.mxu1 %v5365_v15  ;;  %v4639_v8 = vunpack.c.l.bf16 %v6153_v56  ;;  %v4640_v9 = vunpack.c.h.bf16 %v6153_v56  ;;  %v1016_v10 = vmul.f32 0.041666668, %v998_v53  ;;  %v1017_v11 = vmul.f32 0.041666668, %v999_v57 }
  0xd3   : > { %4779 = vmatpush3.bf16.msra.mxu0 %v5367_v19  ;;  %5020 = vmatprep.subr.bf16.mxu1 %v5368_v20  ;;  %v1031_v13 = vfloor.f32 %v1013_v2  ;;  %v1032_v15 = vfloor.f32 %v1014_v3  ;;  %v1033_v17 = vfloor.f32 %v1015_v4  ;;  %v1048_v19 = vmul.f32 24.0, %v1030_v5 }
  0xd4   : > { %4780 = vmatprep.subr.bf16.mxu0 %v5369_v22  ;;  %v1034_v22 = vfloor.f32 %v1016_v10  ;;  %vm1084_vm0 = vcmp.ge.f32.partialorder %v1030_v5, 1.0  ;;  %vm1102_vm1 = vcmp.le.f32.partialorder %v1030_v5, 16.0  ;;  %v6273_v5 = vld [vmem:[%s6127_s15 + $0x20] sm:$0xff]  }
  0xd5   : > { %v1050_v43 = vmul.f32 24.0, %v1032_v15  ;;  %v6169_v49 = vsub.f32 %v976_v35, %v1048_v19  ;;  %vm1085_vm2 = vcmp.ge.f32.partialorder %v1031_v13, 1.0  ;;  %vm1086_vm3 = vcmp.ge.f32.partialorder %v1032_v15, 1.0  ;;  %vm6193_vm9 = vmand %vm1084_vm0, %vm1102_vm1 }
  0xd6   : > { %5021 = vmatpush3.bf16.msra.mxu1 %v5368_v20  ;;  %v5380_v20 = vld [vmem:[#allocation5 + $0x40] sm:$0xff]   ;;  %v1052_v47 = vmul.f32 24.0, %v1034_v22  ;;  %vm1087_vm4 = vcmp.ge.f32.partialorder %v1033_v17, 1.0  ;;  %vm1088_vm5 = vcmp.ge.f32.partialorder %v1034_v22, 1.0  ;;  %vm1103_vm6 = vcmp.le.f32.partialorder %v1031_v13, 16.0 }
  0xd7   : > { %4781 = vmatpush3.bf16.msra.mxu0 %v5370_v25  ;;  %5022 = vmatprep.subr.bf16.mxu1 %v5371_v30  ;;  %v1035_v25 = vfloor.f32 %v1017_v11  ;;  %v6177_v52 = vsub.f32 %v978_v37, %v1050_v43  ;;  %vm1104_vm7 = vcmp.le.f32.partialorder %v1032_v15, 16.0  ;;  %vm1105_vm8 = vcmp.le.f32.partialorder %v1033_v17, 16.0  ;;  %vm6198_vm13 = vmand %vm1085_vm2, %vm1103_vm6 }
  0xd8   : > { %4782 = vmatprep.subr.bf16.mxu0 %v5372_v34  ;;  %v1229_v34 = vmul.f32 %v4632_v63, %v6159_v61  ;;  %v6185_v26 = vsub.f32 %v980_v40, %v1052_v47  ;;  %vm1106_vm11 = vcmp.le.f32.partialorder %v1034_v22, 16.0  ;;  %vm6205_vm15 = vmand %vm1086_vm3, %vm1104_vm7  ;;  %vm1174_vm3 = vcmp.le.f32.partialorder %v6169_v49, 16.0 }
  0xd9   : > { %v1053_v48 = vmul.f32 24.0, %v1035_v25  ;;  %vm6214_vm2 = vmand %vm1087_vm4, %vm1105_vm8  ;;  %v1231_v40 = vmul.f32 %v4636_v1, %v6159_v61  ;;  %vm9283_vm8 = vcmp.le.f32.partialorder %v1035_v25, 16.0  ;;  %vm9284_vm14 = vcmp.ge.f32.partialorder %v1035_v25, 1.0 }
  0xda   : > { %5023 = vmatpush3.bf16.msra.mxu1 %v5371_v30  ;;  %v1228_v30 = vmul.f32 %v4631_v62, %v6159_v61  ;;  %vm1142_vm12 = vcmp.ge.f32.partialorder %v6185_v26, 1.0  ;;  %vm6225_vm1 = vmand %vm1088_vm5, %vm1106_vm11  ;;  %vm1178_vm11 = vcmp.le.f32.partialorder %v6185_v26, 16.0  ;;  %v1247_v57 = vadd.f32 %v6203_v31, %v1229_v34 }
  0xdb   : > { %4783 = vmatpush3.bf16.msra.mxu0 %v5373_v39  ;;  %5024 = vmatprep.subr.bf16.mxu1 %v5374_v41  ;;  %v5382_v39 = vld [vmem:[#allocation5 + $0x1c0] sm:$0xff]   ;;  %v6189_v27 = vsub.f32 %v981_v42, %v1053_v48  ;;  %v1232_v42 = vmul.f32 %v4639_v8, %v6159_v61  ;;  %vm6241_vm5 = vmand %vm9284_vm14, %vm9283_vm8  ;;  %vm9287_vm4 = vcmp.ge.f32.partialorder %v6169_v49, 1.0  ;;  %v1249_v63 = vadd.f32 %v6203_v31, %v1231_v40 }
  0xdc   : > { %4784 = vmatprep.subr.bf16.mxu0 %v5375_v46  ;;  %v1051_v46 = vmul.f32 24.0, %v1033_v17  ;;  %v1246_v55 = vadd.f32 %v6203_v31, %v1228_v30  ;;  %vm6255_vm7 = vmand %vm6193_vm9, %vm9287_vm4  ;;  %vm9292_vm4 = vcmp.ge.f32.partialorder %v6177_v52, 1.0  ;;  %v1265_v8 = vmax.f32 %v1247_v57, 0.0 }
  0xdd   : > { %vm1143_vm6 = vcmp.ge.f32.partialorder %v6189_v27, 1.0  ;;  %vm1179_vm9 = vcmp.le.f32.partialorder %v6189_v27, 16.0  ;;  %vm6279_vm8 = vmand %vm6205_vm15, %vm9292_vm4  ;;  %v1267_v10 = vmax.f32 %v1249_v63, 0.0  ;;  %v1000_v11 = vadd.f32 0.5, %v982_v59 }
  0xde   : > { %5025 = vmatpush3.bf16.msra.mxu1 %v5374_v41  ;;  %v1049_v41 = vmul.f32 24.0, %v1031_v13  ;;  %v6181_v53 = vsub.f32 %v979_v38, %v1051_v46  ;;  %v1230_v38 = vmul.f32 %v4635_v0, %v6159_v61  ;;  %v1250_v0 = vadd.f32 %v6203_v31, %v1232_v42 }
  0xdf   : > { %4785 = vmatpush3.bf16.msra.mxu0 %v5376_v50  ;;  %5026 = vmatprep.subr.bf16.mxu1 %v5377_v51  ;;  %v1264_v3 = vmax.f32 %v1246_v55, 0.0  ;;  %v1001_v17 = vadd.f32 0.5, %v983_v60  ;;  %vm9178_vm15 = vcmask 1046528   ;;  %v1018_v30 = vmul.f32 0.041666668, %v1000_v11 }
  0xe0   : > { %4786 = vmatprep.subr.bf16.mxu0 %v5378_v54  ;;  %v6173_v50 = vsub.f32 %v977_v36, %v1049_v41  ;;  %vm1141_vm10 = vcmp.ge.f32.partialorder %v6181_v53, 1.0  ;;  %v4751_v36 = vld [vmem:[%s6127_s15 + $0x18] sm:$0xff]   ;;  %v1233_v54 = vmul.f32 %v4640_v9, %v6159_v61  ;;  %v1248_v62 = vadd.f32 %v6203_v31, %v1230_v38 }
  0xe1   : > { %v4643_v56 = vunpack.c.l.bf16 %v4751_v36  ;;  %v4644_v4 = vunpack.c.h.bf16 %v4751_v36  ;;  %v1268_v15 = vmax.f32 %v1250_v0, 0.0  ;;  %v6306_v34 = vadd.s32 64, %v6062_v7 }
  0xe2   : > { %5027 = vmatpush3.bf16.msra.mxu1 %v5377_v51  ;;  %vm1139_vm0 = vcmp.ge.f32.partialorder %v6173_v50, 1.0  ;;  %v1251_v2 = vadd.f32 %v6203_v31, %v1233_v54  ;;  %v1266_v9 = vmax.f32 %v1248_v62, 0.0  ;;  %v1019_v43 = vmul.f32 0.041666668, %v1001_v17 }
  0xe3   : > { %4787 = vmatpush3.bf16.msra.mxu0 %v5379_v6  ;;  %4852 = vmatprep.subr.bf16.mxu1 %v5380_v20  ;;  %vm6266_vm14 = vmand %vm6198_vm13, %vm1139_vm0  ;;  %v1234_v19 = vmul.f32 %v4643_v56, %v6159_v61  ;;  %v1235_v20 = vmul.f32 %v4644_v4, %v6159_v61  ;;  %9299 = vst [vmem:[#allocation30_spill] sm:$0xff] %v6306_v34  ;;  %v4647_v48 = vunpack.c.l.bf16 %v6273_v5  ;;  %v1036_v28 = vfloor.f32 %v1018_v30 }
  0xe4   : > { %4932 = vmatprep.subr.bf16.mxu0 %v5382_v39  ;;  %vm6289_vm13 = vmand %vm6214_vm2, %vm1141_vm10  ;;  %v1269_v25 = vmax.f32 %v1251_v2, 0.0  ;;  %v6309_v39 = vadd.s32 72, %v6062_v7  ;;  %v4648_v29 = vunpack.c.h.bf16 %v6273_v5  ;;  %v6333_v32 = vadd.s32 %v6088_v23, %v6306_v34 }
  0xe5   : > { %vm6301_vm0 = vmand %vm6225_vm1, %vm1142_vm12  ;;  %v6320_v46 = vadd.f32 %v6203_v31, %v1234_v19  ;;  %v6323_v47 = vadd.f32 %v6203_v31, %v1235_v20  ;;  %vm9303_vm1 = vcmp.le.f32.partialorder %v6173_v50, 16.0  ;;  %v1037_v36 = vfloor.f32 %v1019_v43 }
  0xe6   : > { %9300 = vst [vmem:[#allocation31_spill] sm:$0xff] %v6309_v39  ;;  %vm6315_vm10 = vmand %vm6241_vm5, %vm1143_vm6  ;;  %v6337_v35 = vadd.s32 %v6088_v23, %v6309_v39  ;;  %vm9304_vm6 = vcmp.le.f32.partialorder %v6177_v52, 16.0  ;;  %v1054_v42 = vmul.f32 24.0, %v1036_v28  ;;  %vm1108_vm5 = vcmp.le.f32.partialorder %v1036_v28, 16.0 }
  0xe7   : > { %vm1192_vm12 = vmand %vm6255_vm7, %vm1174_vm3  ;;  %v1270_v37 = vmax.f32 %v6320_v46, 0.0  ;;  %v1271_v38 = vmax.f32 %v6323_v47, 0.0  ;;  %vm1090_vm7 = vcmp.ge.f32.partialorder %v1036_v28, 1.0  ;;  %vm9305_vm4 = vcmp.le.f32.partialorder %v6181_v53, 16.0 }
  0xe8   : > { %vm1193_vm2 = vmand %vm6266_vm14, %vm9303_vm1  ;;  %v1318_v49 = vsel %vm1192_vm12, %v1264_v3, 0.0  ;;  %v1055_v54 = vmul.f32 24.0, %v1037_v36  ;;  %vm1091_vm12 = vcmp.ge.f32.partialorder %v1037_v36, 1.0  ;;  %v1072_v55 = vsub.f32 %v982_v59, %v1054_v42 }
  0xe9   : > { %vm1194_vm3 = vmand %vm6279_vm8, %vm9304_vm6  ;;  %v1319_v40 = vsel %vm1193_vm2, %v1265_v8, 0.0  ;;  %vm1109_vm8 = vcmp.le.f32.partialorder %v1037_v36, 16.0  ;;  %vm9180_vm2 = vsmask.f32 7424  ;;  %v984_v53 = vcvt.s32.f32 %v6333_v32  ;;  %v5394_v32 = vld [vmem:[#allocation5 + $0x1d0] sm:$0xff]  }
  0xea   : > { %vm1195_vm14 = vmand %vm6289_vm13, %vm9305_vm4  ;;  %v1320_v50 = vsel %vm1194_vm3, %v1266_v9, 0.0  ;;  %v1336_v51 = vpack.c.bf16 %v1319_v40, %v1318_v49  ;;  %v1073_v26 = vsub.f32 %v983_v60, %v1055_v54  ;;  %vm1180_vm6 = vcmp.le.f32.partialorder %v1072_v55, 16.0 }
  0xeb   : > { %vm1196_vm1 = vmand %vm6301_vm0, %vm1178_vm11  ;;  %v1321_v52 = vsel %vm1195_vm14, %v1267_v10, 0.0  ;;  %vm1144_vm0 = vcmp.ge.f32.partialorder %v1072_v55, 1.0  ;;  %vm9179_vm3 = vsmask.f32 4352  ;;  %v985_v4 = vcvt.s32.f32 %v6337_v35  ;;  %v5387_v35 = vld [vmem:[#allocation5 + $0x10] sm:$0xff]  }
  0xec   : > { %vm1197_vm13 = vmand %vm6315_vm10, %vm1179_vm9  ;;  %v1322_v57 = vsel %vm1196_vm1, %v1268_v15, 0.0  ;;  %v1337_v58 = vpack.c.bf16 %v1321_v52, %v1320_v50  ;;  %v1425_v62 = vrot.slane %v1336_v51, 1  ;;  %v1346_v44 = vshrl.u32 %v1336_v51, 16 }
  0xed   : > { %v1323_v63 = vsel %vm1197_vm13, %v1269_v25, 0.0  ;;  %vm1126_vm11 = vmand %vm1090_vm7, %vm1108_vm5  ;;  %vm1145_vm10 = vcmp.ge.f32.partialorder %v1073_v26, 1.0  ;;  %vm1181_vm4 = vcmp.le.f32.partialorder %v1073_v26, 16.0  ;;  %v1348_v27 = vshll.u32 %v1336_v51, 16 }
  0xee   : > { %v6368_v59 = vpack.c.bf16 %v1323_v63, %v1322_v57  ;;  %v1426_v0 = vrot.slane %v1337_v58, 1  ;;  %vm1127_vm9 = vmand %vm1091_vm12, %vm1109_vm8  ;;  %v1353_v45 = vshll.u32 %v1337_v58, 16  ;;  %v1357_v60 = vshrl.u32 %v1337_v58, 16 }
  0xef   : > { %vm1162_vm14 = vmand %vm1126_vm11, %vm1144_vm0  ;;  %v1492_v56 = vrot.slane %v1346_v44, 3  ;;  %v1350_v9 = vrot.slane %v1348_v27, 1  ;;  %v1493_v17 = vrot.slane %v1348_v27, 4 }
  0xf0   : > { %v1427_v1 = vsel %vm9178_vm15, %v1425_v62, %v1426_v0  ;;  %v1428_v2 = vrot.slane %v6368_v59, 1  ;;  %vm1163_vm7 = vmand %vm1127_vm9, %vm1145_vm10  ;;  %v1361_v3 = vshll.u32 %v6368_v59, 16  ;;  %v1355_v10 = vrot.slane %v1353_v45, 1 }
  0xf1   : > { %v1517_v6 = vshrl.u32 %v1427_v1, 16  ;;  %v1520_v8 = vshll.u32 %v1427_v1, 16  ;;  %vm1198_vm5 = vmand %vm1162_vm14, %vm1180_vm6  ;;  %v1351_v41 = vor.u32 %v1350_v9, %v1346_v44  ;;  %v1494_v46 = vor.u32 %v1493_v17, %v1492_v56 }
  0xf2   : > { %v1429_v11 = vsel %vm9178_vm15, %v1426_v0, %v1428_v2  ;;  %vm1199_vm12 = vmand %vm1163_vm7, %vm1181_vm4  ;;  %v1324_v13 = vsel %vm1198_vm5, %v1270_v37, 0.0  ;;  %v6381_v15 = vrot.slane %v1361_v3, 1  ;;  %v1359_v43 = vor.u32 %v1357_v60, %v1355_v10 }
  0xf3   : > { %v1519_v19 = vrot.slane %v1517_v6, 3  ;;  %v1522_v20 = vrot.slane %v1520_v8, 4  ;;  %v1525_v22 = vshrl.u32 %v1429_v11, 16  ;;  %v1528_v25 = vshll.u32 %v1429_v11, 16  ;;  %v5384_v8 = vld [vmem:[#allocation5 + $0x180] sm:$0xff]  }
  0xf4   : > { %v1325_v30 = vsel %vm1199_vm12, %v1271_v38, 0.0  ;;  %v1356_v37 = vsel %vm9180_vm2, %v1351_v41, %v1355_v10  ;;  %v1364_v40 = vsel %vm9180_vm2, %v1359_v43, %v6381_v15  ;;  %v1495_v42 = vrot.slane %v1357_v60, 3  ;;  %v5381_v43 = vld [vmem:[#allocation5] sm:$0xff]  }
  0xf5   : > { %v1523_v47 = vor.u32 %v1522_v20, %v1519_v19  ;;  %v1527_v28 = vrot.slane %v1525_v22, 3  ;;  %v1530_v49 = vrot.slane %v1528_v25, 4  ;;  %v6383_v36 = vpack.c.bf16 %v1325_v30, %v1324_v13  ;;  %v4753_v30 = vld [vmem:[%s6127_s15 + $0x28] sm:$0xff]  }
  0xf6   : > { %v1496_v50 = vrot.slane %v1353_v45, 4  ;;  %v1500_v52 = vshrl.u32 %v1356_v37, 16  ;;  %v1503_v38 = vshll.u32 %v1356_v37, 16  ;;  %v1508_v55 = vshrl.u32 %v1364_v40, 16 }
  0xf7   : > { %v1531_v51 = vor.u32 %v1530_v49, %v1527_v28  ;;  %v1430_v54 = vrot.slane %v6383_v36, 1  ;;  %v1511_v57 = vshll.u32 %v1364_v40, 16  ;;  %v1002_v62 = vadd.f32 0.5, %v984_v53  ;;  %v5388_v28 = vld [vmem:[#allocation5 + $0x1c8] sm:$0xff]  }
  0xf8   : > { %v6389_v58 = vor.u32 %v1496_v50, %v1495_v42  ;;  %v1502_v44 = vrot.slane %v1500_v52, 3  ;;  %v1505_v0 = vrot.slane %v1503_v38, 4  ;;  %v1510_v60 = vrot.slane %v1508_v55, 3  ;;  %v5383_v49 = vld [vmem:[#allocation5 + $0x48] sm:$0xff]   ;;  %v5392_v55 = vld [vmem:[#allocation5 + $0x60] sm:$0xff]  }
  0xf9   : > { %v1532_v26 = vsel %vm9179_vm3, %v1523_v47, %v1531_v51  ;;  %v1431_v63 = vsel %vm9178_vm15, %v1428_v2, %v1430_v54  ;;  %v1513_v56 = vrot.slane %v1511_v57, 4  ;;  %v1003_v9 = vadd.f32 0.5, %v985_v4  ;;  %v5390_v57 = vld [vmem:[#allocation5 + $0x188] sm:$0xff]  }
  0xfa   : > { %5028 = vmatprep.mubr.bf16.mxu1 %v1532_v26  ;;  %v1547_v27 = vshrl.u32 %v1431_v63, 16  ;;  %v1550_v45 = vshll.u32 %v1431_v63, 16  ;;  %v1506_v1 = vor.u32 %v1505_v0, %v1502_v44  ;;  %v1498_v6 = vsel %vm9179_vm3, %v1494_v46, %v6389_v58 }
  0xfb   : > { %v1020_v10 = vmul.f32 0.041666668, %v1002_v62  ;;  %v6401_v2 = vor.u32 %v1513_v56, %v1510_v60  ;;  %v1236_v17 = vmul.f32 %v4647_v48, %v6159_v61  ;;  %v1021_v19 = vmul.f32 0.041666668, %v1003_v9  ;;  %v5389_v9 = vld [vmem:[#allocation5 + $0x58] sm:$0xff]  }
  0xfc   : > { %v1549_v11 = vrot.slane %v1547_v27, 3  ;;  %v1552_v13 = vrot.slane %v1550_v45, 4  ;;  %v1237_v22 = vmul.f32 %v4648_v29, %v6159_v61  ;;  %v6410_v25 = vadd.s32 80, %v6062_v7  ;;  %v5386_v45 = vld [vmem:[#allocation5 + $0x50] sm:$0xff]  }
  0xfd   : > { %v1038_v20 = vfloor.f32 %v1020_v10  ;;  %v1515_v46 = vsel %vm9179_vm3, %v1506_v1, %v6401_v2  ;;  %v1254_v47 = vadd.f32 %v6203_v31, %v1236_v17  ;;  %v6419_v48 = vadd.s32 88, %v6062_v7  ;;  %v5396_v10 = vld [vmem:[#allocation5 + $0x190] sm:$0xff]  }
  0xfe   : > { %9306 = vst [vmem:[#allocation32_spill] sm:$0xff] %v6410_v25  ;;  %v6413_v41 = vor.u32 %v1552_v13, %v1549_v11  ;;  %1887 = vmatprep.mubr.bf16.mxu0 %v1515_v46  ;;  %v1039_v5 = vfloor.f32 %v1021_v19  ;;  %v1255_v40 = vadd.f32 %v6203_v31, %v1237_v22  ;;  %v4651_v50 = vunpack.c.l.bf16 %v4753_v30  ;;  %v5400_v22 = vld [vmem:[#allocation5 + $0x1d8] sm:$0xff]  }
  0xff   : > { %9307 = vst [vmem:[#allocation33_spill] sm:$0xff] %v6419_v48  ;;  %v1056_v29 = vmul.f32 24.0, %v1038_v20  ;;  %vm1092_vm1 = vcmp.ge.f32.partialorder %v1038_v20, 1.0  ;;  %vm1110_vm8 = vcmp.le.f32.partialorder %v1038_v20, 16.0  ;;  %1888 = vmatmul.mubr.bf16.vlgmr.msra.gmra.mrb[0].mxu0 %v1498_v6  ;;  %v1272_v42 = vmax.f32 %v1254_v47, 0.0  ;;  %v6465_v20 = vld [vmem:[%s6127_s15 + $0x30] sm:$0xff]  }
 0x100   : > { %v1554_v37 = vsel %vm9179_vm3, %v1531_v51, %v6413_v41  ;;  %4933 = vmatpush3.bf16.msra.mxu0 %v5384_v8  ;;  %v1057_v52 = vmul.f32 24.0, %v1039_v5  ;;  %vm1093_vm13 = vcmp.ge.f32.partialorder %v1039_v5, 1.0  ;;  %vm1111_vm11 = vcmp.le.f32.partialorder %v1039_v5, 16.0  ;;  %vm6426_vm0 = vmand %vm1092_vm1, %vm1110_vm8  ;;  %v5385_v51 = vld [vmem:[#allocation5 + $0x8] sm:$0xff]  }
 0x101   : > { %5029 = vmatmul.mubr.bf16.vlgmr.msra.gmra.mrb[0].mxu1 %v1554_v37  ;;  %v1074_v38 = vsub.f32 %v984_v53, %v1056_v29  ;;  %v1273_v62 = vmax.f32 %v1255_v40, 0.0  ;;  %v4652_v26 = vunpack.c.h.bf16 %v4753_v30  ;;  %v6432_v63 = vadd.s32 %v6088_v23, %v6410_v25  ;;  %4934 = vmatprep.subr.bf16.mxu0 %v5388_v28  ;;  %vm6440_vm6 = vmand %vm1093_vm13, %vm1111_vm11  ;;  %v5402_v28 = vld [vmem:[#allocation5 + $0x198] sm:$0xff]  }
 0x102   : > { %4853 = vmatpush3.bf16.msra.mxu1 %v5381_v43  ;;  %v6436_v44 = vadd.s32 %v6088_v23, %v6419_v48  ;;  %v1075_v53 = vsub.f32 %v985_v4, %v1057_v52  ;;  %v1238_v27 = vmul.f32 %v4651_v50, %v6159_v61  ;;  %v1365_v4 = vshrl.u32 %v6368_v59, 16  ;;  %v5391_v40 = vld [vmem:[#allocation5 + $0x18] sm:$0xff]  }
 0x103   : > { %4854 = vmatprep.subr.bf16.mxu1 %v5383_v49  ;;  %vm1146_vm9 = vcmp.ge.f32.partialorder %v1074_v38, 1.0  ;;  %vm1182_vm10 = vcmp.le.f32.partialorder %v1074_v38, 16.0  ;;  %v986_v60 = vcvt.s32.f32 %v6432_v63  ;;  %v1239_v1 = vmul.f32 %v4652_v26, %v6159_v61 }
 0x104   : > { %vm1164_vm4 = vmand %vm6426_vm0, %vm1146_vm9  ;;  %v987_v56 = vcvt.s32.f32 %v6436_v44  ;;  %vm1147_vm14 = vcmp.ge.f32.partialorder %v1075_v53, 1.0  ;;  %vm1183_vm7 = vcmp.le.f32.partialorder %v1075_v53, 16.0  ;;  %v6452_v6 = vadd.f32 %v6203_v31, %v1238_v27  ;;  %4935 = vmatpush3.bf16.msra.mxu0 %v5390_v57 }
 0x105   : > { %vm1200_vm5 = vmand %vm1164_vm4, %vm1182_vm10  ;;  %v1369_v8 = vshll.u32 %v6383_v36, 16  ;;  %v1004_v13 = vadd.f32 0.5, %v986_v60  ;;  %v6462_v19 = vadd.f32 %v6203_v31, %v1239_v1  ;;  %4936 = vmatprep.subr.bf16.mxu0 %v5394_v32  ;;  %v1367_v43 = vor.u32 %v1365_v4, %v6381_v15 }
 0x106   : > { %4855 = vmatpush3.bf16.msra.mxu1 %v5385_v51  ;;  %vm1165_vm12 = vmand %vm6440_vm6, %vm1147_vm14  ;;  %v1326_v11 = vsel %vm1200_vm5, %v1272_v42, 0.0  ;;  %v1005_v17 = vadd.f32 0.5, %v987_v56  ;;  %v1274_v30 = vmax.f32 %v6452_v6, 0.0  ;;  %v1533_v47 = vrot.slane %v1365_v4, 3  ;;  %v5404_v42 = vld [vmem:[#allocation5 + $0x1e0] sm:$0xff]  }
 0x107   : > { %vm1201_vm1 = vmand %vm1165_vm12, %vm1183_vm7  ;;  %4856 = vmatprep.subr.bf16.mxu1 %v5386_v45  ;;  %v6472_v46 = vrot.slane %v1369_v8, 1  ;;  %v1022_v5 = vmul.f32 0.041666668, %v1004_v13  ;;  %v1275_v37 = vmax.f32 %v6462_v19, 0.0  ;;  %v1534_v15 = vrot.slane %v1361_v3, 4  ;;  %v5393_v45 = vld [vmem:[#allocation5 + $0x20] sm:$0xff]  }
 0x108   : > { %v1327_v49 = vsel %vm1201_vm1, %v1273_v62, 0.0  ;;  %v1023_v29 = vmul.f32 0.041666668, %v1005_v17  ;;  %v6482_v38 = vadd.s32 96, %v6062_v7  ;;  %4937 = vmatpush3.bf16.msra.mxu0 %v5396_v10  ;;  %v6488_v0 = vadd.s32 104, %v6062_v7  ;;  %v5405_v4 = vld [vmem:[#allocation5 + $0x1a0] sm:$0xff]  }
 0x109   : > { %v6475_v50 = vpack.c.bf16 %v1327_v49, %v1326_v11  ;;  %v1372_v52 = vsel %vm9180_vm2, %v1367_v43, %v6472_v46  ;;  %v1040_v57 = vfloor.f32 %v1022_v5  ;;  %4938 = vmatprep.subr.bf16.mxu0 %v5400_v22  ;;  %v6485_v53 = vor.u32 %v1534_v15, %v1533_v47  ;;  %v4755_v49 = vld [vmem:[%s6127_s15 + $0x38] sm:$0xff]   ;;  %v5397_v5 = vld [vmem:[#allocation5 + $0x28] sm:$0xff]   ;;  %v5410_v17 = vld [vmem:[#allocation5 + $0x1b0] sm:$0xff]  }
 0x10a   : > { %v1041_v51 = vfloor.f32 %v1023_v29  ;;  %4857 = vmatpush3.bf16.msra.mxu1 %v5387_v35  ;;  %v1538_v62 = vshrl.u32 %v1372_v52, 16  ;;  %v1541_v26 = vshll.u32 %v1372_v52, 16  ;;  %v4655_v59 = vunpack.c.l.bf16 %v6465_v20  ;;  %v5407_v29 = vld [vmem:[#allocation5 + $0x1a8] sm:$0xff]   ;;  %v5409_v52 = vld [vmem:[#allocation5 + $0x1f0] sm:$0xff]  }
 0x10b   : > { %v1432_v32 = vrot.slane %v6475_v50, 1  ;;  %4858 = vmatprep.subr.bf16.mxu1 %v5389_v9  ;;  %v1058_v3 = vmul.f32 24.0, %v1040_v57  ;;  %vm1094_vm8 = vcmp.ge.f32.partialorder %v1040_v57, 1.0  ;;  %vm1112_vm11 = vcmp.le.f32.partialorder %v1040_v57, 16.0 }
 0x10c   : > { %v1059_v27 = vmul.f32 24.0, %v1041_v51  ;;  %vm1095_vm13 = vcmp.ge.f32.partialorder %v1041_v51, 1.0  ;;  %vm1113_vm0 = vcmp.le.f32.partialorder %v1041_v51, 16.0  ;;  %v1540_v35 = vrot.slane %v1538_v62, 3  ;;  %4939 = vmatpush3.bf16.msra.mxu0 %v5402_v28  ;;  %vm6500_vm6 = vmand %vm1094_vm8, %vm1112_vm11 }
 0x10d   : > { %v1433_v1 = vsel %vm9178_vm15, %v1430_v54, %v1432_v32  ;;  %v1076_v11 = vsub.f32 %v986_v60, %v1058_v3  ;;  %4940 = vmatprep.subr.bf16.mxu0 %v5404_v42  ;;  %v5406_v54 = vld [vmem:[#allocation5 + $0x1e8] sm:$0xff]   ;;  %vm6505_vm9 = vmand %vm1095_vm13, %vm1113_vm0  ;;  %v1543_v43 = vrot.slane %v1541_v26, 4  ;;  %v1536_v63 = vsel %vm9179_vm3, %v6389_v58, %v6485_v53  ;;  %v5398_v42 = vld [vmem:[#allocation5 + $0x70] sm:$0xff]  }
 0x10e   : > { %v1569_v9 = vshrl.u32 %v1433_v1, 16  ;;  %v1572_v10 = vshll.u32 %v1433_v1, 16  ;;  %v1077_v13 = vsub.f32 %v987_v56, %v1059_v27  ;;  %4859 = vmatpush3.bf16.msra.mxu1 %v5391_v40  ;;  %v4656_v44 = vunpack.c.h.bf16 %v6465_v20  ;;  %v5395_v56 = vld [vmem:[#allocation5 + $0x68] sm:$0xff]  }
 0x10f   : > { %v6515_v60 = vadd.s32 %v6088_v23, %v6482_v38  ;;  %4860 = vmatprep.subr.bf16.mxu1 %v5392_v55  ;;  %vm1148_vm10 = vcmp.ge.f32.partialorder %v1076_v11, 1.0  ;;  %vm1184_vm7 = vcmp.le.f32.partialorder %v1076_v11, 16.0  ;;  %v6524_v58 = vor.u32 %v1543_v43, %v1540_v35  ;;  %v5401_v43 = vld [vmem:[#allocation5 + $0x78] sm:$0xff]  }
 0x110   : > { %v1571_v47 = vrot.slane %v1569_v9, 3  ;;  %v1574_v28 = vrot.slane %v1572_v10, 4  ;;  %vm1149_vm4 = vcmp.ge.f32.partialorder %v1077_v13, 1.0  ;;  %vm6520_vm14 = vmand %vm6500_vm6, %vm1148_vm10  ;;  %vm1185_vm5 = vcmp.le.f32.partialorder %v1077_v13, 16.0  ;;  %4941 = vmatpush3.bf16.msra.mxu0 %v5405_v4  ;;  %v5399_v10 = vld [vmem:[#allocation5 + $0x30] sm:$0xff]  }
 0x111   : > { %v6528_v20 = vadd.s32 %v6088_v23, %v6488_v0  ;;  %vm1167_vm12 = vmand %vm6505_vm9, %vm1149_vm4  ;;  %v988_v55 = vcvt.s32.f32 %v6515_v60  ;;  %v1240_v57 = vmul.f32 %v4655_v59, %v6159_v61  ;;  %v1241_v51 = vmul.f32 %v4656_v44, %v6159_v61  ;;  %4942 = vmatprep.subr.bf16.mxu0 %v5406_v54 }
 0x112   : > { %v6530_v15 = vor.u32 %v1574_v28, %v1571_v47  ;;  %4861 = vmatpush3.bf16.msra.mxu1 %v5393_v45  ;;  %vm1202_vm1 = vmand %vm6520_vm14, %vm1184_vm7  ;;  %v1545_v62 = vsel %vm9179_vm3, %v6401_v2, %v6524_v58  ;;  %v6544_v3 = vadd.s32 112, %v6062_v7  ;;  %v6547_v27 = vadd.s32 120, %v6062_v7 }
 0x113   : > { %v989_v26 = vcvt.s32.f32 %v6528_v20  ;;  %4862 = vmatprep.subr.bf16.mxu1 %v5395_v56  ;;  %vm1203_vm8 = vmand %vm1167_vm12, %vm1185_vm5  ;;  %v1328_v45 = vsel %vm1202_vm1, %v1274_v30, 0.0  ;;  %1895 = vmatprep.mubr.bf16.mxu0 %v1545_v62  ;;  %v1006_v2 = vadd.f32 0.5, %v988_v55  ;;  %v6556_v1 = vadd.f32 %v6203_v31, %v1240_v57 }
 0x114   : > { %9318 = vst [vmem:[#allocation34_spill] sm:$0xff] %v6544_v3  ;;  %9319 = vst [vmem:[#allocation35_spill] sm:$0xff] %v6547_v27  ;;  %v1576_v59 = vsel %vm9179_vm3, %v6413_v41, %v6530_v15  ;;  %v1329_v35 = vsel %vm1203_vm8, %v1275_v37, 0.0  ;;  %1896 = vmatmul.mubr.bf16.gmra.mrb[4].mxu0 %v1536_v63  ;;  %v6561_v9 = vadd.f32 %v6203_v31, %v1241_v51  ;;  %v4659_v41 = vunpack.c.l.bf16 %v4755_v49 }
 0x115   : > { %5032 = vmatprep.mubr.bf16.mxu1 %v1576_v59  ;;  %v1007_v4 = vadd.f32 0.5, %v989_v26  ;;  %v6563_v11 = vpack.c.bf16 %v1329_v35, %v1328_v45  ;;  %v1024_v6 = vmul.f32 0.041666668, %v1006_v2  ;;  %v1276_v30 = vmax.f32 %v6556_v1, 0.0  ;;  %4943 = vmatpush3.bf16.msra.mxu0 %v5407_v29  ;;  %v5403_v29 = vld [vmem:[#allocation5 + $0x38] sm:$0xff]  }
 0x116   : > { %v4660_v13 = vunpack.c.h.bf16 %v4755_v49  ;;  %4863 = vmatpush3.bf16.msra.mxu1 %v5397_v5  ;;  %v1277_v19 = vmax.f32 %v6561_v9, 0.0  ;;  %v6569_v37 = vadd.s32 %v6088_v23, %v6544_v3  ;;  %v6573_v22 = vadd.s32 %v6088_v23, %v6547_v27  ;;  %4944 = vmatprep.subr.bf16.mxu0 %v5409_v52 }
 0x117   : > { %v1025_v54 = vmul.f32 0.041666668, %v1007_v4  ;;  %4864 = vmatprep.subr.bf16.mxu1 %v5398_v42  ;;  %v1434_v63 = vrot.slane %v6563_v11, 1  ;;  %v1042_v44 = vfloor.f32 %v1024_v6  ;;  %v1242_v60 = vmul.f32 %v4659_v41, %v6159_v61  ;;  %v6586_v42 = vld [vmem:[#allocation5 + $0x80] sm:$0xff]  }
 0x118   : > { %v1243_v56 = vmul.f32 %v4660_v13, %v6159_v61  ;;  %v990_v28 = vcvt.s32.f32 %v6569_v37  ;;  %v991_v49 = vcvt.s32.f32 %v6573_v22  ;;  %v1373_v5 = vshrl.u32 %v6383_v36, 16 }
 0x119   : > { %v1043_v47 = vfloor.f32 %v1025_v54  ;;  %v1435_v40 = vsel %vm9178_vm15, %v1432_v32, %v1434_v63  ;;  %v1060_v20 = vmul.f32 24.0, %v1042_v44  ;;  %vm1096_vm13 = vcmp.ge.f32.partialorder %v1042_v44, 1.0  ;;  %4945 = vmatpush3.bf16.msra.mxu0 %v5410_v17 }
 0x11a   : > { %vm1114_vm11 = vcmp.le.f32.partialorder %v1042_v44, 16.0  ;;  %4865 = vmatpush3.bf16.msra.mxu1 %v5399_v10  ;;  %v1591_v61 = vshrl.u32 %v1435_v40, 16  ;;  %v1594_v52 = vshll.u32 %v1435_v40, 16  ;;  %v1008_v32 = vadd.f32 0.5, %v990_v28  ;;  %v5413_v44 = vld [vmem:[#allocation5 + $0x1b8] sm:$0xff]  }
 0x11b   : > { %v1061_v57 = vmul.f32 24.0, %v1043_v47  ;;  %vm1097_vm0 = vcmp.ge.f32.partialorder %v1043_v47, 1.0  ;;  %4866 = vmatprep.subr.bf16.mxu1 %v5401_v43  ;;  %v1078_v51 = vsub.f32 %v988_v55, %v1060_v20  ;;  %vm1115_vm6 = vcmp.le.f32.partialorder %v1043_v47, 16.0  ;;  %vm6588_vm9 = vmand %vm1096_vm13, %vm1114_vm11 }
 0x11c   : > { %v1009_v59 = vadd.f32 0.5, %v991_v49  ;;  %v1593_v45 = vrot.slane %v1591_v61, 3  ;;  %v1596_v2 = vrot.slane %v1594_v52, 4  ;;  %vm1133_vm10 = vmand %vm1097_vm0, %vm1115_vm6  ;;  %v6597_v4 = vadd.f32 %v6203_v31, %v1242_v60 }
 0x11d   : > { %v1079_v35 = vsub.f32 %v989_v26, %v1061_v57  ;;  %vm1150_vm4 = vcmp.ge.f32.partialorder %v1078_v51, 1.0  ;;  %vm1186_vm14 = vcmp.le.f32.partialorder %v1078_v51, 16.0  ;;  %v1026_v55 = vmul.f32 0.041666668, %v1008_v32  ;;  %v5412_v26 = vld [vmem:[#allocation5 + $0x1f8] sm:$0xff]  }
 0x11e   : > { %v1027_v41 = vmul.f32 0.041666668, %v1009_v59  ;;  %4867 = vmatpush3.bf16.msra.mxu1 %v5403_v29  ;;  %v6599_v10 = vor.u32 %v1596_v2, %v1593_v45  ;;  %vm1168_vm5 = vmand %vm6588_vm9, %vm1150_vm4  ;;  %v6604_v6 = vadd.f32 %v6203_v31, %v1243_v56  ;;  %v1278_v54 = vmax.f32 %v6597_v4, 0.0  ;;  %v4756_v29 = vld [vmem:[%s6127_s15 + $0x40] sm:$0xff]   ;;  %4946 = vmatprep.subr.bf16.mxu0 %v5412_v26 }
 0x11f   : > { %vm1151_vm7 = vcmp.ge.f32.partialorder %v1079_v35, 1.0  ;;  %vm1187_vm12 = vcmp.le.f32.partialorder %v1079_v35, 16.0  ;;  %5044 = vmatprep.subr.bf16.mxu1 %v6586_v42  ;;  %v1044_v13 = vfloor.f32 %v1026_v55  ;;  %v1375_v43 = vor.u32 %v1373_v5, %v6472_v46  ;;  %vm1204_vm8 = vmand %vm1168_vm5, %vm1186_vm14  ;;  %4947 = vmatpush3.bf16.msra.mxu0 %v5413_v44 }
 0x120   : > { %vm1169_vm1 = vmand %vm1133_vm10, %vm1151_vm7  ;;  %v1045_v17 = vfloor.f32 %v1027_v41  ;;  %v1598_v60 = vsel %vm9179_vm3, %v6530_v15, %v6599_v10  ;;  %v1279_v31 = vmax.f32 %v6604_v6, 0.0  ;;  %v1377_v56 = vshll.u32 %v6475_v50, 16 }
 0x121   : > { %v1555_v47 = vrot.slane %v1373_v5, 3  ;;  %5033 = vmatmul.mubr.bf16.gmra.mrb[4].mxu1 %v1598_v60  ;;  %vm1205_vm13 = vmand %vm1169_vm1, %vm1187_vm12  ;;  %v1330_v46 = vsel %vm1204_vm8, %v1276_v30, 0.0  ;;  %v1062_v40 = vmul.f32 24.0, %v1044_v13  ;;  %vm1098_vm11 = vcmp.ge.f32.partialorder %v1044_v13, 1.0 }
 0x122   : > { %v1063_v20 = vmul.f32 24.0, %v1045_v17  ;;  %v1331_v15 = vsel %vm1205_vm13, %v1277_v19, 0.0  ;;  %vm1099_vm0 = vcmp.ge.f32.partialorder %v1045_v17, 1.0  ;;  %vm1116_vm6 = vcmp.le.f32.partialorder %v1044_v13, 16.0 }
 0x123   : > { %vm1117_vm9 = vcmp.le.f32.partialorder %v1045_v17, 16.0  ;;  %v6621_v61 = vpack.c.bf16 %v1331_v15, %v1330_v46  ;;  %v1080_v5 = vsub.f32 %v990_v28, %v1062_v40  ;;  %vm1134_vm10 = vmand %vm1098_vm11, %vm1116_vm6  ;;  %v1379_v1 = vrot.slane %v1377_v56, 1  ;;  %v6673_v15 = vld [vmem:[#allocation8] ss:$0 sm:$0xff] }
 0x124   : > { %v1081_v52 = vsub.f32 %v991_v49, %v1063_v20  ;;  %vm6629_vm4 = vmand %vm1099_vm0, %vm1117_vm9  ;;  %v1556_v9 = vrot.slane %v1369_v8, 4  ;;  %v6636_v19 = vadd.s32 128, %v6062_v7  ;;  %v6639_v37 = vadd.s32 136, %v6062_v7 }
 0x125   : > { %v4663_v28 = vunpack.c.l.bf16 %v4756_v29  ;;  %v1436_v22 = vrot.slane %v6621_v61, 1  ;;  %vm1152_vm14 = vcmp.ge.f32.partialorder %v1080_v5, 1.0  ;;  %vm1188_vm5 = vcmp.le.f32.partialorder %v1080_v5, 16.0 }
 0x126   : > { %9324 = vst [vmem:[#allocation36_spill] sm:$0xff] %v6636_v19  ;;  %9325 = vst [vmem:[#allocation37_spill] sm:$0xff] %v6639_v37  ;;  %vm1153_vm7 = vcmp.ge.f32.partialorder %v1081_v52, 1.0  ;;  %vm1189_vm1 = vcmp.le.f32.partialorder %v1081_v52, 16.0  ;;  %v1380_v49 = vsel %vm9180_vm2, %v1375_v43, %v1379_v1  ;;  %v6643_v57 = vor.u32 %v1556_v9, %v1555_v47  ;;  %v6662_v47 = vld [vmem:[#allocation7] ss:$0 sm:$0xff] }
 0x127   : > { %vm1170_vm12 = vmand %vm1134_vm10, %vm1152_vm14  ;;  %v4664_v36 = vunpack.c.h.bf16 %v4756_v29  ;;  %v1437_v8 = vsel %vm9178_vm15, %v1434_v63, %v1436_v22  ;;  %v1560_v51 = vshrl.u32 %v1380_v49, 16  ;;  %v1563_v62 = vshll.u32 %v1380_v49, 16 }
 0x128   : > { %vm1171_vm8 = vmand %vm6629_vm4, %vm1153_vm7  ;;  %v974_v32 = vadd.s32 %v6088_v23, %v6636_v19  ;;  %v1613_v59 = vshrl.u32 %v1437_v8, 16  ;;  %v1616_v45 = vshll.u32 %v1437_v8, 16  ;;  %v1558_v2 = vsel %vm9179_vm3, %v6485_v53, %v6643_v57 }
 0x129   : > { %vm1206_vm13 = vmand %vm1170_vm12, %vm1188_vm5  ;;  %v975_v35 = vadd.s32 %v6088_v23, %v6639_v37  ;;  %v1562_v4 = vrot.slane %v1560_v51, 3  ;;  %v1565_v55 = vrot.slane %v1563_v62, 4  ;;  %v1244_v53 = vmul.f32 %v6662_v47, %v4663_v28 }
 0x12a   : > { %vm1207_vm11 = vmand %vm1171_vm8, %vm1189_vm1  ;;  %v1332_v63 = vsel %vm1206_vm13, %v1278_v54, 0.0  ;;  %v992_v41 = vcvt.s32.f32 %v974_v32  ;;  %v1615_v6 = vrot.slane %v1613_v59, 3  ;;  %v1618_v26 = vrot.slane %v1616_v45, 4 }
 0x12b   : > { %v1333_v13 = vsel %vm1207_vm11, %v1279_v31, 0.0  ;;  %v993_v17 = vcvt.s32.f32 %v975_v35  ;;  %v6660_v44 = vor.u32 %v1565_v55, %v1562_v4  ;;  %v1245_v54 = vmul.f32 %v6662_v47, %v4664_v36 }
 0x12c   : > { %v6658_v43 = vpack.c.bf16 %v1333_v13, %v1332_v63  ;;  %v1010_v60 = vadd.f32 0.5, %v992_v41  ;;  %v1619_v23 = vor.u32 %v1618_v26, %v1615_v6  ;;  %v1381_v46 = vshrl.u32 %v6475_v50, 16 }
 0x12d   : > { %v1011_v29 = vadd.f32 0.5, %v993_v17  ;;  %v1567_v40 = vsel %vm9179_vm3, %v6524_v58, %v6660_v44  ;;  %v1262_v5 = vadd.f32 %v6673_v15, %v1244_v53  ;;  %v1263_v9 = vadd.f32 %v6673_v15, %v1245_v54  ;;  %v6710_v54 = vld [vmem:[%s6689_s11 + $0x8] sm:$0xff]  }
 0x12e   : > { %v1438_v31 = vrot.slane %v6658_v43, 1  ;;  %v1028_v20 = vmul.f32 0.041666668, %v1010_v60  ;;  %v1620_v52 = vsel %vm9179_vm3, %v6599_v10, %v1619_v23  ;;  %1903 = vmatprep.mubr.bf16.mxu0 %v1567_v40  ;;  %v1383_v58 = vor.u32 %v1381_v46, %v1379_v1 }
 0x12f   : > { %v1029_v30 = vmul.f32 0.041666668, %v1011_v29  ;;  %5036 = vmatprep.mubr.bf16.mxu1 %v1620_v52  ;;  %1904 = vmatmul.mubr.bf16.gmra.mrb[8].mxu0 %v1558_v2  ;;  %v9169_v36 = vshll.u32 %v6563_v11, 16  ;;  %v1280_v10 = vmax.f32 %v1262_v5, 0.0  ;;  %v1577_v4 = vrot.slane %v1381_v46, 3  ;;  %v6707_v29 = vld [vmem:[%s6689_s11] sm:$0xff]  }
 0x130   : > { %v1439_v28 = vsel %vm9178_vm15, %v1436_v22, %v1438_v31  ;;  %v1046_v49 = vfloor.f32 %v1028_v20  ;;  %v1578_v53 = vrot.slane %v1377_v56, 4  ;;  %v6723_v5 = vstv %s383_s29 }
 0x131   : > { %v1635_v8 = vshrl.u32 %v1439_v28, 16  ;;  %v1638_v51 = vshll.u32 %v1439_v28, 16  ;;  %v1047_v62 = vfloor.f32 %v1029_v30  ;;  %v6686_v59 = vrot.slane %v9169_v36, 1 }
 0x132   : > { %v1064_v32 = vmul.f32 24.0, %v1046_v49  ;;  %vm1100_vm0 = vcmp.ge.f32.partialorder %v1046_v49, 1.0  ;;  %vm1118_vm6 = vcmp.le.f32.partialorder %v1046_v49, 16.0  ;;  %v6718_v50 = vor.u32 %v1578_v53, %v1577_v4 }
 0x133   : > { %v1637_v22 = vrot.slane %v1635_v8, 3  ;;  %v1640_v45 = vrot.slane %v1638_v51, 4  ;;  %v1065_v2 = vmul.f32 24.0, %v1047_v62  ;;  %vm1101_vm9 = vcmp.ge.f32.partialorder %v1047_v62, 1.0  ;;  %vm6691_vm4 = vmand %vm1100_vm0, %vm1118_vm6 }
 0x134   : > { %v1082_v1 = vsub.f32 %v992_v41, %v1064_v32  ;;  %vm1119_vm10 = vcmp.le.f32.partialorder %v1047_v62, 16.0  ;;  %v1388_v63 = vsel %vm9180_vm2, %v1383_v58, %v6686_v59  ;;  %v1281_v41 = vmax.f32 %v1263_v9, 0.0 }
 0x135   : > { %v6697_v55 = vor.u32 %v1640_v45, %v1637_v22  ;;  %v1083_v6 = vsub.f32 %v993_v17, %v1065_v2  ;;  %vm6699_vm14 = vmand %vm1101_vm9, %vm1119_vm10  ;;  %v1582_v13 = vshrl.u32 %v1388_v63, 16  ;;  %v1585_v60 = vshll.u32 %v1388_v63, 16 }
 0x136   : > { %vm1154_vm7 = vcmp.ge.f32.partialorder %v1082_v1, 1.0  ;;  %vm1190_vm5 = vcmp.le.f32.partialorder %v1082_v1, 16.0  ;;  %v1580_v9 = vsel %vm9179_vm3, %v6643_v57, %v6718_v50  ;;  %v6732_v28 = vadd.s32 %v6723_v5, %v6062_v7 }
 0x137   : > { %v1642_v17 = vsel %vm9179_vm3, %v1619_v23, %v6697_v55  ;;  %vm1155_vm12 = vcmp.ge.f32.partialorder %v1083_v6, 1.0  ;;  %vm1172_vm1 = vmand %vm6691_vm4, %vm1154_vm7  ;;  %vm1191_vm8 = vcmp.le.f32.partialorder %v1083_v6, 16.0  ;;  %v1584_v46 = vrot.slane %v1582_v13, 3 }
 0x138   : > { %5037 = vmatmul.mubr.bf16.gmra.mrb[8].mxu1 %v1642_v17  ;;  %vm1173_vm13 = vmand %vm6699_vm14, %vm1155_vm12  ;;  %v1587_v40 = vrot.slane %v1585_v60, 4  ;;  %v386_v58 = vadd.s32 %v6723_v5, %v6070_v12  ;;  %v387_v8 = vadd.s32 %v6723_v5, %v6073_v14  ;;  %v6740_v51 = vadd.s32 %v6723_v5, %v6076_v16 }
 0x139   : > { %vm1208_vm11 = vmand %vm1172_vm1, %vm1190_vm5  ;;  %v390_v32 = vadd.s32 %v6723_v5, %v6083_v21  ;;  %v403_v22 = vcvt.s32.f32 %v6732_v28  ;;  %v6759_v28 = vld [vmem:[%s6689_s11 + $0x10] sm:$0xff]  }
 0x13a   : > { %vm1209_vm0 = vmand %vm1173_vm13, %vm1191_vm8  ;;  %v1334_v52 = vsel %vm1208_vm11, %v1280_v10, 0.0  ;;  %v6725_v30 = vor.u32 %v1587_v40, %v1584_v46  ;;  %v389_v10 = vadd.s32 %v6723_v5, %v6079_v18  ;;  %v404_v45 = vcvt.s32.f32 %v386_v58 }
 0x13b   : > { %v1335_v49 = vsel %vm1209_vm0, %v1281_v41, 0.0  ;;  %v405_v2 = vcvt.s32.f32 %v387_v8  ;;  %v406_v1 = vcvt.s32.f32 %v6740_v51  ;;  %v408_v4 = vcvt.s32.f32 %v390_v32 }
 0x13c   : > { %v6742_v62 = vpack.c.bf16 %v1335_v49, %v1334_v52  ;;  %v1589_v57 = vsel %vm9179_vm3, %v6660_v44, %v6725_v30  ;;  %v407_v44 = vcvt.s32.f32 %v389_v10  ;;  %v421_v6 = vadd.f32 0.5, %v403_v22 }
 0x13d   : > { %1911 = vmatprep.mubr.bf16.mxu0 %v1589_v57  ;;  %v422_v26 = vadd.f32 0.5, %v404_v45  ;;  %v423_v13 = vadd.f32 0.5, %v405_v2  ;;  %v424_v60 = vadd.f32 0.5, %v406_v1  ;;  %v4603_v27 = vunpack.c.l.bf16 %v6759_v28 }
 0x13e   : > { %v1440_v35 = vrot.slane %v6742_v62, 1  ;;  %1912 = vmatmul.mubr.bf16.gmra.mrb[12].mxu0 %v1580_v9  ;;  %v425_v46 = vadd.f32 0.5, %v407_v44  ;;  %v426_v9 = vadd.f32 0.5, %v408_v4  ;;  %v439_v49 = vmul.f32 0.041666668, %v421_v6 }
 0x13f   : > { %v440_v51 = vmul.f32 0.041666668, %v422_v26  ;;  %v441_v57 = vmul.f32 0.041666668, %v423_v13  ;;  %v442_v36 = vmul.f32 0.041666668, %v424_v60 }
 0x140   : > { %v1441_v41 = vsel %vm9178_vm15, %v1438_v31, %v1440_v35  ;;  %v1679_v53 = vshrl.u32 %v1440_v35, 16  ;;  %v1682_v17 = vshll.u32 %v1440_v35, 16  ;;  %v443_v63 = vmul.f32 0.041666668, %v425_v46 }
 0x141   : > { %v1657_v40 = vshrl.u32 %v1441_v41, 16  ;;  %v1660_v52 = vshll.u32 %v1441_v41, 16  ;;  %v444_v20 = vmul.f32 0.041666668, %v426_v9  ;;  %v457_v31 = vfloor.f32 %v439_v49 }
 0x142   : > { %v1681_v58 = vrot.slane %v1679_v53, 3  ;;  %v1684_v8 = vrot.slane %v1682_v17, 4  ;;  %v458_v56 = vfloor.f32 %v440_v51  ;;  %v459_v37 = vfloor.f32 %v441_v57 }
 0x143   : > { %v1659_v10 = vrot.slane %v1657_v40, 3  ;;  %v1662_v32 = vrot.slane %v1660_v52, 4  ;;  %v460_v19 = vfloor.f32 %v442_v36  ;;  %v461_v41 = vfloor.f32 %v443_v63 }
 0x144   : > { %v1685_v23 = vor.u32 %v1684_v8, %v1681_v58  ;;  %v462_v3 = vfloor.f32 %v444_v20  ;;  %v475_v6 = vmul.f32 24.0, %v457_v31  ;;  %v476_v53 = vmul.f32 24.0, %v458_v56 }
 0x145   : > { %v1663_v35 = vor.u32 %v1662_v32, %v1659_v10  ;;  %v477_v60 = vmul.f32 24.0, %v459_v37  ;;  %v478_v17 = vmul.f32 24.0, %v460_v19  ;;  %v4604_v46 = vunpack.c.h.bf16 %v6759_v28 }
 0x146   : > { %v479_v40 = vmul.f32 24.0, %v461_v41  ;;  %v480_v52 = vmul.f32 24.0, %v462_v3  ;;  %v9330_v36 = vunpack.c.l.bf16 %v6707_v29  ;;  %v6769_v20 = vsub.f32 %v403_v22, %v475_v6  ;;  %v4743_v6 = vld [vmem:[%s6689_s11 + $0x18] sm:$0xff]  }
 0x147   : > { %v1664_v26 = vsel %vm9179_vm3, %v6697_v55, %v1663_v35  ;;  %v1686_v13 = vsel %vm9179_vm3, %v1663_v35, %v1685_v23  ;;  %v6771_v9 = vsub.f32 %v404_v45, %v476_v53  ;;  %v6773_v49 = vsub.f32 %v405_v2, %v477_v60  ;;  %v6785_v45 = vld [vmem:[#allocation5 + $0x200] sm:$0xff]  }
 0x148   : > { %5040 = vmatprep.mubr.bf16.mxu1 %v1664_v26  ;;  %v662_v63 = vmul.f32 %v6662_v47, %v9330_v36  ;;  %vm511_vm6 = vcmp.ge.f32.partialorder %v457_v31, 1.0  ;;  %v6775_v55 = vsub.f32 %v406_v1, %v478_v17  ;;  %v6777_v23 = vsub.f32 %v407_v44, %v479_v40  ;;  %5076 = vmatprep.subr.bf16.mxu0 %v6785_v45 }
 0x149   : > { %5041 = vmatmul.mubr.bf16.gmra.mrb[12].mxu1 %v1686_v13  ;;  %v6779_v58 = vsub.f32 %v408_v4, %v480_v52  ;;  %vm512_vm9 = vcmp.ge.f32.partialorder %v458_v56, 1.0  ;;  %vm513_vm10 = vcmp.ge.f32.partialorder %v459_v37, 1.0  ;;  %vm529_vm4 = vcmp.le.f32.partialorder %v457_v31, 16.0 }
 0x14a   : > { %vm530_vm14 = vcmp.le.f32.partialorder %v458_v56, 16.0  ;;  %vm531_vm7 = vcmp.le.f32.partialorder %v459_v37, 16.0  ;;  %vm514_vm5 = vcmp.ge.f32.partialorder %v460_v19, 1.0  ;;  %vm532_vm8 = vcmp.le.f32.partialorder %v460_v19, 16.0  ;;  %vm6781_vm13 = vmand %vm511_vm6, %vm529_vm4 }
 0x14b   : > { %vm533_vm11 = vcmp.le.f32.partialorder %v461_v41, 16.0  ;;  %vm534_vm0 = vcmp.le.f32.partialorder %v462_v3, 16.0  ;;  %vm6787_vm15 = vmand %vm512_vm9, %vm530_vm14  ;;  %vm565_vm3 = vcmp.ge.f32.partialorder %v6769_v20, 1.0  ;;  %vm567_vm6 = vcmp.ge.f32.partialorder %v6773_v49, 1.0 }
 0x14c   : > { %vm6794_vm12 = vmand %vm513_vm10, %vm531_vm7  ;;  %vm568_vm4 = vcmp.ge.f32.partialorder %v6775_v55, 1.0  ;;  %vm601_vm10 = vcmp.le.f32.partialorder %v6769_v20, 16.0  ;;  %vm602_vm7 = vcmp.le.f32.partialorder %v6771_v9, 16.0  ;;  %v9339_v37 = vunpack.c.h.bf16 %v6707_v29 }
 0x14d   : > { %vm6804_vm14 = vmand %vm514_vm5, %vm532_vm8  ;;  %vm9340_vm1 = vcmp.ge.f32.partialorder %v461_v41, 1.0  ;;  %v9343_v19 = vunpack.c.l.bf16 %v6710_v54  ;;  %v9344_v8 = vunpack.c.h.bf16 %v6710_v54  ;;  %v666_v29 = vmul.f32 %v6662_v47, %v4603_v27 }
 0x14e   : > { %v663_v44 = vmul.f32 %v6662_v47, %v9339_v37  ;;  %vm6816_vm9 = vmand %vm9340_vm1, %vm533_vm11  ;;  %v667_v57 = vmul.f32 %v6662_v47, %v4604_v46  ;;  %vm9345_vm1 = vcmp.ge.f32.partialorder %v462_v3, 1.0  ;;  %v687_v32 = vadd.f32 %v6673_v15, %v662_v63 }
 0x14f   : > { %v664_v28 = vmul.f32 %v6662_v47, %v9343_v19  ;;  %v665_v51 = vmul.f32 %v6662_v47, %v9344_v8  ;;  %vm6831_vm8 = vmand %vm9345_vm1, %vm534_vm0  ;;  %v1389_v35 = vshrl.u32 %v6563_v11, 16  ;;  %v1393_v54 = vshll.u32 %v6621_v61, 16 }
 0x150   : > { %v688_v31 = vadd.f32 %v6673_v15, %v663_v44  ;;  %vm6843_vm11 = vmand %vm6781_vm13, %vm565_vm3  ;;  %vm605_vm0 = vcmp.le.f32.partialorder %v6777_v23, 16.0  ;;  %vm606_vm1 = vcmp.le.f32.partialorder %v6779_v58, 16.0  ;;  %vm9350_vm5 = vcmp.ge.f32.partialorder %v6771_v9, 1.0 }
 0x151   : > { %v689_v3 = vadd.f32 %v6673_v15, %v664_v28  ;;  %v690_v41 = vadd.f32 %v6673_v15, %v665_v51  ;;  %vm6856_vm2 = vmand %vm6787_vm15, %vm9350_vm5  ;;  %v691_v26 = vadd.f32 %v6673_v15, %v666_v29  ;;  %v692_v13 = vadd.f32 %v6673_v15, %v667_v57 }
 0x152   : > { %v1391_v60 = vor.u32 %v1389_v35, %v6686_v59  ;;  %v6865_v17 = vrot.slane %v1393_v54, 1  ;;  %vm6871_vm3 = vmand %vm6794_vm12, %vm567_vm6  ;;  %v705_v40 = vmax.f32 %v687_v32, 0.0  ;;  %v706_v52 = vmax.f32 %v688_v31, 0.0 }
 0x153   : > { %v707_v36 = vmax.f32 %v689_v3, 0.0  ;;  %v708_v63 = vmax.f32 %v690_v41, 0.0  ;;  %vm6879_vm15 = vmand %vm6804_vm14, %vm568_vm4  ;;  %vm9357_vm13 = vsmask.f32 7424  ;;  %v1599_v2 = vrot.slane %v1389_v35, 3 }
 0x154   : > { %v1396_v22 = vsel %vm9357_vm13, %v1391_v60, %v6865_v17  ;;  %v9358_v56 = vshll.u32 %v6563_v11, 16  ;;  %v4607_v44 = vunpack.c.l.bf16 %v4743_v6  ;;  %vm9359_vm12 = vcmp.ge.f32.partialorder %v6777_v23, 1.0  ;;  %vm620_vm5 = vmand %vm6856_vm2, %vm602_vm7 }
 0x155   : > { %vm6891_vm6 = vmand %vm6816_vm9, %vm9359_vm12  ;;  %v1604_v1 = vshrl.u32 %v1396_v22, 16  ;;  %v1607_v28 = vshll.u32 %v1396_v22, 16  ;;  %v4608_v8 = vunpack.c.h.bf16 %v4743_v6  ;;  %v391_v51 = vadd.s32 %v6723_v5, %v6091_v24 }
 0x156   : > { %v1600_v37 = vrot.slane %v9358_v56, 4  ;;  %vm9362_vm4 = vcmp.ge.f32.partialorder %v6779_v58, 1.0  ;;  %v709_v29 = vmax.f32 %v691_v26, 0.0  ;;  %v392_v57 = vadd.s32 %v6723_v5, %v6118_v33  ;;  %vm619_vm9 = vmand %vm6843_vm11, %vm601_vm10 }
 0x157   : > { %vm6901_vm14 = vmand %vm6831_vm8, %vm9362_vm4  ;;  %v668_v32 = vmul.f32 %v6662_v47, %v4607_v44  ;;  %v1606_v31 = vrot.slane %v1604_v1, 3  ;;  %v1609_v35 = vrot.slane %v1607_v28, 4  ;;  %v409_v10 = vcvt.s32.f32 %v391_v51 }
 0x158   : > { %v6905_v4 = vor.u32 %v1600_v37, %v1599_v2  ;;  %v669_v3 = vmul.f32 %v6662_v47, %v4608_v8  ;;  %v710_v41 = vmax.f32 %v692_v13, 0.0  ;;  %v759_v6 = vsel %vm619_vm9, %v705_v40, 0.0 }
 0x159   : > { %v410_v26 = vcvt.s32.f32 %v392_v57  ;;  %v1397_v60 = vshrl.u32 %v6621_v61, 16  ;;  %vm9365_vm8 = vcmp.le.f32.partialorder %v6773_v49, 16.0  ;;  %v760_v20 = vsel %vm620_vm5, %v706_v52, 0.0 }
 0x15a   : > { %vm621_vm10 = vmand %vm6871_vm3, %vm9365_vm8  ;;  %v6924_v27 = vor.u32 %v1609_v35, %v1606_v31  ;;  %v427_v22 = vadd.f32 0.5, %v409_v10  ;;  %v6927_v2 = vadd.f32 %v6673_v15, %v668_v32  ;;  %vm9366_vm11 = vcmp.le.f32.partialorder %v6775_v55, 16.0 }
 0x15b   : > { %vm622_vm2 = vmand %vm6879_vm15, %vm9366_vm11  ;;  %v761_v9 = vsel %vm621_vm10, %v707_v36, 0.0  ;;  %v6933_v53 = vpack.c.bf16 %v760_v20, %v759_v6  ;;  %vm9367_vm7 = vsmask.f32 4352  ;;  %v428_v13 = vadd.f32 0.5, %v410_v26 }
 0x15c   : > { %v1602_v49 = vsel %vm9367_vm7, %v6718_v50, %v6905_v4  ;;  %vm623_vm3 = vmand %vm6891_vm6, %vm605_vm0  ;;  %v762_v46 = vsel %vm622_vm2, %v708_v63, 0.0  ;;  %v445_v40 = vmul.f32 0.041666668, %v427_v22  ;;  %v6946_v52 = vadd.f32 %v6673_v15, %v669_v3 }
 0x15d   : > { %vm9368_vm13 = vmmov %vm9367_vm7  ;;  %v763_v50 = vsel %vm623_vm3, %v709_v29, 0.0  ;;  %v6952_v36 = vpack.c.bf16 %v762_v46, %v761_v9  ;;  %v788_v23 = vshrl.u32 %v6933_v53, 16  ;;  %v790_v63 = vshll.u32 %v6933_v53, 16 }
 0x15e   : > { %v1611_v55 = vsel %vm9368_vm13, %v6725_v30, %v6924_v27  ;;  %vm624_vm15 = vmand %vm6901_vm14, %vm606_vm1  ;;  %v446_v30 = vmul.f32 0.041666668, %v428_v13  ;;  %v463_v56 = vfloor.f32 %v445_v40  ;;  %v711_v37 = vmax.f32 %v6927_v2, 0.0 }
 0x15f   : > { %1919 = vmatprep.mubr.bf16.mxu0 %v1611_v55  ;;  %v764_v59 = vsel %vm624_vm15, %v710_v41, 0.0  ;;  %v792_v58 = vrot.slane %v790_v63, 1  ;;  %v795_v19 = vshll.u32 %v6952_v36, 16  ;;  %v799_v1 = vshrl.u32 %v6952_v36, 16 }
 0x160   : > { %1920 = vmatmul.mubr.bf16.gmra.mrb[16].mxu0 %v1602_v49  ;;  %v6957_v44 = vpack.c.bf16 %v764_v59, %v763_v50  ;;  %v2049_v28 = vrot.slane %v788_v23, 3  ;;  %v2050_v8 = vrot.slane %v790_v63, 4  ;;  %v464_v51 = vfloor.f32 %v446_v30 }
 0x161   : > { %v481_v11 = vmul.f32 24.0, %v463_v56  ;;  %v793_v29 = vor.u32 %v792_v58, %v788_v23  ;;  %v797_v57 = vrot.slane %v795_v19, 1  ;;  %v2052_v31 = vrot.slane %v799_v1, 3  ;;  %v4744_v58 = vld [vmem:[%s6689_s11 + $0x20] sm:$0xff]  }
 0x162   : > { %v803_v32 = vshll.u32 %v6957_v44, 16  ;;  %v2051_v35 = vor.u32 %v2050_v8, %v2049_v28  ;;  %v2053_v3 = vrot.slane %v795_v19, 4  ;;  %v482_v41 = vmul.f32 24.0, %v464_v51 }
 0x163   : > { %v499_v6 = vsub.f32 %v409_v10, %v481_v11  ;;  %vm9369_vm0 = vsmask.f32 7424  ;;  %v801_v22 = vor.u32 %v799_v1, %v797_v57  ;;  %vm517_vm1 = vcmp.ge.f32.partialorder %v463_v56, 1.0 }
 0x164   : > { %v798_v20 = vsel %vm9369_vm0, %v793_v29, %v797_v57  ;;  %v805_v2 = vrot.slane %v803_v32, 1  ;;  %v6963_v13 = vor.u32 %v2053_v3, %v2052_v31  ;;  %v500_v46 = vsub.f32 %v410_v26, %v482_v41  ;;  %vm9370_vm12 = vmmov %vm9369_vm0 }
 0x165   : > { %v2057_v9 = vshrl.u32 %v798_v20, 16  ;;  %v2060_v49 = vshll.u32 %v798_v20, 16  ;;  %vm518_vm6 = vcmp.ge.f32.partialorder %v464_v51, 1.0  ;;  %vm535_vm4 = vcmp.le.f32.partialorder %v463_v56, 16.0 }
 0x166   : > { %v806_v55 = vsel %vm9370_vm12, %v801_v22, %v805_v2  ;;  %vm536_vm14 = vcmp.le.f32.partialorder %v464_v51, 16.0  ;;  %vm553_vm9 = vmand %vm517_vm1, %vm535_vm4  ;;  %vm571_vm8 = vcmp.ge.f32.partialorder %v499_v6, 1.0  ;;  %vm572_vm10 = vcmp.ge.f32.partialorder %v500_v46, 1.0 }
 0x167   : > { %v2059_v40 = vrot.slane %v2057_v9, 3  ;;  %v2062_v50 = vrot.slane %v2060_v49, 4  ;;  %v2065_v23 = vshrl.u32 %v806_v55, 16  ;;  %v2068_v10 = vshll.u32 %v806_v55, 16  ;;  %vm554_vm5 = vmand %vm518_vm6, %vm536_vm14 }
 0x168   : > { %vm607_vm11 = vcmp.le.f32.partialorder %v499_v6, 16.0  ;;  %v712_v63 = vmax.f32 %v6946_v52, 0.0  ;;  %vm589_vm2 = vmand %vm553_vm9, %vm571_vm8  ;;  %vm608_vm7 = vcmp.le.f32.partialorder %v500_v46, 16.0  ;;  %v807_v56 = vshrl.u32 %v6957_v44, 16 }
 0x169   : > { %v2063_v59 = vor.u32 %v2062_v50, %v2059_v40  ;;  %v2067_v30 = vrot.slane %v2065_v23, 3  ;;  %v2070_v26 = vrot.slane %v2068_v10, 4  ;;  %vm590_vm3 = vmand %vm554_vm5, %vm572_vm10  ;;  %v1399_v19 = vor.u32 %v1397_v60, %v6865_v17 }
 0x16a   : > { %v1401_v1 = vshll.u32 %v6658_v43, 16  ;;  %v1621_v28 = vrot.slane %v1397_v60, 3  ;;  %v2055_v52 = vsel %vm9368_vm13, %v2051_v35, %v6963_v13  ;;  %vm625_vm15 = vmand %vm589_vm2, %vm607_vm11  ;;  %v2091_v51 = vrot.slane %v803_v32, 4  ;;  %v5411_v32 = vld [vmem:[#allocation5 + $0x88] sm:$0xff]  }
 0x16b   : > { %v6975_v8 = vor.u32 %v2070_v26, %v2067_v30  ;;  %v1622_v11 = vrot.slane %v1393_v54, 4  ;;  %vm626_vm0 = vmand %vm590_vm3, %vm608_vm7  ;;  %v765_v29 = vsel %vm625_vm15, %v711_v37, 0.0  ;;  %v2090_v57 = vrot.slane %v807_v56, 3  ;;  %v5414_v30 = vld [vmem:[#allocation5 + $0x90] sm:$0xff]  }
 0x16c   : > { %v6984_v17 = vrot.slane %v1401_v1, 1  ;;  %v4611_v31 = vunpack.c.l.bf16 %v4744_v58  ;;  %vm9371_vm1 = vmmov %vm9368_vm13  ;;  %v766_v3 = vsel %vm626_vm0, %v712_v63, 0.0  ;;  %v4612_v41 = vunpack.c.h.bf16 %v4744_v58 }
 0x16d   : > { %v2072_v60 = vsel %vm9371_vm1, %v2063_v59, %v6975_v8  ;;  %v393_v35 = vadd.s32 %v6723_v5, %v6306_v34  ;;  %v6990_v61 = vpack.c.bf16 %v766_v3, %v765_v29  ;;  %v6994_v37 = vor.u32 %v1622_v11, %v1621_v28  ;;  %vm9372_vm6 = vmmov %vm9371_vm1  ;;  %v5416_v3 = vld [vmem:[#allocation5 + $0x98] sm:$0xff]  }
 0x16e   : > { %2444 = vmatprep.mubr.bf16.mxu1 %v2072_v60  ;;  %v1404_v54 = vsel %vm9370_vm12, %v1399_v19, %v6984_v17  ;;  %v394_v6 = vadd.s32 %v6723_v5, %v6309_v39  ;;  %v6998_v20 = vor.u32 %v2091_v51, %v2090_v57  ;;  %v809_v46 = vor.u32 %v807_v56, %v805_v2  ;;  %vm9373_vm4 = vmmov %vm9371_vm1 }
 0x16f   : > { %2445 = vmatmul.mubr.bf16.vlgmr.msra.gmra.mrb[16].mxu1 %v2055_v52  ;;  %v1626_v22 = vshrl.u32 %v1404_v54, 16  ;;  %v1629_v9 = vshll.u32 %v1404_v54, 16  ;;  %v411_v49 = vcvt.s32.f32 %v393_v35  ;;  %v811_v55 = vshll.u32 %v6990_v61, 16  ;;  %vm9374_vm14 = vmmov %vm9370_vm12 }
 0x170   : > { %v412_v40 = vcvt.s32.f32 %v394_v6  ;;  %v670_v50 = vmul.f32 %v6662_v47, %v4611_v31  ;;  %5045 = vmatpush3.bf16.msra.mxu1 %v6586_v42  ;;  %v671_v59 = vmul.f32 %v6662_v47, %v4612_v41  ;;  %v1624_v58 = vsel %vm9372_vm6, %v6905_v4, %v6994_v37  ;;  %vm9375_vm9 = vmmov %vm9371_vm1 }
 0x171   : > { %v1628_v23 = vrot.slane %v1626_v22, 3  ;;  %v1631_v10 = vrot.slane %v1629_v9, 4  ;;  %v429_v63 = vadd.f32 0.5, %v411_v49  ;;  %5046 = vmatprep.subr.bf16.mxu1 %v5411_v32  ;;  %v813_v26 = vrot.slane %v811_v55, 1  ;;  %vm9380_vm3 = vmmov %vm9371_vm1 }
 0x172   : > { %v430_v2 = vadd.f32 0.5, %v412_v40  ;;  %v7008_v56 = vadd.f32 %v6673_v15, %v670_v50  ;;  %v2093_v42 = vsel %vm9373_vm4, %v6963_v13, %v6998_v20  ;;  %v815_v52 = vshrl.u32 %v6990_v61, 16 }
 0x173   : > { %v7013_v19 = vor.u32 %v1631_v10, %v1628_v23  ;;  %v447_v28 = vmul.f32 0.041666668, %v429_v63  ;;  %v814_v51 = vsel %vm9374_vm14, %v809_v46, %v813_v26  ;;  %v7018_v29 = vadd.f32 %v6673_v15, %v671_v59  ;;  %v5418_v63 = vld [vmem:[#allocation5 + $0xa0] sm:$0xff]   ;;  %vm9381_vm14 = vmmov %vm9380_vm3 }
 0x174   : > { %v448_v11 = vmul.f32 0.041666668, %v430_v2  ;;  %v2113_v4 = vrot.slane %v811_v55, 4  ;;  %5047 = vmatpush3.bf16.msra.mxu1 %v5411_v32  ;;  %v2095_v57 = vshrl.u32 %v814_v51, 16  ;;  %v2098_v31 = vshll.u32 %v814_v51, 16 }
 0x175   : > { %v1633_v60 = vsel %vm9375_vm9, %v6924_v27, %v7013_v19  ;;  %v465_v13 = vfloor.f32 %v447_v28  ;;  %5048 = vmatprep.subr.bf16.mxu1 %v5414_v30  ;;  %v713_v35 = vmax.f32 %v7008_v56, 0.0  ;;  %v2112_v54 = vrot.slane %v815_v52, 3  ;;  %v4745_v56 = vld [vmem:[%s6689_s11 + $0x28] sm:$0xff]  }
 0x176   : > { %1927 = vmatprep.mubr.bf16.mxu0 %v1633_v60  ;;  %v466_v41 = vfloor.f32 %v448_v11  ;;  %v1405_v6 = vshrl.u32 %v6658_v43, 16  ;;  %v2097_v22 = vrot.slane %v2095_v57, 3  ;;  %v2100_v9 = vrot.slane %v2098_v31, 4 }
 0x177   : > { %1928 = vmatmul.mubr.bf16.gmra.mrb[20].mxu0 %v1624_v58  ;;  %v483_v32 = vmul.f32 24.0, %v465_v13  ;;  %vm519_vm5 = vcmp.ge.f32.partialorder %v465_v13, 1.0  ;;  %vm537_vm10 = vcmp.le.f32.partialorder %v465_v13, 16.0  ;;  %v7031_v23 = vor.u32 %v2113_v4, %v2112_v54 }
 0x178   : > { %v484_v46 = vmul.f32 24.0, %v466_v41  ;;  %vm520_vm8 = vcmp.ge.f32.partialorder %v466_v41, 1.0  ;;  %vm538_vm11 = vcmp.le.f32.partialorder %v466_v41, 16.0  ;;  %5049 = vmatpush3.bf16.msra.mxu1 %v5414_v30  ;;  %v7025_v27 = vor.u32 %v2100_v9, %v2097_v22  ;;  %vm7027_vm2 = vmand %vm519_vm5, %vm537_vm10 }
 0x179   : > { %v501_v55 = vsub.f32 %v411_v49, %v483_v32  ;;  %v1407_v10 = vor.u32 %v1405_v6, %v6984_v17  ;;  %5050 = vmatprep.subr.bf16.mxu1 %v5416_v3  ;;  %vm7034_vm7 = vmand %vm520_vm8, %vm538_vm11  ;;  %v1409_v30 = vshll.u32 %v6742_v62, 16  ;;  %v1643_v2 = vrot.slane %v1405_v6, 3 }
 0x17a   : > { %v502_v59 = vsub.f32 %v412_v40, %v484_v46  ;;  %v1644_v49 = vrot.slane %v1401_v1, 4  ;;  %v2102_v28 = vsel %vm9380_vm3, %v6975_v8, %v7025_v27  ;;  %v7045_v17 = vor.u32 %v815_v52, %v813_v26  ;;  %v5420_v52 = vld [vmem:[#allocation5 + $0xa8] sm:$0xff]   ;;  %v5421_v46 = vld [vmem:[#allocation5 + $0xb0] sm:$0xff]   ;;  %vm9383_vm8 = vmmov %vm9380_vm3 }
 0x17b   : > { %vm573_vm13 = vcmp.ge.f32.partialorder %v501_v55, 1.0  ;;  %vm609_vm15 = vcmp.le.f32.partialorder %v501_v55, 16.0  ;;  %2452 = vmatprep.mubr.bf16.mxu1 %v2102_v28  ;;  %v714_v40 = vmax.f32 %v7018_v29, 0.0  ;;  %v1411_v51 = vrot.slane %v1409_v30, 1  ;;  %vm9384_vm10 = vmmov %vm9380_vm3 }
 0x17c   : > { %vm574_vm0 = vcmp.ge.f32.partialorder %v502_v59, 1.0  ;;  %vm591_vm1 = vmand %vm7027_vm2, %vm573_vm13  ;;  %vm610_vm12 = vcmp.le.f32.partialorder %v502_v59, 16.0  ;;  %5051 = vmatpush3.bf16.msra.mxu1 %v5416_v3  ;;  %v4615_v43 = vunpack.c.l.bf16 %v4745_v56  ;;  %v4616_v1 = vunpack.c.h.bf16 %v4745_v56 }
 0x17d   : > { %2453 = vmatmul.mubr.bf16.gmra.mrb[20].mxu1 %v2093_v42  ;;  %vm592_vm6 = vmand %vm7034_vm7, %vm574_vm0  ;;  %v395_v8 = vadd.s32 %v6723_v5, %v6410_v25  ;;  %v7056_v26 = vadd.s32 %v6723_v5, %v6419_v48  ;;  %5052 = vmatprep.subr.bf16.mxu1 %v5418_v63  ;;  %v7062_v42 = vsel %vm9381_vm14, %v6998_v20, %v7031_v23  ;;  %vm9382_vm9 = vsmask.f32 7424 }
 0x17e   : > { %vm627_vm4 = vmand %vm591_vm1, %vm609_vm15  ;;  %v1412_v11 = vsel %vm9382_vm9, %v1407_v10, %v1411_v51  ;;  %v7065_v29 = vor.u32 %v1644_v49, %v1643_v2  ;;  %v1413_v4 = vshrl.u32 %v6742_v62, 16  ;;  %v672_v54 = vmul.f32 %v6662_v47, %v4615_v43 }
 0x17f   : > { %vm628_vm5 = vmand %vm592_vm6, %vm610_vm12  ;;  %v767_v57 = vsel %vm627_vm4, %v713_v35, 0.0  ;;  %v1648_v31 = vshrl.u32 %v1412_v11, 16  ;;  %v1651_v60 = vshll.u32 %v1412_v11, 16  ;;  %v413_v13 = vcvt.s32.f32 %v395_v8 }
 0x180   : > { %v768_v3 = vsel %vm628_vm5, %v714_v40, 0.0  ;;  %v414_v41 = vcvt.s32.f32 %v7056_v26  ;;  %v673_v20 = vmul.f32 %v6662_v47, %v4616_v1  ;;  %5053 = vmatpush3.bf16.msra.mxu1 %v5418_v63  ;;  %v1646_v35 = vsel %vm9383_vm8, %v6994_v37, %v7065_v29  ;;  %vm9385_vm11 = vmmov %vm9382_vm9 }
 0x181   : > { %v7072_v6 = vpack.c.bf16 %v768_v3, %v767_v57  ;;  %v1650_v22 = vrot.slane %v1648_v31, 3  ;;  %v1653_v9 = vrot.slane %v1651_v60, 4  ;;  %v431_v32 = vadd.f32 0.5, %v413_v13  ;;  %5054 = vmatprep.subr.bf16.mxu1 %v5420_v52  ;;  %vm9390_vm5 = vmmov %vm9383_vm8 }
 0x182   : > { %v432_v55 = vadd.f32 0.5, %v414_v41  ;;  %v1415_v50 = vor.u32 %v1413_v4, %v1411_v51  ;;  %v7079_v10 = vrot.slane %v1409_v30, 4  ;;  %v7087_v56 = vadd.f32 %v6673_v15, %v672_v54 }
 0x183   : > { %v819_v59 = vshll.u32 %v7072_v6, 16  ;;  %v7082_v63 = vor.u32 %v1653_v9, %v1650_v22  ;;  %v449_v58 = vmul.f32 0.041666668, %v431_v32  ;;  %v823_v2 = vshrl.u32 %v7072_v6, 16 }
 0x184   : > { %v450_v49 = vmul.f32 0.041666668, %v432_v55  ;;  %v7090_v37 = vadd.f32 %v6673_v15, %v673_v20  ;;  %v1670_v28 = vshrl.u32 %v1415_v50, 16  ;;  %5055 = vmatpush3.bf16.msra.mxu1 %v5420_v52  ;;  %v1673_v11 = vshll.u32 %v1415_v50, 16  ;;  %v5423_v55 = vld [vmem:[#allocation5 + $0xb8] sm:$0xff]  }
 0x185   : > { %v7092_v40 = vrot.slane %v819_v59, 1  ;;  %v1655_v30 = vsel %vm9384_vm10, %v7013_v19, %v7082_v63  ;;  %v467_v51 = vfloor.f32 %v449_v58  ;;  %v2134_v43 = vrot.slane %v823_v2, 3  ;;  %5056 = vmatprep.subr.bf16.mxu1 %v5421_v46  ;;  %vm9391_vm10 = vmmov %vm9390_vm5 }
 0x186   : > { %1935 = vmatprep.mubr.bf16.mxu0 %v1655_v30  ;;  %v468_v1 = vfloor.f32 %v450_v49  ;;  %v2135_v8 = vrot.slane %v819_v59, 4  ;;  %v1672_v26 = vrot.slane %v1670_v28, 3  ;;  %v715_v20 = vmax.f32 %v7087_v56, 0.0 }
 0x187   : > { %v822_v52 = vsel %vm9385_vm11, %v7045_v17, %v7092_v40  ;;  %1936 = vmatmul.mubr.bf16.gmra.mrb[24].mxu0 %v1646_v35  ;;  %v485_v57 = vmul.f32 24.0, %v467_v51  ;;  %vm521_vm2 = vcmp.ge.f32.partialorder %v467_v51, 1.0  ;;  %vm539_vm7 = vcmp.le.f32.partialorder %v467_v51, 16.0 }
 0x188   : > { %v2117_v19 = vshrl.u32 %v822_v52, 16  ;;  %v2120_v31 = vshll.u32 %v822_v52, 16  ;;  %v486_v60 = vmul.f32 24.0, %v468_v1  ;;  %vm522_vm3 = vcmp.ge.f32.partialorder %v468_v1, 1.0  ;;  %5057 = vmatpush3.bf16.msra.mxu1 %v5421_v46  ;;  %vm7104_vm15 = vmand %vm521_vm2, %vm539_vm7 }
 0x189   : > { %v503_v3 = vsub.f32 %v413_v13, %v485_v57  ;;  %vm540_vm13 = vcmp.le.f32.partialorder %v468_v1, 16.0  ;;  %v716_v17 = vmax.f32 %v7090_v37, 0.0  ;;  %v1675_v46 = vrot.slane %v1673_v11, 4  ;;  %v4746_v13 = vld [vmem:[%s6689_s11 + $0x30] sm:$0xff]   ;;  %5058 = vmatprep.subr.bf16.mxu1 %v5423_v55  ;;  %vm9392_vm2 = vmmov %vm9390_vm5  ;;  %v7154_v11 = vld [vmem:[%s7125_s25 + $0x8] sm:$0xff]  }
 0x18a   : > { %v2119_v22 = vrot.slane %v2117_v19, 3  ;;  %v2122_v9 = vrot.slane %v2120_v31, 4  ;;  %v504_v32 = vsub.f32 %v414_v41, %v486_v60  ;;  %vm7111_vm0 = vmand %vm522_vm3, %vm540_vm13  ;;  %v7116_v50 = vor.u32 %v2135_v8, %v2134_v43  ;;  %v7167_v19 = vld [vmem:[%s7125_s25 + $0x10] sm:$0xff]  }
 0x18b   : > { %vm575_vm1 = vcmp.ge.f32.partialorder %v503_v3, 1.0  ;;  %vm611_vm12 = vcmp.le.f32.partialorder %v503_v3, 16.0  ;;  %v1665_v59 = vrot.slane %v1413_v4, 3  ;;  %v1676_v41 = vor.u32 %v1675_v46, %v1672_v26  ;;  %vm9393_vm7 = vmmov %vm9392_vm2 }
 0x18c   : > { %v7120_v58 = vor.u32 %v2122_v9, %v2119_v22  ;;  %vm576_vm6 = vcmp.ge.f32.partialorder %v504_v32, 1.0  ;;  %vm593_vm4 = vmand %vm7104_vm15, %vm575_vm1  ;;  %vm612_vm14 = vcmp.le.f32.partialorder %v504_v32, 16.0  ;;  %v4619_v56 = vunpack.c.l.bf16 %v4746_v13  ;;  %5059 = vmatpush3.bf16.msra.mxu1 %v5423_v55 }
 0x18d   : > { %vm594_vm9 = vmand %vm7111_vm0, %vm576_vm6  ;;  %v1667_v49 = vor.u32 %v7079_v10, %v1665_v59  ;;  %v4620_v62 = vunpack.c.h.bf16 %v4746_v13  ;;  %v397_v4 = vadd.s32 %v6723_v5, %v6482_v38  ;;  %v1677_v28 = vsel %vm9391_vm10, %v7082_v63, %v1676_v41  ;;  %5108 = vmatprep.subr.bf16.mxu1 %v6785_v45  ;;  %v7146_v63 = vld [vmem:[%s7125_s25] sm:$0xff]  }
 0x18e   : > { %v2124_v37 = vsel %vm9390_vm5, %v7025_v27, %v7120_v58  ;;  %vm629_vm8 = vmand %vm593_vm4, %vm611_vm12  ;;  %v398_v30 = vadd.s32 %v6723_v5, %v6488_v0  ;;  %1943 = vmatprep.mubr.bf16.mxu0 %v1677_v28  ;;  %v674_v43 = vmul.f32 %v6662_v47, %v4619_v56  ;;  %v825_v45 = vor.u32 %v823_v2, %v7092_v40 }
 0x18f   : > { %2460 = vmatprep.mubr.bf16.mxu1 %v2124_v37  ;;  %vm630_vm11 = vmand %vm594_vm9, %vm612_vm14  ;;  %v769_v10 = vsel %vm629_vm8, %v715_v20, 0.0  ;;  %v1668_v27 = vsel %vm9392_vm2, %v7065_v29, %v1667_v49  ;;  %v415_v51 = vcvt.s32.f32 %v397_v4  ;;  %v675_v26 = vmul.f32 %v6662_v47, %v4620_v62 }
 0x190   : > { %2461 = vmatmul.mubr.bf16.gmra.mrb[24].mxu1 %v7062_v42  ;;  %v770_v1 = vsel %vm630_vm11, %v716_v17, 0.0  ;;  %1944 = vmatmul.mubr.bf16.gmra.mrb[28].mxu0 %v1668_v27  ;;  %v416_v8 = vcvt.s32.f32 %v398_v30  ;;  %v7161_v52 = vsel %vm9393_vm7, %v7031_v23, %v7116_v50  ;;  %v7164_v42 = vadd.f32 %v6673_v15, %v674_v43  ;;  %vm9395_vm11 = vmmov %vm9392_vm2 }
 0x191   : > { %v7156_v29 = vpack.c.bf16 %v770_v1, %v769_v10  ;;  %v433_v57 = vadd.f32 0.5, %v415_v51  ;;  %v7171_v40 = vadd.f32 %v6673_v15, %v675_v26  ;;  %v4667_v47 = vunpack.c.l.bf16 %v7146_v63 }
 0x192   : > { %v434_v2 = vadd.f32 0.5, %v416_v8  ;;  %v4668_v31 = vunpack.c.h.bf16 %v7146_v63  ;;  %v4671_v23 = vunpack.c.l.bf16 %v7154_v11  ;;  %v4672_v54 = vunpack.c.h.bf16 %v7154_v11 }
 0x193   : > { %v827_v60 = vshll.u32 %v7156_v29, 16  ;;  %v451_v3 = vmul.f32 0.041666668, %v433_v57  ;;  %v831_v17 = vshrl.u32 %v7156_v29, 16  ;;  %v7180_v9 = vstv %s2629_s7 }
 0x194   : > { %v452_v20 = vmul.f32 0.041666668, %v434_v2  ;;  %v717_v35 = vmax.f32 %v7164_v42, 0.0  ;;  %v718_v46 = vmax.f32 %v7171_v40, 0.0  ;;  %v7188_v41 = vadd.s32 %v7180_v9, %v6062_v7 }
 0x195   : > { %v829_v15 = vrot.slane %v827_v60, 1  ;;  %v469_v32 = vfloor.f32 %v451_v3  ;;  %v2156_v55 = vrot.slane %v831_v17, 3  ;;  %v2157_v59 = vrot.slane %v827_v60, 4 }
 0x196   : > { %v470_v13 = vfloor.f32 %v452_v20  ;;  %vm9394_vm3 = vsmask.f32 7424  ;;  %v7193_v30 = vadd.s32 %v7180_v9, %v6070_v12  ;;  %v7197_v10 = vadd.s32 %v7180_v9, %v6073_v14 }
 0x197   : > { %v830_v49 = vsel %vm9394_vm3, %v825_v45, %v829_v15  ;;  %v487_v56 = vmul.f32 24.0, %v469_v32  ;;  %vm523_vm13 = vcmp.ge.f32.partialorder %v469_v32, 1.0  ;;  %vm541_vm15 = vcmp.le.f32.partialorder %v469_v32, 16.0  ;;  %vm9396_vm3 = vmmov %vm9395_vm11 }
 0x198   : > { %v2139_v62 = vshrl.u32 %v830_v49, 16  ;;  %v2142_v4 = vshll.u32 %v830_v49, 16  ;;  %v488_v37 = vmul.f32 24.0, %v470_v13  ;;  %vm524_vm0 = vcmp.ge.f32.partialorder %v470_v13, 1.0  ;;  %vm559_vm12 = vmand %vm523_vm13, %vm541_vm15 }
 0x199   : > { %v505_v28 = vsub.f32 %v415_v51, %v487_v56  ;;  %vm542_vm1 = vcmp.le.f32.partialorder %v470_v13, 16.0  ;;  %v7201_v45 = vadd.s32 %v7180_v9, %v6076_v16  ;;  %v7206_v26 = vadd.s32 %v7180_v9, %v6079_v18 }
 0x19a   : > { %v2141_v27 = vrot.slane %v2139_v62, 3  ;;  %v2144_v43 = vrot.slane %v2142_v4, 4  ;;  %v506_v1 = vsub.f32 %v416_v8, %v488_v37  ;;  %vm560_vm6 = vmand %vm524_vm0, %vm542_vm1  ;;  %v2636_v8 = vadd.s32 %v7180_v9, %v6083_v21 }
 0x19b   : > { %vm577_vm4 = vcmp.ge.f32.partialorder %v505_v28, 1.0  ;;  %vm613_vm14 = vcmp.le.f32.partialorder %v505_v28, 16.0  ;;  %v2649_v42 = vcvt.s32.f32 %v7188_v41  ;;  %v2650_v2 = vcvt.s32.f32 %v7193_v30 }
 0x19c   : > { %v7208_v57 = vor.u32 %v2144_v43, %v2141_v27  ;;  %vm578_vm9 = vcmp.ge.f32.partialorder %v506_v1, 1.0  ;;  %vm595_vm5 = vmand %vm559_vm12, %vm577_vm4  ;;  %vm614_vm8 = vcmp.le.f32.partialorder %v506_v1, 16.0  ;;  %v2651_v40 = vcvt.s32.f32 %v7197_v10 }
 0x19d   : > { %vm596_vm10 = vmand %vm560_vm6, %vm578_vm9  ;;  %v2652_v60 = vcvt.s32.f32 %v7201_v45  ;;  %v7219_v20 = vor.u32 %v2157_v59, %v2156_v55  ;;  %v2653_v32 = vcvt.s32.f32 %v7206_v26  ;;  %v2654_v13 = vcvt.s32.f32 %v2636_v8 }
 0x19e   : > { %v2146_v3 = vsel %vm9395_vm11, %v7120_v58, %v7208_v57  ;;  %vm631_vm2 = vmand %vm595_vm5, %vm613_vm14  ;;  %v2667_v41 = vadd.f32 0.5, %v2649_v42  ;;  %v2668_v56 = vadd.f32 0.5, %v2650_v2  ;;  %v2669_v62 = vadd.f32 0.5, %v2651_v40 }
 0x19f   : > { %2468 = vmatprep.mubr.bf16.mxu1 %v2146_v3  ;;  %vm632_vm7 = vmand %vm596_vm10, %vm614_vm8  ;;  %v771_v49 = vsel %vm631_vm2, %v717_v35, 0.0  ;;  %v2670_v37 = vadd.f32 0.5, %v2652_v60  ;;  %v2671_v28 = vadd.f32 0.5, %v2653_v32  ;;  %v2672_v30 = vadd.f32 0.5, %v2654_v13 }
 0x1a0   : > { %2469 = vmatmul.mubr.bf16.gmra.mrb[28].mxu1 %v7161_v52  ;;  %v772_v4 = vsel %vm632_vm7, %v718_v46, 0.0  ;;  %v2685_v58 = vmul.f32 0.041666668, %v2667_v41  ;;  %v2686_v55 = vmul.f32 0.041666668, %v2668_v56  ;;  %v833_v27 = vor.u32 %v831_v17, %v829_v15 }
 0x1a1   : > { %v7223_v10 = vpack.c.bf16 %v772_v4, %v771_v49  ;;  %v2687_v59 = vmul.f32 0.041666668, %v2669_v62  ;;  %v2688_v43 = vmul.f32 0.041666668, %v2670_v37  ;;  %v2689_v1 = vmul.f32 0.041666668, %v2671_v28 }
 0x1a2   : > { %v2690_v35 = vmul.f32 0.041666668, %v2672_v30  ;;  %v2703_v26 = vfloor.f32 %v2685_v58  ;;  %v2704_v8 = vfloor.f32 %v2686_v55  ;;  %v2159_v46 = vsel %vm9396_vm3, %v7116_v50, %v7219_v20  ;;  %v7235_v30 = vld [vmem:[#allocation7] ss:$0 sm:$0xff] }
 0x1a3   : > { %v9181_v45 = vshll.u32 %v7223_v10, 16  ;;  %v2705_v52 = vfloor.f32 %v2687_v59  ;;  %v2706_v3 = vfloor.f32 %v2688_v43  ;;  %v2707_v49 = vfloor.f32 %v2689_v1 }
 0x1a4   : > { %v2708_v41 = vfloor.f32 %v2690_v35  ;;  %v2721_v17 = vmul.f32 24.0, %v2703_v26  ;;  %v2722_v15 = vmul.f32 24.0, %v2704_v8  ;;  %v2901_v58 = vmul.f32 %v7235_v30, %v4667_v47 }
 0x1a5   : > { %v7233_v56 = vrot.slane %v9181_v45, 1  ;;  %v2723_v62 = vmul.f32 24.0, %v2705_v52  ;;  %v2724_v4 = vmul.f32 24.0, %v2706_v3  ;;  %v2725_v37 = vmul.f32 24.0, %v2707_v49 }
 0x1a6   : > { %v2726_v28 = vmul.f32 24.0, %v2708_v41  ;;  %vm9397_vm13 = vsmask.f32 7424  ;;  %vm2757_vm15 = vcmp.ge.f32.partialorder %v2703_v26, 1.0  ;;  %v2902_v55 = vmul.f32 %v7235_v30, %v4668_v31 }
 0x1a7   : > { %v838_v50 = vsel %vm9397_vm13, %v833_v27, %v7233_v56  ;;  %v2903_v59 = vmul.f32 %v7235_v30, %v4671_v23  ;;  %v7248_v35 = vsub.f32 %v2649_v42, %v2721_v17  ;;  %v7250_v45 = vsub.f32 %v2650_v2, %v2722_v15  ;;  %v7310_v17 = vld [vmem:[#allocation8] ss:$0 sm:$0xff] }
 0x1a8   : > { %v2161_v43 = vshrl.u32 %v838_v50, 16  ;;  %v2164_v1 = vshll.u32 %v838_v50, 16  ;;  %v7252_v51 = vsub.f32 %v2651_v40, %v2723_v62  ;;  %v7254_v47 = vsub.f32 %v2652_v60, %v2724_v4 }
 0x1a9   : > { %v7256_v27 = vsub.f32 %v2653_v32, %v2725_v37  ;;  %v7258_v22 = vsub.f32 %v2654_v13, %v2726_v28  ;;  %vm2758_vm0 = vcmp.ge.f32.partialorder %v2704_v8, 1.0  ;;  %vm2759_vm1 = vcmp.ge.f32.partialorder %v2705_v52, 1.0  ;;  %v4747_v32 = vld [vmem:[%s6689_s11 + $0x38] sm:$0xff]  }
 0x1aa   : > { %v2163_v63 = vrot.slane %v2161_v43, 3  ;;  %v2166_v31 = vrot.slane %v2164_v1, 4  ;;  %vm2760_vm12 = vcmp.ge.f32.partialorder %v2706_v3, 1.0  ;;  %vm2775_vm6 = vcmp.le.f32.partialorder %v2703_v26, 16.0  ;;  %v9421_v1 = vld [vmem:[#allocation35_spill] sm:$0xff] }
 0x1ab   : > { %vm2776_vm4 = vcmp.le.f32.partialorder %v2704_v8, 16.0  ;;  %vm2777_vm14 = vcmp.le.f32.partialorder %v2705_v52, 16.0  ;;  %vm2778_vm8 = vcmp.le.f32.partialorder %v2706_v3, 16.0  ;;  %vm7263_vm10 = vmand %vm2757_vm15, %vm2775_vm6  ;;  %vm2779_vm11 = vcmp.le.f32.partialorder %v2707_v49, 16.0 }
 0x1ac   : > { %v7260_v23 = vor.u32 %v2166_v31, %v2163_v63  ;;  %vm2780_vm2 = vcmp.le.f32.partialorder %v2708_v41, 16.0  ;;  %vm7267_vm7 = vmand %vm2758_vm0, %vm2776_vm4  ;;  %vm2811_vm3 = vcmp.ge.f32.partialorder %v7248_v35, 1.0  ;;  %vm9402_vm9 = vsmask.f32 4352  ;;  %v7351_v31 = vld [vmem:[%s7125_s25 + $0x18] sm:$0xff]  }
 0x1ad   : > { %vm7277_vm5 = vmand %vm2759_vm1, %vm2777_vm14  ;;  %vm2815_vm6 = vcmp.ge.f32.partialorder %v7256_v27, 1.0  ;;  %vm2847_vm1 = vcmp.le.f32.partialorder %v7248_v35, 16.0  ;;  %vm2848_vm14 = vcmp.le.f32.partialorder %v7250_v45, 16.0  ;;  %vm2849_vm13 = vcmp.le.f32.partialorder %v7252_v51, 16.0 }
 0x1ae   : > { %v2168_v40 = vsel %vm9402_vm9, %v7208_v57, %v7260_v23  ;;  %vm7286_vm4 = vmand %vm2760_vm12, %vm2778_vm8  ;;  %vm2816_vm9 = vcmp.ge.f32.partialorder %v7258_v22, 1.0  ;;  %vm9407_vm0 = vcmp.ge.f32.partialorder %v2707_v49, 1.0  ;;  %v2904_v26 = vmul.f32 %v7235_v30, %v4672_v54 }
 0x1af   : > { %2476 = vmatprep.mubr.bf16.mxu1 %v2168_v40  ;;  %vm7296_vm15 = vmand %vm9407_vm0, %vm2779_vm11  ;;  %v9410_v8 = vunpack.c.l.bf16 %v7167_v19  ;;  %v9411_v3 = vunpack.c.h.bf16 %v7167_v19  ;;  %v2919_v49 = vadd.f32 %v7310_v17, %v2901_v58  ;;  %vm9412_vm8 = vcmp.ge.f32.partialorder %v2708_v41, 1.0 }
 0x1b0   : > { %2477 = vmatmul.mubr.bf16.gmra.mrb[32].mxu1 %v2159_v46  ;;  %vm7315_vm11 = vmand %vm9412_vm8, %vm2780_vm2  ;;  %v2920_v11 = vadd.f32 %v7310_v17, %v2902_v55  ;;  %v2921_v54 = vadd.f32 %v7310_v17, %v2903_v59  ;;  %v4623_v19 = vunpack.c.l.bf16 %v4747_v32  ;;  %v4624_v62 = vunpack.c.h.bf16 %v4747_v32  ;;  %v9420_v59 = vld [vmem:[#allocation34_spill] sm:$0xff] }
 0x1b1   : > { %v2905_v52 = vmul.f32 %v7235_v30, %v9410_v8  ;;  %v2906_v46 = vmul.f32 %v7235_v30, %v9411_v3  ;;  %vm7326_vm12 = vmand %vm7263_vm10, %vm2811_vm3  ;;  %vm2852_vm2 = vcmp.le.f32.partialorder %v7258_v22, 16.0  ;;  %v2922_v41 = vadd.f32 %v7310_v17, %v2904_v26 }
 0x1b2   : > { %vm9417_vm8 = vcmp.ge.f32.partialorder %v7250_v45, 1.0  ;;  %v2937_v50 = vmax.f32 %v2919_v49, 0.0  ;;  %v2938_v55 = vmax.f32 %v2920_v11, 0.0  ;;  %v7344_v43 = vadd.s32 %v6723_v5, %v9420_v59 }
 0x1b3   : > { %v2923_v37 = vadd.f32 %v7310_v17, %v2905_v52  ;;  %v2924_v28 = vadd.f32 %v7310_v17, %v2906_v46  ;;  %vm7338_vm0 = vmand %vm7267_vm7, %vm9417_vm8  ;;  %v7348_v63 = vadd.s32 %v6723_v5, %v9421_v1  ;;  %vm9422_vm10 = vcmp.ge.f32.partialorder %v7252_v51, 1.0 }
 0x1b4   : > { %vm7357_vm7 = vmand %vm7277_vm5, %vm9422_vm10  ;;  %v2939_v2 = vmax.f32 %v2921_v54, 0.0  ;;  %v2940_v40 = vmax.f32 %v2922_v41, 0.0  ;;  %v676_v26 = vmul.f32 %v7235_v30, %v4623_v19  ;;  %vm9425_vm3 = vcmp.ge.f32.partialorder %v7254_v47, 1.0 }
 0x1b5   : > { %v2941_v32 = vmax.f32 %v2923_v37, 0.0  ;;  %vm7366_vm8 = vmand %vm7286_vm4, %vm9425_vm3  ;;  %v417_v52 = vcvt.s32.f32 %v7344_v43  ;;  %v418_v60 = vcvt.s32.f32 %v7348_v63  ;;  %v677_v3 = vmul.f32 %v7235_v30, %v4624_v62 }
 0x1b6   : > { %v839_v46 = vshrl.u32 %v7223_v10, 16  ;;  %vm7378_vm5 = vmand %vm7296_vm15, %vm2815_vm6  ;;  %v2942_v13 = vmax.f32 %v2924_v28, 0.0  ;;  %v7383_v11 = vadd.f32 %v7310_v17, %v676_v26  ;;  %v9430_v54 = vshll.u32 %v7223_v10, 16 }
 0x1b7   : > { %vm7392_vm4 = vmand %vm7315_vm11, %vm2816_vm9  ;;  %v435_v57 = vadd.f32 0.5, %v417_v52  ;;  %v436_v37 = vadd.f32 0.5, %v418_v60  ;;  %v7397_v28 = vadd.f32 %v7310_v17, %v677_v3  ;;  %v7409_v26 = vadd.s32 %v7180_v9, %v6091_v24 }
 0x1b8   : > { %v2179_v19 = vrot.slane %v9430_v54, 4  ;;  %vm2865_vm15 = vmand %vm7326_vm12, %vm2847_vm1  ;;  %v7405_v63 = vor.u32 %v839_v46, %v7233_v56  ;;  %v2178_v15 = vrot.slane %v839_v46, 3  ;;  %v7413_v54 = vadd.s32 %v7180_v9, %v6118_v33 }
 0x1b9   : > { %vm2866_vm6 = vmand %vm7338_vm0, %vm2848_vm14  ;;  %v2991_v35 = vsel %vm2865_vm15, %v2937_v50, 0.0  ;;  %v453_v4 = vmul.f32 0.041666668, %v435_v57  ;;  %v454_v3 = vmul.f32 0.041666668, %v436_v37  ;;  %v9183_v41 = vcvt.s32.f32 %v7409_v26 }
 0x1ba   : > { %vm2867_vm9 = vmand %vm7357_vm7, %vm2849_vm13  ;;  %v2992_v46 = vsel %vm2866_vm6, %v2938_v55, 0.0  ;;  %v9182_v45 = vcvt.s32.f32 %v7413_v54  ;;  %vm9433_vm1 = vcmp.le.f32.partialorder %v7254_v47, 16.0  ;;  %vm9434_vm12 = vcmp.le.f32.partialorder %v7256_v27, 16.0 }
 0x1bb   : > { %vm2868_vm14 = vmand %vm7366_vm8, %vm9433_vm1  ;;  %v2993_v58 = vsel %vm2867_vm9, %v2939_v2, 0.0  ;;  %v7431_v50 = vpack.c.bf16 %v2992_v46, %v2991_v35  ;;  %v471_v57 = vfloor.f32 %v453_v4  ;;  %v472_v51 = vfloor.f32 %v454_v3 }
 0x1bc   : > { %vm2869_vm13 = vmand %vm7378_vm5, %vm9434_vm12  ;;  %v2994_v55 = vsel %vm2868_vm14, %v2940_v40, 0.0  ;;  %v7437_v42 = vor.u32 %v2179_v19, %v2178_v15  ;;  %v2673_v37 = vadd.f32 0.5, %v9183_v41  ;;  %v2674_v47 = vadd.f32 0.5, %v9182_v45 }
 0x1bd   : > { %vm2870_vm11 = vmand %vm7392_vm4, %vm2852_vm2  ;;  %v2995_v2 = vsel %vm2869_vm13, %v2941_v32, 0.0  ;;  %v7447_v8 = vpack.c.bf16 %v2994_v55, %v2993_v58  ;;  %v3019_v27 = vshrl.u32 %v7431_v50, 16  ;;  %v3021_v40 = vshll.u32 %v7431_v50, 16 }
 0x1be   : > { %v2996_v49 = vsel %vm2870_vm11, %v2942_v13, 0.0  ;;  %v489_v19 = vmul.f32 24.0, %v471_v57  ;;  %v490_v15 = vmul.f32 24.0, %v472_v51  ;;  %vm525_vm0 = vcmp.ge.f32.partialorder %v471_v57, 1.0 }
 0x1bf   : > { %v7451_v35 = vpack.c.bf16 %v2996_v49, %v2995_v2  ;;  %v3023_v4 = vrot.slane %v3021_v40, 1  ;;  %v3026_v3 = vshll.u32 %v7447_v8, 16  ;;  %v3030_v22 = vshrl.u32 %v7447_v8, 16 }
 0x1c0   : > { %v3164_v62 = vrot.slane %v3019_v27, 3  ;;  %v3165_v46 = vrot.slane %v3021_v40, 4  ;;  %v507_v32 = vsub.f32 %v417_v52, %v489_v19  ;;  %v508_v58 = vsub.f32 %v418_v60, %v490_v15 }
 0x1c1   : > { %v3024_v55 = vor.u32 %v3023_v4, %v3019_v27  ;;  %v3028_v45 = vrot.slane %v3026_v3, 1  ;;  %v3034_v41 = vshll.u32 %v7451_v35, 16  ;;  %v3167_v43 = vrot.slane %v3030_v22, 3 }
 0x1c2   : > { %v3166_v13 = vor.u32 %v3165_v46, %v3164_v62  ;;  %v3168_v56 = vrot.slane %v3026_v3, 4  ;;  %vm526_vm2 = vcmp.ge.f32.partialorder %v472_v51, 1.0  ;;  %vm543_vm10 = vcmp.le.f32.partialorder %v471_v57, 16.0 }
 0x1c3   : > { %vm9435_vm7 = vsmask.f32 7424  ;;  %v3032_v49 = vor.u32 %v3030_v22, %v3028_v45  ;;  %v7459_v33 = vrot.slane %v3034_v41, 1  ;;  %vm544_vm3 = vcmp.le.f32.partialorder %v472_v51, 16.0  ;;  %vm561_vm8 = vmand %vm525_vm0, %vm543_vm10 }
 0x1c4   : > { %v3029_v2 = vsel %vm9435_vm7, %v3024_v55, %v3028_v45  ;;  %v7462_v27 = vor.u32 %v3168_v56, %v3167_v43  ;;  %vm562_vm5 = vmand %vm526_vm2, %vm544_vm3  ;;  %vm579_vm4 = vcmp.ge.f32.partialorder %v507_v32, 1.0  ;;  %vm580_vm6 = vcmp.ge.f32.partialorder %v508_v58, 1.0 }
 0x1c5   : > { %v3172_v52 = vshrl.u32 %v3029_v2, 16  ;;  %v3175_v60 = vshll.u32 %v3029_v2, 16  ;;  %vm9436_vm15 = vmmov %vm9435_vm7  ;;  %vm615_vm1 = vcmp.le.f32.partialorder %v507_v32, 16.0  ;;  %vm616_vm14 = vcmp.le.f32.partialorder %v508_v58, 16.0 }
 0x1c6   : > { %v3037_v40 = vsel %vm9436_vm15, %v3032_v49, %v7459_v33  ;;  %vm597_vm9 = vmand %vm561_vm8, %vm579_vm4  ;;  %vm9437_vm13 = vsmask.f32 4352  ;;  %v2691_v43 = vmul.f32 0.041666668, %v2673_v37  ;;  %v2692_v56 = vmul.f32 0.041666668, %v2674_v47 }
 0x1c7   : > { %v3174_v45 = vrot.slane %v3172_v52, 3  ;;  %v3177_v19 = vrot.slane %v3175_v60, 4  ;;  %v3180_v15 = vshrl.u32 %v3037_v40, 16  ;;  %v3183_v4 = vshll.u32 %v3037_v40, 16  ;;  %vm598_vm12 = vmand %vm562_vm5, %vm580_vm6 }
 0x1c8   : > { %v3170_v57 = vsel %vm9437_vm13, %v3166_v13, %v7462_v27  ;;  %vm633_vm11 = vmand %vm597_vm9, %vm615_vm1  ;;  %v9438_v51 = vunpack.c.l.bf16 %v7351_v31  ;;  %v9439_v32 = vmax.f32 %v7383_v11, 0.0  ;;  %v9440_v55 = vmax.f32 %v7397_v28, 0.0 }
 0x1c9   : > { %v3178_v22 = vor.u32 %v3177_v19, %v3174_v45  ;;  %v3182_v62 = vrot.slane %v3180_v15, 3  ;;  %v3185_v46 = vrot.slane %v3183_v4, 4  ;;  %vm634_vm0 = vmand %vm598_vm12, %vm616_vm14  ;;  %v2709_v49 = vfloor.f32 %v2691_v43 }
 0x1ca   : > { %v2907_v3 = vmul.f32 %v7235_v30, %v9438_v51  ;;  %v773_v58 = vsel %vm633_vm11, %v9439_v32, 0.0  ;;  %v774_v2 = vsel %vm634_vm0, %v9440_v55, 0.0  ;;  %v2710_v52 = vfloor.f32 %v2692_v56  ;;  %vm9442_vm7 = vmmov %vm9437_vm13  ;;  %v7510_v55 = vld [vmem:[#allocation5 + $0x200] sm:$0xff]  }
 0x1cb   : > { %v9441_v13 = vunpack.c.h.bf16 %v7351_v31  ;;  %v7478_v47 = vor.u32 %v3185_v46, %v3182_v62  ;;  %v7480_v60 = vpack.c.bf16 %v774_v2, %v773_v58  ;;  %v3038_v45 = vshrl.u32 %v7451_v35, 16  ;;  %v4748_v62 = vld [vmem:[%s6689_s11 + $0x40] sm:$0xff]   ;;  %vm9447_vm4 = vmmov %vm9442_vm7 }
 0x1cc   : > { %v2925_v40 = vadd.f32 %v7310_v17, %v2907_v3  ;;  %v2727_v11 = vmul.f32 24.0, %v2709_v49  ;;  %v2728_v19 = vmul.f32 24.0, %v2710_v52  ;;  %vm2763_vm2 = vcmp.ge.f32.partialorder %v2709_v49, 1.0 }
 0x1cd   : > { %v2908_v37 = vmul.f32 %v7235_v30, %v9441_v13  ;;  %vm2764_vm10 = vcmp.ge.f32.partialorder %v2710_v52, 1.0  ;;  %v3187_v28 = vsel %vm9442_vm7, %v3178_v22, %v7478_v47  ;;  %v843_v31 = vshll.u32 %v7480_v60, 16  ;;  %vm9454_vm7 = vmmov %vm9447_vm4 }
 0x1ce   : > { %vm2781_vm3 = vcmp.le.f32.partialorder %v2709_v49, 16.0  ;;  %vm2782_vm8 = vcmp.le.f32.partialorder %v2710_v52, 16.0  ;;  %3559 = vmatprep.mubr.bf16.mxu0 %v3187_v28  ;;  %v9443_v15 = vcvt.s32.f32 %v7409_v26  ;;  %v9444_v43 = vcvt.s32.f32 %v7413_v54  ;;  %v7506_v54 = vld [vmem:[#allocation5 + $0x208] sm:$0xff]  }
 0x1cf   : > { %vm7491_vm5 = vmand %vm2763_vm2, %vm2781_vm3  ;;  %v2926_v3 = vadd.f32 %v7310_v17, %v2908_v37  ;;  %3560 = vmatmul.mubr.bf16.vlgmr.msra.gmra.mrb[32].mxu0 %v3170_v57  ;;  %v7497_v22 = vrot.slane %v843_v31, 1  ;;  %v2181_v46 = vsel %vm9447_vm4, %v7219_v20, %v7437_v42  ;;  %v3205_v32 = vrot.slane %v3038_v45, 3  ;;  %v9451_v37 = vld [vmem:[#allocation36_spill] sm:$0xff] }
 0x1d0   : > { %v2745_v4 = vsub.f32 %v9443_v15, %v2727_v11  ;;  %v2746_v56 = vsub.f32 %v9444_v43, %v2728_v19  ;;  %vm7502_vm15 = vmand %vm2764_vm10, %vm2782_vm8  ;;  %v3206_v58 = vrot.slane %v3034_v41, 4  ;;  %5077 = vmatpush3.bf16.msra.mxu0 %v7510_v55  ;;  %v2943_v57 = vmax.f32 %v2925_v40, 0.0 }
 0x1d1   : > { %vm9450_vm14 = vsmask.f32 7424  ;;  %v2944_v2 = vmax.f32 %v2926_v3, 0.0  ;;  %5078 = vmatprep.subr.bf16.mxu0 %v7506_v54  ;;  %v4627_v41 = vunpack.c.l.bf16 %v4748_v62  ;;  %v4628_v13 = vunpack.c.h.bf16 %v4748_v62  ;;  %vm9453_vm10 = vmmov %vm9447_vm4 }
 0x1d2   : > { %vm2817_vm6 = vcmp.ge.f32.partialorder %v2745_v4, 1.0  ;;  %vm2818_vm9 = vcmp.ge.f32.partialorder %v2746_v56, 1.0  ;;  %vm2853_vm1 = vcmp.le.f32.partialorder %v2745_v4, 16.0  ;;  %v846_v20 = vsel %vm9450_vm14, %v7405_v63, %v7497_v22  ;;  %v9452_v63 = vld [vmem:[#allocation37_spill] sm:$0xff]  ;;  %vm9455_vm3 = vmmov %vm9450_vm14 }
 0x1d3   : > { %vm2835_vm12 = vmand %vm7491_vm5, %vm2817_vm6  ;;  %vm2854_vm13 = vcmp.le.f32.partialorder %v2746_v56, 16.0  ;;  %v2183_v49 = vshrl.u32 %v846_v20, 16  ;;  %v2186_v52 = vshll.u32 %v846_v20, 16  ;;  %v401_v40 = vadd.s32 %v6723_v5, %v9451_v37  ;;  %v7531_v4 = vld [vmem:[#allocation5 + $0x210] sm:$0xff]  }
 0x1d4   : > { %vm2836_vm11 = vmand %vm7502_vm15, %vm2818_vm9  ;;  %v7523_v11 = vor.u32 %v3206_v58, %v3205_v32  ;;  %v7527_v19 = vadd.s32 %v6723_v5, %v9452_v63  ;;  %v678_v28 = vmul.f32 %v7235_v30, %v4627_v41  ;;  %v9185_v15 = vshrl.u32 %v7480_v60, 16  ;;  %5079 = vmatpush3.bf16.msra.mxu0 %v7506_v54 }
 0x1d5   : > { %vm2871_vm0 = vmand %vm2835_vm12, %vm2853_vm1  ;;  %v2185_v43 = vrot.slane %v2183_v49, 3  ;;  %v2188_v51 = vrot.slane %v2186_v52, 4  ;;  %v419_v62 = vcvt.s32.f32 %v401_v40  ;;  %v679_v5 = vmul.f32 %v7235_v30, %v4628_v13  ;;  %5080 = vmatprep.subr.bf16.mxu0 %v7531_v4  ;;  %v4760_v49 = vld [vmem:[%s7125_s25 + $0x20] sm:$0xff]  }
 0x1d6   : > { %vm2872_vm2 = vmand %vm2836_vm11, %vm2854_vm13  ;;  %v2997_v3 = vsel %vm2871_vm0, %v2943_v57, 0.0  ;;  %v420_v32 = vcvt.s32.f32 %v7527_v19  ;;  %v7538_v58 = vadd.f32 %v7310_v17, %v678_v28  ;;  %v3040_v56 = vor.u32 %v3038_v45, %v7459_v33  ;;  %v7557_v19 = vld [vmem:[#allocation5 + $0x218] sm:$0xff]  }
 0x1d7   : > { %v2998_v26 = vsel %vm2872_vm2, %v2944_v2, 0.0  ;;  %v7541_v20 = vor.u32 %v2188_v51, %v2185_v43  ;;  %v437_v57 = vadd.f32 0.5, %v419_v62  ;;  %v7550_v2 = vsel %vm9453_vm10, %v7462_v27, %v7523_v11  ;;  %vm9461_vm2 = vmmov %vm9454_vm7 }
 0x1d8   : > { %v7543_v41 = vpack.c.bf16 %v2998_v26, %v2997_v3  ;;  %v438_v52 = vadd.f32 0.5, %v420_v32  ;;  %v7553_v13 = vadd.f32 %v7310_v17, %v679_v5  ;;  %v2200_v40 = vrot.slane %v9185_v15, 3  ;;  %5081 = vmatpush3.bf16.msra.mxu0 %v7531_v4  ;;  %vm9462_vm10 = vmmov %vm9461_vm2 }
 0x1d9   : > { %v2190_v33 = vsel %vm9454_vm7, %v7260_v23, %v7541_v20  ;;  %v455_v28 = vmul.f32 0.041666668, %v437_v57  ;;  %v2201_v43 = vrot.slane %v843_v31, 4  ;;  %v721_v51 = vmax.f32 %v7538_v58, 0.0  ;;  %5082 = vmatprep.subr.bf16.mxu0 %v7557_v19 }
 0x1da   : > { %v9186_v45 = vshll.u32 %v7543_v41, 16  ;;  %2484 = vmatprep.mubr.bf16.mxu1 %v2190_v33  ;;  %v456_v27 = vmul.f32 0.041666668, %v438_v52  ;;  %v4683_v26 = vunpack.c.l.bf16 %v4760_v49  ;;  %v4684_v15 = vunpack.c.h.bf16 %v4760_v49 }
 0x1db   : > { %2485 = vmatmul.mubr.bf16.gmra.mrb[36].mxu1 %v2181_v46  ;;  %v473_v23 = vfloor.f32 %v455_v28  ;;  %v7573_v31 = vadd.s32 %v7180_v9, %v6306_v34  ;;  %v7575_v52 = vor.u32 %v2201_v43, %v2200_v40  ;;  %v7579_v58 = vadd.s32 %v7180_v9, %v6309_v39  ;;  %v7582_v46 = vld [vmem:[#allocation5 + $0x220] sm:$0xff]  }
 0x1dc   : > { %v7569_v5 = vrot.slane %v9186_v45, 1  ;;  %v474_v57 = vfloor.f32 %v456_v27  ;;  %v2909_v33 = vmul.f32 %v7235_v30, %v4683_v26  ;;  %5083 = vmatpush3.bf16.msra.mxu0 %v7557_v19 }
 0x1dd   : > { %v491_v28 = vmul.f32 24.0, %v473_v23  ;;  %vm527_vm8 = vcmp.ge.f32.partialorder %v473_v23, 1.0  ;;  %vm545_vm5 = vcmp.le.f32.partialorder %v473_v23, 16.0  ;;  %5084 = vmatprep.subr.bf16.mxu0 %v7582_v46  ;;  %v2657_v45 = vcvt.s32.f32 %v7573_v31  ;;  %v7610_v31 = vld [vmem:[%s7125_s25 + $0x28] sm:$0xff]  }
 0x1de   : > { %v3045_v3 = vsel %vm9455_vm3, %v3040_v56, %v7569_v5  ;;  %v492_v40 = vmul.f32 24.0, %v474_v57  ;;  %vm528_vm4 = vcmp.ge.f32.partialorder %v474_v57, 1.0  ;;  %vm546_vm15 = vcmp.le.f32.partialorder %v474_v57, 16.0  ;;  %vm7588_vm6 = vmand %vm527_vm8, %vm545_vm5 }
 0x1df   : > { %v3210_v49 = vshrl.u32 %v3045_v3, 16  ;;  %v3213_v27 = vshll.u32 %v3045_v3, 16  ;;  %v509_v43 = vsub.f32 %v419_v62, %v491_v28  ;;  %v2910_v56 = vmul.f32 %v7235_v30, %v4684_v15  ;;  %vm7594_vm9 = vmand %vm528_vm4, %vm546_vm15  ;;  %v7599_v62 = vld [vmem:[#allocation5 + $0x228] sm:$0xff]   ;;  %v7632_v3 = vld [vmem:[#allocation5 + $0x230] sm:$0xff]  }
 0x1e0   : > { %v510_v34 = vsub.f32 %v420_v32, %v492_v40  ;;  %v2658_v24 = vcvt.s32.f32 %v7579_v58  ;;  %v2675_v57 = vadd.f32 0.5, %v2657_v45  ;;  %v7602_v28 = vadd.f32 %v7310_v17, %v2909_v33  ;;  %5085 = vmatpush3.bf16.msra.mxu0 %v7582_v46 }
 0x1e1   : > { %v3212_v39 = vrot.slane %v3210_v49, 3  ;;  %v3215_v23 = vrot.slane %v3213_v27, 4  ;;  %vm581_vm1 = vcmp.ge.f32.partialorder %v509_v43, 1.0  ;;  %vm617_vm14 = vcmp.le.f32.partialorder %v509_v43, 16.0  ;;  %5086 = vmatprep.subr.bf16.mxu0 %v7599_v62 }
 0x1e2   : > { %vm582_vm12 = vcmp.ge.f32.partialorder %v510_v34, 1.0  ;;  %vm599_vm13 = vmand %vm7588_vm6, %vm581_vm1  ;;  %vm618_vm11 = vcmp.le.f32.partialorder %v510_v34, 16.0  ;;  %v2676_v32 = vadd.f32 0.5, %v2658_v24  ;;  %v9460_v58 = vshrl.u32 %v7480_v60, 16 }
 0x1e3   : > { %v7605_v15 = vor.u32 %v3215_v23, %v3212_v39  ;;  %vm600_vm0 = vmand %vm7594_vm9, %vm582_vm12  ;;  %v7621_v39 = vsel %vm9461_vm2, %v7437_v42, %v7575_v52  ;;  %v2693_v49 = vmul.f32 0.041666668, %v2675_v57  ;;  %v7624_v27 = vadd.f32 %v7310_v17, %v2910_v56 }
 0x1e4   : > { %v849_v33 = vor.u32 %v9460_v58, %v7497_v22  ;;  %vm635_vm7 = vmand %vm599_vm13, %vm617_vm14  ;;  %v2694_v26 = vmul.f32 0.041666668, %v2676_v32  ;;  %v2945_v23 = vmax.f32 %v7602_v28, 0.0  ;;  %v3046_v22 = vshrl.u32 %v7543_v41, 16  ;;  %5087 = vmatpush3.bf16.msra.mxu0 %v7599_v62 }
 0x1e5   : > { %v3217_v40 = vsel %vm9462_vm10, %v7478_v47, %v7605_v15  ;;  %vm636_vm3 = vmand %vm600_vm0, %vm618_vm11  ;;  %v775_v42 = vsel %vm635_vm7, %v721_v51, 0.0  ;;  %v2711_v57 = vfloor.f32 %v2693_v49  ;;  %v9463_v56 = vshll.u32 %v7543_v41, 16  ;;  %5088 = vmatprep.subr.bf16.mxu0 %v7632_v3 }
 0x1e6   : > { %3567 = vmatprep.mubr.bf16.mxu0 %v3217_v40  ;;  %v4687_v21 = vunpack.c.l.bf16 %v7610_v31  ;;  %v9464_v47 = vmax.f32 %v7553_v13, 0.0  ;;  %v2712_v28 = vfloor.f32 %v2694_v26  ;;  %v2946_v32 = vmax.f32 %v7624_v27, 0.0 }
 0x1e7   : > { %v3228_v58 = vrot.slane %v9463_v56, 4  ;;  %3568 = vmatmul.mubr.bf16.gmra.mrb[36].mxu0 %v7550_v2  ;;  %v3227_v40 = vrot.slane %v3046_v22, 3  ;;  %v2729_v51 = vmul.f32 24.0, %v2711_v57  ;;  %vm2765_vm8 = vcmp.ge.f32.partialorder %v2711_v57, 1.0  ;;  %v7649_v2 = vld [vmem:[#allocation5 + $0x238] sm:$0xff]  }
 0x1e8   : > { %v776_v43 = vsel %vm636_vm3, %v9464_v47, 0.0  ;;  %vm2783_vm5 = vcmp.le.f32.partialorder %v2711_v57, 16.0  ;;  %v2730_v49 = vmul.f32 24.0, %v2712_v28  ;;  %vm2766_vm4 = vcmp.ge.f32.partialorder %v2712_v28, 1.0  ;;  %5089 = vmatpush3.bf16.msra.mxu0 %v7632_v3 }
 0x1e9   : > { %v7644_v34 = vpack.c.bf16 %v776_v43, %v775_v42  ;;  %vm2784_vm15 = vcmp.le.f32.partialorder %v2712_v28, 16.0  ;;  %v7647_v56 = vor.u32 %v3046_v22, %v7569_v5  ;;  %v2747_v26 = vsub.f32 %v2657_v45, %v2729_v51  ;;  %vm7652_vm6 = vmand %vm2765_vm8, %vm2783_vm5  ;;  %5090 = vmatprep.subr.bf16.mxu0 %v7649_v2 }
 0x1ea   : > { %v7659_v57 = vadd.s32 %v7180_v9, %v6410_v25  ;;  %v2748_v47 = vsub.f32 %v2658_v24, %v2730_v49  ;;  %vm7662_vm9 = vmand %vm2766_vm4, %vm2784_vm15  ;;  %v7666_v22 = vor.u32 %v3228_v58, %v3227_v40  ;;  %v4688_v45 = vunpack.c.h.bf16 %v7610_v31 }
 0x1eb   : > { %v851_v13 = vshll.u32 %v7644_v34, 16  ;;  %v855_v42 = vshrl.u32 %v7644_v34, 16  ;;  %v7671_v43 = vadd.s32 %v7180_v9, %v6419_v48  ;;  %vm2819_vm1 = vcmp.ge.f32.partialorder %v2747_v26, 1.0 }
 0x1ec   : > { %vm2855_vm14 = vcmp.le.f32.partialorder %v2747_v26, 16.0  ;;  %vm2820_vm12 = vcmp.ge.f32.partialorder %v2748_v47, 1.0  ;;  %vm2837_vm13 = vmand %vm7652_vm6, %vm2819_vm1  ;;  %vm2856_vm11 = vcmp.le.f32.partialorder %v2748_v47, 16.0  ;;  %v2659_v58 = vcvt.s32.f32 %v7659_v57  ;;  %5091 = vmatpush3.bf16.msra.mxu0 %v7649_v2 }
 0x1ed   : > { %v853_v28 = vrot.slane %v851_v13, 1  ;;  %v2222_v51 = vrot.slane %v855_v42, 3  ;;  %v2223_v24 = vrot.slane %v851_v13, 4  ;;  %vm9469_vm0 = vsmask.f32 7424  ;;  %vm2838_vm2 = vmand %vm7662_vm9, %vm2820_vm12 }
 0x1ee   : > { %v2660_v49 = vcvt.s32.f32 %v7671_v43  ;;  %v2911_v48 = vmul.f32 %v7235_v30, %v4687_v21  ;;  %vm2873_vm10 = vmand %vm2837_vm13, %vm2855_vm14  ;;  %v2677_v27 = vadd.f32 0.5, %v2659_v58  ;;  %v2912_v13 = vmul.f32 %v7235_v30, %v4688_v45 }
 0x1ef   : > { %v854_v31 = vsel %vm9469_vm0, %v849_v33, %v853_v28  ;;  %v857_v40 = vor.u32 %v855_v42, %v853_v28  ;;  %vm2874_vm7 = vmand %vm2838_vm2, %vm2856_vm11  ;;  %v2999_v57 = vsel %vm2873_vm10, %v2945_v23, 0.0  ;;  %v2224_v43 = vor.u32 %v2223_v24, %v2222_v51 }
 0x1f0   : > { %v2205_v25 = vshrl.u32 %v854_v31, 16  ;;  %v2208_v18 = vshll.u32 %v854_v31, 16  ;;  %v2678_v5 = vadd.f32 0.5, %v2660_v49  ;;  %v3000_v28 = vsel %vm2874_vm7, %v2946_v32, 0.0  ;;  %vm9474_vm14 = vmmov %vm9469_vm0 }
 0x1f1   : > { %v2227_v33 = vshrl.u32 %v857_v40, 16  ;;  %v2230_v47 = vshll.u32 %v857_v40, 16  ;;  %v7685_v14 = vpack.c.bf16 %v3000_v28, %v2999_v57  ;;  %v2695_v7 = vmul.f32 0.041666668, %v2677_v27 }
 0x1f2   : > { %v2207_v16 = vrot.slane %v2205_v25, 3  ;;  %v2210_v42 = vrot.slane %v2208_v18, 4  ;;  %vm9470_vm3 = vsmask.f32 4352  ;;  %v2696_v45 = vmul.f32 0.041666668, %v2678_v5 }
 0x1f3   : > { %v2229_v21 = vrot.slane %v2227_v33, 3  ;;  %v2232_v12 = vrot.slane %v2230_v47, 4  ;;  %v7690_v26 = vsel %vm9470_vm3, %v7523_v11, %v7666_v22  ;;  %v2929_v23 = vadd.f32 %v7310_v17, %v2911_v48  ;;  %vm9471_vm8 = vmmov %vm9470_vm3 }
 0x1f4   : > { %v2211_v31 = vor.u32 %v2210_v42, %v2207_v16  ;;  %v3050_v40 = vshll.u32 %v7685_v14, 16  ;;  %v2713_v18 = vfloor.f32 %v2695_v7  ;;  %v2930_v32 = vadd.f32 %v7310_v17, %v2912_v13  ;;  %vm9472_vm5 = vmmov %vm9470_vm3 }
 0x1f5   : > { %v2233_v25 = vor.u32 %v2232_v12, %v2229_v21  ;;  %v2225_v16 = vsel %vm9472_vm5, %v7575_v52, %v2224_v43  ;;  %v2714_v24 = vfloor.f32 %v2696_v45  ;;  %v3054_v27 = vshrl.u32 %v7685_v14, 16  ;;  %vm9473_vm4 = vmmov %vm9470_vm3  ;;  %v4762_v21 = vld [vmem:[%s7125_s25 + $0x30] sm:$0xff]  }
 0x1f6   : > { %v2212_v51 = vsel %vm9471_vm8, %v7541_v20, %v2211_v31  ;;  %v3052_v11 = vrot.slane %v3050_v40, 1  ;;  %v2731_v48 = vmul.f32 24.0, %v2713_v18  ;;  %vm2767_vm15 = vcmp.ge.f32.partialorder %v2713_v18, 1.0 }
 0x1f7   : > { %2492 = vmatprep.mubr.bf16.mxu1 %v2212_v51  ;;  %v2234_v57 = vsel %vm9473_vm4, %v2211_v31, %v2233_v25  ;;  %v2732_v7 = vmul.f32 24.0, %v2714_v24  ;;  %vm2768_vm6 = vcmp.ge.f32.partialorder %v2714_v24, 1.0  ;;  %vm2785_vm9 = vcmp.le.f32.partialorder %v2713_v18, 16.0 }
 0x1f8   : > { %2493 = vmatmul.mubr.bf16.gmra.mrb[40].mxu1 %v7621_v39  ;;  %vm2786_vm1 = vcmp.le.f32.partialorder %v2714_v24, 16.0  ;;  %v3053_v12 = vsel %vm9474_vm14, %v7647_v56, %v3052_v11  ;;  %v2749_v20 = vsub.f32 %v2659_v58, %v2731_v48  ;;  %vm7704_vm12 = vmand %vm2767_vm15, %vm2785_vm9  ;;  %v2947_v13 = vmax.f32 %v2929_v23, 0.0 }
 0x1f9   : > { %2500 = vmatprep.mubr.bf16.mxu1 %v2234_v57  ;;  %v2948_v33 = vmax.f32 %v2930_v32, 0.0  ;;  %v3232_v47 = vshrl.u32 %v3053_v12, 16  ;;  %v3235_v5 = vshll.u32 %v3053_v12, 16  ;;  %v2750_v42 = vsub.f32 %v2660_v49, %v2732_v7  ;;  %vm2804_vm13 = vmand %vm2768_vm6, %vm2786_vm1 }
 0x1fa   : > { %v3056_v39 = vor.u32 %v3054_v27, %v3052_v11  ;;  %vm2821_vm11 = vcmp.ge.f32.partialorder %v2749_v20, 1.0  ;;  %vm2857_vm0 = vcmp.le.f32.partialorder %v2749_v20, 16.0  ;;  %v868_v28 = vrot.slane %v6933_v53, 1  ;;  %vm9481_vm1 = vmmov %vm9474_vm14 }
 0x1fb   : > { %v869_v56 = vrot.slane %v6952_v36, 1  ;;  %v3234_v43 = vrot.slane %v3232_v47, 3  ;;  %v3237_v58 = vrot.slane %v3235_v5, 4  ;;  %vm2822_vm2 = vcmp.ge.f32.partialorder %v2750_v42, 1.0  ;;  %vm2839_vm10 = vmand %vm7704_vm12, %vm2821_vm11 }
 0x1fc   : > { %vm2858_vm7 = vcmp.le.f32.partialorder %v2750_v42, 16.0  ;;  %vm2840_vm3 = vmand %vm2804_vm13, %vm2822_vm2  ;;  %v3249_v31 = vrot.slane %v3054_v27, 3  ;;  %vm9477_vm8 = vcmask 1046528   ;;  %v871_v45 = vrot.slane %v6957_v44, 1 }
 0x1fd   : > { %v870_v49 = vsel %vm9477_vm8, %v868_v28, %v869_v56  ;;  %v873_v23 = vrot.slane %v6990_v61, 1  ;;  %v7716_v25 = vor.u32 %v3237_v58, %v3234_v43  ;;  %vm2875_vm5 = vmand %vm2839_vm10, %vm2857_vm0  ;;  %v3250_v53 = vrot.slane %v3050_v40, 4 }
 0x1fe   : > { %v2074_v36 = vshrl.u32 %v870_v49, 16  ;;  %v2077_v18 = vshll.u32 %v870_v49, 16  ;;  %vm2876_vm4 = vmand %vm2840_vm3, %vm2858_vm7  ;;  %v3001_v32 = vsel %vm2875_vm5, %v2947_v13, 0.0  ;;  %v4691_v27 = vunpack.c.l.bf16 %v4762_v21 }
 0x1ff   : > { %vm9478_vm15 = vmmov %vm9477_vm8  ;;  %vm9480_vm9 = vsmask.f32 4352  ;;  %v3002_v11 = vsel %vm2876_vm4, %v2948_v33, 0.0  ;;  %v4692_v47 = vunpack.c.h.bf16 %v4762_v21  ;;  %v2643_v5 = vadd.s32 %v7180_v9, %v6482_v38 }
 0x200   : > { %v872_v51 = vsel %vm9478_vm15, %v869_v56, %v871_v45  ;;  %vm9479_vm6 = vmmov %vm9477_vm8  ;;  %v3239_v44 = vsel %vm9480_vm9, %v7605_v15, %v7716_v25  ;;  %2501 = vmatmul.mubr.bf16.gmra.mrb[44].mxu1 %v2225_v16  ;;  %v2076_v57 = vrot.slane %v2074_v36, 3  ;;  %v2079_v48 = vrot.slane %v2077_v18, 4 }
 0x201   : > { %v874_v24 = vsel %vm9479_vm6, %v871_v45, %v873_v23  ;;  %3575 = vmatprep.mubr.bf16.mxu0 %v3239_v44  ;;  %v7726_v40 = vpack.c.bf16 %v3002_v11, %v3001_v32  ;;  %v2082_v7 = vshrl.u32 %v872_v51, 16  ;;  %v2085_v12 = vshll.u32 %v872_v51, 16  ;;  %vm9482_vm14 = vmmov %vm9480_vm9 }
 0x202   : > { %v2104_v20 = vshrl.u32 %v874_v24, 16  ;;  %3576 = vmatmul.mubr.bf16.gmra.mrb[40].mxu0 %v7690_v26  ;;  %v2080_v52 = vor.u32 %v2079_v48, %v2076_v57  ;;  %v2107_v13 = vshll.u32 %v874_v24, 16  ;;  %v2644_v56 = vadd.s32 %v7180_v9, %v6488_v0  ;;  %vm9483_vm12 = vmmov %vm9480_vm9 }
 0x203   : > { %v3058_v15 = vshll.u32 %v7726_v40, 16  ;;  %v2084_v16 = vrot.slane %v2082_v7, 3  ;;  %v2087_v33 = vrot.slane %v2085_v12, 4  ;;  %v2661_v43 = vcvt.s32.f32 %v2643_v5  ;;  %vm9484_vm13 = vmmov %vm9480_vm9 }
 0x204   : > { %v2106_v42 = vrot.slane %v2104_v20, 3  ;;  %v2109_v28 = vrot.slane %v2107_v13, 4  ;;  %v2913_v58 = vmul.f32 %v7235_v30, %v4691_v27  ;;  %v7737_v26 = vor.u32 %v3250_v53, %v3249_v31  ;;  %v4763_v20 = vld [vmem:[%s7125_s25 + $0x38] sm:$0xff]   ;;  %vm9485_vm2 = vmmov %vm9479_vm6 }
 0x205   : > { %v7735_v49 = vrot.slane %v3058_v15, 1  ;;  %v2088_v21 = vor.u32 %v2087_v33, %v2084_v16  ;;  %v2914_v45 = vmul.f32 %v7235_v30, %v4692_v47  ;;  %v2662_v18 = vcvt.s32.f32 %v2644_v56  ;;  %vm9486_vm10 = vmmov %vm9480_vm9 }
 0x206   : > { %v7740_v36 = vor.u32 %v2109_v28, %v2106_v42  ;;  %v2679_v32 = vadd.f32 0.5, %v2661_v43  ;;  %v7743_v51 = vadd.f32 %v7310_v17, %v2913_v58  ;;  %v3062_v31 = vshrl.u32 %v7726_v40, 16  ;;  %vm9489_vm4 = vmmov %vm9485_vm2 }
 0x207   : > { %v3061_v24 = vsel %vm9481_vm1, %v3056_v39, %v7735_v49  ;;  %v2089_v27 = vsel %vm9482_vm14, %v2080_v52, %v2088_v21  ;;  %v7749_v44 = vadd.f32 %v7310_v17, %v2914_v45  ;;  %v2680_v57 = vadd.f32 0.5, %v2662_v18 }
 0x208   : > { %v3254_v53 = vshrl.u32 %v3061_v24, 16  ;;  %v3257_v30 = vshll.u32 %v3061_v24, 16  ;;  %5060 = vmatprep.mubr.bf16.mxu1 %v2089_v27  ;;  %v2111_v11 = vsel %vm9483_vm12, %v2088_v21, %v7740_v36  ;;  %v3252_v48 = vsel %vm9484_vm13, %v7666_v22, %v7737_v26 }
 0x209   : > { %5061 = vmatmul.mubr.bf16.vlgmr.msra.gmra.mrb[0].mxu1 %v2111_v11  ;;  %v2697_v39 = vmul.f32 0.041666668, %v2679_v32  ;;  %v2949_v7 = vmax.f32 %v7743_v51, 0.0  ;;  %v3271_v12 = vrot.slane %v3062_v31, 3  ;;  %v2698_v47 = vmul.f32 0.041666668, %v2680_v57 }
 0x20a   : > { %v3256_v52 = vrot.slane %v3254_v53, 3  ;;  %v3259_v13 = vrot.slane %v3257_v30, 4  ;;  %5116 = vmatpush3.bf16.msra.mxu1 %v7510_v55  ;;  %v3272_v5 = vrot.slane %v3058_v15, 4  ;;  %v2950_v33 = vmax.f32 %v7749_v44, 0.0 }
 0x20b   : > { %v2715_v16 = vfloor.f32 %v2697_v39  ;;  %5109 = vmatprep.subr.bf16.mxu1 %v7506_v54  ;;  %v875_v22 = vrot.slane %v7072_v6, 1  ;;  %v877_v42 = vrot.slane %v7156_v29, 1  ;;  %v2716_v56 = vfloor.f32 %v2698_v47  ;;  %v7798_v39 = vld [vmem:[#allocation7] ss:$0 sm:$0xff] }
 0x20c   : > { %v7766_v28 = vor.u32 %v3259_v13, %v3256_v52  ;;  %v7768_v58 = vor.u32 %v3272_v5, %v3271_v12  ;;  %v4695_v21 = vunpack.c.l.bf16 %v4763_v20  ;;  %v4696_v61 = vunpack.c.h.bf16 %v4763_v20 }
 0x20d   : > { %v2733_v45 = vmul.f32 24.0, %v2715_v16  ;;  %vm2769_vm11 = vcmp.ge.f32.partialorder %v2715_v16, 1.0  ;;  %vm2787_vm0 = vcmp.le.f32.partialorder %v2715_v16, 16.0  ;;  %v876_v55 = vsel %vm9485_vm2, %v873_v23, %v875_v22 }
 0x20e   : > { %v3261_v15 = vsel %vm9486_vm10, %v7716_v25, %v7766_v28  ;;  %v2734_v6 = vmul.f32 24.0, %v2716_v56  ;;  %vm2770_vm7 = vcmp.ge.f32.partialorder %v2716_v56, 1.0  ;;  %vm2788_vm3 = vcmp.le.f32.partialorder %v2716_v56, 16.0  ;;  %5117 = vmatpush3.bf16.msra.mxu1 %v7506_v54  ;;  %vm7777_vm8 = vmand %vm2769_vm11, %vm2787_vm0 }
 0x20f   : > { %3583 = vmatprep.mubr.bf16.mxu0 %v3261_v15  ;;  %v2751_v32 = vsub.f32 %v2661_v43, %v2733_v45  ;;  %v2126_v24 = vshrl.u32 %v876_v55, 16  ;;  %v2129_v27 = vshll.u32 %v876_v55, 16  ;;  %5110 = vmatprep.subr.bf16.mxu1 %v7531_v4  ;;  %vm2806_vm5 = vmand %vm2770_vm7, %vm2788_vm3  ;;  %v878_v25 = vsel %vm9489_vm4, %v875_v22, %v877_v42 }
 0x210   : > { %3584 = vmatmul.mubr.bf16.gmra.mrb[44].mxu0 %v3252_v48  ;;  %v2752_v23 = vsub.f32 %v2662_v18, %v2734_v6  ;;  %v7787_v54 = vadd.s32 %v7180_v9, %v9420_v59  ;;  %v7791_v43 = vadd.s32 %v7180_v9, %v9421_v1  ;;  %v2148_v18 = vshrl.u32 %v878_v25, 16  ;;  %vm9490_vm0 = vmmov %vm9486_vm10 }
 0x211   : > { %vm2823_vm15 = vcmp.ge.f32.partialorder %v2751_v32, 1.0  ;;  %vm2859_vm6 = vcmp.le.f32.partialorder %v2751_v32, 16.0  ;;  %v2128_v44 = vrot.slane %v2126_v24, 3  ;;  %v2131_v53 = vrot.slane %v2129_v27, 4  ;;  %vm9491_vm10 = vmmov %vm9490_vm0 }
 0x212   : > { %vm2824_vm9 = vcmp.ge.f32.partialorder %v2752_v23, 1.0  ;;  %vm2841_vm1 = vmand %vm7777_vm8, %vm2823_vm15  ;;  %vm2860_vm14 = vcmp.le.f32.partialorder %v2752_v23, 16.0  ;;  %v2151_v30 = vshll.u32 %v878_v25, 16  ;;  %5118 = vmatpush3.bf16.msra.mxu1 %v7531_v4  ;;  %v2663_v57 = vcvt.s32.f32 %v7787_v54 }
 0x213   : > { %vm2842_vm12 = vmand %vm2806_vm5, %vm2824_vm9  ;;  %v2132_v11 = vor.u32 %v2131_v53, %v2128_v44  ;;  %v2664_v48 = vcvt.s32.f32 %v7791_v43  ;;  %v2915_v12 = vmul.f32 %v7798_v39, %v4695_v21  ;;  %5111 = vmatprep.subr.bf16.mxu1 %v7557_v19  ;;  %v2150_v20 = vrot.slane %v2148_v18, 3  ;;  %v4764_v43 = vld [vmem:[%s7125_s25 + $0x40] sm:$0xff]  }
 0x214   : > { %vm2877_vm13 = vmand %vm2841_vm1, %vm2859_vm6  ;;  %v2153_v52 = vrot.slane %v2151_v30, 4  ;;  %v2916_v13 = vmul.f32 %v7798_v39, %v4696_v61  ;;  %v879_v4 = vrot.slane %v7223_v10, 1  ;;  %v2681_v16 = vadd.f32 0.5, %v2663_v57 }
 0x215   : > { %vm2878_vm11 = vmand %vm2842_vm12, %vm2860_vm14  ;;  %v3003_v47 = vsel %vm2877_vm13, %v2949_v7, 0.0  ;;  %v2133_v5 = vsel %vm9490_vm0, %v7740_v36, %v2132_v11  ;;  %v2682_v22 = vadd.f32 0.5, %v2664_v48  ;;  %v7809_v45 = vadd.f32 %v7310_v17, %v2915_v12 }
 0x216   : > { %v3004_v56 = vsel %vm2878_vm11, %v2950_v33, 0.0  ;;  %5064 = vmatprep.mubr.bf16.mxu1 %v2133_v5  ;;  %v2154_v21 = vor.u32 %v2153_v52, %v2150_v20  ;;  %v7812_v55 = vadd.f32 %v7310_v17, %v2916_v13  ;;  %5119 = vmatpush3.bf16.msra.mxu1 %v7557_v19  ;;  %v2699_v6 = vmul.f32 0.041666668, %v2681_v16  ;;  %vm9492_vm7 = vmmov %vm9490_vm0 }
 0x217   : > { %v7815_v15 = vpack.c.bf16 %v3004_v56, %v3003_v47  ;;  %v2700_v7 = vmul.f32 0.041666668, %v2682_v22  ;;  %v880_v36 = vsel %vm9485_vm2, %v877_v42, %v879_v4  ;;  %5112 = vmatprep.subr.bf16.mxu1 %v7582_v46  ;;  %v3064_v33 = vor.u32 %v3062_v31, %v7735_v49 }
 0x218   : > { %v7829_v17 = vsel %vm9491_vm10, %v7737_v26, %v7768_v58  ;;  %v2155_v19 = vsel %vm9492_vm7, %v2132_v11, %v2154_v21  ;;  %v2170_v32 = vshrl.u32 %v880_v36, 16  ;;  %v2717_v29 = vfloor.f32 %v2699_v6 }
 0x219   : > { %v3066_v51 = vshll.u32 %v7815_v15, 16  ;;  %5065 = vmatmul.mubr.bf16.gmra.mrb[4].mxu1 %v2155_v19  ;;  %v2718_v24 = vfloor.f32 %v2700_v7  ;;  %v2951_v42 = vmax.f32 %v7809_v45, 0.0  ;;  %v2952_v27 = vmax.f32 %v7812_v55, 0.0 }
 0x21a   : > { %v3070_v49 = vshrl.u32 %v7815_v15, 16  ;;  %v2172_v31 = vrot.slane %v2170_v32, 3  ;;  %v2173_v61 = vshll.u32 %v880_v36, 16  ;;  %5120 = vmatpush3.bf16.msra.mxu1 %v7582_v46  ;;  %v2735_v23 = vmul.f32 24.0, %v2717_v29 }
 0x21b   : > { %v3068_v26 = vrot.slane %v3066_v51, 1  ;;  %v2736_v25 = vmul.f32 24.0, %v2718_v24  ;;  %vm2771_vm3 = vcmp.ge.f32.partialorder %v2717_v29, 1.0  ;;  %5113 = vmatprep.subr.bf16.mxu1 %v7599_v62  ;;  %vm2772_vm8 = vcmp.ge.f32.partialorder %v2718_v24, 1.0 }
 0x21c   : > { %vm2789_vm5 = vcmp.le.f32.partialorder %v2717_v29, 16.0  ;;  %vm2790_vm4 = vcmp.le.f32.partialorder %v2718_v24, 16.0  ;;  %v881_v54 = vrot.slane %v7480_v60, 1  ;;  %vm9493_vm15 = vsmask.f32 7424 }
 0x21d   : > { %v3069_v44 = vsel %vm9493_vm15, %v3064_v33, %v3068_v26  ;;  %v2753_v53 = vsub.f32 %v2663_v57, %v2735_v23  ;;  %v2754_v18 = vsub.f32 %v2664_v48, %v2736_v25  ;;  %vm7841_vm6 = vmand %vm2771_vm3, %vm2789_vm5  ;;  %v3293_v46 = vrot.slane %v3070_v49, 3  ;;  %v5436_v24 = vld [vmem:[#allocation8] ss:$0 sm:$0xff] }
 0x21e   : > { %v3276_v11 = vshrl.u32 %v3069_v44, 16  ;;  %v3279_v12 = vshll.u32 %v3069_v44, 16  ;;  %vm2808_vm9 = vmand %vm2772_vm8, %vm2790_vm4  ;;  %v3294_v20 = vrot.slane %v3066_v51, 4  ;;  %v2175_v52 = vrot.slane %v2173_v61, 4  ;;  %5121 = vmatpush3.bf16.msra.mxu1 %v7599_v62 }
 0x21f   : > { %vm2825_vm1 = vcmp.ge.f32.partialorder %v2753_v53, 1.0  ;;  %vm2826_vm14 = vcmp.ge.f32.partialorder %v2754_v18, 1.0  ;;  %vm2861_vm12 = vcmp.le.f32.partialorder %v2753_v53, 16.0  ;;  %v4699_v13 = vunpack.c.l.bf16 %v4764_v43  ;;  %5114 = vmatprep.subr.bf16.mxu1 %v7632_v3  ;;  %vm9496_vm8 = vmmov %vm9492_vm7 }
 0x220   : > { %v3278_v57 = vrot.slane %v3276_v11, 3  ;;  %v3281_v48 = vrot.slane %v3279_v12, 4  ;;  %vm2843_vm13 = vmand %vm7841_vm6, %vm2825_vm1  ;;  %vm2862_vm11 = vcmp.le.f32.partialorder %v2754_v18, 16.0  ;;  %v2176_v47 = vor.u32 %v2175_v52, %v2172_v31 }
 0x221   : > { %vm2844_vm0 = vmand %vm2808_vm9, %vm2826_vm14  ;;  %v7851_v5 = vor.u32 %v3294_v20, %v3293_v46  ;;  %v882_v62 = vsel %vm9485_vm2, %v879_v4, %v881_v54  ;;  %v2647_v16 = vadd.s32 %v7180_v9, %v9451_v37  ;;  %v2648_v22 = vadd.s32 %v7180_v9, %v9452_v63 }
 0x222   : > { %v7862_v56 = vor.u32 %v3281_v48, %v3278_v57  ;;  %vm2879_vm10 = vmand %vm2843_vm13, %vm2861_vm12  ;;  %v2177_v45 = vsel %vm9492_vm7, %v2154_v21, %v2176_v47  ;;  %v2192_v55 = vshrl.u32 %v882_v62, 16  ;;  %v4700_v6 = vunpack.c.h.bf16 %v4764_v43  ;;  %5122 = vmatpush3.bf16.msra.mxu1 %v7632_v3 }
 0x223   : > { %vm2880_vm3 = vmand %vm2844_vm0, %vm2862_vm11  ;;  %v3005_v7 = vsel %vm2879_vm10, %v2951_v42, 0.0  ;;  %5068 = vmatprep.mubr.bf16.mxu1 %v2177_v45  ;;  %v2195_v10 = vshll.u32 %v882_v62, 16  ;;  %v2665_v4 = vcvt.s32.f32 %v2647_v16  ;;  %v2666_v36 = vcvt.s32.f32 %v2648_v22  ;;  %5115 = vmatprep.subr.bf16.mxu1 %v7649_v2  ;;  %v7910_v16 = vpop.f32.mrb[0].mxu0 }
 0x224   : > { %v3283_v9 = vsel %vm9496_vm8, %v7766_v28, %v7862_v56  ;;  %v3006_v37 = vsel %vm2880_vm3, %v2952_v27, 0.0  ;;  %v2194_v63 = vrot.slane %v2192_v55, 3  ;;  %v2917_v21 = vmul.f32 %v7798_v39, %v4699_v13  ;;  %vm9497_vm5 = vmmov %vm9492_vm7  ;;  %v7912_v45 = vpop.f32.mrb[1].mxu0 }
 0x225   : > { %3591 = vmatprep.mubr.bf16.mxu0 %v3283_v9  ;;  %v7871_v33 = vpack.c.bf16 %v3006_v37, %v3005_v7  ;;  %v2197_v3 = vrot.slane %v2195_v10, 4  ;;  %v2683_v19 = vadd.f32 0.5, %v2665_v4  ;;  %v2684_v32 = vadd.f32 0.5, %v2666_v36  ;;  %vm9498_vm4 = vmmov %vm9485_vm2  ;;  %v7917_v10 = vpop.f32.mrb[2].mxu0 }
 0x226   : > { %3592 = vmatmul.mubr.bf16.gmra.mrb[48].mxu0 %v7829_v17  ;;  %v3072_v51 = vor.u32 %v3070_v49, %v3068_v26  ;;  %v2918_v29 = vmul.f32 %v7798_v39, %v4700_v6  ;;  %v7877_v42 = vadd.f32 %v5436_v24, %v2917_v21  ;;  %v7880_v28 = vrot.slane %v7644_v34, 1  ;;  %5123 = vmatpush3.bf16.msra.mxu1 %v7649_v2  ;;  %vm9499_vm15 = vmmov %vm9497_vm5 }
 0x227   : > { %v3074_v27 = vshll.u32 %v7871_v33, 16  ;;  %v7884_v31 = vor.u32 %v2197_v3, %v2194_v63  ;;  %v2701_v61 = vmul.f32 0.041666668, %v2683_v19  ;;  %v2702_v23 = vmul.f32 0.041666668, %v2684_v32  ;;  %v7925_v63 = vpop.f32.mrb[3].mxu0 }
 0x228   : > { %v3296_v17 = vsel %vm9497_vm5, %v7768_v58, %v7851_v5  ;;  %v7889_v49 = vadd.f32 %v5436_v24, %v2918_v29  ;;  %v884_v34 = vsel %vm9498_vm4, %v881_v54, %v7880_v28  ;;  %v3105_v39 = vrot.slane %v7685_v14, 1 }
 0x229   : > { %v3076_v2 = vrot.slane %v3074_v27, 1  ;;  %v2199_v26 = vsel %vm9499_vm15, %v2176_v47, %v7884_v31  ;;  %v2719_v25 = vfloor.f32 %v2701_v61  ;;  %v2720_v43 = vfloor.f32 %v2702_v23 }
 0x22a   : > { %5069 = vmatmul.mubr.bf16.gmra.mrb[8].mxu1 %v2199_v26  ;;  %v2953_v44 = vmax.f32 %v7877_v42, 0.0  ;;  %v2954_v58 = vmax.f32 %v7889_v49, 0.0  ;;  %v3078_v53 = vshrl.u32 %v7871_v33, 16  ;;  %v2214_v18 = vshrl.u32 %v884_v34, 16 }
 0x22b   : > { %vm9500_vm6 = vsmask.f32 7424  ;;  %v2737_v30 = vmul.f32 24.0, %v2719_v25  ;;  %v2738_v54 = vmul.f32 24.0, %v2720_v43  ;;  %vm2773_vm9 = vcmp.ge.f32.partialorder %v2719_v25, 1.0 }
 0x22c   : > { %v3077_v60 = vsel %vm9500_vm6, %v3072_v51, %v3076_v2  ;;  %vm2774_vm1 = vcmp.ge.f32.partialorder %v2720_v43, 1.0  ;;  %vm2791_vm14 = vcmp.le.f32.partialorder %v2719_v25, 16.0  ;;  %vm2792_vm12 = vcmp.le.f32.partialorder %v2720_v43, 16.0  ;;  %v7932_v51 = vpop.f32.mrb[4].mxu0 }
 0x22d   : > { %v3298_v46 = vshrl.u32 %v3077_v60, 16  ;;  %v3301_v11 = vshll.u32 %v3077_v60, 16  ;;  %v2755_v12 = vsub.f32 %v2665_v4, %v2737_v30  ;;  %v2756_v20 = vsub.f32 %v2666_v36, %v2738_v54  ;;  %vm2809_vm13 = vmand %vm2773_vm9, %vm2791_vm14 }
 0x22e   : > { %v7902_v52 = vrot.slane %v3078_v53, 3  ;;  %vm7904_vm11 = vmand %vm2774_vm1, %vm2792_vm12  ;;  %v7908_v47 = vor.u32 %v3078_v53, %v3076_v2  ;;  %v3316_v62 = vrot.slane %v3074_v27, 4  ;;  %v2216_v22 = vrot.slane %v2214_v18, 3 }
 0x22f   : > { %v3300_v13 = vrot.slane %v3298_v46, 3  ;;  %v3303_v57 = vrot.slane %v3301_v11, 4  ;;  %vm2827_vm0 = vcmp.ge.f32.partialorder %v2755_v12, 1.0  ;;  %vm2828_vm2 = vcmp.ge.f32.partialorder %v2756_v20, 1.0  ;;  %vm9505_vm1 = vmmov %vm9497_vm5 }
 0x230   : > { %vm2863_vm10 = vcmp.le.f32.partialorder %v2755_v12, 16.0  ;;  %vm2845_vm7 = vmand %vm2809_vm13, %vm2827_vm0  ;;  %vm2864_vm3 = vcmp.le.f32.partialorder %v2756_v20, 16.0  ;;  %v2217_v6 = vshll.u32 %v884_v34, 16  ;;  %v2236_v7 = vshrl.u32 %v7880_v28, 16 }
 0x231   : > { %v7914_v55 = vor.u32 %v3303_v57, %v3300_v13  ;;  %vm2846_vm8 = vmand %vm7904_vm11, %vm2828_vm2  ;;  %v2239_v4 = vshll.u32 %v7880_v28, 16  ;;  %v3107_v36 = vrot.slane %v7726_v40, 1  ;;  %v3109_v9 = vrot.slane %v7815_v15, 1 }
 0x232   : > { %v3111_v37 = vrot.slane %v7871_v33, 1  ;;  %vm2881_vm4 = vmand %vm2845_vm7, %vm2863_vm10  ;;  %v2219_v3 = vrot.slane %v2217_v6, 4  ;;  %v2238_v19 = vrot.slane %v2236_v7, 3  ;;  %v3098_v32 = vrot.slane %v7431_v50, 1 }
 0x233   : > { %v3305_v21 = vsel %vm9497_vm5, %v7862_v56, %v7914_v55  ;;  %vm2882_vm15 = vmand %vm2846_vm8, %vm2864_vm3  ;;  %v3007_v40 = vsel %vm2881_vm4, %v2953_v44, 0.0  ;;  %v2241_v15 = vrot.slane %v2239_v4, 4  ;;  %vm9503_vm6 = vcmask 1046528   ;;  %v7939_v56 = vpop.f32.mrb[5].mxu0 }
 0x234   : > { %3599 = vmatprep.mubr.bf16.mxu0 %v3305_v21  ;;  %v3108_v29 = vsel %vm9503_vm6, %v3105_v39, %v3107_v36  ;;  %vm9504_vm9 = vmmov %vm9503_vm6  ;;  %v3008_v42 = vsel %vm2882_vm15, %v2954_v58, 0.0  ;;  %v2220_v28 = vor.u32 %v2219_v3, %v2216_v22  ;;  %v7941_v61 = vpop.f32.mrb[6].mxu0  ;;  %v7964_v57 = vor.u32 %v3316_v62, %v7902_v52 }
 0x235   : > { %v3110_v24 = vsel %vm9504_vm9, %v3107_v36, %v3109_v9  ;;  %3600 = vmatmul.mubr.bf16.gmra.mrb[52].mxu0 %v3296_v17  ;;  %v3263_v27 = vshrl.u32 %v3108_v29, 16  ;;  %v3266_v50 = vshll.u32 %v3108_v29, 16  ;;  %v7943_v23 = vpack.c.bf16 %v3008_v42, %v3007_v40  ;;  %v7945_v26 = vpop.f32.mrb[7].mxu0  ;;  %vm9506_vm14 = vmmov %vm9503_vm6 }
 0x236   : > { %v2242_v49 = vor.u32 %v2241_v15, %v2238_v19  ;;  %v3285_v34 = vshrl.u32 %v3110_v24, 16  ;;  %v3288_v2 = vshll.u32 %v3110_v24, 16  ;;  %v2221_v25 = vsel %vm9505_vm1, %v7884_v31, %v2220_v28  ;;  %v7952_v58 = vpop.f32.mrb[8].mxu0  ;;  %vm9507_vm12 = vmmov %vm9505_vm1 }
 0x237   : > { %v3265_v43 = vrot.slane %v3263_v27, 3  ;;  %v3268_v44 = vrot.slane %v3266_v50, 4  ;;  %v3112_v17 = vsel %vm9506_vm14, %v3109_v9, %v3111_v37  ;;  %v3082_v53 = vshll.u32 %v7943_v23, 16  ;;  %5072 = vmatprep.mubr.bf16.mxu1 %v2221_v25  ;;  %v7957_v54 = vpop.f32.mrb[9].mxu0  ;;  %vm9509_vm11 = vmmov %vm9503_vm6 }
 0x238   : > { %v2243_v18 = vsel %vm9507_vm12, %v2220_v28, %v2242_v49  ;;  %v3086_v60 = vshrl.u32 %v7943_v23, 16  ;;  %v3287_v30 = vrot.slane %v3285_v34, 3  ;;  %v3290_v46 = vrot.slane %v3288_v2, 4  ;;  %v7961_v20 = vpop.f32.mrb[10].mxu0  ;;  %vm9510_vm0 = vmmov %vm9505_vm1 }
 0x239   : > { %5073 = vmatmul.mubr.bf16.gmra.mrb[12].mxu1 %v2243_v18  ;;  %v7959_v31 = vor.u32 %v3268_v44, %v3265_v43  ;;  %v3307_v11 = vshrl.u32 %v3112_v17, 16  ;;  %v3310_v12 = vshll.u32 %v3112_v17, 16  ;;  %v3084_v13 = vrot.slane %v3082_v53, 1  ;;  %v7967_v22 = vpop.f32.mrb[11].mxu0  ;;  %vm9511_vm2 = vmmov %vm9503_vm6 }
 0x23a   : > { %v3099_v48 = vrot.slane %v7447_v8, 1  ;;  %v3291_v6 = vor.u32 %v3290_v46, %v3287_v30  ;;  %v3101_v36 = vrot.slane %v7451_v35, 1  ;;  %v7970_v9 = vpop.f32.mrb[12].mxu0  ;;  %vm9508_vm13 = vsmask.f32 7424  ;;  %vm9512_vm10 = vmmov %vm9510_vm0 }
 0x23b   : > { %v3309_v7 = vrot.slane %v3307_v11, 3  ;;  %v3312_v4 = vrot.slane %v3310_v12, 4  ;;  %v3085_v21 = vsel %vm9508_vm13, %v7908_v47, %v3084_v13  ;;  %v3088_v3 = vor.u32 %v3086_v60, %v3084_v13  ;;  %v7977_v62 = vpop.f32.mrb[13].mxu0  ;;  %vm9513_vm7 = vmmov %vm9510_vm0 }
 0x23c   : > { %v7974_v19 = vrot.slane %v3086_v60, 3  ;;  %v3100_v52 = vsel %vm9509_vm11, %v3098_v32, %v3099_v48  ;;  %v3320_v8 = vshrl.u32 %v3085_v21, 16  ;;  %v3323_v40 = vshll.u32 %v3085_v21, 16  ;;  %v7983_v35 = vpop.f32.mrb[14].mxu0  ;;  %vm9514_vm3 = vmmov %vm9510_vm0 }
 0x23d   : > { %v3292_v15 = vsel %vm9510_vm0, %v7959_v31, %v3291_v6  ;;  %v7981_v29 = vor.u32 %v3312_v4, %v3309_v7  ;;  %v3342_v24 = vshrl.u32 %v3088_v3, 16  ;;  %v3345_v42 = vshll.u32 %v3088_v3, 16  ;;  %v7986_v27 = vpop.f32.mrb[15].mxu0  ;;  %vm9515_vm8 = vmmov %vm9511_vm2 }
 0x23e   : > { %v3338_v28 = vrot.slane %v3082_v53, 4  ;;  %5100 = vmatprep.mubr.bf16.mxu1 %v3292_v15  ;;  %v3102_v47 = vsel %vm9511_vm2, %v3099_v48, %v3101_v36  ;;  %v3322_v32 = vrot.slane %v3320_v8, 3  ;;  %v3325_v50 = vrot.slane %v3323_v40, 4  ;;  %v7990_v2 = vpop.f32.mrb[16].mxu0  ;;  %vm9516_vm5 = vmmov %vm9510_vm0 }
 0x23f   : > { %v3314_v49 = vsel %vm9512_vm10, %v3291_v6, %v7981_v29  ;;  %v3189_v34 = vshrl.u32 %v3100_v52, 16  ;;  %v3344_v25 = vrot.slane %v3342_v24, 3  ;;  %v3347_v43 = vrot.slane %v3345_v42, 4  ;;  %v7992_v18 = vpop.f32.mrb[17].mxu0  ;;  %vm9517_vm4 = vmmov %vm9511_vm2 }
 0x240   : > { %v3192_v44 = vshll.u32 %v3100_v52, 16  ;;  %v3197_v17 = vshrl.u32 %v3102_v47, 16  ;;  %v3326_v53 = vor.u32 %v3325_v50, %v3322_v32  ;;  %v3200_v30 = vshll.u32 %v3102_v47, 16  ;;  %v7995_v11 = vpop.f32.mrb[18].mxu0  ;;  %vm9518_vm15 = vmmov %vm9511_vm2 }
 0x241   : > { %5101 = vmatmul.mubr.bf16.vlgmr.msra.gmra.mrb[8].mxu1 %v3314_v49  ;;  %v3191_v60 = vrot.slane %v3189_v34, 3  ;;  %v3103_v46 = vrot.slane %v7543_v41, 1  ;;  %v3318_v12 = vsel %vm9513_vm7, %v7851_v5, %v7964_v57  ;;  %v3348_v13 = vor.u32 %v3347_v43, %v3344_v25  ;;  %v8001_v7 = vpop.f32.mrb[19].mxu0  ;;  %vm9519_vm6 = vmmov %vm9510_vm0 }
 0x242   : > { %v3194_v48 = vrot.slane %v3192_v44, 4  ;;  %v3113_v6 = vrot.slane %v7943_v23, 1  ;;  %v3327_v4 = vsel %vm9514_vm3, %v7914_v55, %v3326_v53  ;;  %v3199_v21 = vrot.slane %v3197_v17, 3  ;;  %v8014_v14 = vpop.f32.mrb[16].mxu1  ;;  %vm9520_vm9 = vmmov %vm9510_vm0 }
 0x243   : > { %v3202_v3 = vrot.slane %v3200_v30, 4  ;;  %v3104_v52 = vsel %vm9515_vm8, %v3101_v36, %v3103_v46  ;;  %3607 = vmatprep.mubr.bf16.mxu0 %v3327_v4  ;;  %v3349_v41 = vsel %vm9516_vm5, %v3326_v53, %v3348_v13  ;;  %v3339_v8 = vor.u32 %v3338_v28, %v7974_v19  ;;  %v8016_v25 = vpop.f32.mrb[17].mxu1  ;;  %vm9521_vm1 = vmmov %vm9510_vm0 }
 0x244   : > { %v3106_v5 = vsel %vm9517_vm4, %v3103_v46, %v3105_v39  ;;  %3608 = vmatmul.mubr.bf16.gmra.mrb[56].mxu0 %v3318_v12  ;;  %v3195_v23 = vor.u32 %v3194_v48, %v3191_v60  ;;  %v3114_v40 = vsel %vm9518_vm15, %v3111_v37, %v3113_v6  ;;  %v3351_v55 = vshrl.u32 %v3113_v6, 16  ;;  %v8018_v37 = vpop.f32.mrb[18].mxu1  ;;  %vm9522_vm14 = vmmov %vm9510_vm0 }
 0x245   : > { %v3354_v15 = vshll.u32 %v3113_v6, 16  ;;  %3615 = vmatprep.mubr.bf16.mxu0 %v3349_v41  ;;  %v3219_v24 = vshrl.u32 %v3104_v52, 16  ;;  %v3222_v36 = vshll.u32 %v3104_v52, 16  ;;  %v3329_v42 = vshrl.u32 %v3114_v40, 16  ;;  %v8022_v60 = vpop.f32.mrb[19].mxu1  ;;  %vm9523_vm12 = vmmov %vm9510_vm0 }
 0x246   : > { %v3332_v47 = vshll.u32 %v3114_v40, 16  ;;  %v3203_v32 = vor.u32 %v3202_v3, %v3199_v21  ;;  %v3353_v50 = vrot.slane %v3351_v55, 3  ;;  %v3241_v28 = vshrl.u32 %v3106_v5, 16  ;;  %vm9524_vm13 = vmmov %vm9510_vm0 }
 0x247   : > { %v3356_v19 = vrot.slane %v3354_v15, 4  ;;  %v3331_v39 = vrot.slane %v3329_v42, 3  ;;  %v3244_v34 = vshll.u32 %v3106_v5, 16  ;;  %v3340_v43 = vsel %vm9519_vm6, %v7964_v57, %v3339_v8  ;;  %vm9527_vm11 = vmmov %vm9510_vm0 }
 0x248   : > { %v3334_v49 = vrot.slane %v3332_v47, 4  ;;  %v3221_v44 = vrot.slane %v3219_v24, 3  ;;  %v3224_v17 = vrot.slane %v3222_v36, 4  ;;  %v3204_v30 = vsel %vm9520_vm9, %v3195_v23, %v3203_v32  ;;  %v9528_v36 = vld [vmem:[#allocation22_spill] sm:$0xff]  ;;  %v9529_v47 = vld [vmem:[#allocation23_spill] sm:$0xff] }
 0x249   : > { %v3357_v33 = vor.u32 %v3356_v19, %v3353_v50  ;;  %v3243_v46 = vrot.slane %v3241_v28, 3  ;;  %v3246_v12 = vrot.slane %v3244_v34, 4  ;;  %v8046_v40 = vadd.f32 %v7912_v45, %v7910_v16  ;;  %v9530_v19 = vld [vmem:[#allocation24_spill] sm:$0xff]  ;;  %v9532_v45 = vld [vmem:[#allocation25_spill] sm:$0xff] }
 0x24a   : > { %v3335_v53 = vor.u32 %v3334_v49, %v3331_v39  ;;  %v3225_v6 = vor.u32 %v3224_v17, %v3221_v44  ;;  %v8028_v4 = vpop.f32.mrb[20].mxu0  ;;  %v3737_v55 = vstv %s6067_s13  ;;  %v8051_v15 = vadd.f32 %v7925_v63, %v7917_v10  ;;  %v9534_v10 = vld [vmem:[#allocation26_spill] sm:$0xff]  ;;  %v9539_v34 = vld [vmem:[#allocation28_spill] sm:$0xff] }
 0x24b   : > { %v3247_v57 = vor.u32 %v3246_v12, %v3243_v46  ;;  %v8030_v21 = vpop.f32.mrb[21].mxu0  ;;  %9525 = vst [vmem:[#allocation34_spill] sm:$0xff] %v8046_v40  ;;  %v8056_v42 = vadd.s32 %v3737_v55, %v9528_v36  ;;  %v8064_v16 = vadd.s32 %v3737_v55, %v9530_v19  ;;  %v8067_v28 = vadd.s32 %v3737_v55, %v9532_v45  ;;  %v9545_v12 = vld [vmem:[#allocation30_spill] sm:$0xff] }
 0x24c   : > { %v3336_v13 = vsel %vm9521_vm1, %v7981_v29, %v3335_v53  ;;  %v3358_v48 = vsel %vm9522_vm14, %v3335_v53, %v3357_v33  ;;  %3616 = vmatmul.mubr.bf16.gmra.mrb[60].mxu0 %v3340_v43  ;;  %v8032_v3 = vpop.f32.mrb[22].mxu0  ;;  %v3226_v52 = vsel %vm9523_vm12, %v3203_v32, %v3225_v6  ;;  %9526 = vst [vmem:[#allocation35_spill] sm:$0xff] %v8051_v15 }
 0x24d   : > { %5104 = vmatprep.mubr.bf16.mxu1 %v3336_v13  ;;  %5092 = vmatprep.mubr.bf16.mxu0 %v3204_v30  ;;  %v8035_v41 = vpop.f32.mrb[23].mxu0  ;;  %v3248_v29 = vsel %vm9524_vm13, %v3225_v6, %v3247_v57  ;;  %v3270_v24 = vsel %vm9527_vm11, %v3247_v57, %v7959_v31  ;;  %v8059_v32 = vadd.s32 %v3737_v55, %v9529_v47  ;;  %v9537_v31 = vld [vmem:[#allocation27_spill] sm:$0xff]  ;;  %v9199_v43 = vcvt.s32.f32 %v8056_v42  ;;  %v9543_v30 = vld [vmem:[#allocation29_spill] sm:$0xff] }
 0x24e   : > { %5105 = vmatmul.mubr.bf16.gmra.mrb[12].mxu1 %v3358_v48  ;;  %9531 = vst [vmem:[#allocation36_spill] sm:$0xff] %v8064_v16  ;;  %9533 = vst [vmem:[#allocation37_spill] sm:$0xff] %v8067_v28  ;;  %v8070_v63 = vadd.s32 %v3737_v55, %v9534_v10  ;;  %v8075_v49 = vadd.s32 %v3737_v55, %v9537_v31  ;;  %v8078_v33 = vadd.s32 %v3737_v55, %v9539_v34  ;;  %v9547_v48 = vld [vmem:[#allocation31_spill] sm:$0xff]  ;;  %v9550_v10 = vld [vmem:[#allocation32_spill] sm:$0xff] }
 0x24f   : > { %v9200_v17 = vcvt.s32.f32 %v8059_v32  ;;  %v8087_v46 = vadd.s32 %v3737_v55, %v9543_v30  ;;  %v8090_v13 = vadd.s32 %v3737_v55, %v9545_v12  ;;  %v8093_v6 = vadd.s32 %v3737_v55, %v9547_v48  ;;  %v9552_v34 = vld [vmem:[#allocation33_spill] sm:$0xff] }
 0x250   : > { %v8038_v8 = vpop.f32.mrb[20].mxu1  ;;  %9535 = vst [vmem:[#allocation23_spill] sm:$0xff] %v8070_v63  ;;  %9538 = vst [vmem:[#allocation25_spill] sm:$0xff] %v8075_v49  ;;  %v3770_v45 = vadd.f32 0.5, %v9199_v43  ;;  %v8105_v31 = vadd.s32 %v3737_v55, %v9550_v10  ;;  %v8108_v30 = vadd.s32 %v3737_v55, %v9552_v34  ;;  %v8111_v12 = vadd.s32 %v3737_v55, %v6482_v38 }
 0x251   : > { %v8040_v5 = vpop.f32.mrb[21].mxu1  ;;  %9540 = vst [vmem:[#allocation26_spill] sm:$0xff] %v8078_v33  ;;  %9544 = vst [vmem:[#allocation29_spill] sm:$0xff] %v8087_v46  ;;  %v3771_v48 = vadd.f32 0.5, %v9200_v17  ;;  %v8122_v10 = vadd.s32 %v3737_v55, %v9420_v59  ;;  %v9554_v17 = vcvt.s32.f32 %v8070_v63  ;;  %v9556_v19 = vcvt.s32.f32 %v8075_v49 }
 0x252   : > { %v8042_v23 = vpop.f32.mrb[22].mxu1  ;;  %9546 = vst [vmem:[#allocation30_spill] sm:$0xff] %v8090_v13  ;;  %9548 = vst [vmem:[#allocation31_spill] sm:$0xff] %v8093_v6  ;;  %v9557_v43 = vcvt.s32.f32 %v8078_v33  ;;  %v3786_v59 = vmul.f32 0.041666668, %v3770_v45  ;;  %v9561_v33 = vcvt.s32.f32 %v8090_v13 }
 0x253   : > { %v8061_v50 = vpop.f32.mrb[23].mxu1  ;;  %9551 = vst [vmem:[#allocation32_spill] sm:$0xff] %v8105_v31  ;;  %9553 = vst [vmem:[#allocation33_spill] sm:$0xff] %v8111_v12  ;;  %v3774_v36 = vadd.f32 0.5, %v9554_v17  ;;  %v3775_v47 = vadd.f32 0.5, %v9556_v19 }
 0x254   : > { %5093 = vmatmul.mubr.bf16.vlgmr.msra.gmra.mrb[64].mxu0 %v3226_v52  ;;  %v9202_v52 = vcvt.s32.f32 %v8064_v16  ;;  %v3776_v15 = vadd.f32 0.5, %v9557_v43  ;;  %v3787_v63 = vmul.f32 0.041666668, %v3771_v48  ;;  %v9560_v43 = vcvt.s32.f32 %v8087_v46 }
 0x255   : > { %5096 = vmatprep.mubr.bf16.mxu0 %v3248_v29  ;;  %v9203_v29 = vcvt.s32.f32 %v8067_v28  ;;  %v3778_v49 = vadd.f32 0.5, %v9561_v33  ;;  %v9562_v28 = vcvt.s32.f32 %v8093_v6  ;;  %v3790_v19 = vmul.f32 0.041666668, %v3774_v36 }
 0x256   : > { %v3772_v34 = vadd.f32 0.5, %v9202_v52  ;;  %v3777_v45 = vadd.f32 0.5, %v9560_v43  ;;  %v3792_v46 = vmul.f32 0.041666668, %v3776_v15  ;;  %v3802_v43 = vfloor.f32 %v3786_v59 }
 0x257   : > { %v3773_v38 = vadd.f32 0.5, %v9203_v29  ;;  %v3779_v52 = vadd.f32 0.5, %v9562_v28  ;;  %v9566_v28 = vcvt.s32.f32 %v8105_v31  ;;  %v3794_v15 = vmul.f32 0.041666668, %v3778_v49 }
 0x258   : > { %v3788_v48 = vmul.f32 0.041666668, %v3772_v34  ;;  %v8175_v33 = vfloor.f32 %v3790_v19  ;;  %vm3850_vm0 = vcmp.ge.f32.partialorder %v3802_v43, 1.0  ;;  %vm3866_vm4 = vcmp.le.f32.partialorder %v3802_v43, 16.0 }
 0x259   : > { %v3789_v17 = vmul.f32 0.041666668, %v3773_v38  ;;  %v3780_v6 = vadd.f32 0.5, %v9566_v28  ;;  %v9568_v38 = vcvt.s32.f32 %v8111_v12  ;;  %v3795_v59 = vmul.f32 0.041666668, %v3779_v52  ;;  %vm8259_vm13 = vmand %vm3850_vm0, %vm3866_vm4 }
 0x25a   : > { %v8072_v39 = vpop.f32.mrb[24].mxu0  ;;  %v3818_v28 = vmul.f32 24.0, %v3802_v43  ;;  %vm3854_vm3 = vcmp.ge.f32.partialorder %v8175_v33, 1.0  ;;  %vm3870_vm1 = vcmp.le.f32.partialorder %v8175_v33, 16.0  ;;  %v9591_v43 = vld [vmem:[#allocation34_spill] sm:$0xff] }
 0x25b   : > { %9536 = vst [vmem:[#allocation24_spill] sm:$0xff] %v8072_v39  ;;  %v8081_v44 = vpop.f32.mrb[25].mxu0  ;;  %v3782_v39 = vadd.f32 0.5, %v9568_v38  ;;  %v8173_v13 = vfloor.f32 %v3789_v17  ;;  %v8189_v49 = vmul.f32 0.041666668, %v3780_v6  ;;  %vm8345_vm4 = vmand %vm3854_vm3, %vm3870_vm1 }
 0x25c   : > { %5097 = vmatmul.mubr.bf16.gmra.mrb[68].mxu0 %v3270_v24  ;;  %9541 = vst [vmem:[#allocation27_spill] sm:$0xff] %v8081_v44  ;;  %v8084_v53 = vpop.f32.mrb[26].mxu0  ;;  %v8116_v24 = vadd.s32 %v3737_v55, %v6488_v0  ;;  %v8131_v0 = vadd.s32 %v3737_v55, %v9421_v1  ;;  %v3803_v44 = vfloor.f32 %v3787_v63  ;;  %v8179_v63 = vfloor.f32 %v3792_v46 }
 0x25d   : > { %9542 = vst [vmem:[#allocation28_spill] sm:$0xff] %v8084_v53  ;;  %v8095_v57 = vpop.f32.mrb[27].mxu0  ;;  %v3791_v53 = vmul.f32 0.041666668, %v3775_v47  ;;  %v3793_v47 = vmul.f32 0.041666668, %v3777_v45  ;;  %v8199_v45 = vfloor.f32 %v3794_v15 }
 0x25e   : > { %9549 = vst [vmem:[#allocation38_spill] sm:$0xff] %v8095_v57  ;;  %9555 = vst [vmem:[#allocation39_spill] sm:$0xff] %v8131_v0  ;;  %v9571_v38 = vcvt.s32.f32 %v8131_v0  ;;  %v3819_v52 = vmul.f32 24.0, %v3803_v44  ;;  %v8193_v19 = vmul.f32 0.041666668, %v3782_v39  ;;  %v3821_v0 = vmul.f32 24.0, %v8173_v13 }
 0x25f   : > { %v8177_v31 = vfloor.f32 %v3791_v53  ;;  %v8197_v46 = vfloor.f32 %v3793_v47  ;;  %v8211_v39 = vmul.f32 24.0, %v8179_v63  ;;  %v9573_v47 = vcvt.s32.f32 %v8059_v32 }
 0x260   : > { %vm3851_vm2 = vcmp.ge.f32.partialorder %v3803_v44, 1.0  ;;  %vm3853_vm7 = vcmp.ge.f32.partialorder %v8173_v13, 1.0  ;;  %vm3856_vm5 = vcmp.ge.f32.partialorder %v8179_v63, 1.0  ;;  %vm3867_vm15 = vcmp.le.f32.partialorder %v3803_v44, 16.0 }
 0x261   : > { %v8208_v6 = vmul.f32 24.0, %v8177_v31  ;;  %v8219_v15 = vsub.f32 %v9573_v47, %v3819_v52  ;;  %vm3855_vm8 = vcmp.ge.f32.partialorder %v8177_v31, 1.0  ;;  %vm3869_vm9 = vcmp.le.f32.partialorder %v8173_v13, 16.0  ;;  %vm8277_vm11 = vmand %vm3851_vm2, %vm3867_vm15 }
 0x262   : > { %vm3871_vm14 = vcmp.le.f32.partialorder %v8177_v31, 16.0  ;;  %vm3872_vm12 = vcmp.le.f32.partialorder %v8179_v63, 16.0  ;;  %v8239_v52 = vadd.f32 %v7967_v22, %v7961_v20  ;;  %v8265_v20 = vadd.f32 %v8001_v7, %v7995_v11  ;;  %vm8319_vm2 = vmand %vm3853_vm7, %vm3869_vm9 }
 0x263   : > { %v8137_v40 = vpop.f32.mrb[24].mxu1  ;;  %v8139_v16 = vpop.f32.mrb[28].mxu0  ;;  %v4876_v22 = vadd.f32 %v8040_v5, %v8038_v8  ;;  %vm3873_vm7 = vcmp.le.f32.partialorder %v8197_v46, 16.0  ;;  %vm3858_vm15 = vcmp.ge.f32.partialorder %v8199_v45, 1.0  ;;  %vm8359_vm9 = vmand %vm3855_vm8, %vm3871_vm14  ;;  %vm3899_vm1 = vcmp.ge.f32.partialorder %v8219_v15, 1.0 }
 0x264   : > { %9558 = vst [vmem:[#allocation40_spill] sm:$0xff] %v8139_v16  ;;  %v8144_v1 = vpop.f32.mrb[25].mxu1  ;;  %v8146_v55 = vpop.f32.mrb[29].mxu0  ;;  %vm8377_vm3 = vmand %vm3856_vm5, %vm3872_vm12 }
 0x265   : > { %9559 = vst [vmem:[#allocation41_spill] sm:$0xff] %v8146_v55  ;;  %v8155_v16 = vpop.f32.mrb[26].mxu1  ;;  %v8157_v29 = vpop.f32.mrb[30].mxu0 }
 0x266   : > { %9563 = vst [vmem:[#allocation42_spill] sm:$0xff] %v8157_v29  ;;  %v8159_v57 = vpop.f32.mrb[27].mxu1  ;;  %v8161_v55 = vpop.f32.mrb[31].mxu0  ;;  %v9567_v29 = vcvt.s32.f32 %v8108_v30 }
 0x267   : > { %9564 = vst [vmem:[#allocation43_spill] sm:$0xff] %v8159_v57  ;;  %9565 = vst [vmem:[#allocation44_spill] sm:$0xff] %v8161_v55  ;;  %v9569_v55 = vcvt.s32.f32 %v8116_v24  ;;  %v3804_v57 = vfloor.f32 %v3788_v48  ;;  %v8201_v48 = vfloor.f32 %v3795_v59  ;;  %v4799_v59 = vadd.f32 %v7945_v26, %v7941_v61 }
 0x268   : > { %v3781_v34 = vadd.f32 0.5, %v9567_v29  ;;  %v9570_v29 = vcvt.s32.f32 %v8122_v10  ;;  %v4873_v61 = vadd.f32 %v8022_v60, %v8018_v37  ;;  %v8255_v26 = vadd.f32 %v7992_v18, %v7990_v2 }
 0x269   : > { %v3783_v36 = vadd.f32 0.5, %v9569_v55  ;;  %v8187_v55 = vadd.f32 0.5, %v9571_v38  ;;  %v8205_v38 = vmul.f32 24.0, %v8175_v33  ;;  %vm3852_vm10 = vcmp.ge.f32.partialorder %v3804_v57, 1.0  ;;  %v9600_v33 = vld [vmem:[#allocation35_spill] sm:$0xff] }
 0x26a   : > { %v8183_v12 = vadd.f32 0.5, %v9570_v29  ;;  %v8191_v17 = vmul.f32 0.041666668, %v3781_v34  ;;  %v3820_v29 = vmul.f32 24.0, %v3804_v57  ;;  %v9572_v34 = vcvt.s32.f32 %v8056_v42 }
 0x26b   : > { %v8195_v53 = vmul.f32 0.041666668, %v3783_v36  ;;  %vm3868_vm6 = vcmp.le.f32.partialorder %v3804_v57, 16.0  ;;  %v4796_v42 = vadd.f32 %v7939_v56, %v7932_v51  ;;  %v8247_v51 = vadd.f32 %v7986_v27, %v7983_v35  ;;  %v9585_v5 = vld [vmem:[#allocation40_spill] sm:$0xff] }
 0x26c   : > { %v8215_v36 = vsub.f32 %v9572_v34, %v3818_v28  ;;  %v8235_v28 = vadd.f32 %v7957_v54, %v7952_v58  ;;  %v8243_v34 = vadd.f32 %v7977_v62, %v7970_v9  ;;  %v4870_v56 = vadd.f32 %v8016_v25, %v8014_v14  ;;  %v9579_v14 = vld [vmem:[#allocation24_spill] sm:$0xff]  ;;  %v9580_v25 = vld [vmem:[#allocation27_spill] sm:$0xff]  ;;  %vm8299_vm0 = vmand %vm3852_vm10, %vm3868_vm6 }
 0x26d   : > { %v4879_v9 = vadd.f32 %v8061_v50, %v8042_v23  ;;  %v8273_v62 = vadd.f32 %v8030_v21, %v8028_v4  ;;  %v8283_v2 = vadd.f32 %v8035_v41, %v8032_v3  ;;  %v8287_v18 = vadd.f32 %v8144_v1, %v8137_v40  ;;  %v9583_v4 = vld [vmem:[#allocation28_spill] sm:$0xff]  ;;  %v9584_v21 = vld [vmem:[#allocation38_spill] sm:$0xff]  ;;  %v9586_v23 = vld [vmem:[#allocation41_spill] sm:$0xff] }
 0x26e   : > { %v9578_v11 = vld [vmem:[#allocation43_spill] sm:$0xff]  ;;  %v8295_v37 = vadd.f32 %v9580_v25, %v9579_v14  ;;  %v8305_v3 = vadd.f32 %v9584_v21, %v9583_v4  ;;  %v8313_v40 = vadd.f32 %v9586_v23, %v9585_v5  ;;  %v9590_v44 = vld [vmem:[#allocation44_spill] sm:$0xff]  ;;  %v8327_v1 = vadd.f32 %v4876_v22, %v4796_v42  ;;  %v9605_v5 = vld [vmem:[#allocation25_spill] sm:$0xff] }
 0x26f   : > { %v8291_v7 = vadd.f32 %v9578_v11, %v8155_v16  ;;  %v9589_v16 = vld [vmem:[#allocation42_spill] sm:$0xff]  ;;  %vm3857_vm10 = vcmp.ge.f32.partialorder %v8197_v46, 1.0  ;;  %vm3874_vm6 = vcmp.le.f32.partialorder %v8199_v45, 16.0  ;;  %v3812_v14 = vfloor.f32 %v8189_v49  ;;  %v9601_v25 = vld [vmem:[#allocation23_spill] sm:$0xff] }
 0x270   : > { %v8325_v57 = vadd.f32 %v9590_v44, %v9589_v16  ;;  %v9602_v4 = vcvt.s32.f32 %v9601_v25  ;;  %vm3898_vm8 = vcmp.ge.f32.partialorder %v8215_v36, 1.0  ;;  %v8384_v49 = vfloor.f32 %v8191_v17  ;;  %vm8395_vm5 = vmand %vm3857_vm10, %vm3873_vm7  ;;  %v9609_v16 = vld [vmem:[#allocation26_spill] sm:$0xff] }
 0x271   : > { %v9606_v23 = vcvt.s32.f32 %v9605_v5  ;;  %v8402_v17 = vfloor.f32 %v8193_v19  ;;  %v9610_v44 = vcvt.s32.f32 %v9609_v16  ;;  %vm8413_vm14 = vmand %vm3858_vm15, %vm3874_vm6  ;;  %v3827_v19 = vmul.f32 24.0, %v8201_v48  ;;  %v9630_v16 = vld [vmem:[#allocation32_spill] sm:$0xff] }
 0x272   : > { %v8371_v21 = vsub.f32 %v9602_v4, %v8205_v38  ;;  %vm8431_vm7 = vmand %vm8259_vm13, %vm3898_vm8  ;;  %v3829_v54 = vmul.f32 24.0, %v8384_v49  ;;  %v8627_v25 = vadd.f32 %v8291_v7, %v8239_v52  ;;  %v9682_v7 = vmov 0 }
 0x273   : > { %v4886_v32 = vpop.f32.mrb[28].mxu1  ;;  %v8389_v38 = vsub.f32 %v9606_v23, %v8208_v6  ;;  %v8407_v6 = vsub.f32 %v9610_v44, %v8211_v39  ;;  %v3828_v39 = vmul.f32 24.0, %v3812_v14  ;;  %vm8442_vm6 = vmand %vm8277_vm11, %vm3899_vm1  ;;  %vm3875_vm11 = vcmp.le.f32.partialorder %v8201_v48, 16.0 }
 0x274   : > { %v4887_v47 = vpop.f32.mrb[29].mxu1  ;;  %v8468_v60 = vmul.f32 24.0, %v8402_v17  ;;  %v9631_v44 = vcvt.s32.f32 %v9630_v16 }
 0x275   : > { %v4889_v58 = vpop.f32.mrb[30].mxu1  ;;  %v8307_v41 = vadd.f32 %v4887_v47, %v4886_v32  ;;  %v8330_v32 = vadd.f32 %v4870_v56, %v9591_v43  ;;  %v8332_v47 = vadd.f32 %v4879_v9, %v4799_v59  ;;  %v9596_v59 = vld [vmem:[#allocation37_spill] sm:$0xff]  ;;  %v8364_v9 = vadd.f32 %v4873_v61, %v9600_v33 }
 0x276   : > { %v4890_v35 = vpop.f32.mrb[31].mxu1  ;;  %v9597_v56 = vcvt.s32.f32 %v9596_v59  ;;  %v3800_v61 = vmul.f32 0.041666668, %v8183_v12  ;;  %v3801_v12 = vmul.f32 0.041666668, %v8187_v55  ;;  %v8419_v55 = vfloor.f32 %v8195_v53  ;;  %v9613_v43 = vld [vmem:[#allocation29_spill] sm:$0xff] }
 0x277   : > { %v8309_v8 = vadd.f32 %v4890_v35, %v4889_v58  ;;  %v3825_v58 = vmul.f32 24.0, %v8197_v46  ;;  %v9592_v35 = vld [vmem:[#allocation36_spill] sm:$0xff]  ;;  %v9617_v59 = vld [vmem:[#allocation30_spill] sm:$0xff]  ;;  %vm3903_vm13 = vcmp.ge.f32.partialorder %v8389_v38, 1.0  ;;  %v5723_v46 = vmov 0.0  }
 0x278   : > { %v9593_v11 = vcvt.s32.f32 %v9592_v35  ;;  %v8351_v22 = vsub.f32 %v9597_v56, %v3821_v0  ;;  %v3826_v0 = vmul.f32 24.0, %v8199_v45  ;;  %v9614_v35 = vcvt.s32.f32 %v9613_v43 }
 0x279   : > { %v9618_v53 = vcvt.s32.f32 %v9617_v59  ;;  %v8446_v33 = vfloor.f32 %v3800_v61  ;;  %v8471_v4 = vmul.f32 24.0, %v8419_v55  ;;  %v9625_v61 = vld [vmem:[#allocation31_spill] sm:$0xff]  ;;  %v8488_v43 = vsub.f32 %v9631_v44, %v3828_v39 }
 0x27a   : > { %v8337_v13 = vsub.f32 %v9593_v11, %v3820_v29  ;;  %v8424_v11 = vsub.f32 %v9614_v35, %v3825_v58  ;;  %vm3901_vm10 = vcmp.ge.f32.partialorder %v8351_v22, 1.0  ;;  %v9619_v58 = vmov 0 }
 0x27b   : > { %v8437_v56 = vsub.f32 %v9618_v53, %v3826_v0  ;;  %v9620_v58 = vsel %vm8442_vm6, 4294967295, %v9619_v58  ;;  %v8456_v0 = vfloor.f32 %v3801_v12  ;;  %vm8463_vm6 = vmand %vm8319_vm2, %vm3901_vm10  ;;  %v9626_v5 = vcvt.s32.f32 %v9625_v61 }
 0x27c   : > { %vm3900_vm12 = vcmp.ge.f32.partialorder %v8337_v13, 1.0  ;;  %v9634_v35 = vcvt.s32.f32 %v8108_v30  ;;  %v9636_v39 = vmov 0  ;;  %v9639_v29 = vmov 0 }
 0x27d   : > { %vm8452_vm8 = vmand %vm8299_vm0, %vm3900_vm12  ;;  %v8475_v23 = vsub.f32 %v9626_v5, %v3827_v19  ;;  %vm9627_vm12 = vcmp.ge.f32.partialorder %v8371_v21, 1.0  ;;  %vm9645_vm10 = vcmp.ge.f32.partialorder %v3812_v14, 1.0  ;;  %vm9648_vm1 = vcmp.ge.f32.partialorder %v8437_v56, 1.0 }
 0x27e   : > { %vm8482_vm2 = vmand %vm8345_vm4, %vm9627_vm12  ;;  %v8501_v59 = vsub.f32 %v9634_v35, %v3829_v54  ;;  %vm9635_vm12 = vcmp.ge.f32.partialorder %v8201_v48, 1.0  ;;  %v9646_v54 = vmov 0  ;;  %v9688_v35 = vld [vmem:[#allocation33_spill] sm:$0xff] }
 0x27f   : > { %vm8495_vm0 = vmand %vm8359_vm9, %vm3903_vm13  ;;  %vm9638_vm9 = vcmp.ge.f32.partialorder %v8407_v6, 1.0 }
 0x280   : > { %vm8508_vm15 = vmand %vm9635_vm12, %vm3875_vm11  ;;  %vm9641_vm12 = vcmp.ge.f32.partialorder %v8424_v11, 1.0  ;;  %vm9659_vm11 = vnez %v9620_v58 }
 0x281   : > { %v9637_v39 = vsel %vm8508_vm15, 4294967295, %v9636_v39  ;;  %vm8516_vm13 = vmand %vm8377_vm3, %vm9638_vm9  ;;  %vm9644_vm9 = vcmp.le.f32.partialorder %v3812_v14, 16.0  ;;  %v9652_v14 = vmov 0  ;;  %vm9658_vm3 = vcmp.le.f32.partialorder %v8219_v15, 16.0 }
 0x282   : > { %v9640_v29 = vsel %vm8516_vm13, 4294967295, %v9639_v29  ;;  %vm8528_vm15 = vmand %vm8395_vm5, %vm9641_vm12  ;;  %vm9654_vm12 = vcmp.le.f32.partialorder %v8384_v49, 16.0  ;;  %vm9655_vm5 = vcmp.ge.f32.partialorder %v8384_v49, 1.0  ;;  %v9663_v15 = vmov 0 }
 0x283   : > { %v4892_v12 = vpop.f32.mrb[32].mxu1  ;;  %vm8535_vm13 = vmand %vm9645_vm10, %vm9644_vm9 }
 0x284   : > { %v4893_v42 = vpop.f32.mrb[33].mxu1  ;;  %v9647_v54 = vsel %vm8535_vm13, 4294967295, %v9646_v54  ;;  %vm8543_vm4 = vmand %vm8413_vm14, %vm9648_vm1  ;;  %vm9651_vm14 = vcmp.le.f32.partialorder %v8215_v36, 16.0  ;;  %v9660_v36 = vmov 0 }
 0x285   : > { %v4894_v30 = vadd.f32 %v4893_v42, %v4892_v12  ;;  %v4895_v53 = vpop.f32.mrb[34].mxu1  ;;  %vm8559_vm1 = vmand %vm8431_vm7, %vm9651_vm14  ;;  %v8588_v12 = vadd.f32 %v8287_v18, %v8235_v28  ;;  %vm9666_vm14 = vcmp.le.f32.partialorder %v8402_v17, 16.0  ;;  %vm9667_vm7 = vcmp.ge.f32.partialorder %v8402_v17, 1.0 }
 0x286   : > { %v4896_v31 = vpop.f32.mrb[35].mxu1  ;;  %v9653_v14 = vsel %vm8559_vm1, 4294967295, %v9652_v14  ;;  %vm8567_vm13 = vmand %vm9655_vm5, %vm9654_vm12  ;;  %v4554_v45 = vsel %vm8559_vm1, 1.0, %v5723_v46  ;;  %vm9665_vm12 = vcmask 7168   ;;  %v9671_v18 = vmov 0 }
 0x287   : > { %v8549_v63 = vadd.f32 %v4894_v30, %v8255_v26  ;;  %v4897_v5 = vadd.f32 %v4896_v31, %v4895_v53  ;;  %vm8576_vm9 = vmand %vm9659_vm11, %vm9658_vm3  ;;  %vm9662_vm11 = vcmp.le.f32.partialorder %v8337_v13, 16.0  ;;  %v4107_v58 = vsel %vm9665_vm12, %v4554_v45, 0.0 }
 0x288   : > { %v9661_v36 = vsel %vm8576_vm9, 4294967295, %v9660_v36  ;;  %vm8596_vm3 = vmand %vm8452_vm8, %vm9662_vm11  ;;  %vm9670_vm8 = vcmp.le.f32.partialorder %v8351_v22, 16.0  ;;  %v9674_v22 = vmov 0  ;;  %vm9677_vm5 = vcmp.le.f32.partialorder %v8419_v55, 16.0 }
 0x289   : > { %v8584_v49 = vadd.f32 %v4897_v5, %v8265_v20  ;;  %v9664_v15 = vsel %vm8596_vm3, 4294967295, %v9663_v15  ;;  %v4555_v20 = vsel %vm8576_vm9, 1.0, %v5723_v46  ;;  %vm8608_vm10 = vmand %vm9667_vm7, %vm9666_vm14  ;;  %v4556_v13 = vsel %vm8596_vm3, 1.0, %v5723_v46 }
 0x28a   : > { %vm8617_vm11 = vmand %vm8463_vm6, %vm9670_vm8  ;;  %v4108_v17 = vsel %vm9665_vm12, %v4555_v20, 0.0  ;;  %vm9673_vm14 = vcmp.le.f32.partialorder %v8371_v21, 16.0  ;;  %vm9678_vm7 = vcmp.ge.f32.partialorder %v8419_v55, 1.0  ;;  %v3832_v42 = vmul.f32 24.0, %v8446_v33 }
 0x28b   : > { %v9672_v18 = vsel %vm8617_vm11, 4294967295, %v9671_v18  ;;  %vm8634_vm6 = vmand %vm8482_vm2, %vm9673_vm14  ;;  %v4557_v27 = vsel %vm8617_vm11, 1.0, %v5723_v46  ;;  %v4109_v16 = vadd.f32 %v4108_v17, %v4107_v58  ;;  %vm9681_vm14 = vcmp.le.f32.partialorder %v8389_v38, 16.0 }
 0x28c   : > { %v9675_v22 = vsel %vm8634_vm6, 4294967295, %v9674_v22  ;;  %vm9676_vm8 = vmmov %vm9665_vm12  ;;  %v4558_v21 = vsel %vm8634_vm6, 1.0, %v5723_v46  ;;  %vm9684_vm12 = vcmp.le.f32.partialorder %v8407_v6, 16.0  ;;  %vm9685_vm2 = vnez %v9640_v29 }
 0x28d   : > { %v4110_v44 = vsel %vm9676_vm8, %v4556_v13, 0.0  ;;  %vm8647_vm9 = vmand %vm9678_vm7, %vm9677_vm5  ;;  %v4112_v55 = vsel %vm9676_vm8, %v4557_v27, 0.0  ;;  %v9686_v38 = vmov 0  ;;  %v9689_v30 = vcvt.s32.f32 %v9688_v35 }
 0x28e   : > { %vm8656_vm1 = vmand %vm8495_vm0, %vm9681_vm14  ;;  %v4111_v19 = vadd.f32 %v4110_v44, %v4109_v16  ;;  %vm9690_vm0 = vcmp.le.f32.partialorder %v8446_v33, 16.0  ;;  %vm9691_vm14 = vcmp.ge.f32.partialorder %v8446_v33, 1.0  ;;  %v9695_v29 = vmov 0 }
 0x28f   : > { %v9683_v7 = vsel %vm8656_vm1, 4294967295, %v9682_v7  ;;  %vm8670_vm11 = vmand %vm9685_vm2, %vm9684_vm12  ;;  %v4559_v50 = vsel %vm8656_vm1, 1.0, %v5723_v46  ;;  %v3846_v53 = vsub.f32 %v9689_v30, %v8468_v60  ;;  %vm3908_vm12 = vcmp.ge.f32.partialorder %v8488_v43, 1.0 }
 0x290   : > { %v9687_v38 = vsel %vm8670_vm11, 4294967295, %v9686_v38  ;;  %vm8685_vm8 = vmand %vm9691_vm14, %vm9690_vm0  ;;  %vm9694_vm2 = vcmp.le.f32.partialorder %v8424_v11, 16.0  ;;  %vm9697_vm5 = vcmask 7168   ;;  %v3833_v31 = vmul.f32 24.0, %v8456_v0 }
 0x291   : > { %vm8694_vm7 = vmand %vm8528_vm15, %vm9694_vm2  ;;  %v4114_v60 = vsel %vm9697_vm5, %v4558_v21, 0.0  ;;  %vm9698_vm1 = vcmp.ge.f32.partialorder %v8475_v23, 1.0  ;;  %vm9699_vm0 = vnez %v9637_v39  ;;  %v4560_v11 = vsel %vm8670_vm11, 1.0, %v5723_v46 }
 0x292   : > { %v9696_v29 = vsel %vm8694_vm7, 4294967295, %v9695_v29  ;;  %vm8704_vm14 = vmand %vm9699_vm0, %vm9698_vm1  ;;  %v4113_v48 = vadd.f32 %v4112_v55, %v4111_v19  ;;  %v9702_v5 = vcvt.s32.f32 %v8116_v24  ;;  %vm9703_vm15 = vcmp.le.f32.partialorder %v8456_v0, 16.0 }
 0x293   : > { %vm9704_vm5 = vcmp.ge.f32.partialorder %v8456_v0, 1.0  ;;  %v9705_v39 = vmov 0  ;;  %vm3909_vm1 = vcmp.ge.f32.partialorder %v8501_v59, 1.0  ;;  %vm9707_vm0 = vcmp.le.f32.partialorder %v8437_v56, 16.0 }
 0x294   : > { %v3847_v45 = vsub.f32 %v9702_v5, %v8471_v4  ;;  %vm8719_vm2 = vmand %vm9704_vm5, %vm9703_vm15  ;;  %v9708_v20 = vmov 0  ;;  %vm9710_vm11 = vcmask 7168   ;;  %v8735_v4 = vadd.f32 %v8307_v41, %v8243_v34 }
 0x295   : > { %v9706_v39 = vsel %vm8719_vm2, 4294967295, %v9705_v39  ;;  %vm8728_vm6 = vmand %vm8543_vm4, %vm9707_vm0  ;;  %v4116_v24 = vsel %vm9710_vm11, %v4559_v50, 0.0  ;;  %vm9711_vm15 = vnez %v9647_v54  ;;  %vm3940_vm3 = vcmp.le.f32.partialorder %v8488_v43, 16.0  ;;  %v9719_v54 = vld [vmem:[#allocation39_spill] sm:$0xff] }
 0x296   : > { %v9709_v20 = vsel %vm8728_vm6, 4294967295, %v9708_v20  ;;  %vm8739_vm5 = vmand %vm9711_vm15, %vm3908_vm12  ;;  %v4561_v56 = vsel %vm8694_vm7, 1.0, %v5723_v46  ;;  %v4115_v61 = vadd.f32 %v4114_v60, %v4113_v48  ;;  %v9714_v58 = vcvt.s32.f32 %v8122_v10 }
 0x297   : > { %vm3910_vm4 = vcmp.ge.f32.partialorder %v3846_v53, 1.0  ;;  %vm9715_vm11 = vcmp.le.f32.partialorder %v8475_v23, 16.0  ;;  %v9716_v34 = vmov 0  ;;  %vm9718_vm12 = vcmask 7168   ;;  %vm3925_vm15 = vmand %vm8567_vm13, %vm3909_vm1 }
 0x298   : > { %v3848_v13 = vsub.f32 %v9714_v58, %v3832_v42  ;;  %vm8753_vm0 = vmand %vm8704_vm14, %vm9715_vm11  ;;  %v4118_v41 = vsel %vm9718_vm12, %v4560_v11, 0.0  ;;  %v8760_v43 = vadd.f32 %v8309_v8, %v8247_v51  ;;  %vm3941_vm7 = vcmp.le.f32.partialorder %v8501_v59, 16.0 }
 0x299   : > { %v9717_v34 = vsel %vm8753_vm0, 4294967295, %v9716_v34  ;;  %v4562_v10 = vsel %vm8728_vm6, 1.0, %v5723_v46  ;;  %v4117_v23 = vadd.f32 %v4116_v24, %v4115_v61  ;;  %v9720_v17 = vcvt.s32.f32 %v9719_v54  ;;  %vm8772_vm11 = vmand %vm8739_vm5, %vm3940_vm3 }
 0x29a   : > { %vm3911_vm14 = vcmp.ge.f32.partialorder %v3847_v45, 1.0  ;;  %v4120_v51 = vsel %vm9718_vm12, %v4561_v56, 0.0  ;;  %vm3926_vm13 = vmand %vm8608_vm10, %vm3910_vm4  ;;  %vm3942_vm1 = vcmp.le.f32.partialorder %v3846_v53, 16.0  ;;  %v4563_v8 = vsel %vm8753_vm0, 1.0, %v5723_v46 }
 0x29b   : > { %v3849_v27 = vsub.f32 %v9720_v17, %v3833_v31  ;;  %v4119_v59 = vadd.f32 %v4118_v41, %v4117_v23  ;;  %vm3912_vm6 = vcmp.ge.f32.partialorder %v3848_v13, 1.0  ;;  %vm8782_vm2 = vmand %vm3925_vm15, %vm3941_vm7  ;;  %v4564_v28 = vsel %vm8772_vm11, 1.0, %v5723_v46 }
 0x29c   : > { %vm9725_vm3 = vmmov %vm9718_vm12  ;;  %vm3943_vm12 = vcmp.le.f32.partialorder %v3847_v45, 16.0  ;;  %v4565_v52 = vsel %vm8782_vm2, 1.0, %v5723_v46 }
 0x29d   : > { %v4122_v44 = vsel %vm9725_vm3, %v4562_v10, 0.0  ;;  %vm3927_vm5 = vmand %vm8647_vm9, %vm3911_vm14  ;;  %v4121_v21 = vadd.f32 %v4120_v51, %v4119_v59  ;;  %vm3913_vm10 = vcmp.ge.f32.partialorder %v3849_v27, 1.0  ;;  %vm3945_vm0 = vcmp.le.f32.partialorder %v3849_v27, 16.0 }
 0x29e   : > { %vm8792_vm4 = vmand %vm3926_vm13, %vm3942_vm1  ;;  %vm9732_vm13 = vnez %v9706_v39 }
 0x29f   : > { %vm9728_vm7 = vmmov %vm9725_vm3  ;;  %vm3944_vm3 = vcmp.le.f32.partialorder %v3848_v13, 16.0  ;;  %v4123_v19 = vadd.f32 %v4122_v44, %v4121_v21  ;;  %v4566_v30 = vsel %vm8792_vm4, 1.0, %v5723_v46 }
 0x2a0   : > { %v4124_v50 = vsel %vm9728_vm7, %v4563_v8, 0.0  ;;  %vm3928_vm15 = vmand %vm8685_vm8, %vm3912_vm6 }
 0x2a1   : > { %vm8802_vm9 = vmand %vm3927_vm5, %vm3943_vm12  ;;  %v4125_v53 = vadd.f32 %v4124_v50, %v4123_v19 }
 0x2a2   : > { %vm9731_vm14 = vmmov %vm9728_vm7  ;;  %v4567_v31 = vsel %vm8802_vm9, 1.0, %v5723_v46  ;;  %v4948_v24 = vpop.f32.mrb[32].mxu0 }
 0x2a3   : > { %v4126_v35 = vsel %vm9731_vm14, %v4564_v28, 0.0  ;;  %vm3929_vm1 = vmand %vm9732_vm13, %vm3913_vm10  ;;  %v4949_v61 = vpop.f32.mrb[33].mxu0  ;;  %vm9744_vm14 = vnez %v9664_v15  ;;  %vm9745_vm13 = vnez %v9672_v18 }
 0x2a4   : > { %vm8812_vm6 = vmand %vm3928_vm15, %vm3944_vm3  ;;  %v4127_v33 = vadd.f32 %v4126_v35, %v4125_v53  ;;  %v4950_v13 = vadd.f32 %v4949_v61, %v4948_v24  ;;  %v4951_v41 = vpop.f32.mrb[34].mxu0  ;;  %vm9742_vm15 = vnez %v9709_v20  ;;  %vm9743_vm3 = vnez %v9717_v34 }
 0x2a5   : > { %vm9735_vm8 = vmmov %vm9728_vm7  ;;  %v4568_v5 = vsel %vm8812_vm6, 1.0, %v5723_v46  ;;  %v4952_v23 = vpop.f32.mrb[35].mxu0 }
 0x2a6   : > { %v4128_v60 = vsel %vm9735_vm8, %v4565_v52, 0.0  ;;  %vm8820_vm5 = vmand %vm3929_vm1, %vm3945_vm0  ;;  %v4953_v17 = vadd.f32 %v4952_v23, %v4951_v41  ;;  %vm9746_vm1 = vnez %v9653_v14  ;;  %vm9747_vm8 = vnez %v9661_v36 }
 0x2a7   : > { %vm9738_vm12 = vmmov %vm9728_vm7  ;;  %v4129_v45 = vadd.f32 %v4128_v60, %v4127_v33  ;;  %v4569_v0 = vsel %vm8820_vm5, 1.0, %v5723_v46 }
 0x2a8   : > { %v4130_v48 = vsel %vm9738_vm12, %v4566_v30, 0.0  ;;  %vm9739_vm10 = vmmov %vm9728_vm7  ;;  %vm9748_vm12 = vnez %v9675_v22 }
 0x2a9   : > { %v4132_v39 = vsel %vm9739_vm10, %v4567_v31, 0.0  ;;  %v4131_v56 = vadd.f32 %v4130_v48, %v4129_v45  ;;  %vm9740_vm0 = vmmov %vm9728_vm7  ;;  %vm9749_vm10 = vnez %v9687_v38 }
 0x2aa   : > { %v4134_v58 = vsel %vm9740_vm0, %v4568_v5, 0.0  ;;  %vm9741_vm7 = vmmov %vm9740_vm0  ;;  %vm9750_vm0 = vnez %v9696_v29 }
 0x2ab   : > { %v4133_v10 = vadd.f32 %v4132_v39, %v4131_v56  ;;  %v4136_v54 = vsel %vm9741_vm7, %v4569_v0, 0.0  ;;  %vm9751_vm7 = vnez %v9683_v7 }
 0x2ad   : > { %v4135_v27 = vadd.f32 %v4134_v58, %v4133_v10 }
 0x2ae   : > { %v4898_v8 = vpop.f32.mrb[36].mxu1 }
 0x2af   : > { %v4137_v51 = vadd.f32 %v4136_v54, %v4135_v27  ;;  %v4899_v59 = vpop.f32.mrb[37].mxu1 }
 0x2b0   : > { %v4900_v44 = vadd.f32 %v4899_v59, %v4898_v8  ;;  %v4901_v28 = vpop.f32.mrb[38].mxu1 }
 0x2b1   : > { %4138 = vadd.xlane.f32.xlu0 %v4137_v51  ;;  %v4902_v21 = vpop.f32.mrb[39].mxu1 }
 0x2b2   : > { %v8835_v46 = vadd.f32 %v4900_v44, %v8273_v62  ;;  %v4903_v50 = vadd.f32 %v4902_v21, %v4901_v28 }
 0x2b4   : > { %v8838_v52 = vadd.f32 %v4903_v50, %v8283_v2 }
 0x2ba   : > { %v4954_v19 = vpop.f32.mrb[36].mxu0 }
 0x2bb   : > { %v4955_v35 = vpop.f32.mrb[37].mxu0 }
 0x2bc   : > { %v4956_v30 = vadd.f32 %v4955_v35, %v4954_v19  ;;  %v4957_v53 = vpop.f32.mrb[38].mxu0 }
 0x2bd   : > { %v4958_v60 = vpop.f32.mrb[39].mxu0 }
 0x2be   : > { %v4959_v31 = vadd.f32 %v4958_v60, %v4957_v53 }
 0x2cb   : > { %v4904_v33 = vpop.f32.mrb[40].mxu1 }
 0x2cc   : > { %v4905_v48 = vpop.f32.mrb[41].mxu1 }
 0x2cd   : > { %v4906_v5 = vadd.f32 %v4905_v48, %v4904_v33  ;;  %v4907_v45 = vpop.f32.mrb[42].mxu1 }
 0x2ce   : > { %v4908_v39 = vpop.f32.mrb[43].mxu1 }
 0x2cf   : > { %v8841_v24 = vadd.f32 %v4906_v5, %v8295_v37  ;;  %v4909_v62 = vadd.f32 %v4908_v39, %v4907_v45 }
 0x2d1   : > { %v8844_v0 = vadd.f32 %v4909_v62, %v8305_v3 }
 0x2d3   : > { %v4910_v2 = vpop.f32.mrb[44].mxu1 }
 0x2d4   : > { %v4911_v56 = vpop.f32.mrb[45].mxu1 }
 0x2d5   : > { %v4960_v61 = vpop.f32.mrb[40].mxu0  ;;  %v4912_v58 = vadd.f32 %v4911_v56, %v4910_v2  ;;  %v4913_v41 = vpop.f32.mrb[46].mxu1 }
 0x2d6   : > { %v4961_v10 = vpop.f32.mrb[41].mxu0  ;;  %v4914_v23 = vpop.f32.mrb[47].mxu1 }
 0x2d7   : > { %v4962_v54 = vadd.f32 %v4961_v10, %v4960_v61  ;;  %v4963_v27 = vpop.f32.mrb[42].mxu0  ;;  %v8847_v51 = vadd.f32 %v4912_v58, %v8313_v40  ;;  %v4915_v8 = vadd.f32 %v4914_v23, %v4913_v41 }
 0x2d8   : > { %v4964_v59 = vpop.f32.mrb[43].mxu0 }
 0x2d9   : > { %v4965_v37 = vadd.f32 %v4964_v59, %v4963_v27  ;;  %v8850_v44 = vadd.f32 %v4915_v8, %v8325_v57 }
 0x2dc   : > { %v5062_v3 = vpop.f32.mrb[0].mxu1 }
 0x2dd   : > { %v5125_v28 = vadd.f32 %v8327_v1, %v5062_v3  ;;  %v2543_v21 = vpop.f32.mrb[1].mxu1 }
 0x2de   : > { %v5129_v50 = vadd.f32 %v8330_v32, %v2543_v21  ;;  %v5063_v19 = vpop.f32.mrb[2].mxu1 }
 0x2df   : > { %v5133_v35 = vadd.f32 %v8332_v47, %v5063_v19  ;;  %v2546_v53 = vpop.f32.mrb[3].mxu1  ;;  %v8855_v60 = vadd.f32 %v5125_v28, %v4956_v30 }
 0x2e0   : > { %v5137_v40 = vadd.f32 %v8364_v9, %v2546_v53  ;;  %v8858_v33 = vadd.f32 %v5129_v50, %v4950_v13 }
 0x2e1   : > { %v8860_v48 = vadd.f32 %v5133_v35, %v4959_v31 }
 0x2e2   : > { %v8862_v57 = vadd.f32 %v5137_v40, %v4953_v17 }
 0x2e3   : > { %v4966_v5 = vpop.f32.mrb[44].mxu0 }
 0x2e4   : > { %v4967_v45 = vpop.f32.mrb[45].mxu0 }
 0x2e5   : > { %v4968_v1 = vadd.f32 %v4967_v45, %v4966_v5  ;;  %v4969_v39 = vpop.f32.mrb[46].mxu0 }
 0x2e6   : > { %v4970_v62 = vpop.f32.mrb[47].mxu0 }
 0x2e7   : > { %v4971_v32 = vadd.f32 %v4970_v62, %v4969_v39 }
 0x2ec   : > { %v5066_v2 = vpop.f32.mrb[4].mxu1 }
 0x2ed   : > { %v5141_v47 = vadd.f32 %v8735_v4, %v5066_v2  ;;  %v2559_v56 = vpop.f32.mrb[5].mxu1 }
 0x2ee   : > { %v5145_v30 = vadd.f32 %v8588_v12, %v2559_v56  ;;  %v5067_v61 = vpop.f32.mrb[6].mxu1 }
 0x2ef   : > { %v5149_v9 = vadd.f32 %v8760_v43, %v5067_v61  ;;  %v2562_v13 = vpop.f32.mrb[7].mxu1  ;;  %v8867_v31 = vadd.f32 %v5141_v47, %v4968_v1 }
 0x2f0   : > { %v5153_v17 = vadd.f32 %v8627_v25, %v2562_v13  ;;  %v8870_v58 = vadd.f32 %v5145_v30, %v4962_v54 }
 0x2f1   : > { %v8872_v41 = vadd.f32 %v5149_v9, %v4971_v32 }
 0x2f2   : > { %v8874_v10 = vadd.f32 %v5153_v17, %v4965_v37 }
 0x2f9   : > { %v4972_v23 = vpop.f32.mrb[48].mxu0 }
 0x2fa   : > { %v4973_v27 = vpop.f32.mrb[49].mxu0 }
 0x2fb   : > { %v4974_v4 = vadd.f32 %v4973_v27, %v4972_v23  ;;  %v4975_v8 = vpop.f32.mrb[50].mxu0 }
 0x2fc   : > { %v4976_v59 = vpop.f32.mrb[51].mxu0 }
 0x2fd   : > { %v4977_v12 = vadd.f32 %v4976_v59, %v4975_v8  ;;  %v5160_v3 = vadd.f32 %v8549_v63, %v4974_v4 }
 0x2ff   : > { %v5166_v43 = vadd.f32 %v8584_v49, %v4977_v12 }
 0x308   : > { %v4978_v28 = vpop.f32.mrb[52].mxu0 }
 0x309   : > { %v4979_v21 = vpop.f32.mrb[53].mxu0 }
 0x30a   : > { %v4980_v50 = vadd.f32 %v4979_v21, %v4978_v28  ;;  %v4981_v25 = vpop.f32.mrb[54].mxu0 }
 0x30b   : > { %v4982_v54 = vpop.f32.mrb[55].mxu0 }
 0x30c   : > { %v4983_v19 = vadd.f32 %v4982_v54, %v4981_v25  ;;  %v5157_v35 = vadd.f32 %v8835_v46, %v4980_v50 }
 0x30e   : > { %v5163_v37 = vadd.f32 %v8838_v52, %v4983_v19 }
 0x314   : > { %v5102_v53 = vpop.f32.mrb[8].mxu1 }
 0x315   : > { %v8880_v40 = vadd.f32 %v5157_v35, %v5102_v53  ;;  %v3690_v5 = vpop.f32.mrb[9].mxu1 }
 0x316   : > { %v8882_v45 = vadd.f32 %v5160_v3, %v3690_v5  ;;  %v5103_v1 = vpop.f32.mrb[10].mxu1 }
 0x317   : > { %v8884_v63 = vadd.f32 %v5163_v37, %v5103_v1  ;;  %v3693_v49 = vpop.f32.mrb[11].mxu1  ;;  %v4984_v39 = vpop.f32.mrb[56].mxu0  ;;  %v8891_v46 = vsel %vm8772_vm11, %v8880_v40, 0.0 }
 0x318   : > { %v8886_v62 = vadd.f32 %v5166_v43, %v3693_v49  ;;  %v4985_v32 = vpop.f32.mrb[57].mxu0  ;;  %v8901_v56 = vsel %vm9742_vm15, %v8882_v45, 0.0 }
 0x319   : > { %v8896_v52 = vsel %vm8782_vm2, %v8884_v63, 0.0  ;;  %v4986_v2 = vadd.f32 %v4985_v32, %v4984_v39  ;;  %v4987_v47 = vpop.f32.mrb[58].mxu0 }
 0x31a   : > { %v4729_v30 = vpack.c.bf16 %v8896_v52, %v8891_v46  ;;  %v8908_v61 = vsel %vm9743_vm3, %v8886_v62, 0.0  ;;  %v4988_v9 = vpop.f32.mrb[59].mxu0 }
 0x31b   : > { %v4724_v13 = vpack.c.bf16 %v8908_v61, %v8901_v56  ;;  %v4989_v17 = vadd.f32 %v4988_v9, %v4987_v47  ;;  %v5172_v23 = vadd.f32 %v8841_v24, %v4986_v2 }
 0x31c   : > { %4769 = vst [vmem:[%s6036_s14 + $0x28] sm:$0xff] %v4729_v30  }
 0x31d   : > { %4768 = vst [vmem:[%s6036_s14 + $0x20] sm:$0xff] %v4724_v13   ;;  %v5178_v27 = vadd.f32 %v8844_v0, %v4989_v17 }
 0x31f   : > { %v4990_v4 = vpop.f32.mrb[60].mxu0 }
 0x320   : > { %v4991_v8 = vpop.f32.mrb[61].mxu0 }
 0x321   : > { %v5106_v59 = vpop.f32.mrb[12].mxu1  ;;  %v4992_v12 = vadd.f32 %v4991_v8, %v4990_v4  ;;  %v4993_v3 = vpop.f32.mrb[62].mxu0 }
 0x322   : > { %v3706_v43 = vpop.f32.mrb[13].mxu1  ;;  %v4994_v28 = vpop.f32.mrb[63].mxu0 }
 0x323   : > { %v8916_v21 = vadd.f32 %v5172_v23, %v3706_v43  ;;  %v5107_v50 = vpop.f32.mrb[14].mxu1  ;;  %v4995_v25 = vadd.f32 %v4994_v28, %v4993_v3  ;;  %v5169_v54 = vadd.f32 %v8847_v51, %v4992_v12 }
 0x324   : > { %v3709_v19 = vpop.f32.mrb[15].mxu1 }
 0x325   : > { %v8919_v35 = vadd.f32 %v5178_v27, %v3709_v19  ;;  %v8921_v24 = vadd.f32 %v5169_v54, %v5106_v59  ;;  %v5175_v0 = vadd.f32 %v8850_v44, %v4995_v25  ;;  %v4006_v37 = vsel %vm8792_vm4, %v8916_v21, 0.0 }
 0x327   : > { %v4007_v53 = vsel %vm8802_vm9, %v8919_v35, 0.0  ;;  %v5094_v5 = vpop.f32.mrb[64].mxu0  ;;  %v8930_v1 = vadd.f32 %v5175_v0, %v5107_v50  ;;  %v4008_v2 = vsel %vm8812_vm6, %v8921_v24, 0.0 }
 0x328   : > { %v4734_v51 = vpack.c.bf16 %v4007_v53, %v4006_v37  ;;  %v8933_v49 = vadd.f32 %v8855_v60, %v5094_v5  ;;  %v3658_v39 = vpop.f32.mrb[65].mxu0 }
 0x329   : > { %v8936_v32 = vadd.f32 %v8858_v33, %v3658_v39  ;;  %v5095_v44 = vpop.f32.mrb[66].mxu0  ;;  %v4009_v47 = vsel %vm8820_vm5, %v8930_v1, 0.0 }
 0x32a   : > { %4770 = vst [vmem:[%s6036_s14 + $0x30] sm:$0xff] %v4734_v51   ;;  %v8946_v30 = vadd.f32 %v8860_v48, %v5095_v44  ;;  %v3661_v60 = vpop.f32.mrb[67].mxu0  ;;  %v4739_v9 = vpack.c.bf16 %v4009_v47, %v4008_v2  ;;  %v3996_v13 = vsel %vm9744_vm14, %v8933_v49, 0.0 }
 0x32b   : > { %v8949_v33 = vadd.f32 %v8862_v57, %v3661_v60  ;;  %v3994_v23 = vsel %vm9746_vm1, %v8936_v32, 0.0 }
 0x32c   : > { %v3997_v17 = vsel %vm9745_vm13, %v8946_v30, 0.0  ;;  %4771 = vst [vmem:[%s6036_s14 + $0x38] sm:$0xff] %v4739_v9  }
 0x32d   : > { %v4709_v48 = vpack.c.bf16 %v3997_v17, %v3996_v13  ;;  %v3995_v27 = vsel %vm9747_vm8, %v8949_v33, 0.0 }
 0x32e   : > { %v4704_v57 = vpack.c.bf16 %v3995_v27, %v3994_v23  ;;  %v4148_v4 = vadd.f32 %v3995_v27, %v3994_v23 }
 0x32f   : > { %4765 = vst [vmem:[%s6036_s14 + $0x8] sm:$0xff] %v4709_v48   ;;  %v5098_v8 = vpop.f32.mrb[68].mxu0 }
 0x330   : > { %4705 = vst [vmem:[%s6036_s14] sm:$0xff] %v4704_v57   ;;  %v4149_v59 = vadd.f32 %v4148_v4, %v3996_v13  ;;  %v8967_v12 = vadd.f32 %v8867_v31, %v5098_v8  ;;  %v3674_v3 = vpop.f32.mrb[69].mxu0 }
 0x331   : > { %v5147_v43 = vadd.f32 %v8870_v58, %v3674_v3  ;;  %v5099_v28 = vpop.f32.mrb[70].mxu0 }
 0x332   : > { %v4150_v50 = vadd.f32 %v4149_v59, %v3997_v17  ;;  %v8971_v25 = vadd.f32 %v8872_v41, %v5099_v28  ;;  %v3677_v54 = vpop.f32.mrb[71].mxu0  ;;  %v4000_v31 = vsel %vm9749_vm10, %v8967_v12, 0.0 }
 0x333   : > { %v3998_v19 = vsel %vm9748_vm12, %v5147_v43, 0.0  ;;  %v5155_v0 = vadd.f32 %v8874_v10, %v3677_v54 }
 0x334   : > { %v4151_v5 = vadd.f32 %v4150_v50, %v3998_v19  ;;  %v4001_v58 = vsel %vm9750_vm0, %v8971_v25, 0.0 }
 0x335   : > { %v4719_v51 = vpack.c.bf16 %v4001_v58, %v4000_v31  ;;  %v3999_v41 = vsel %vm9751_vm7, %v5155_v0, 0.0 }
 0x336   : > { %v4714_v39 = vpack.c.bf16 %v3999_v41, %v3998_v19  ;;  %v4152_v44 = vadd.f32 %v4151_v5, %v3999_v41 }
 0x337   : > { %4767 = vst [vmem:[%s6036_s14 + $0x18] sm:$0xff] %v4719_v51  }
 0x338   : > { %4766 = vst [vmem:[%s6036_s14 + $0x10] sm:$0xff] %v4714_v39   ;;  %v4153_v60 = vadd.f32 %v4152_v44, %v4000_v31 }
 0x33a   : > { %v4154_v9 = vadd.f32 %v4153_v60, %v4001_v58 }
 0x33c   : > { %v4155_v17 = vadd.f32 %v4154_v9, %v8901_v56 }
 0x33e   : > { %v4139_v10 = vpop.xlane.xlu0 %4138  ;;  %v4156_v48 = vadd.f32 %v4155_v17, %v8908_v61 }
 0x33f   : > { %v4140_v13 = vrot.slane %v4139_v10, 4 }
 0x340   : > { %v4157_v57 = vadd.f32 %v4156_v48, %v8891_v46 }
 0x341   : > { %v4141_v23 = vadd.f32 %v4140_v13, %v4139_v10 }
 0x342   : > { %v4158_v8 = vadd.f32 %v4157_v57, %v8896_v52 }
 0x343   : > { %v4142_v27 = vrot.slane %v4141_v23, 2 }
 0x344   : > { %v4159_v3 = vadd.f32 %v4158_v8, %v4006_v37 }
 0x345   : > { %v4143_v4 = vadd.f32 %v4142_v27, %v4141_v23 }
 0x346   : > { %v4160_v50 = vadd.f32 %v4159_v3, %v4007_v53 }
 0x347   : > { %v4144_v59 = vrot.slane %v4143_v4, 1 }
 0x348   : > { %v4161_v54 = vadd.f32 %v4160_v50, %v4008_v2 }
 0x349   : > { %v4145_v28 = vadd.f32 %v4144_v59, %v4143_v4 }
 0x34a   : > { %v4162_v19 = vadd.f32 %v4161_v54, %v4009_v47 }
 0x34b   : > { %5207 = vpush %v4145_v28 }
 0x34c   : > { %v4163_v31 = vrot.slane %v4162_v19, 4 }
 0x34e   : > { %v4164_v5 = vadd.f32 %v4163_v31, %v4162_v19 }
 0x350   : > { %v4165_v58 = vrot.slane %v4164_v5, 2 }
 0x352   : > { %v4166_v61 = vadd.f32 %v4165_v58, %v4164_v5 }
 0x354   : > { %v4167_v52 = vrot.slane %v4166_v61, 1 }
 0x356   : > { %v8995_v51 = vadd.f32 %v4167_v52, %v4166_v61 }
 0x37c   : > { %s8990_s13 = spop %5207 }
 0x37d   : > { %v4147_v56 = vstv %s8990_s13 }
 0x37e   : > { %v4169_v46 = vmax.f32 %v4147_v56, 1.0 }
 0x380   : > { %5428 = vrcp.f32 %v4169_v46 }
 0x38a   : > { %v5429_v37 = vpop.eup %5428 }
 0x38b   : > { %v4171_v53 = vmul.f32 %v5429_v37, %v8995_v51 }
 0x38d   : > { %v4172_v2 = vsub.f32 %v8936_v32, %v4171_v53  ;;  %v4173_v47 = vsub.f32 %v8949_v33, %v4171_v53  ;;  %v4174_v41 = vsub.f32 %v8933_v49, %v4171_v53  ;;  %v4175_v60 = vsub.f32 %v8946_v30, %v4171_v53 }
 0x38e   : > { %v4176_v13 = vsub.f32 %v5147_v43, %v4171_v53  ;;  %v4177_v23 = vsub.f32 %v5155_v0, %v4171_v53  ;;  %v4178_v14 = vsub.f32 %v8967_v12, %v4171_v53  ;;  %v4179_v30 = vsub.f32 %v8971_v25, %v4171_v53 }
 0x38f   : > { %v4188_v39 = vsel %vm9746_vm1, %v4172_v2, 0.0  ;;  %v4189_v44 = vsel %vm9747_vm8, %v4173_v47, 0.0  ;;  %v4190_v17 = vsel %vm9744_vm14, %v4174_v41, 0.0  ;;  %v4191_v32 = vsel %vm9745_vm13, %v4175_v60, 0.0 }
 0x390   : > { %v4204_v9 = vmul.f32 %v4188_v39, %v4188_v39  ;;  %v4205_v10 = vmul.f32 %v4189_v44, %v4189_v44  ;;  %v4206_v33 = vmul.f32 %v4190_v17, %v4190_v17  ;;  %v4192_v36 = vsel %vm9748_vm12, %v4176_v13, 0.0  ;;  %v9752_v13 = vld [vmem:[#allocation22_spill] sm:$0xff] }
 0x391   : > { %v4207_v48 = vmul.f32 %v4191_v32, %v4191_v32  ;;  %v4193_v43 = vsel %vm9751_vm7, %v4177_v23, 0.0  ;;  %v4208_v15 = vmul.f32 %v4192_v36, %v4192_v36  ;;  %v4180_v0 = vsub.f32 %v8882_v45, %v4171_v53 }
 0x392   : > { %v4220_v49 = vadd.f32 %v4205_v10, %v4204_v9  ;;  %v4194_v18 = vsel %vm9749_vm10, %v4178_v14, 0.0  ;;  %v4209_v4 = vmul.f32 %v4193_v43, %v4193_v43  ;;  %v4181_v12 = vsub.f32 %v8886_v62, %v4171_v53 }
 0x393   : > { %v4195_v22 = vsel %vm9750_vm0, %v4179_v30, 0.0  ;;  %v4210_v59 = vmul.f32 %v4194_v18, %v4194_v18  ;;  %v4182_v25 = vsub.f32 %v8880_v40, %v4171_v53  ;;  %v4196_v7 = vsel %vm9742_vm15, %v4180_v0, 0.0 }
 0x394   : > { %v4221_v27 = vadd.f32 %v4220_v49, %v4206_v33  ;;  %v4211_v28 = vmul.f32 %v4195_v22, %v4195_v22  ;;  %v4183_v45 = vsub.f32 %v8884_v63, %v4171_v53  ;;  %v4197_v38 = vsel %vm9743_vm3, %v4181_v12, 0.0 }
 0x395   : > { %v4212_v54 = vmul.f32 %v4196_v7, %v4196_v7  ;;  %v4184_v62 = vsub.f32 %v8916_v21, %v4171_v53  ;;  %v4198_v29 = vsel %vm8772_vm11, %v4182_v25, 0.0  ;;  %v4213_v31 = vmul.f32 %v4197_v38, %v4197_v38 }
 0x396   : > { %v4222_v57 = vadd.f32 %v4221_v27, %v4207_v48  ;;  %v4185_v40 = vsub.f32 %v8919_v35, %v4171_v53  ;;  %v4199_v20 = vsel %vm8782_vm2, %v4183_v45, 0.0  ;;  %v4214_v58 = vmul.f32 %v4198_v29, %v4198_v29 }
 0x397   : > { %v4186_v63 = vsub.f32 %v8921_v24, %v4171_v53  ;;  %v4200_v34 = vsel %vm8792_vm4, %v4184_v62, 0.0  ;;  %v4215_v61 = vmul.f32 %v4199_v20, %v4199_v20  ;;  %v4187_v21 = vsub.f32 %v8930_v1, %v4171_v53 }
 0x398   : > { %v4223_v8 = vadd.f32 %v4222_v57, %v4208_v15  ;;  %v4201_v16 = vsel %vm8802_vm9, %v4185_v40, 0.0  ;;  %v4216_v37 = vmul.f32 %v4200_v34, %v4200_v34  ;;  %vm4243_vm2 = vcmp.eq.s32.totalorder %v9752_v13, 2 }
 0x399   : > { %v4202_v26 = vsel %vm8812_vm6, %v4186_v63, 0.0  ;;  %v4217_v35 = vmul.f32 %v4201_v16, %v4201_v16  ;;  %v4203_v24 = vsel %vm8820_vm5, %v4187_v21, 0.0  ;;  %vm4242_vm11 = vcmp.eq.s32.totalorder %v9752_v13, 1 }
 0x39a   : > { %v4224_v3 = vadd.f32 %v4223_v8, %v4209_v4  ;;  %v4218_v55 = vmul.f32 %v4202_v26, %v4202_v26  ;;  %v4219_v39 = vmul.f32 %v4203_v24, %v4203_v24  ;;  %vm4241_vm4 = vcmp.eq.s32.totalorder %v9752_v13, 0 }
 0x39b   : > { %v4244_v11 = vsel %vm4243_vm2, %v4147_v56, 0.0 }
 0x39c   : > { %v4225_v50 = vadd.f32 %v4224_v3, %v4210_v59 }
 0x39e   : > { %v4226_v19 = vadd.f32 %v4225_v50, %v4211_v28 }
 0x3a0   : > { %v4227_v5 = vadd.f32 %v4226_v19, %v4212_v54 }
 0x3a2   : > { %v4228_v46 = vadd.f32 %v4227_v5, %v4213_v31 }
 0x3a4   : > { %v4229_v52 = vadd.f32 %v4228_v46, %v4214_v58 }
 0x3a6   : > { %v4230_v2 = vadd.f32 %v4229_v52, %v4215_v61 }
 0x3a8   : > { %v4231_v47 = vadd.f32 %v4230_v2, %v4216_v37 }
 0x3aa   : > { %v4232_v41 = vadd.f32 %v4231_v47, %v4217_v35 }
 0x3ac   : > { %v4233_v44 = vadd.f32 %v4232_v41, %v4218_v55 }
 0x3ae   : > { %v4234_v1 = vadd.f32 %v4233_v44, %v4219_v39 }
 0x3b0   : > { %v4235_v53 = vrot.slane %v4234_v1, 4 }
 0x3b2   : > { %v4236_v42 = vadd.f32 %v4235_v53, %v4234_v1 }
 0x3b4   : > { %v4237_v60 = vrot.slane %v4236_v42, 2 }
 0x3b6   : > { %v4238_v9 = vadd.f32 %v4237_v60, %v4236_v42 }
 0x3b8   : > { %v4239_v10 = vrot.slane %v4238_v9, 1 }
 0x3ba   : > { %v4240_v6 = vadd.f32 %v4239_v10, %v4238_v9 }
 0x3bc   : > { %v4247_v17 = vsel %vm4242_vm11, %v4240_v6, %v4244_v11 }
 0x3bd   : > { %v4250_v23 = vsel %vm4241_vm4, %v8995_v51, %v4247_v17 }
 0x3be   : > { %4251 = vst [vmem:[%s6038_s30] sm:$0xff] %v4250_v23 }
 0x3bf PF: > { %s9753_s10 = sld [smem:[#allocation19_spill]]  ;;  %s9754_s1 = sld [smem:[#allocation20_spill]] }
 0x3c0   : > { %s4572_s15 = sshll.u32 %s5697_s24, 4  ;;  %s4273_s17 = sshll.u32 %s6036_s14, 4  ;;  %s9054_s17 = int_to_ptr.vmem [resolvable:$true] %s4273_s17 }
 0x3c1   : > { %s9755_s12 = sld [smem:[#allocation49_spill]]  ;;  %s4253_s7 = scalar_lea.sflag [#allocation4], %s6026_s2 }
 0x3c2   : > { %s5551_s13 = scalar_lea.vmem %s9054_s17, 1024  ;;  %s5724_s14 = smov [#allocation10]  }
 0x3c3   : > { %p5552_p5 = scmp.ne.s32.totalorder %s9054_s17, %s5551_s13  ;;  %s5555_s0 = sshll.u32 %s5724_s14, 4  ;;  %s5556_s0 = int_to_ptr.vmem [resolvable:$false] %s5555_s0 }
 0x3c4   : > { %s5557_s3 = scalar_lea.vmem %s5556_s0, 2048  ;;  %p5558_p12 = scmp.lt.s32.totalorder %s9054_s17, %s5556_s0 }
 0x3c5   : > { %s5209_s21 = smul.u32 96, %s9753_s10  ;;  %p9756_p13 = scmp.ne.s32.totalorder %s9754_s1, 0 }
 0x3c6   : > { %s5210_s25 = smul.u32 6, %s9753_s10  ;;  %p5559_p4 = scmp.lt.s32.totalorder %s5557_s3, %s5551_s13 }
 0x3c7   : > { %s4270_s8 = sadd.s32 %s5209_s21, %s4572_s15  ;;  %p5553_p6 = pnand %p5552_p5, %p9756_p13 }
 0x3c8   : > { %s4573_s11 = sshll.u32 %s4270_s8, 6  ;;  %p5560_p7 = por %p5559_p4, %p5558_p12 }
 0x3c9   : > { %s9059_s16 = scalar_lea.hbm %s9755_s12, %s4573_s11  ;;  %p5554_p8 = pneg %p5553_p6 }
 0x3cb   : > { %p5561_p3 = pnand %p5560_p7, %p5554_p8 }
 0x3cd   : > { %5564 = shalt.err (!%p5561_p3)
}
 0x3ce   : > { %s5565_s15 = scalar_lea.hbm %s9059_s16, 1024  ;;  %s5569_s11 = scalar_lea.hbm %s9755_s12, 12288 }
 0x3cf   : > { %p5566_p0 = scmp.ne.s32.totalorder %s9059_s16, %s5565_s15  ;;  %p5570_p10 = scmp.lt.u32.totalorder %s9059_s16, %s9755_s12 }
 0x3d0   : > { %p5571_p2 = scmp.lt.u32.totalorder %s5569_s11, %s5565_s15  ;;  %p5573_p5 = scmp.lt.u32.totalorder %s5565_s15, %s9059_s16 }
 0x3d1   : > { %p5567_p1 = pnand %p5566_p0, %p9756_p13 }
 0x3d2   : > { %p5572_p9 = por %p5571_p2, %p5570_p10 }
 0x3d3   : > { %p5568_p11 = pneg %p5567_p1 }
 0x3d4   : > { %p5574_p6 = por %p5573_p5, %p5572_p9 }
 0x3d6   : > { %p5575_p8 = pnand %p5574_p6, %p5568_p11 }
 0x3d8   : > { %5578 = shalt.err (!%p5575_p8)
}
 0x3d9   : > { %s5725_s3 = smov 64   ;;  %s5726_s6 = smov 4  }
 0x3da   : > { %5225 = dma.vmem_to_hbm [thread:$0]  (%p9756_p13), %s9054_s17, 1024, %s9059_s16, %s4253_s7, %s5725_s3, %s5725_s3, %s5726_s6  }
 0x3db   : > { %s4287_s13 = sadd.s32 %s5697_s24, %s5210_s25  ;;  %s4291_s14 = sshll.u32 %s6038_s30, 4  ;;  %s9090_s14 = int_to_ptr.vmem [resolvable:$true] %s4291_s14 }
 0x3dc   : > { %s4574_s15 = sshll.u32 %s4287_s13, 7  ;;  %s9757_s11 = sld [smem:[#allocation50_spill]] }
 0x3dd   : > { %s4258_s0 = scalar_lea.sflag [#allocation12], %s6026_s2  ;;  %s5579_s12 = scalar_lea.vmem %s9090_s14, 128 }
 0x3de   : > { %p5580_p12 = scmp.ne.s32.totalorder %s9090_s14, %s5579_s12  ;;  %s5727_s17 = smov [#allocation11]  }
 0x3df   : > { %s5583_s10 = sshll.u32 %s5727_s17, 4  ;;  %s5584_s10 = int_to_ptr.vmem [resolvable:$false] %s5583_s10 }
 0x3e0   : > { %p5581_p4 = pnand %p5580_p12, %p9756_p13  ;;  %s5585_s24 = scalar_lea.vmem %s5584_s10, 256 }
 0x3e1   : > { %p5586_p3 = scmp.lt.s32.totalorder %s9090_s14, %s5584_s10  ;;  %p5587_p0 = scmp.lt.s32.totalorder %s5585_s24, %s5579_s12 }
 0x3e2   : > { %s4289_s29 = scalar_lea.hbm %s9757_s11, %s4574_s15  ;;  %p5582_p7 = pneg %p5581_p4 }
 0x3e3   : > { %p5588_p1 = por %p5587_p0, %p5586_p3 }
 0x3e5   : > { %p5589_p11 = pnand %p5588_p1, %p5582_p7 }
 0x3e7   : > { %5592 = shalt.err (!%p5589_p11)
}
 0x3e8   : > { %s5593_s30 = scalar_lea.hbm %s4289_s29, 128  ;;  %s5597_s25 = scalar_lea.hbm %s9757_s11, 1536 }
 0x3e9   : > { %p5594_p10 = scmp.ne.s32.totalorder %s4289_s29, %s5593_s30  ;;  %p5598_p5 = scmp.lt.u32.totalorder %s4289_s29, %s9757_s11 }
 0x3ea   : > { %p5599_p6 = scmp.lt.u32.totalorder %s5597_s25, %s5593_s30  ;;  %p5601_p12 = scmp.lt.u32.totalorder %s5593_s30, %s4289_s29 }
 0x3eb   : > { %p5595_p2 = pnand %p5594_p10, %p9756_p13 }
 0x3ec   : > { %p5600_p8 = por %p5599_p6, %p5598_p5 }
 0x3ed   : > { %p5596_p9 = pneg %p5595_p2 }
 0x3ee   : > { %p5602_p4 = por %p5601_p12, %p5600_p8 }
 0x3f0   : > { %p5603_p7 = pnand %p5602_p4, %p5596_p9 }
 0x3f2   : > { %5606 = shalt.err (!%p5603_p7)
}
 0x3f3   : > { %5226 = dma.vmem_to_hbm [thread:$0]  (%p9756_p13), %s9090_s14, 128, %s4289_s29, %s4258_s0  }
 0x3f4 PF: > { %s9758_s12 = sld [smem:[#allocation18_spill]]  ;;  %s9759_s6 = sld [smem:[#allocation21_spill]] }
 0x3f5   : > { %p5257_p3 = scmp.ge.s32.totalorder %s5713_s28, 2 }
 0x3fa   : > { %s4303_s13 = sand.u32 1, %s9758_s12   ;;  %p9760_p0 = scmp.ne.s32.totalorder %s9759_s6, 0 }
 0x3fb   : > { %s4304_s15 = scalar_lea.sflag [#allocation4], %s4303_s13 }
 0x3fc   : > { %p5244_p1 = pnand %p5257_p3, %p9760_p0 }
 0x3fe   : > { %5664 = dma.done.wait (!%p5244_p1), %s4304_s15, 1024  }
 0x3ff   : > { %5666 = vsyncadd (!%p5244_p1), %s4304_s15, 4294966272  ;;  %s4313_s21 = scalar_lea.sflag [#allocation12], %s4303_s13 }
 0x400   : > { %5668 = dma.done.wait (!%p5244_p1), %s4313_s21, 128  }
 0x401   : > { %5670 = vsyncadd (!%p5244_p1), %s4313_s21, 4294967168  ;;  %s27_s28 = sadd.s32 1, %s5713_s28   ;;  %s9761_s1 = smov %s9773_s18 }
 0x402   : > { %p24_p11 = scmp.ge.s32.totalorder %s27_s28, 14   ;;  %s9762_s18 = smov %s5677_s19 }
 0x403   : > { %s9763_s19 = smov %s5681_s20  ;;  %s9764_s20 = smov %s5960_s5 }
 0x404   : > { %s9765_s21 = smov %s5689_s22  ;;  %s9766_s22 = smov %s5693_s23 }
 0x405   : > { %s9767_s23 = smov %s5955_s4  ;;  %s9768_s24 = smov %s5705_s26 }
 0x406   : > { %s9769_s25 = smov %s5709_s27  ;;  %s9770_s26 = smov %s9761_s1 }
 0x407   : > { %s9771_s27 = smov %s9777_s9  ;;  %26 = sbr.rel (!%p24_p11) target bundleno = 20 (0x14), region = 123 }
 0x40e   :  { %4318 = vsyncpa [#allocation3], 1 }
 0x40f   :  { %4320 = vsyncpa [#allocation3 + $0x1], 1 }
 0x410   :  { %4321 = vsyncpa [#allocation6], 1 }
 0x411   :  { %4322 = vsyncpa [#allocation9], 1 }
 0x412   :  { %4323 = vsyncpa [#allocation4], 1 }
 0x413   :  { %4325 = vsyncpa [#allocation4 + $0x1], 1 }
 0x414   :  { %4326 = vsyncpa [#allocation12], 1 }
 0x415   :  { %4328 = vsyncpa [#allocation12 + $0x1], 1 }

</bundles_post_ra>
